<compile_context>
chip_gen: v7x
topology: tpu7x:2x2x1
jax: 0.10.0
libtpu: 0.0.40
codegen_flags: <defaults>
</compile_context>

<pallas_src>
import functools

import jax
import jax.numpy as jnp
from jax.experimental import pallas as pl
from jax.experimental.pallas import tpu as pltpu

# ----- SRCNN hyper-parameters (the k_i / P_i constants from the source) -----
K1, P1 = 9, 4
K2, P2 = 1, 0
K3, P3 = 5, 2

C1, C2 = 64, 32        # conv1 / conv2 output channels


def _fused_srcnn_kernel(x81_ref, w1_ref, b1_ref, w2_ref, b2_ref, w3_ref, b3_ref,
                        o_ref, h2_ref, *, H, W, TH):
    """One (batch, row-tile) step of conv1+ReLU -> conv2(1x1)+ReLU -> conv3.

    x81_ref: (1, Hrows, W, 81) bf16   im2col'ed, zero-padded 1-channel input
    w1_ref : (81, C1)  bf16           conv1 weight, taps flattened (kh*9 + kw)
    b1_ref : (1, 1, C1) f32
    w2_ref : (C1, C2)  bf16           1x1 conv == channel matmul
    b2_ref : (1, 1, C2) f32
    w3_ref : (K3, K3, C2, 1) f32      conv3 weight (used on the VPU)
    b3_ref : (1, 1) f32
    o_ref  : (1, TH, W)               lane-dense output row tile
    h2_ref : (TH+2*P3, C2, W+2*P3) f32 scratch: channels on sublane, W on lane
    """
    r = pl.program_id(1)
    row0 = r * TH
    th1 = TH + 2 * P3

    # ---- conv1: a single K=81 MXU matmul (bf16 operands, f32 accumulation) --
    xk = x81_ref[0, pl.ds(row0, th1), :, :]                   # (th1, W, 81)
    h1 = jnp.einsum("hwk,kc->hwc", xk, w1_ref[...],
                    preferred_element_type=jnp.float32)       # (th1, W, C1)
    h1 = jnp.maximum(h1 + b1_ref[...], 0.0)                   # bias + ReLU (f32)

    # ---- conv2 (1x1): one K=C1 channel matmul --------------------------------
    h2 = jnp.einsum("hwc,cd->hwd", h1.astype(jnp.bfloat16), w2_ref[...],
                    preferred_element_type=jnp.float32)       # (th1, W, C2)
    h2 = jnp.maximum(h2 + b2_ref[...], 0.0)

    # Rows outside the image must read as zero (conv3's zero padding in H).
    grow = (row0 - P3) + jax.lax.broadcasted_iota(jnp.int32, (th1, 1, 1), 0)
    h2 = jnp.where((grow >= 0) & (grow < H), h2, 0.0)

    # ---- stage channels-on-sublane / W-on-lane; zero only the side strips ----
    h2_ref[:, :, 0:P3] = jnp.zeros((th1, C2, P3), jnp.float32)
    h2_ref[:, :, P3 + W:P3 + W + P3] = jnp.zeros((th1, C2, P3), jnp.float32)
    h2_ref[:, :, P3:P3 + W] = jnp.transpose(h2, (0, 2, 1))    # (th1, C2, W)

    # ---- conv3 on the VPU: 25 broadcast MACs + one 32-way channel reduction --
    w3 = w3_ref[...]                                          # (K3, K3, C2, 1)
    acc = jnp.zeros((TH, C2, W), jnp.float32)
    for kh in range(K3):
        for kw in range(K3):
            acc = acc + h2_ref[kh:kh + TH, :, kw:kw + W] * w3[kh, kw]
    out = jnp.sum(acc, axis=1) + b3_ref[...]                  # (TH, W) lane-dense
    o_ref[0] = out.astype(o_ref.dtype)


def _round_up(n, m):
    return -(-n // m) * m


def _vmem_limit_bytes():
    cap = None
    try:
        cap = int(pltpu.get_tpu_info().vmem_capacity_bytes)
    except Exception:
        cap = None
    if not cap:
        cap = 64 * 1024 * 1024
    return int(min(cap * 2 // 3, 100 * 1024 * 1024))


def srcnn_forward(params, x_nchw, *, tile_rows=64):
    """x_nchw: (B, 1, H, W) float32  ->  (B, 1, H, W) float32."""
    B, cin, H, W = x_nchw.shape
    assert cin == 1, "SRCNN takes a single-channel input"

    TH = _round_up(max(8, min(tile_rows, _round_up(H, 8))), 8)
    Hpad = _round_up(H, TH)                 # pad rows so every tile is full-size
    n_row_tiles = Hpad // TH
    th1 = TH + 2 * P3
    Hrows = Hpad + 2 * P3                   # im2col rows needed (conv3 row halo)

    # Zero-pad the tiny 1-channel input, then im2col all 81 conv1 taps so the
    # kernel's conv1 is a single K=81 contraction (this runs once, in XLA, on
    # the smallest tensor of the network; cast to bf16 for the MXU).
    x2 = x_nchw[:, 0, :, :]                                             # (B,H,W)
    xp = jnp.pad(x2, ((0, 0), (P1 + P3, P1 + P3 + Hpad - H), (P1, P1)))
    cols = [xp[:, kh:kh + Hrows, kw:kw + W]
            for kh in range(K1) for kw in range(K1)]
    x81 = jnp.stack(cols, axis=-1).astype(jnp.bfloat16)        # (B,Hrows,W,81)

    w1 = params["w1"].reshape(K1 * K1, C1).astype(jnp.bfloat16)
    b1 = params["b1"].reshape(1, 1, C1).astype(jnp.float32)
    w2 = params["w2"].reshape(C1, C2).astype(jnp.bfloat16)
    b2 = params["b2"].reshape(1, 1, C2).astype(jnp.float32)
    w3 = params["w3"].astype(jnp.float32)                      # (K3,K3,C2,1)
    b3 = params["b3"].reshape(1, 1).astype(jnp.float32)

    kernel = functools.partial(_fused_srcnn_kernel, H=H, W=W, TH=TH)

    out = pl.pallas_call(
        kernel,
        out_shape=jax.ShapeDtypeStruct((B, Hpad, W), x_nchw.dtype),
        grid_spec=pltpu.PrefetchScalarGridSpec(
            num_scalar_prefetch=0,
            grid=(B, n_row_tiles),
            in_specs=[
                # Whole im2col'ed image of batch b stays VMEM-resident across
                # its row tiles (block index ignores r -> one DMA per batch).
                pl.BlockSpec((1, Hrows, W, K1 * K1), lambda b, r: (b, 0, 0, 0)),
                pl.BlockSpec((K1 * K1, C1), lambda b, r: (0, 0)),
                pl.BlockSpec((1, 1, C1), lambda b, r: (0, 0, 0)),
                pl.BlockSpec((C1, C2), lambda b, r: (0, 0)),
                pl.BlockSpec((1, 1, C2), lambda b, r: (0, 0, 0)),
                pl.BlockSpec((K3, K3, C2, 1), lambda b, r: (0, 0, 0, 0)),
                pl.BlockSpec((1, 1), lambda b, r: (0, 0)),
            ],
            out_specs=pl.BlockSpec((1, TH, W), lambda b, r: (b, r, 0)),
            scratch_shapes=[pltpu.VMEM((th1, C2, W + 2 * P3), jnp.float32)]),
        compiler_params=pltpu.CompilerParams(
            dimension_semantics=("parallel", "parallel"),
            vmem_limit_bytes=_vmem_limit_bytes()),
    )(x81, w1, b1, w2, b2, w3, b3)

    out = out[:, :H, :]                     # crop the padded rows
    return out[:, None, :, :]               # (B, H, W) -> NCHW with C=1


# ---------------------------- parameter init --------------------------------
def _xavier_uniform(key, kh, kw, cin, cout):
    fan_in = cin * kh * kw
    fan_out = cout * kh * kw
    bound = (6.0 / (fan_in + fan_out)) ** 0.5
    return jax.random.uniform(key, (kh, kw, cin, cout), jnp.float32,
                              minval=-bound, maxval=bound)


def _bias_init(key, kh, kw, cin, cout):
    fan_in = cin * kh * kw
    bound = 1.0 / (fan_in ** 0.5)
    return jax.random.uniform(key, (cout,), jnp.float32,
                              minval=-bound, maxval=bound)


def init_params(key):
    ks = jax.random.split(key, 6)
    return {
        "w1": _xavier_uniform(ks[0], K1, K1, 1, C1),
        "b1": _bias_init(ks[1], K1, K1, 1, C1),
        "w2": _xavier_uniform(ks[2], K2, K2, C1, C2),
        "b2": _bias_init(ks[3], K2, K2, C1, C2),
        "w3": _xavier_uniform(ks[4], K3, K3, C2, 1),
        "b3": _bias_init(ks[5], K3, K3, C2, 1),
    }


# --------------------- pure-XLA reference (correctness) ---------------------
def _reference_forward(params, x):
    def conv(x, w, b, pad):
        y = jax.lax.conv_general_dilated(
            x, w, window_strides=(1, 1), padding=((pad, pad), (pad, pad)),
            dimension_numbers=("NCHW", "HWIO", "NCHW"),
            precision=jax.lax.Precision.HIGHEST)
        return y + b.reshape(1, -1, 1, 1)
    y = jax.nn.relu(conv(x, params["w1"], params["b1"], P1))
    y = jax.nn.relu(conv(y, params["w2"], params["b2"], P2))
    return conv(y, params["w3"], params["b3"], P3)


if __name__ == "__main__":
    key = jax.random.PRNGKey(0)
    pkey, xkey = jax.random.split(key)
    params = init_params(pkey)
    x = jax.random.normal(xkey, (2, 1, 16, 16), jnp.float32)   # NCHW, 1 channel

    fwd = jax.jit(functools.partial(srcnn_forward, tile_rows=8))
    y = fwd(params, x)
    jax.block_until_ready(y)
    assert y.shape == (2, 1, 16, 16), y.shape

    y_ref = _reference_forward(params, x)
    max_err = float(jnp.max(jnp.abs(y - y_ref)))
    assert max_err < 3e-2, max_err

    print("KERNEL_OK")
</pallas_src>

<mosaic_0001>
module attributes {stable_mosaic.version = 11 : i64} {
  func.func @_fused_srcnn_kernel(%arg0: i32, %arg1: i32, %arg2: memref<1x20x16x81xbf16, #tpu.memory_space<vmem>>, %arg3: memref<81x64xbf16, #tpu.memory_space<vmem>>, %arg4: memref<1x1x64xf32, #tpu.memory_space<vmem>>, %arg5: memref<64x32xbf16, #tpu.memory_space<vmem>>, %arg6: memref<1x1x32xf32, #tpu.memory_space<vmem>>, %arg7: memref<5x5x32x1xf32, #tpu.memory_space<vmem>>, %arg8: memref<1x1xf32, #tpu.memory_space<vmem>>, %arg9: memref<1x8x16xf32, #tpu.memory_space<vmem>>, %arg10: memref<12x32x20xf32, #tpu.memory_space<vmem>>) attributes {dimension_semantics = [#tpu.dimension_semantics<parallel>, #tpu.dimension_semantics<parallel>], iteration_bounds = array<i64: 2, 2>, scalar_prefetch = 0 : i64, scratch_operands = 1 : i64, tpu.core_type = #tpu.core_type<tc>, window_params = [{transform_indices = @transform_0, window_bounds = array<i64: 1, 20, 16, 81>}, {pipeline_mode = #tpu.pipeline_mode<synchronous>, transform_indices = @transform_1, window_bounds = array<i64: 81, 64>}, {pipeline_mode = #tpu.pipeline_mode<synchronous>, transform_indices = @transform_2, window_bounds = array<i64: 1, 1, 64>}, {pipeline_mode = #tpu.pipeline_mode<synchronous>, transform_indices = @transform_3, window_bounds = array<i64: 64, 32>}, {pipeline_mode = #tpu.pipeline_mode<synchronous>, transform_indices = @transform_4, window_bounds = array<i64: 1, 1, 32>}, {pipeline_mode = #tpu.pipeline_mode<synchronous>, transform_indices = @transform_5, window_bounds = array<i64: 5, 5, 32, 1>}, {pipeline_mode = #tpu.pipeline_mode<synchronous>, transform_indices = @transform_6, window_bounds = array<i64: 1, 1>}, {transform_indices = @transform_7, window_bounds = array<i64: 1, 8, 16>}]} {
    %c8_i32 = arith.constant 8 : i32
    %0 = arith.muli %arg1, %c8_i32 : i32
    %c0 = arith.constant 0 : index
    %1 = arith.index_cast %0 : i32 to index
    %c0_0 = arith.constant 0 : index
    %c0_1 = arith.constant 0 : index
    %2 = vector.load %arg2[%c0, %1, %c0_0, %c0_1] : memref<1x20x16x81xbf16, #tpu.memory_space<vmem>>, vector<1x12x16x81xbf16>
    %3 = vector.shape_cast %2 : vector<1x12x16x81xbf16> to vector<12x16x81xbf16>
    %c0_2 = arith.constant 0 : index
    %c0_3 = arith.constant 0 : index
    %4 = vector.load %arg3[%c0_2, %c0_3] : memref<81x64xbf16, #tpu.memory_space<vmem>>, vector<81x64xbf16>
    "tpu.trace_start"() <{level = 10 : i32, message = "hwk,kc->hwc"}> : () -> ()
    %cst = arith.constant dense<0.000000e+00> : vector<12x16x64xf32>
    %5 = tpu.matmul %3, %4, %cst {dimension_numbers = #tpu.dot_dimension_numbers<[2], [0], [0, 1], [1], [0, 0, 0, 1, 1, 1], [], []>} : vector<12x16x81xbf16>, vector<81x64xbf16>, vector<12x16x64xf32> -> vector<12x16x64xf32>
    "tpu.trace_stop"() : () -> ()
    %c0_4 = arith.constant 0 : index
    %c0_5 = arith.constant 0 : index
    %c0_6 = arith.constant 0 : index
    %6 = vector.load %arg4[%c0_4, %c0_5, %c0_6] : memref<1x1x64xf32, #tpu.memory_space<vmem>>, vector<1x1x64xf32>
    %7 = vector.broadcast %6 : vector<1x1x64xf32> to vector<12x16x64xf32>
    %8 = arith.addf %5, %7 : vector<12x16x64xf32>
    %cst_7 = arith.constant 0.000000e+00 : f32
    %9 = vector.broadcast %cst_7 : f32 to vector<12x16x64xf32>
    %10 = arith.maximumf %8, %9 : vector<12x16x64xf32>
    %11 = arith.truncf %10 : vector<12x16x64xf32> to vector<12x16x64xbf16>
    %c0_8 = arith.constant 0 : index
    %c0_9 = arith.constant 0 : index
    %12 = vector.load %arg5[%c0_8, %c0_9] : memref<64x32xbf16, #tpu.memory_space<vmem>>, vector<64x32xbf16>
    "tpu.trace_start"() <{level = 10 : i32, message = "hwc,cd->hwd"}> : () -> ()
    %cst_10 = arith.constant dense<0.000000e+00> : vector<12x16x32xf32>
    %13 = tpu.matmul %11, %12, %cst_10 {dimension_numbers = #tpu.dot_dimension_numbers<[2], [0], [0, 1], [1], [0, 0, 0, 1, 1, 1], [], []>} : vector<12x16x64xbf16>, vector<64x32xbf16>, vector<12x16x32xf32> -> vector<12x16x32xf32>
    "tpu.trace_stop"() : () -> ()
    %c0_11 = arith.constant 0 : index
    %c0_12 = arith.constant 0 : index
    %c0_13 = arith.constant 0 : index
    %14 = vector.load %arg6[%c0_11, %c0_12, %c0_13] : memref<1x1x32xf32, #tpu.memory_space<vmem>>, vector<1x1x32xf32>
    %15 = vector.broadcast %14 : vector<1x1x32xf32> to vector<12x16x32xf32>
    %16 = arith.addf %13, %15 : vector<12x16x32xf32>
    %cst_14 = arith.constant 0.000000e+00 : f32
    %17 = vector.broadcast %cst_14 : f32 to vector<12x16x32xf32>
    %18 = arith.maximumf %16, %17 : vector<12x16x32xf32>
    %c2_i32 = arith.constant 2 : i32
    %19 = arith.subi %0, %c2_i32 : i32
    %20 = tpu.iota {dimensions = array<i32: 0>} : vector<12x1x1xi32>
    %21 = vector.broadcast %19 : i32 to vector<12x1x1xi32>
    %22 = arith.addi %21, %20 : vector<12x1x1xi32>
    %c0_i32 = arith.constant 0 : i32
    %23 = vector.broadcast %c0_i32 : i32 to vector<12x1x1xi32>
    %24 = arith.cmpi sge, %22, %23 : vector<12x1x1xi32>
    %c16_i32 = arith.constant 16 : i32
    %25 = vector.broadcast %c16_i32 : i32 to vector<12x1x1xi32>
    %26 = arith.cmpi slt, %22, %25 : vector<12x1x1xi32>
    %27 = arith.andi %24, %26 : vector<12x1x1xi1>
    %cst_15 = arith.constant 0.000000e+00 : f32
    %28 = vector.shape_cast %27 : vector<12x1x1xi1> to vector<12x1x1xi1>
    %29 = vector.broadcast %28 : vector<12x1x1xi1> to vector<12x16x32xi1>
    %30 = vector.broadcast %cst_15 : f32 to vector<12x16x32xf32>
    %31 = arith.select %29, %18, %30 : vector<12x16x32xi1>, vector<12x16x32xf32>
    %cst_16 = arith.constant 0.000000e+00 : f32
    %32 = vector.broadcast %cst_16 : f32 to vector<12x32x2xf32>
    %c0_17 = arith.constant 0 : index
    %c0_18 = arith.constant 0 : index
    %c0_19 = arith.constant 0 : index
    %33 = vector.load %arg10[%c0_17, %c0_18, %c0_19] : memref<12x32x20xf32, #tpu.memory_space<vmem>>, vector<12x32x2xf32>
    tpu.vector_store %arg10[%c0_17, %c0_18, %c0_19], %32 {strides = array<i32>} : memref<12x32x20xf32, #tpu.memory_space<vmem>>, vector<12x32x2xf32>,
    %cst_20 = arith.constant 0.000000e+00 : f32
    %34 = vector.broadcast %cst_20 : f32 to vector<12x32x2xf32>
    %c0_21 = arith.constant 0 : index
    %c0_22 = arith.constant 0 : index
    %c18 = arith.constant 18 : index
    %35 = vector.load %arg10[%c0_21, %c0_22, %c18] : memref<12x32x20xf32, #tpu.memory_space<vmem>>, vector<12x32x2xf32>
    tpu.vector_store %arg10[%c0_21, %c0_22, %c18], %34 {strides = array<i32>} : memref<12x32x20xf32, #tpu.memory_space<vmem>>, vector<12x32x2xf32>,
    %36 = tpu.transpose %31, [0, 2, 1] : vector<12x16x32xf32> -> vector<12x32x16xf32>
    %c0_23 = arith.constant 0 : index
    %c0_24 = arith.constant 0 : index
    %c2 = arith.constant 2 : index
    %37 = vector.load %arg10[%c0_23, %c0_24, %c2] : memref<12x32x20xf32, #tpu.memory_space<vmem>>, vector<12x32x16xf32>
    tpu.vector_store %arg10[%c0_23, %c0_24, %c2], %36 {strides = array<i32>} : memref<12x32x20xf32, #tpu.memory_space<vmem>>, vector<12x32x16xf32>,
    %c0_25 = arith.constant 0 : index
    %c0_26 = arith.constant 0 : index
    %c0_27 = arith.constant 0 : index
    %c0_28 = arith.constant 0 : index
    %38 = vector.load %arg7[%c0_25, %c0_26, %c0_27, %c0_28] : memref<5x5x32x1xf32, #tpu.memory_space<vmem>>, vector<5x5x32x1xf32>
    %cst_29 = arith.constant 0.000000e+00 : f32
    %39 = vector.broadcast %cst_29 : f32 to vector<8x32x16xf32>
    %c0_30 = arith.constant 0 : index
    %c0_31 = arith.constant 0 : index
    %c0_32 = arith.constant 0 : index
    %40 = vector.load %arg10[%c0_30, %c0_31, %c0_32] : memref<12x32x20xf32, #tpu.memory_space<vmem>>, vector<8x32x16xf32>
    %41 = vector.extract_strided_slice %38 {offsets = [0, 0, 0, 0], sizes = [1, 1, 32, 1], strides = [1, 1, 1, 1]} : vector<5x5x32x1xf32> to vector<1x1x32x1xf32>
    %42 = vector.shape_cast %41 : vector<1x1x32x1xf32> to vector<32x1xf32>
    %43 = vector.shape_cast %42 : vector<32x1xf32> to vector<1x32x1xf32>
    %44 = vector.broadcast %43 : vector<1x32x1xf32> to vector<8x32x16xf32>
    %45 = arith.mulf %40, %44 : vector<8x32x16xf32>
    %46 = arith.addf %39, %45 : vector<8x32x16xf32>
    %c0_33 = arith.constant 0 : index
    %c0_34 = arith.constant 0 : index
    %c1 = arith.constant 1 : index
    %47 = vector.load %arg10[%c0_33, %c0_34, %c1] : memref<12x32x20xf32, #tpu.memory_space<vmem>>, vector<8x32x16xf32>
    %48 = vector.extract_strided_slice %38 {offsets = [0, 1, 0, 0], sizes = [1, 1, 32, 1], strides = [1, 1, 1, 1]} : vector<5x5x32x1xf32> to vector<1x1x32x1xf32>
    %49 = vector.shape_cast %48 : vector<1x1x32x1xf32> to vector<32x1xf32>
    %50 = vector.shape_cast %49 : vector<32x1xf32> to vector<1x32x1xf32>
    %51 = vector.broadcast %50 : vector<1x32x1xf32> to vector<8x32x16xf32>
    %52 = arith.mulf %47, %51 : vector<8x32x16xf32>
    %53 = arith.addf %46, %52 : vector<8x32x16xf32>
    %c0_35 = arith.constant 0 : index
    %c0_36 = arith.constant 0 : index
    %c2_37 = arith.constant 2 : index
    %54 = vector.load %arg10[%c0_35, %c0_36, %c2_37] : memref<12x32x20xf32, #tpu.memory_space<vmem>>, vector<8x32x16xf32>
    %55 = vector.extract_strided_slice %38 {offsets = [0, 2, 0, 0], sizes = [1, 1, 32, 1], strides = [1, 1, 1, 1]} : vector<5x5x32x1xf32> to vector<1x1x32x1xf32>
    %56 = vector.shape_cast %55 : vector<1x1x32x1xf32> to vector<32x1xf32>
    %57 = vector.shape_cast %56 : vector<32x1xf32> to vector<1x32x1xf32>
    %58 = vector.broadcast %57 : vector<1x32x1xf32> to vector<8x32x16xf32>
    %59 = arith.mulf %54, %58 : vector<8x32x16xf32>
    %60 = arith.addf %53, %59 : vector<8x32x16xf32>
    %c0_38 = arith.constant 0 : index
    %c0_39 = arith.constant 0 : index
    %c3 = arith.constant 3 : index
    %61 = vector.load %arg10[%c0_38, %c0_39, %c3] : memref<12x32x20xf32, #tpu.memory_space<vmem>>, vector<8x32x16xf32>
    %62 = vector.extract_strided_slice %38 {offsets = [0, 3, 0, 0], sizes = [1, 1, 32, 1], strides = [1, 1, 1, 1]} : vector<5x5x32x1xf32> to vector<1x1x32x1xf32>
    %63 = vector.shape_cast %62 : vector<1x1x32x1xf32> to vector<32x1xf32>
    %64 = vector.shape_cast %63 : vector<32x1xf32> to vector<1x32x1xf32>
    %65 = vector.broadcast %64 : vector<1x32x1xf32> to vector<8x32x16xf32>
    %66 = arith.mulf %61, %65 : vector<8x32x16xf32>
    %67 = arith.addf %60, %66 : vector<8x32x16xf32>
    %c0_40 = arith.constant 0 : index
    %c0_41 = arith.constant 0 : index
    %c4 = arith.constant 4 : index
    %68 = vector.load %arg10[%c0_40, %c0_41, %c4] : memref<12x32x20xf32, #tpu.memory_space<vmem>>, vector<8x32x16xf32>
    %69 = vector.extract_strided_slice %38 {offsets = [0, 4, 0, 0], sizes = [1, 1, 32, 1], strides = [1, 1, 1, 1]} : vector<5x5x32x1xf32> to vector<1x1x32x1xf32>
    %70 = vector.shape_cast %69 : vector<1x1x32x1xf32> to vector<32x1xf32>
    %71 = vector.shape_cast %70 : vector<32x1xf32> to vector<1x32x1xf32>
    %72 = vector.broadcast %71 : vector<1x32x1xf32> to vector<8x32x16xf32>
    %73 = arith.mulf %68, %72 : vector<8x32x16xf32>
    %74 = arith.addf %67, %73 : vector<8x32x16xf32>
    %c1_42 = arith.constant 1 : index
    %c0_43 = arith.constant 0 : index
    %c0_44 = arith.constant 0 : index
    %75 = vector.load %arg10[%c1_42, %c0_43, %c0_44] : memref<12x32x20xf32, #tpu.memory_space<vmem>>, vector<8x32x16xf32>
    %76 = vector.extract_strided_slice %38 {offsets = [1, 0, 0, 0], sizes = [1, 1, 32, 1], strides = [1, 1, 1, 1]} : vector<5x5x32x1xf32> to vector<1x1x32x1xf32>
    %77 = vector.shape_cast %76 : vector<1x1x32x1xf32> to vector<32x1xf32>
    %78 = vector.shape_cast %77 : vector<32x1xf32> to vector<1x32x1xf32>
    %79 = vector.broadcast %78 : vector<1x32x1xf32> to vector<8x32x16xf32>
    %80 = arith.mulf %75, %79 : vector<8x32x16xf32>
    %81 = arith.addf %74, %80 : vector<8x32x16xf32>
    %c1_45 = arith.constant 1 : index
    %c0_46 = arith.constant 0 : index
    %c1_47 = arith.constant 1 : index
    %82 = vector.load %arg10[%c1_45, %c0_46, %c1_47] : memref<12x32x20xf32, #tpu.memory_space<vmem>>, vector<8x32x16xf32>
    %83 = vector.extract_strided_slice %38 {offsets = [1, 1, 0, 0], sizes = [1, 1, 32, 1], strides = [1, 1, 1, 1]} : vector<5x5x32x1xf32> to vector<1x1x32x1xf32>
    %84 = vector.shape_cast %83 : vector<1x1x32x1xf32> to vector<32x1xf32>
    %85 = vector.shape_cast %84 : vector<32x1xf32> to vector<1x32x1xf32>
    %86 = vector.broadcast %85 : vector<1x32x1xf32> to vector<8x32x16xf32>
    %87 = arith.mulf %82, %86 : vector<8x32x16xf32>
    %88 = arith.addf %81, %87 : vector<8x32x16xf32>
    %c1_48 = arith.constant 1 : index
    %c0_49 = arith.constant 0 : index
    %c2_50 = arith.constant 2 : index
    %89 = vector.load %arg10[%c1_48, %c0_49, %c2_50] : memref<12x32x20xf32, #tpu.memory_space<vmem>>, vector<8x32x16xf32>
    %90 = vector.extract_strided_slice %38 {offsets = [1, 2, 0, 0], sizes = [1, 1, 32, 1], strides = [1, 1, 1, 1]} : vector<5x5x32x1xf32> to vector<1x1x32x1xf32>
    %91 = vector.shape_cast %90 : vector<1x1x32x1xf32> to vector<32x1xf32>
    %92 = vector.shape_cast %91 : vector<32x1xf32> to vector<1x32x1xf32>
    %93 = vector.broadcast %92 : vector<1x32x1xf32> to vector<8x32x16xf32>
    %94 = arith.mulf %89, %93 : vector<8x32x16xf32>
    %95 = arith.addf %88, %94 : vector<8x32x16xf32>
    %c1_51 = arith.constant 1 : index
    %c0_52 = arith.constant 0 : index
    %c3_53 = arith.constant 3 : index
    %96 = vector.load %arg10[%c1_51, %c0_52, %c3_53] : memref<12x32x20xf32, #tpu.memory_space<vmem>>, vector<8x32x16xf32>
    %97 = vector.extract_strided_slice %38 {offsets = [1, 3, 0, 0], sizes = [1, 1, 32, 1], strides = [1, 1, 1, 1]} : vector<5x5x32x1xf32> to vector<1x1x32x1xf32>
    %98 = vector.shape_cast %97 : vector<1x1x32x1xf32> to vector<32x1xf32>
    %99 = vector.shape_cast %98 : vector<32x1xf32> to vector<1x32x1xf32>
    %100 = vector.broadcast %99 : vector<1x32x1xf32> to vector<8x32x16xf32>
    %101 = arith.mulf %96, %100 : vector<8x32x16xf32>
    %102 = arith.addf %95, %101 : vector<8x32x16xf32>
    %c1_54 = arith.constant 1 : index
    %c0_55 = arith.constant 0 : index
    %c4_56 = arith.constant 4 : index
    %103 = vector.load %arg10[%c1_54, %c0_55, %c4_56] : memref<12x32x20xf32, #tpu.memory_space<vmem>>, vector<8x32x16xf32>
    %104 = vector.extract_strided_slice %38 {offsets = [1, 4, 0, 0], sizes = [1, 1, 32, 1], strides = [1, 1, 1, 1]} : vector<5x5x32x1xf32> to vector<1x1x32x1xf32>
    %105 = vector.shape_cast %104 : vector<1x1x32x1xf32> to vector<32x1xf32>
    %106 = vector.shape_cast %105 : vector<32x1xf32> to vector<1x32x1xf32>
    %107 = vector.broadcast %106 : vector<1x32x1xf32> to vector<8x32x16xf32>
    %108 = arith.mulf %103, %107 : vector<8x32x16xf32>
    %109 = arith.addf %102, %108 : vector<8x32x16xf32>
    %c2_57 = arith.constant 2 : index
    %c0_58 = arith.constant 0 : index
    %c0_59 = arith.constant 0 : index
    %110 = vector.load %arg10[%c2_57, %c0_58, %c0_59] : memref<12x32x20xf32, #tpu.memory_space<vmem>>, vector<8x32x16xf32>
    %111 = vector.extract_strided_slice %38 {offsets = [2, 0, 0, 0], sizes = [1, 1, 32, 1], strides = [1, 1, 1, 1]} : vector<5x5x32x1xf32> to vector<1x1x32x1xf32>
    %112 = vector.shape_cast %111 : vector<1x1x32x1xf32> to vector<32x1xf32>
    %113 = vector.shape_cast %112 : vector<32x1xf32> to vector<1x32x1xf32>
    %114 = vector.broadcast %113 : vector<1x32x1xf32> to vector<8x32x16xf32>
    %115 = arith.mulf %110, %114 : vector<8x32x16xf32>
    %116 = arith.addf %109, %115 : vector<8x32x16xf32>
    %c2_60 = arith.constant 2 : index
    %c0_61 = arith.constant 0 : index
    %c1_62 = arith.constant 1 : index
    %117 = vector.load %arg10[%c2_60, %c0_61, %c1_62] : memref<12x32x20xf32, #tpu.memory_space<vmem>>, vector<8x32x16xf32>
    %118 = vector.extract_strided_slice %38 {offsets = [2, 1, 0, 0], sizes = [1, 1, 32, 1], strides = [1, 1, 1, 1]} : vector<5x5x32x1xf32> to vector<1x1x32x1xf32>
    %119 = vector.shape_cast %118 : vector<1x1x32x1xf32> to vector<32x1xf32>
    %120 = vector.shape_cast %119 : vector<32x1xf32> to vector<1x32x1xf32>
    %121 = vector.broadcast %120 : vector<1x32x1xf32> to vector<8x32x16xf32>
    %122 = arith.mulf %117, %121 : vector<8x32x16xf32>
    %123 = arith.addf %116, %122 : vector<8x32x16xf32>
    %c2_63 = arith.constant 2 : index
    %c0_64 = arith.constant 0 : index
    %c2_65 = arith.constant 2 : index
    %124 = vector.load %arg10[%c2_63, %c0_64, %c2_65] : memref<12x32x20xf32, #tpu.memory_space<vmem>>, vector<8x32x16xf32>
    %125 = vector.extract_strided_slice %38 {offsets = [2, 2, 0, 0], sizes = [1, 1, 32, 1], strides = [1, 1, 1, 1]} : vector<5x5x32x1xf32> to vector<1x1x32x1xf32>
    %126 = vector.shape_cast %125 : vector<1x1x32x1xf32> to vector<32x1xf32>
    %127 = vector.shape_cast %126 : vector<32x1xf32> to vector<1x32x1xf32>
    %128 = vector.broadcast %127 : vector<1x32x1xf32> to vector<8x32x16xf32>
    %129 = arith.mulf %124, %128 : vector<8x32x16xf32>
    %130 = arith.addf %123, %129 : vector<8x32x16xf32>
    %c2_66 = arith.constant 2 : index
    %c0_67 = arith.constant 0 : index
    %c3_68 = arith.constant 3 : index
    %131 = vector.load %arg10[%c2_66, %c0_67, %c3_68] : memref<12x32x20xf32, #tpu.memory_space<vmem>>, vector<8x32x16xf32>
    %132 = vector.extract_strided_slice %38 {offsets = [2, 3, 0, 0], sizes = [1, 1, 32, 1], strides = [1, 1, 1, 1]} : vector<5x5x32x1xf32> to vector<1x1x32x1xf32>
    %133 = vector.shape_cast %132 : vector<1x1x32x1xf32> to vector<32x1xf32>
    %134 = vector.shape_cast %133 : vector<32x1xf32> to vector<1x32x1xf32>
    %135 = vector.broadcast %134 : vector<1x32x1xf32> to vector<8x32x16xf32>
    %136 = arith.mulf %131, %135 : vector<8x32x16xf32>
    %137 = arith.addf %130, %136 : vector<8x32x16xf32>
    %c2_69 = arith.constant 2 : index
    %c0_70 = arith.constant 0 : index
    %c4_71 = arith.constant 4 : index
    %138 = vector.load %arg10[%c2_69, %c0_70, %c4_71] : memref<12x32x20xf32, #tpu.memory_space<vmem>>, vector<8x32x16xf32>
    %139 = vector.extract_strided_slice %38 {offsets = [2, 4, 0, 0], sizes = [1, 1, 32, 1], strides = [1, 1, 1, 1]} : vector<5x5x32x1xf32> to vector<1x1x32x1xf32>
    %140 = vector.shape_cast %139 : vector<1x1x32x1xf32> to vector<32x1xf32>
    %141 = vector.shape_cast %140 : vector<32x1xf32> to vector<1x32x1xf32>
    %142 = vector.broadcast %141 : vector<1x32x1xf32> to vector<8x32x16xf32>
    %143 = arith.mulf %138, %142 : vector<8x32x16xf32>
    %144 = arith.addf %137, %143 : vector<8x32x16xf32>
    %c3_72 = arith.constant 3 : index
    %c0_73 = arith.constant 0 : index
    %c0_74 = arith.constant 0 : index
    %145 = vector.load %arg10[%c3_72, %c0_73, %c0_74] : memref<12x32x20xf32, #tpu.memory_space<vmem>>, vector<8x32x16xf32>
    %146 = vector.extract_strided_slice %38 {offsets = [3, 0, 0, 0], sizes = [1, 1, 32, 1], strides = [1, 1, 1, 1]} : vector<5x5x32x1xf32> to vector<1x1x32x1xf32>
    %147 = vector.shape_cast %146 : vector<1x1x32x1xf32> to vector<32x1xf32>
    %148 = vector.shape_cast %147 : vector<32x1xf32> to vector<1x32x1xf32>
    %149 = vector.broadcast %148 : vector<1x32x1xf32> to vector<8x32x16xf32>
    %150 = arith.mulf %145, %149 : vector<8x32x16xf32>
    %151 = arith.addf %144, %150 : vector<8x32x16xf32>
    %c3_75 = arith.constant 3 : index
    %c0_76 = arith.constant 0 : index
    %c1_77 = arith.constant 1 : index
    %152 = vector.load %arg10[%c3_75, %c0_76, %c1_77] : memref<12x32x20xf32, #tpu.memory_space<vmem>>, vector<8x32x16xf32>
    %153 = vector.extract_strided_slice %38 {offsets = [3, 1, 0, 0], sizes = [1, 1, 32, 1], strides = [1, 1, 1, 1]} : vector<5x5x32x1xf32> to vector<1x1x32x1xf32>
    %154 = vector.shape_cast %153 : vector<1x1x32x1xf32> to vector<32x1xf32>
    %155 = vector.shape_cast %154 : vector<32x1xf32> to vector<1x32x1xf32>
    %156 = vector.broadcast %155 : vector<1x32x1xf32> to vector<8x32x16xf32>
    %157 = arith.mulf %152, %156 : vector<8x32x16xf32>
    %158 = arith.addf %151, %157 : vector<8x32x16xf32>
    %c3_78 = arith.constant 3 : index
    %c0_79 = arith.constant 0 : index
    %c2_80 = arith.constant 2 : index
    %159 = vector.load %arg10[%c3_78, %c0_79, %c2_80] : memref<12x32x20xf32, #tpu.memory_space<vmem>>, vector<8x32x16xf32>
    %160 = vector.extract_strided_slice %38 {offsets = [3, 2, 0, 0], sizes = [1, 1, 32, 1], strides = [1, 1, 1, 1]} : vector<5x5x32x1xf32> to vector<1x1x32x1xf32>
    %161 = vector.shape_cast %160 : vector<1x1x32x1xf32> to vector<32x1xf32>
    %162 = vector.shape_cast %161 : vector<32x1xf32> to vector<1x32x1xf32>
    %163 = vector.broadcast %162 : vector<1x32x1xf32> to vector<8x32x16xf32>
    %164 = arith.mulf %159, %163 : vector<8x32x16xf32>
    %165 = arith.addf %158, %164 : vector<8x32x16xf32>
    %c3_81 = arith.constant 3 : index
    %c0_82 = arith.constant 0 : index
    %c3_83 = arith.constant 3 : index
    %166 = vector.load %arg10[%c3_81, %c0_82, %c3_83] : memref<12x32x20xf32, #tpu.memory_space<vmem>>, vector<8x32x16xf32>
    %167 = vector.extract_strided_slice %38 {offsets = [3, 3, 0, 0], sizes = [1, 1, 32, 1], strides = [1, 1, 1, 1]} : vector<5x5x32x1xf32> to vector<1x1x32x1xf32>
    %168 = vector.shape_cast %167 : vector<1x1x32x1xf32> to vector<32x1xf32>
    %169 = vector.shape_cast %168 : vector<32x1xf32> to vector<1x32x1xf32>
    %170 = vector.broadcast %169 : vector<1x32x1xf32> to vector<8x32x16xf32>
    %171 = arith.mulf %166, %170 : vector<8x32x16xf32>
    %172 = arith.addf %165, %171 : vector<8x32x16xf32>
    %c3_84 = arith.constant 3 : index
    %c0_85 = arith.constant 0 : index
    %c4_86 = arith.constant 4 : index
    %173 = vector.load %arg10[%c3_84, %c0_85, %c4_86] : memref<12x32x20xf32, #tpu.memory_space<vmem>>, vector<8x32x16xf32>
    %174 = vector.extract_strided_slice %38 {offsets = [3, 4, 0, 0], sizes = [1, 1, 32, 1], strides = [1, 1, 1, 1]} : vector<5x5x32x1xf32> to vector<1x1x32x1xf32>
    %175 = vector.shape_cast %174 : vector<1x1x32x1xf32> to vector<32x1xf32>
    %176 = vector.shape_cast %175 : vector<32x1xf32> to vector<1x32x1xf32>
    %177 = vector.broadcast %176 : vector<1x32x1xf32> to vector<8x32x16xf32>
    %178 = arith.mulf %173, %177 : vector<8x32x16xf32>
    %179 = arith.addf %172, %178 : vector<8x32x16xf32>
    %c4_87 = arith.constant 4 : index
    %c0_88 = arith.constant 0 : index
    %c0_89 = arith.constant 0 : index
    %180 = vector.load %arg10[%c4_87, %c0_88, %c0_89] : memref<12x32x20xf32, #tpu.memory_space<vmem>>, vector<8x32x16xf32>
    %181 = vector.extract_strided_slice %38 {offsets = [4, 0, 0, 0], sizes = [1, 1, 32, 1], strides = [1, 1, 1, 1]} : vector<5x5x32x1xf32> to vector<1x1x32x1xf32>
    %182 = vector.shape_cast %181 : vector<1x1x32x1xf32> to vector<32x1xf32>
    %183 = vector.shape_cast %182 : vector<32x1xf32> to vector<1x32x1xf32>
    %184 = vector.broadcast %183 : vector<1x32x1xf32> to vector<8x32x16xf32>
    %185 = arith.mulf %180, %184 : vector<8x32x16xf32>
    %186 = arith.addf %179, %185 : vector<8x32x16xf32>
    %c4_90 = arith.constant 4 : index
    %c0_91 = arith.constant 0 : index
    %c1_92 = arith.constant 1 : index
    %187 = vector.load %arg10[%c4_90, %c0_91, %c1_92] : memref<12x32x20xf32, #tpu.memory_space<vmem>>, vector<8x32x16xf32>
    %188 = vector.extract_strided_slice %38 {offsets = [4, 1, 0, 0], sizes = [1, 1, 32, 1], strides = [1, 1, 1, 1]} : vector<5x5x32x1xf32> to vector<1x1x32x1xf32>
    %189 = vector.shape_cast %188 : vector<1x1x32x1xf32> to vector<32x1xf32>
    %190 = vector.shape_cast %189 : vector<32x1xf32> to vector<1x32x1xf32>
    %191 = vector.broadcast %190 : vector<1x32x1xf32> to vector<8x32x16xf32>
    %192 = arith.mulf %187, %191 : vector<8x32x16xf32>
    %193 = arith.addf %186, %192 : vector<8x32x16xf32>
    %c4_93 = arith.constant 4 : index
    %c0_94 = arith.constant 0 : index
    %c2_95 = arith.constant 2 : index
    %194 = vector.load %arg10[%c4_93, %c0_94, %c2_95] : memref<12x32x20xf32, #tpu.memory_space<vmem>>, vector<8x32x16xf32>
    %195 = vector.extract_strided_slice %38 {offsets = [4, 2, 0, 0], sizes = [1, 1, 32, 1], strides = [1, 1, 1, 1]} : vector<5x5x32x1xf32> to vector<1x1x32x1xf32>
    %196 = vector.shape_cast %195 : vector<1x1x32x1xf32> to vector<32x1xf32>
    %197 = vector.shape_cast %196 : vector<32x1xf32> to vector<1x32x1xf32>
    %198 = vector.broadcast %197 : vector<1x32x1xf32> to vector<8x32x16xf32>
    %199 = arith.mulf %194, %198 : vector<8x32x16xf32>
    %200 = arith.addf %193, %199 : vector<8x32x16xf32>
    %c4_96 = arith.constant 4 : index
    %c0_97 = arith.constant 0 : index
    %c3_98 = arith.constant 3 : index
    %201 = vector.load %arg10[%c4_96, %c0_97, %c3_98] : memref<12x32x20xf32, #tpu.memory_space<vmem>>, vector<8x32x16xf32>
    %202 = vector.extract_strided_slice %38 {offsets = [4, 3, 0, 0], sizes = [1, 1, 32, 1], strides = [1, 1, 1, 1]} : vector<5x5x32x1xf32> to vector<1x1x32x1xf32>
    %203 = vector.shape_cast %202 : vector<1x1x32x1xf32> to vector<32x1xf32>
    %204 = vector.shape_cast %203 : vector<32x1xf32> to vector<1x32x1xf32>
    %205 = vector.broadcast %204 : vector<1x32x1xf32> to vector<8x32x16xf32>
    %206 = arith.mulf %201, %205 : vector<8x32x16xf32>
    %207 = arith.addf %200, %206 : vector<8x32x16xf32>
    %c4_99 = arith.constant 4 : index
    %c0_100 = arith.constant 0 : index
    %c4_101 = arith.constant 4 : index
    %208 = vector.load %arg10[%c4_99, %c0_100, %c4_101] : memref<12x32x20xf32, #tpu.memory_space<vmem>>, vector<8x32x16xf32>
    %209 = vector.extract_strided_slice %38 {offsets = [4, 4, 0, 0], sizes = [1, 1, 32, 1], strides = [1, 1, 1, 1]} : vector<5x5x32x1xf32> to vector<1x1x32x1xf32>
    %210 = vector.shape_cast %209 : vector<1x1x32x1xf32> to vector<32x1xf32>
    %211 = vector.shape_cast %210 : vector<32x1xf32> to vector<1x32x1xf32>
    %212 = vector.broadcast %211 : vector<1x32x1xf32> to vector<8x32x16xf32>
    %213 = arith.mulf %208, %212 : vector<8x32x16xf32>
    %214 = arith.addf %207, %213 : vector<8x32x16xf32>
    %cst_102 = arith.constant dense<0.000000e+00> : vector<8x16xf32>
    %215 = vector.multi_reduction <add>, %214, %cst_102 [1] : vector<8x32x16xf32> to vector<8x16xf32>
    %c0_103 = arith.constant 0 : index
    %c0_104 = arith.constant 0 : index
    %216 = vector.load %arg8[%c0_103, %c0_104] : memref<1x1xf32, #tpu.memory_space<vmem>>, vector<1x1xf32>
    %217 = vector.broadcast %216 : vector<1x1xf32> to vector<8x16xf32>
    %218 = arith.addf %215, %217 : vector<8x16xf32>
    %c0_105 = arith.constant 0 : index
    %c0_106 = arith.constant 0 : index
    %c0_107 = arith.constant 0 : index
    %219 = vector.load %arg9[%c0_105, %c0_106, %c0_107] : memref<1x8x16xf32, #tpu.memory_space<vmem>>, vector<1x8x16xf32>
    %220 = vector.shape_cast %219 : vector<1x8x16xf32> to vector<8x16xf32>
    %221 = vector.shape_cast %218 : vector<8x16xf32> to vector<1x8x16xf32>
    tpu.vector_store %arg9[%c0_105, %c0_106, %c0_107], %221 {strides = array<i32>} : memref<1x8x16xf32, #tpu.memory_space<vmem>>, vector<1x8x16xf32>,
    return
  }
  func.func @transform_0(%arg0: i32, %arg1: i32) -> (i32, i32, i32, i32) {
    %c0_i32 = arith.constant 0 : i32
    %c0_i32_0 = arith.constant 0 : i32
    %c0_i32_1 = arith.constant 0 : i32
    %c0_i32_2 = arith.constant 0 : i32
    return %arg0, %c0_i32, %c0_i32_0, %c0_i32_1 : i32, i32, i32, i32
  }
  func.func @transform_1(%arg0: i32, %arg1: i32) -> (i32, i32) {
    %c0_i32 = arith.constant 0 : i32
    %c0_i32_0 = arith.constant 0 : i32
    %c0_i32_1 = arith.constant 0 : i32
    return %c0_i32, %c0_i32_0 : i32, i32
  }
  func.func @transform_2(%arg0: i32, %arg1: i32) -> (i32, i32, i32) {
    %c0_i32 = arith.constant 0 : i32
    %c0_i32_0 = arith.constant 0 : i32
    %c0_i32_1 = arith.constant 0 : i32
    %c0_i32_2 = arith.constant 0 : i32
    return %c0_i32, %c0_i32_0, %c0_i32_1 : i32, i32, i32
  }
  func.func @transform_3(%arg0: i32, %arg1: i32) -> (i32, i32) {
    %c0_i32 = arith.constant 0 : i32
    %c0_i32_0 = arith.constant 0 : i32
    %c0_i32_1 = arith.constant 0 : i32
    return %c0_i32, %c0_i32_0 : i32, i32
  }
  func.func @transform_4(%arg0: i32, %arg1: i32) -> (i32, i32, i32) {
    %c0_i32 = arith.constant 0 : i32
    %c0_i32_0 = arith.constant 0 : i32
    %c0_i32_1 = arith.constant 0 : i32
    %c0_i32_2 = arith.constant 0 : i32
    return %c0_i32, %c0_i32_0, %c0_i32_1 : i32, i32, i32
  }
  func.func @transform_5(%arg0: i32, %arg1: i32) -> (i32, i32, i32, i32) {
    %c0_i32 = arith.constant 0 : i32
    %c0_i32_0 = arith.constant 0 : i32
    %c0_i32_1 = arith.constant 0 : i32
    %c0_i32_2 = arith.constant 0 : i32
    %c0_i32_3 = arith.constant 0 : i32
    return %c0_i32, %c0_i32_0, %c0_i32_1, %c0_i32_2 : i32, i32, i32, i32
  }
  func.func @transform_6(%arg0: i32, %arg1: i32) -> (i32, i32) {
    %c0_i32 = arith.constant 0 : i32
    %c0_i32_0 = arith.constant 0 : i32
    %c0_i32_1 = arith.constant 0 : i32
    return %c0_i32, %c0_i32_0 : i32, i32
  }
  func.func @transform_7(%arg0: i32, %arg1: i32) -> (i32, i32, i32) {
    %c0_i32 = arith.constant 0 : i32
    %c0_i32_0 = arith.constant 0 : i32
    return %arg0, %arg1, %c0_i32 : i32, i32, i32
  }
}

</mosaic_0001>

<bundles_post_ra>
// kernel: srcnn_forward.1
= control target key start
LH: loop header
LB: loop body
LE: loop exit
PB: predicated region body
PF: predicated region fallthrough
CT: control target
= control target key end

     0   :  { %s12979_s0 = inlined_call_operand.vmem [shape: bf16[2,20,16,81], index: 0, kind: input, shape index: {}]   ;;  %s12980_s1 = inlined_call_operand.vmem [shape: bf16[81,64], index: 1, kind: input, shape index: {}]   ;;  %s12981_s2 = inlined_call_operand.vmem [shape: f32[1,1,64], index: 2, kind: input, shape index: {}]   ;;  %s12982_s3 = inlined_call_operand.vmem [shape: bf16[64,32], index: 3, kind: input, shape index: {}]   ;;  %s12983_s4 = inlined_call_operand.vmem [shape: f32[1,1,32], index: 4, kind: input, shape index: {}]   ;;  %s12984_s5 = inlined_call_operand.vmem [shape: f32[5,5,32,1], index: 5, kind: input, shape index: {}]   ;;  %s12985_s6 = inlined_call_operand.<no memory space> [shape: f32[1,1], index: 6, kind: input, shape index: {}]   ;;  %s12986_s7 = inlined_call_operand.hbm [shape: f32[2,16,16], index: 7, kind: output, shape index: {}]  }
   0x1   :  { %13041 = sst [smem:[#allocation619_spill]] %s12979_s0  ;;  %v12_v0 = vstv %s12985_s6 }
   0x2   :  { %13042 = sst [smem:[#allocation620_spill]] %s12980_s1  ;;  %13 = vst [vmem:[#allocation3] sm:$0x1] %v12_v0 }
   0x3   :  { %14 = vsyncpa [#allocation5], 0 }
   0x4   :  { %16 = vsyncpa [#allocation5 + $0x1], 0  ;;  %s7427_s26 = smov 0   ;;  %s7429_s27 = smov 0  }
   0x5   :  { %s7431_s28 = smov 0   ;;  %s7433_s29 = smov 0  }
   0x6   :  { %s7435_s30 = smov 0   ;;  %s7437_s8 = smov 0  }
   0x7   :  { %s7439_s9 = smov 0   ;;  %s7441_s10 = smov 0  }
   0x8 LB: > { %s6851_s6 = sadd.s32 4294967295, %s7374_s10   ;;  %s6852_s11 = sadd.s32 4294967294, %s7374_s10   ;;  %s7374_s10 = sphi %s7441_s10, %s22_s10   ;;  %s7370_s9 = sphi %s7439_s9, %s14357_s9   ;;  %s7366_s8 = sphi %s7437_s8, %s14356_s8   ;;  %s7362_s30 = sphi %s7435_s30, %s14355_s30   ;;  %s7358_s29 = sphi %s7433_s29, %s14354_s29   ;;  %s7354_s28 = sphi %s7431_s28, %s14353_s28   ;;  %s7350_s27 = sphi %s7429_s27, %s14352_s27   ;;  %s7346_s26 = sphi %s7427_s26, %s14351_s26  }
   0x9   : > { %s31_s12 = sadd.s32 1, %s7366_s8  ;;  %s34_s13 = sadd.s32 1, %s7370_s9 }
   0xa   : > { %p32_p0 = scmp.ge.s32.totalorder %s31_s12, 2  ;;  %p205_p1 = scmp.ne.s32.totalorder %s7354_s28, %s7350_s27 }
   0xb   : > { %p206_p2 = scmp.eq.s32.totalorder %s6851_s6, 3  ;;  %p211_p5 = scmp.ne.s32.totalorder %s7350_s27, %s7346_s26 }
   0xc   : > { %s14359_s12 = smov (%p32_p0, %s31_s12), 0  ;;  %s14361_s13 = smov (!%p32_p0, %s34_s13), %s7370_s9 }
   0xd   : > { %s191_s14 = ssub.s32 %s7366_s8, %s14359_s12  ;;  %p7478_p3 = por %p206_p2, %p205_p1 }
   0xe   : > { %p36_p4 = scmp.ge.s32.totalorder %s14361_s13, 2  ;;  %p212_p6 = scmp.eq.s32.totalorder %s6852_s11, 3 }
   0xf   : > { %p6855_p7 = scmp.ge.s32.totalorder %s7374_s10, 1  ;;  %p256_p9 = scmp.lt.s32.totalorder %s7374_s10, 5 }
  0x10   : > { %s14363_s13 = smov (%p36_p4, %s14361_s13), 0  ;;  %p7487_p8 = por %p212_p6, %p211_p5 }
  0x11   : > { %13044 = sst [smem:[#allocation7_spill]] %s14363_s13  ;;  %s190_s17 = ssub.s32 %s7370_s9, %s14363_s13 }
  0x12   : > { %s195_s18 = sadd.s32 1, %s7354_s28  ;;  %s192_s19 = sor.u32 %s191_s14, %s190_s17 }
  0x13   : > { %p257_p10 = pnand %p6855_p7, %p256_p9  ;;  %p193_p11 = scmp.eq.s32.totalorder %s192_s19, 0 }
  0x15   : > { %s7496_s20 = scalar_select %p193_p11, %s7354_s28, %s195_s18  }
  0x16   : > { %260 = sbr.rel (%p257_p10) target bundleno = 3799 (0xed7), region = 48 }
  0x1d   : > { %s13046_s1 = sld [smem:[#allocation620_spill]]  ;;  %v7376_v3 = vmov 0   ;;  %p288_p12 = scmp.lt.s32.totalorder %s7362_s30, 1  ;;  %v7119_v6 = vld [vmem:[%s12982_s3] sm:$0xff]   ;;  %v7120_v7 = vld [vmem:[%s12982_s3 + $0x8] sm:$0xff]   ;;  %vm470_vm0 = vcmask 1040384  }
  0x1e   : > { %7099 = vset.pattern.permute.xlu1 %v7376_v3  ;;  %7100 = vset.pattern.permute.xlu0 %v7376_v3  ;;  %s6917_s18 = sshll.u32 %s7358_s29, 6  ;;  %s13047_s0 = sld [smem:[#allocation619_spill]]  ;;  %vm433_vm1 = vcmask 662528   ;;  %v472_v11 = vsel %vm470_vm0, 65535, %v7376_v3  ;;  %v7121_v24 = vld [vmem:[%s12982_s3 + $0x10] sm:$0xff]   ;;  %v7122_v25 = vld [vmem:[%s12982_s3 + $0x18] sm:$0xff]  }
  0x1f   : > { %s289_s11 = scalar_select %p288_p12, %s7362_s30, 1  ;;  %6988 = vmatprep.subr.bf16.mxu1 %v7119_v6  ;;  %v1690_v26 = vld [vmem:[%s12984_s5] sm:$0xff]  ;;  %v1692_v27 = vld [vmem:[%s12984_s5 + $0x10] sm:$0xff]  ;;  %v1693_v28 = vld [vmem:[%s12984_s5 + $0x18] sm:$0xff]  ;;  %vm680_vm2 = vcmask 523264  }
  0x20   : > { %6989 = vmatpush3.bf16.msra.mxu1 %v7119_v6  ;;  %1824 = vperm.xlu1 %7099, %v1690_v26   ;;  %v1695_v29 = vld [vmem:[%s12984_s5 + $0x28] sm:$0xff]  ;;  %v1697_v30 = vld [vmem:[%s12984_s5 + $0x38] sm:$0xff]  ;;  %v1694_v33 = vld [vmem:[%s12984_s5 + $0x20] sm:$0xff]  ;;  %s6858_s6 = sshll.u32 %s7358_s29, 3  ;;  %s12998_s21 = smov 127  }
  0x21   : > { %s7020_s22 = smul.u32 160, %s289_s11  ;;  %6990 = vmatprep.subr.bf16.mxu1 %v7120_v7  ;;  %v1691_v31 = vld [vmem:[%s12984_s5 + $0x8] sm:$0xff]  ;;  %v1701_v34 = vld [vmem:[%s12984_s5 + $0x58] sm:$0xff]  ;;  %v1696_v35 = vld [vmem:[%s12984_s5 + $0x30] sm:$0xff]  ;;  %s6909_s14 = sadd.s32 4294967294, %s6858_s6 }
  0x22   : > { %v1699_v32 = vld [vmem:[%s12984_s5 + $0x48] sm:$0xff]  ;;  %1829 = vperm.xlu0 %7100, %v1691_v31   ;;  %v1698_v37 = vld [vmem:[%s12984_s5 + $0x40] sm:$0xff]  ;;  %v1705_v38 = vld [vmem:[%s12984_s5 + $0x78] sm:$0xff]  ;;  %s7378_s11 = smov 2   ;;  %s13368_s25 = smov 125  }
  0x23   : > { %v7101_v1 = vld [vmem:[%s13046_s1] sm:$0xff]   ;;  %v7102_v2 = vld [vmem:[%s13046_s1 + $0x8] sm:$0xff]   ;;  %v7103_v4 = vld [vmem:[%s13046_s1 + $0x10] sm:$0xff]   ;;  %s13401_s24 = smov 124  }
  0x24   : > { %6952 = vmatprep.subr.bf16.mxu0 %v7101_v1  ;;  %v7104_v5 = vld [vmem:[%s13046_s1 + $0x18] sm:$0xff]   ;;  %s292_s13 = scalar_lea.vmem %s13047_s0, %s7020_s22  ;;  %v7106_v8 = vld [vmem:[%s13046_s1 + $0x28] ss:$0 sps:$4 sm:$0x11]   ;;  %v7105_v10 = vld [vmem:[%s13046_s1 + $0x20] sm:$0xff]   ;;  %6991 = vmatpush3.bf16.msra.mxu1 %v7120_v7  ;;  %s12988_s22 = smov 124  }
  0x25   : > { %6953 = vmatpush3.bf16.msra.mxu0 %v7101_v1  ;;  %s7525_s19 = scalar_lea.vmem %s292_s13, %s6917_s18  ;;  %v474_v12 = vand.u32 %v7106_v8, %v472_v11  ;;  %6992 = vmatprep.subr.bf16.mxu1 %v7121_v24  ;;  %v1703_v36 = vld [vmem:[%s12984_s5 + $0x68] sm:$0xff]  ;;  %v1700_v39 = vld [vmem:[%s12984_s5 + $0x50] sm:$0xff]  ;;  %v1702_v41 = vld [vmem:[%s12984_s5 + $0x60] sm:$0xff]  ;;  %s12996_s13 = smov 126  }
  0x26   : > { %6954 = vmatprep.subr.bf16.mxu0 %v7102_v2  ;;  %v7107_v9 = vld [vmem:[%s7525_s19] sm:$0xff]   ;;  %v7108_v13 = vld [vmem:[%s7525_s19 + $0x8] sm:$0xff]   ;;  %v7109_v14 = vld [vmem:[%s7525_s19 + $0x10] sm:$0xff]   ;;  %1834 = vperm.xlu1 %7099, %v1692_v27   ;;  %s12990_s18 = smov 125   ;;  %s6912_s1 = sshll.u32 %s7362_s30, 1 }
  0x27   : > { %6964 = vmatprep.mubr.msk.bf16.mxu0 %vm433_vm1, %v7107_v9  ;;  %v7110_v15 = vld [vmem:[%s7525_s19 + $0x18] sm:$0xff]   ;;  %v7111_v16 = vld [vmem:[%s7525_s19 + $0x20] sm:$0xff]   ;;  %v7112_v17 = vld [vmem:[%s7525_s19 + $0x28] sm:$0xff]   ;;  %1908 = vperm.xlu0 %7100, %v1694_v33  }
  0x28   : > { %v7113_v18 = vld [vmem:[%s7525_s19 + $0x30] sm:$0xff]   ;;  %v7114_v19 = vld [vmem:[%s7525_s19 + $0x38] sm:$0xff]   ;;  %v7115_v20 = vld [vmem:[%s7525_s19 + $0x40] sm:$0xff]   ;;  %6993 = vmatpush3.bf16.msra.mxu1 %v7121_v24 }
  0x29   : > { %6955 = vmatpush3.bf16.msra.mxu0 %v7102_v2  ;;  %v7116_v21 = vld [vmem:[%s7525_s19 + $0x48] sm:$0xff]   ;;  %v7117_v22 = vld [vmem:[%s7525_s19 + $0x50] sm:$0xff]   ;;  %v7118_v23 = vld [vmem:[%s7525_s19 + $0x58] sm:$0xff]   ;;  %6994 = vmatprep.subr.bf16.mxu1 %v7122_v25  ;;  %s13471_s19 = smov 126  }
  0x2a   : > { %6956 = vmatprep.subr.bf16.mxu0 %v7103_v4  ;;  %1839 = vperm.xlu1 %7099, %v1693_v28   ;;  %v1707_v40 = vld [vmem:[%s12984_s5 + $0x88] sm:$0xff]  ;;  %v1709_v42 = vld [vmem:[%s12984_s5 + $0x98] sm:$0xff]  ;;  %v1704_v43 = vld [vmem:[%s12984_s5 + $0x70] sm:$0xff] }
  0x2b   : > { %1918 = vperm.xlu0 %7100, %v1696_v35   ;;  %v1711_v44 = vld [vmem:[%s12984_s5 + $0xa8] sm:$0xff]  ;;  %v1706_v45 = vld [vmem:[%s12984_s5 + $0x80] sm:$0xff]  ;;  %v1713_v46 = vld [vmem:[%s12984_s5 + $0xb8] sm:$0xff] }
  0x2c   : > { %6995 = vmatpush3.bf16.msra.mxu1 %v7122_v25  ;;  %v1708_v47 = vld [vmem:[%s12984_s5 + $0x90] sm:$0xff]  ;;  %v1715_v48 = vld [vmem:[%s12984_s5 + $0xc8] sm:$0xff]  ;;  %v1710_v49 = vld [vmem:[%s12984_s5 + $0xa0] sm:$0xff] }
  0x2d   : > { %6957 = vmatpush3.bf16.msra.mxu0 %v7103_v4  ;;  %v1717_v50 = vld [vmem:[%s12984_s5 + $0xd8] sm:$0xff]  ;;  %v1712_v51 = vld [vmem:[%s12984_s5 + $0xb0] sm:$0xff]  ;;  %v1719_v52 = vld [vmem:[%s12984_s5 + $0xe8] sm:$0xff] }
  0x2e   : > { %6958 = vmatprep.subr.bf16.mxu0 %v7104_v5  ;;  %1913 = vperm.xlu1 %7099, %v1695_v29   ;;  %v1714_v53 = vld [vmem:[%s12984_s5 + $0xc0] sm:$0xff]  ;;  %v1721_v54 = vld [vmem:[%s12984_s5 + $0xf8] sm:$0xff]  ;;  %v1716_v55 = vld [vmem:[%s12984_s5 + $0xd0] sm:$0xff] }
  0x2f   : > { %2120 = vperm.xlu0 %7100, %v1698_v37   ;;  %v1723_v56 = vld [vmem:[%s12984_s5 + $0x108] sm:$0xff]  ;;  %v1718_v57 = vld [vmem:[%s12984_s5 + $0xe0] sm:$0xff]  ;;  %v1725_v58 = vld [vmem:[%s12984_s5 + $0x118] sm:$0xff] }
  0x30   : > { %v1720_v59 = vld [vmem:[%s12984_s5 + $0xf0] sm:$0xff]  ;;  %v1722_v60 = vld [vmem:[%s12984_s5 + $0x100] sm:$0xff] }
  0x31   : > { %6959 = vmatpush3.bf16.msra.mxu0 %v7104_v5  ;;  %v1724_v61 = vld [vmem:[%s12984_s5 + $0x110] sm:$0xff]  ;;  %v7671_v62 = vld [vmem:[%s12981_s2] ss:$0 sm:$0xff] }
  0x32   : > { %6960 = vmatprep.subr.bf16.mxu0 %v7105_v10  ;;  %1923 = vperm.xlu1 %7099, %v1697_v30  }
  0x33   : > { %2130 = vperm.xlu0 %7100, %v1700_v39  }
  0x35   : > { %6961 = vmatpush3.bf16.msra.mxu0 %v7105_v10 }
  0x36   : > { %6962 = vmatprep.subr.bf16.mxu0 %v474_v12  ;;  %2125 = vperm.xlu1 %7099, %v1699_v32  }
  0x37   : > { %2332 = vperm.xlu0 %7100, %v1702_v41  }
  0x39   : > { %6963 = vmatpush3.bf16.msra.mxu0 %v474_v12 }
  0x3a   : > { %2135 = vperm.xlu1 %7099, %v1701_v34  }
  0x3b   : > { %2342 = vperm.xlu0 %7100, %v1704_v43  }
  0x3c   : > { %6965 = vmatmul.mubr.msk.bf16.vlgmr.msra.gmra.mrb[0].mxu0 %vm433_vm1, %v7108_v13 }
  0x3d   : > { %6968 = vmatprep.mubr.msk.bf16.mxu0 %vm433_vm1, %v7109_v14 }
  0x3e   : > { %2337 = vperm.xlu1 %7099, %v1703_v36  }
  0x3f   : > { %2544 = vperm.xlu0 %7100, %v1706_v45  }
  0x42   : > { %2347 = vperm.xlu1 %7099, %v1705_v38  }
  0x43   : > { %2554 = vperm.xlu0 %7100, %v1708_v47  }
  0x44   : > { %6969 = vmatmul.mubr.msk.bf16.gmra.mrb[4].mxu0 %vm433_vm1, %v7110_v15 }
  0x45   : > { %6972 = vmatprep.mubr.msk.bf16.mxu0 %vm433_vm1, %v7111_v16 }
  0x46   : > { %2549 = vperm.xlu1 %7099, %v1707_v40  }
  0x47   : > { %2789 = vperm.xlu0 %7100, %v1710_v49  }
  0x4a   : > { %2559 = vperm.xlu1 %7099, %v1709_v42  }
  0x4b   : > { %2799 = vperm.xlu0 %7100, %v1712_v51  }
  0x4c   : > { %6973 = vmatmul.mubr.msk.bf16.gmra.mrb[8].mxu0 %vm433_vm1, %v7112_v17 }
  0x4d   : > { %6976 = vmatprep.mubr.msk.bf16.mxu0 %vm433_vm1, %v7113_v18 }
  0x4e   : > { %2794 = vperm.xlu1 %7099, %v1711_v44  }
  0x4f   : > { %2873 = vperm.xlu0 %7100, %v1714_v53  }
  0x52   : > { %2804 = vperm.xlu1 %7099, %v1713_v46  }
  0x53   : > { %2883 = vperm.xlu0 %7100, %v1716_v55  }
  0x54   : > { %6977 = vmatmul.mubr.msk.bf16.gmra.mrb[12].mxu0 %vm433_vm1, %v7114_v19 }
  0x55   : > { %6980 = vmatprep.mubr.msk.bf16.mxu0 %vm433_vm1, %v7115_v20 }
  0x56   : > { %2878 = vperm.xlu1 %7099, %v1715_v48  }
  0x57   : > { %3085 = vperm.xlu0 %7100, %v1718_v57  }
  0x5a   : > { %2888 = vperm.xlu1 %7099, %v1717_v50  }
  0x5b   : > { %3095 = vperm.xlu0 %7100, %v1720_v59  }
  0x5c   : > { %6981 = vmatmul.mubr.msk.bf16.gmra.mrb[16].mxu0 %vm433_vm1, %v7116_v21 }
  0x5d   : > { %6984 = vmatprep.mubr.msk.bf16.mxu0 %vm433_vm1, %v7117_v22 }
  0x5e   : > { %3090 = vperm.xlu1 %7099, %v1719_v52  }
  0x5f   : > { %3297 = vperm.xlu0 %7100, %v1722_v60  }
  0x62   : > { %3100 = vperm.xlu1 %7099, %v1721_v54  }
  0x63   : > { %3307 = vperm.xlu0 %7100, %v1724_v61  }
  0x64   : > { %6985 = vmatmul.mubr.msk.bf16.gmra.mrb[20].mxu0 %vm433_vm1, %v7118_v23 }
  0x66   : > { %3302 = vperm.xlu1 %7099, %v1723_v56  }
  0x6a   : > { %3312 = vperm.xlu1 %7099, %v1725_v58  }
 0x10f   : > { %v6966_v63 = vpop.f32.mrb[0].mxu0 }
 0x110   : > { %v519_v0 = vadd.f32 %v6966_v63, %v7671_v62  ;;  %v510_v1 = vpop.f32.mrb[1].mxu0 }
 0x111   : > { %v511_v2 = vadd.f32 %v7671_v62, %v510_v1  ;;  %v6967_v3 = vpop.f32.mrb[2].mxu0 }
 0x112   : > { %v522_v4 = vadd.f32 %v6967_v3, %v7671_v62  ;;  %v513_v5 = vpop.f32.mrb[3].mxu0  ;;  %v607_v7 = vmax.f32 %v519_v0, 0.0 }
 0x113   : > { %v514_v6 = vadd.f32 %v7671_v62, %v513_v5  ;;  %v605_v9 = vmax.f32 %v511_v2, 0.0 }
 0x114   : > { %v608_v8 = vmax.f32 %v522_v4, 0.0 }
 0x115   : > { %v606_v10 = vmax.f32 %v514_v6, 0.0 }
 0x116   : > { %v630_v11 = vpack.c.bf16 %v608_v8, %v607_v7 }
 0x117   : > { %v629_v12 = vpack.c.bf16 %v606_v10, %v605_v9  ;;  %v6970_v13 = vpop.f32.mrb[4].mxu0 }
 0x118   : > { %v535_v14 = vadd.f32 %v6970_v13, %v7671_v62  ;;  %v526_v15 = vpop.f32.mrb[5].mxu0 }
 0x119   : > { %6996 = vmatprep.mubr.msk.bf16.mxu1 %vm680_vm2, %v629_v12  ;;  %v527_v16 = vadd.f32 %v7671_v62, %v526_v15  ;;  %v6971_v17 = vpop.f32.mrb[6].mxu0 }
 0x11a   : > { %6997 = vmatmul.mubr.msk.bf16.vlgmr.msra.gmra.mrb[0].mxu1 %vm680_vm2, %v630_v11  ;;  %v611_v18 = vmax.f32 %v535_v14, 0.0  ;;  %v538_v19 = vadd.f32 %v6971_v17, %v7671_v62  ;;  %v529_v20 = vpop.f32.mrb[7].mxu0 }
 0x11b   : > { %v609_v21 = vmax.f32 %v527_v16, 0.0  ;;  %v530_v22 = vadd.f32 %v7671_v62, %v529_v20  ;;  %v7710_v20 = vstv %s6909_s14 }
 0x11c   : > { %v612_v23 = vmax.f32 %v538_v19, 0.0  ;;  %vm883_vm5 = vcmp.ge.s32.totalorder %v7710_v20, 0  ;;  %vm895_vm6 = vcmp.lt.s32.totalorder %v7710_v20, 16 }
 0x11d   : > { %v610_v24 = vmax.f32 %v530_v22, 0.0  ;;  %v7716_v22 = vld [vmem:[%s12983_s4] ss:$0 sm:$0xff]  ;;  %vm7727_vm8 = vmand %vm883_vm5, %vm895_vm6 }
 0x11e   : > { %v632_v25 = vpack.c.bf16 %v612_v23, %v611_v18 }
 0x11f   : > { %v631_v26 = vpack.c.bf16 %v610_v24, %v609_v21  ;;  %v6974_v27 = vpop.f32.mrb[8].mxu0  ;;  %v872_v21 = vadd.s32 1, %v7710_v20 }
 0x120   : > { %v551_v28 = vadd.f32 %v6974_v27, %v7671_v62  ;;  %v542_v29 = vpop.f32.mrb[9].mxu0  ;;  %v7761_v27 = vpop.permute.xlu0 %1829 }
 0x121   : > { %7000 = vmatprep.mubr.msk.bf16.mxu1 %vm680_vm2, %v631_v26  ;;  %v543_v30 = vadd.f32 %v7671_v62, %v542_v29  ;;  %v6975_v31 = vpop.f32.mrb[10].mxu0  ;;  %vm884_vm3 = vcmp.ge.s32.totalorder %v872_v21, 0  ;;  %vm896_vm4 = vcmp.lt.s32.totalorder %v872_v21, 16  ;;  %v877_v21 = vadd.s32 6, %v7710_v20 }
 0x122   : > { %7001 = vmatmul.mubr.msk.bf16.gmra.mrb[4].mxu1 %vm680_vm2, %v632_v25  ;;  %v615_v32 = vmax.f32 %v551_v28, 0.0  ;;  %v554_v33 = vadd.f32 %v6975_v31, %v7671_v62  ;;  %v545_v34 = vpop.f32.mrb[11].mxu0  ;;  %vm7722_vm7 = vmand %vm884_vm3, %vm896_vm4 }
 0x123   : > { %v613_v35 = vmax.f32 %v543_v30, 0.0  ;;  %v546_v36 = vadd.f32 %v7671_v62, %v545_v34 }
 0x124   : > { %v616_v37 = vmax.f32 %v554_v33, 0.0 }
 0x125   : > { %v614_v38 = vmax.f32 %v546_v36, 0.0 }
 0x126   : > { %v634_v39 = vpack.c.bf16 %v616_v37, %v615_v32 }
 0x127   : > { %v633_v40 = vpack.c.bf16 %v614_v38, %v613_v35  ;;  %v6978_v41 = vpop.f32.mrb[12].mxu0  ;;  %v874_v38 = vadd.s32 3, %v7710_v20 }
 0x128   : > { %v567_v42 = vadd.f32 %v6978_v41, %v7671_v62  ;;  %v558_v43 = vpop.f32.mrb[13].mxu0 }
 0x129   : > { %7004 = vmatprep.mubr.msk.bf16.mxu1 %vm680_vm2, %v633_v40  ;;  %v559_v44 = vadd.f32 %v7671_v62, %v558_v43  ;;  %v6979_v45 = vpop.f32.mrb[14].mxu0  ;;  %vm886_vm9 = vcmp.ge.s32.totalorder %v874_v38, 0  ;;  %vm898_vm10 = vcmp.lt.s32.totalorder %v874_v38, 16  ;;  %v7776_v38 = vpop.permute.xlu0 %1908 }
 0x12a   : > { %7005 = vmatmul.mubr.msk.bf16.gmra.mrb[8].mxu1 %vm680_vm2, %v634_v39  ;;  %v619_v46 = vmax.f32 %v567_v42, 0.0  ;;  %v570_v47 = vadd.f32 %v6979_v45, %v7671_v62  ;;  %v561_v48 = vpop.f32.mrb[15].mxu0  ;;  %v873_v39 = vadd.s32 2, %v7710_v20  ;;  %vm910_vm13 = vmand %vm886_vm9, %vm898_vm10 }
 0x12b   : > { %v617_v49 = vmax.f32 %v559_v44, 0.0  ;;  %v562_v50 = vadd.f32 %v7671_v62, %v561_v48 }
 0x12c   : > { %v620_v51 = vmax.f32 %v570_v47, 0.0  ;;  %vm885_vm11 = vcmp.ge.s32.totalorder %v873_v39, 0  ;;  %vm897_vm12 = vcmp.lt.s32.totalorder %v873_v39, 16 }
 0x12d   : > { %v618_v52 = vmax.f32 %v562_v50, 0.0  ;;  %vm909_vm14 = vmand %vm885_vm11, %vm897_vm12 }
 0x12e   : > { %v636_v53 = vpack.c.bf16 %v620_v51, %v619_v46 }
 0x12f   : > { %v635_v54 = vpack.c.bf16 %v618_v52, %v617_v49  ;;  %v6982_v55 = vpop.f32.mrb[16].mxu0 }
 0x130   : > { %v583_v56 = vadd.f32 %v6982_v55, %v7671_v62  ;;  %v574_v57 = vpop.f32.mrb[17].mxu0 }
 0x131   : > { %7008 = vmatprep.mubr.msk.bf16.mxu1 %vm680_vm2, %v635_v54  ;;  %v575_v58 = vadd.f32 %v7671_v62, %v574_v57  ;;  %v6983_v59 = vpop.f32.mrb[18].mxu0 }
 0x132   : > { %7009 = vmatmul.mubr.msk.bf16.gmra.mrb[12].mxu1 %vm680_vm2, %v636_v53  ;;  %v623_v60 = vmax.f32 %v583_v56, 0.0  ;;  %v586_v61 = vadd.f32 %v6983_v59, %v7671_v62  ;;  %v577_v63 = vpop.f32.mrb[19].mxu0 }
 0x133   : > { %v621_v0 = vmax.f32 %v575_v58, 0.0  ;;  %v578_v1 = vadd.f32 %v7671_v62, %v577_v63  ;;  %v875_v63 = vadd.s32 4, %v7710_v20 }
 0x134   : > { %v624_v2 = vmax.f32 %v586_v61, 0.0 }
 0x135   : > { %v622_v3 = vmax.f32 %v578_v1, 0.0  ;;  %vm887_vm1 = vcmp.ge.s32.totalorder %v875_v63, 0 }
 0x136   : > { %v638_v4 = vpack.c.bf16 %v624_v2, %v623_v60  ;;  %v876_v60 = vadd.s32 5, %v7710_v20  ;;  %v7749_v2 = vpop.permute.xlu1 %1824 }
 0x137   : > { %v637_v5 = vpack.c.bf16 %v622_v3, %v621_v0  ;;  %v6986_v6 = vpop.f32.mrb[20].mxu0 }
 0x138   : > { %v599_v7 = vadd.f32 %v6986_v6, %v7671_v62  ;;  %v590_v8 = vpop.f32.mrb[21].mxu0  ;;  %vm888_vm15 = vcmp.ge.s32.totalorder %v876_v60, 0  ;;  %vm900_vm0 = vcmp.lt.s32.totalorder %v876_v60, 16 }
 0x139   : > { %7012 = vmatprep.mubr.msk.bf16.mxu1 %vm680_vm2, %v637_v5  ;;  %v591_v9 = vadd.f32 %v7671_v62, %v590_v8  ;;  %v6987_v10 = vpop.f32.mrb[22].mxu0  ;;  %vm912_vm3 = vmand %vm888_vm15, %vm900_vm0 }
 0x13a   : > { %7013 = vmatmul.mubr.msk.bf16.gmra.mrb[16].mxu1 %vm680_vm2, %v638_v4  ;;  %v627_v11 = vmax.f32 %v599_v7, 0.0  ;;  %v602_v12 = vadd.f32 %v6987_v10, %v7671_v62  ;;  %v593_v13 = vpop.f32.mrb[23].mxu0 }
 0x13b   : > { %v625_v14 = vmax.f32 %v591_v9, 0.0  ;;  %v594_v15 = vadd.f32 %v7671_v62, %v593_v13 }
 0x13c   : > { %v628_v16 = vmax.f32 %v602_v12, 0.0  ;;  %v7754_v12 = vpop.permute.xlu1 %1834 }
 0x13d   : > { %v626_v17 = vmax.f32 %v594_v15, 0.0 }
 0x13e   : > { %v640_v18 = vpack.c.bf16 %v628_v16, %v627_v11 }
 0x13f   : > { %v639_v19 = vpack.c.bf16 %v626_v17, %v625_v14  ;;  %v878_v17 = vadd.s32 7, %v7710_v20 }
 0x141   : > { %7016 = vmatprep.mubr.msk.bf16.mxu1 %vm680_vm2, %v639_v19  ;;  %vm890_vm5 = vcmp.ge.s32.totalorder %v878_v17, 0  ;;  %vm902_vm6 = vcmp.lt.s32.totalorder %v878_v17, 16 }
 0x142   : > { %7017 = vmatmul.mubr.msk.bf16.gmra.mrb[20].mxu1 %vm680_vm2, %v640_v18  ;;  %vm899_vm2 = vcmp.lt.s32.totalorder %v875_v63, 16  ;;  %vm7766_vm9 = vmand %vm890_vm5, %vm902_vm6 }
 0x143   : > { %vm911_vm4 = vmand %vm887_vm1, %vm899_vm2 }
 0x1ed   : > { %v6998_v62 = vpop.f32.mrb[0].mxu1 }
 0x1ee   : > { %v760_v23 = vadd.f32 %v6998_v62, %v7716_v22  ;;  %v751_v24 = vpop.f32.mrb[1].mxu1 }
 0x1ef   : > { %v752_v25 = vadd.f32 %v7716_v22, %v751_v24  ;;  %v6999_v26 = vpop.f32.mrb[2].mxu1 }
 0x1f0   : > { %v848_v28 = vmax.f32 %v760_v23, 0.0  ;;  %v763_v29 = vadd.f32 %v6999_v26, %v7716_v22  ;;  %v754_v30 = vpop.f32.mrb[3].mxu1  ;;  %v7758_v23 = vpop.permute.xlu1 %1839 }
 0x1f1   : > { %v846_v32 = vmax.f32 %v752_v25, 0.0  ;;  %v755_v33 = vadd.f32 %v7716_v22, %v754_v30 }
 0x1f2   : > { %v849_v34 = vmax.f32 %v763_v29, 0.0  ;;  %v945_v35 = vsel %vm7722_vm7, %v848_v28, 0.0 }
 0x1f3   : > { %v847_v36 = vmax.f32 %v755_v33, 0.0  ;;  %1097 = vxpose.xlu1.b32.start [1/2] (short) (narrow) %v945_v35, 32  ;;  %v943_v37 = vsel %vm7727_vm8, %v846_v32, 0.0 }
 0x1f4   : > { %1065 = vxpose.xlu0.b32.start [1/2] (short) (narrow) %v943_v37, 32  ;;  %v946_v41 = vsel %vm7722_vm7, %v849_v34, 0.0  ;;  %vm889_vm7 = vcmp.ge.s32.totalorder %v877_v21, 0  ;;  %v7770_v35 = vpop.permute.xlu1 %1913 }
 0x1f5   : > { %v7002_v40 = vpop.f32.mrb[4].mxu1  ;;  %v944_v44 = vsel %vm7727_vm8, %v847_v36, 0.0  ;;  %vm901_vm8 = vcmp.lt.s32.totalorder %v877_v21, 16 }
 0x1f6   : > { %v776_v42 = vadd.f32 %v7002_v40, %v7716_v22  ;;  %v767_v43 = vpop.f32.mrb[5].mxu1  ;;  %vm7772_vm10 = vmand %vm889_vm7, %vm901_vm8  ;;  %vm967_vm7 = vcmask 15360   ;;  %vm1016_vm8 = vcmask 162960  }
 0x1f7   : > { %1098 = vxpose.xlu1.b32.end [2/2] (short) (narrow) %v946_v41, 32  ;;  %v768_v45 = vadd.f32 %v7716_v22, %v767_v43  ;;  %v7003_v46 = vpop.f32.mrb[6].mxu1 }
 0x1f8   : > { %1066 = vxpose.xlu0.b32.end [2/2] (short) (narrow) %v944_v44, 32  ;;  %v770_v47 = vpop.f32.mrb[7].mxu1  ;;  %v852_v48 = vmax.f32 %v776_v42, 0.0  ;;  %v779_v49 = vadd.f32 %v7003_v46, %v7716_v22 }
 0x1f9   : > { %v850_v50 = vmax.f32 %v768_v45, 0.0  ;;  %v771_v51 = vadd.f32 %v7716_v22, %v770_v47 }
 0x1fa   : > { %v853_v52 = vmax.f32 %v779_v49, 0.0  ;;  %v949_v53 = vsel %vm910_vm13, %v852_v48, 0.0 }
 0x1fb   : > { %v851_v55 = vmax.f32 %v771_v51, 0.0  ;;  %v947_v56 = vsel %vm909_vm14, %v850_v50, 0.0  ;;  %v880_v50 = vadd.s32 9, %v7710_v20  ;;  %v7787_v51 = vpop.permute.xlu1 %1923 }
 0x1fc   : > { %v950_v61 = vsel %vm910_vm13, %v853_v52, 0.0 }
 0x1fd   : > { %v7006_v54 = vpop.f32.mrb[8].mxu1  ;;  %v948_v0 = vsel %vm909_vm14, %v851_v55, 0.0  ;;  %vm892_vm11 = vcmp.ge.s32.totalorder %v880_v50, 0  ;;  %vm904_vm12 = vcmp.lt.s32.totalorder %v880_v50, 16 }
 0x1fe   : > { %v783_v57 = vpop.f32.mrb[9].mxu1  ;;  %v792_v1 = vadd.f32 %v7006_v54, %v7716_v22  ;;  %v7792_v54 = vpop.permute.xlu0 %1918  ;;  %vm916_vm15 = vmand %vm892_vm11, %vm904_vm12  ;;  %vm6745_vm11 = vcmask 1041409   ;;  %vm6747_vm12 = vcmask 1042434  }
 0x1ff   : > { %v7007_v58 = vpop.f32.mrb[10].mxu1  ;;  %v784_v3 = vadd.f32 %v7716_v22, %v783_v57  ;;  %v7799_v60 = vpop.permute.xlu1 %2125 }
 0x200   : > { %1161 = vxpose.xlu1.b32.start [1/2] (short) (narrow) %v949_v53, 32  ;;  %v786_v59 = vpop.f32.mrb[11].mxu1  ;;  %v856_v5 = vmax.f32 %v792_v1, 0.0  ;;  %v795_v6 = vadd.f32 %v7007_v58, %v7716_v22  ;;  %v879_v53 = vadd.s32 8, %v7710_v20 }
 0x201   : > { %1129 = vxpose.xlu0.b32.start [1/2] (short) (narrow) %v947_v56, 32  ;;  %v854_v8 = vmax.f32 %v784_v3, 0.0  ;;  %v787_v9 = vadd.f32 %v7716_v22, %v786_v59 }
 0x202   : > { %v857_v13 = vmax.f32 %v795_v6, 0.0  ;;  %v953_v14 = vsel %vm912_vm3, %v856_v5, 0.0  ;;  %vm891_vm13 = vcmp.ge.s32.totalorder %v879_v53, 0  ;;  %vm903_vm14 = vcmp.lt.s32.totalorder %v879_v53, 16 }
 0x203   : > { %v855_v15 = vmax.f32 %v787_v9, 0.0  ;;  %v951_v16 = vsel %vm911_vm4, %v854_v8, 0.0  ;;  %vm915_vm0 = vmand %vm891_vm13, %vm903_vm14  ;;  %v7804_v6 = vpop.permute.xlu1 %2135  ;;  %vm6749_vm13 = vcmask 1043459   ;;  %vm6751_vm14 = vcmask 1044484  }
 0x204   : > { %1162 = vxpose.xlu1.b32.end [2/2] (short) (narrow) %v950_v61, 32  ;;  %v954_v19 = vsel %vm912_vm3, %v857_v13, 0.0 }
 0x205   : > { %1130 = vxpose.xlu0.b32.end [2/2] (short) (narrow) %v948_v0, 32  ;;  %v7010_v4 = vpop.f32.mrb[12].mxu1  ;;  %v952_v24 = vsel %vm911_vm4, %v855_v15, 0.0  ;;  %v7802_v0 = vpop.permute.xlu0 %2120 }
 0x206   : > { %v799_v7 = vpop.f32.mrb[13].mxu1  ;;  %v808_v25 = vadd.f32 %v7010_v4, %v7716_v22 }
 0x207   : > { %v7011_v10 = vpop.f32.mrb[14].mxu1  ;;  %v800_v28 = vadd.f32 %v7716_v22, %v799_v7  ;;  %v882_v7 = vadd.s32 11, %v7710_v20 }
 0x208   : > { %v802_v11 = vpop.f32.mrb[15].mxu1  ;;  %v860_v30 = vmax.f32 %v808_v25, 0.0  ;;  %v811_v31 = vadd.f32 %v7011_v10, %v7716_v22  ;;  %v881_v10 = vadd.s32 10, %v7710_v20 }
 0x209   : > { %v858_v32 = vmax.f32 %v800_v28, 0.0  ;;  %v803_v33 = vadd.f32 %v7716_v22, %v802_v11  ;;  %v7807_v8 = vpop.permute.xlu0 %2130  ;;  %vm894_vm1 = vcmp.ge.s32.totalorder %v882_v7, 0  ;;  %vm906_vm2 = vcmp.lt.s32.totalorder %v882_v7, 16  ;;  %v7810_v11 = vpop.permute.xlu1 %2337 }
 0x20a   : > { %v861_v41 = vmax.f32 %v811_v31, 0.0  ;;  %v957_v42 = vsel %vm7766_vm9, %v860_v30, 0.0  ;;  %vm893_vm3 = vcmp.ge.s32.totalorder %v881_v10, 0  ;;  %vm905_vm4 = vcmp.lt.s32.totalorder %v881_v10, 16  ;;  %vm918_vm5 = vmand %vm894_vm1, %vm906_vm2 }
 0x20b   : > { %v859_v45 = vmax.f32 %v803_v33, 0.0  ;;  %v955_v46 = vsel %vm7772_vm10, %v858_v32, 0.0  ;;  %vm917_vm6 = vmand %vm893_vm3, %vm905_vm4  ;;  %vm6757_vm1 = vcmask 1047559  }
 0x20c   : > { %v958_v52 = vsel %vm7766_vm9, %v861_v41, 0.0  ;;  %vm1641_vm9 = vcmask 146448  }
 0x20d   : > { %1225 = vxpose.xlu1.b32.start [1/2] (short) (narrow) %v953_v14, 32  ;;  %v7014_v18 = vpop.f32.mrb[16].mxu1  ;;  %v956_v55 = vsel %vm7772_vm10, %v859_v45, 0.0  ;;  %v7812_v14 = vpop.permute.xlu0 %2332  ;;  %vm6614_vm10 = vcmask 130048  }
 0x20e   : > { %1193 = vxpose.xlu0.b32.start [1/2] (short) (narrow) %v951_v16, 32  ;;  %v815_v62 = vpop.f32.mrb[17].mxu1  ;;  %v824_v56 = vadd.f32 %v7014_v18, %v7716_v22  ;;  %v7814_v20 = vpop.permute.xlu1 %2347 }
 0x20f   : > { %v7015_v26 = vpop.f32.mrb[18].mxu1  ;;  %v816_v57 = vadd.f32 %v7716_v22, %v815_v62 }
 0x210   : > { %v818_v29 = vpop.f32.mrb[19].mxu1  ;;  %v864_v58 = vmax.f32 %v824_v56, 0.0  ;;  %v827_v59 = vadd.f32 %v7015_v26, %v7716_v22 }
 0x211   : > { %1226 = vxpose.xlu1.b32.end [2/2] (short) (narrow) %v954_v19, 32  ;;  %v862_v61 = vmax.f32 %v816_v57, 0.0  ;;  %v819_v63 = vadd.f32 %v7716_v22, %v818_v29  ;;  %v7816_v21 = vpop.permute.xlu0 %2342 }
 0x212   : > { %1194 = vxpose.xlu0.b32.end [2/2] (short) (narrow) %v952_v24, 32  ;;  %v865_v1 = vmax.f32 %v827_v59, 0.0  ;;  %v961_v3 = vsel %vm916_vm15, %v864_v58, 0.0  ;;  %v7818_v25 = vpop.permute.xlu1 %2549 }
 0x213   : > { %v863_v4 = vmax.f32 %v819_v63, 0.0  ;;  %v959_v5 = vsel %vm915_vm0, %v862_v61, 0.0 }
 0x214   : > { %v962_v9 = vsel %vm916_vm15, %v865_v1, 0.0  ;;  %vm6753_vm15 = vcmask 1045509  }
 0x215   : > { %v7018_v37 = vpop.f32.mrb[20].mxu1  ;;  %v7820_v26 = vpop.permute.xlu0 %2544 }
 0x216   : > { %v840_v39 = vadd.f32 %v7018_v37, %v7716_v22  ;;  %v831_v40 = vpop.f32.mrb[21].mxu1  ;;  %v7822_v28 = vpop.permute.xlu1 %2559 }
 0x217   : > { %v832_v43 = vadd.f32 %v7716_v22, %v831_v40  ;;  %v7019_v44 = vpop.f32.mrb[22].mxu1  ;;  %v7377_v40 = vmov 0.0  }
 0x218   : > { %v843_v47 = vadd.f32 %v7019_v44, %v7716_v22  ;;  %v834_v48 = vpop.f32.mrb[23].mxu1  ;;  %v868_v13 = vmax.f32 %v840_v39, 0.0  ;;  %972 = vst.msk [vmem:[#allocation2 + $0x20] sm:$0xff] %vm967_vm7, %v7377_v40  ;;  %968 = vst.msk [vmem:[#allocation2] sm:$0xff] %vm967_vm7, %v7377_v40 }
 0x219   : > { %v835_v49 = vadd.f32 %v7716_v22, %v834_v48  ;;  %v960_v22 = vsel %vm915_vm0, %v863_v4, 0.0  ;;  %v866_v15 = vmax.f32 %v832_v43, 0.0  ;;  %v7824_v29 = vpop.permute.xlu0 %2554  ;;  %969 = vst.msk [vmem:[#allocation2 + $0x8] sm:$0xff] %vm967_vm7, %v7377_v40  ;;  %970 = vst.msk [vmem:[#allocation2 + $0x10] sm:$0xff] %vm967_vm7, %v7377_v40  ;;  %vm6755_vm0 = vcmask 1046534  }
 0x21a   : > { %1289 = vxpose.xlu1.b32.start [1/2] (short) (narrow) %v957_v42, 32  ;;  %v869_v16 = vmax.f32 %v843_v47, 0.0  ;;  %v965_v17 = vsel %vm918_vm5, %v868_v13, 0.0  ;;  %v7826_v30 = vpop.permute.xlu1 %2794  ;;  %971 = vst.msk [vmem:[#allocation2 + $0x18] sm:$0xff] %vm967_vm7, %v7377_v40  ;;  %973 = vst.msk [vmem:[#allocation2 + $0x28] sm:$0xff] %vm967_vm7, %v7377_v40 }
 0x21b   : > { %1257 = vxpose.xlu0.b32.start [1/2] (short) (narrow) %v955_v46, 32  ;;  %v867_v18 = vmax.f32 %v835_v49, 0.0  ;;  %v963_v19 = vsel %vm917_vm6, %v866_v15, 0.0  ;;  %974 = vst.msk [vmem:[#allocation2 + $0x30] sm:$0xff] %vm967_vm7, %v7377_v40  ;;  %975 = vst.msk [vmem:[#allocation2 + $0x38] sm:$0xff] %vm967_vm7, %v7377_v40 }
 0x21c   : > { %v966_v62 = vsel %vm918_vm5, %v869_v16, 0.0  ;;  %976 = vst.msk [vmem:[#allocation2 + $0x40] sm:$0xff] %vm967_vm7, %v7377_v40  ;;  %977 = vst.msk [vmem:[#allocation2 + $0x48] sm:$0xff] %vm967_vm7, %v7377_v40 }
 0x21d   : > { %v964_v24 = vsel %vm917_vm6, %v867_v18, 0.0  ;;  %v7828_v31 = vpop.permute.xlu0 %2789  ;;  %978 = vst.msk [vmem:[#allocation2 + $0x50] sm:$0xff] %vm967_vm7, %v7377_v40  ;;  %979 = vst.msk [vmem:[#allocation2 + $0x58] sm:$0xff] %vm967_vm7, %v7377_v40 }
 0x21e   : > { %1290 = vxpose.xlu1.b32.end [2/2] (short) (narrow) %v958_v52, 32  ;;  %v7830_v32 = vpop.permute.xlu1 %2804  ;;  %980 = vst.msk [vmem:[#allocation2 + $0x60] sm:$0xff] %vm967_vm7, %v7377_v40  ;;  %981 = vst.msk [vmem:[#allocation2 + $0x68] sm:$0xff] %vm967_vm7, %v7377_v40 }
 0x21f   : > { %1258 = vxpose.xlu0.b32.end [2/2] (short) (narrow) %v956_v55, 32  ;;  %982 = vst.msk [vmem:[#allocation2 + $0x70] sm:$0xff] %vm967_vm7, %v7377_v40  ;;  %983 = vst.msk [vmem:[#allocation2 + $0x78] sm:$0xff] %vm967_vm7, %v7377_v40 }
 0x220   : > { %984 = vst.msk [vmem:[#allocation2 + $0x80] sm:$0xff] %vm967_vm7, %v7377_v40  ;;  %985 = vst.msk [vmem:[#allocation2 + $0x88] sm:$0xff] %vm967_vm7, %v7377_v40 }
 0x221   : > { %v7832_v33 = vpop.permute.xlu0 %2799  ;;  %986 = vst.msk [vmem:[#allocation2 + $0x90] sm:$0xff] %vm967_vm7, %v7377_v40  ;;  %987 = vst.msk [vmem:[#allocation2 + $0x98] sm:$0xff] %vm967_vm7, %v7377_v40 }
 0x222   : > { %v7834_v34 = vpop.permute.xlu1 %2878  ;;  %988 = vst.msk [vmem:[#allocation2 + $0xa0] sm:$0xff] %vm967_vm7, %v7377_v40  ;;  %989 = vst.msk [vmem:[#allocation2 + $0xa8] sm:$0xff] %vm967_vm7, %v7377_v40 }
 0x223   : > { %990 = vst.msk [vmem:[#allocation2 + $0xb0] sm:$0xff] %vm967_vm7, %v7377_v40  ;;  %991 = vst.msk [vmem:[#allocation2 + $0xb8] sm:$0xff] %vm967_vm7, %v7377_v40 }
 0x224   : > { %992 = vst.msk [vmem:[#allocation2 + $0xc0] sm:$0xff] %vm967_vm7, %v7377_v40  ;;  %993 = vst.msk [vmem:[#allocation2 + $0xc8] sm:$0xff] %vm967_vm7, %v7377_v40 }
 0x225   : > { %v7836_v36 = vpop.permute.xlu0 %2873  ;;  %994 = vst.msk [vmem:[#allocation2 + $0xd0] sm:$0xff] %vm967_vm7, %v7377_v40  ;;  %995 = vst.msk [vmem:[#allocation2 + $0xd8] sm:$0xff] %vm967_vm7, %v7377_v40 }
 0x226   : > { %v7838_v37 = vpop.permute.xlu1 %2888  ;;  %996 = vst.msk [vmem:[#allocation2 + $0xe0] sm:$0xff] %vm967_vm7, %v7377_v40  ;;  %997 = vst.msk [vmem:[#allocation2 + $0xe8] sm:$0xff] %vm967_vm7, %v7377_v40 }
 0x227   : > { %1353 = vxpose.xlu1.b32.start [1/2] (short) (narrow) %v961_v3, 32  ;;  %998 = vst.msk [vmem:[#allocation2 + $0xf0] sm:$0xff] %vm967_vm7, %v7377_v40  ;;  %999 = vst.msk [vmem:[#allocation2 + $0xf8] sm:$0xff] %vm967_vm7, %v7377_v40 }
 0x228   : > { %1321 = vxpose.xlu0.b32.start [1/2] (short) (narrow) %v959_v5, 32  ;;  %1000 = vst.msk [vmem:[#allocation2 + $0x100] sm:$0xff] %vm967_vm7, %v7377_v40  ;;  %1001 = vst.msk [vmem:[#allocation2 + $0x108] sm:$0xff] %vm967_vm7, %v7377_v40 }
 0x229   : > { %v7840_v39 = vpop.permute.xlu0 %2883  ;;  %1002 = vst.msk [vmem:[#allocation2 + $0x110] sm:$0xff] %vm967_vm7, %v7377_v40  ;;  %1003 = vst.msk [vmem:[#allocation2 + $0x118] sm:$0xff] %vm967_vm7, %v7377_v40 }
 0x22a   : > { %1004 = vst.msk [vmem:[#allocation2 + $0x120] sm:$0xff] %vm967_vm7, %v7377_v40  ;;  %1005 = vst.msk [vmem:[#allocation2 + $0x128] sm:$0xff] %vm967_vm7, %v7377_v40  ;;  %v8034_v41 = vpop.permute.xlu1 %3090 }
 0x22b   : > { %1354 = vxpose.xlu1.b32.end [2/2] (short) (narrow) %v962_v9, 32  ;;  %1006 = vst.msk [vmem:[#allocation2 + $0x130] sm:$0xff] %vm967_vm7, %v7377_v40  ;;  %1007 = vst.msk [vmem:[#allocation2 + $0x138] sm:$0xff] %vm967_vm7, %v7377_v40 }
 0x22c   : > { %1322 = vxpose.xlu0.b32.end [2/2] (short) (narrow) %v960_v22, 32  ;;  %1008 = vst.msk [vmem:[#allocation2 + $0x140] sm:$0xff] %vm967_vm7, %v7377_v40  ;;  %1009 = vst.msk [vmem:[#allocation2 + $0x148] sm:$0xff] %vm967_vm7, %v7377_v40 }
 0x22d   : > { %1010 = vst.msk [vmem:[#allocation2 + $0x150] sm:$0xff] %vm967_vm7, %v7377_v40  ;;  %1011 = vst.msk [vmem:[#allocation2 + $0x158] sm:$0xff] %vm967_vm7, %v7377_v40  ;;  %v8036_v42 = vpop.permute.xlu0 %3085 }
 0x22e   : > { %1012 = vst.msk [vmem:[#allocation2 + $0x160] sm:$0xff] %vm967_vm7, %v7377_v40  ;;  %1013 = vst.msk [vmem:[#allocation2 + $0x168] sm:$0xff] %vm967_vm7, %v7377_v40  ;;  %v8038_v43 = vpop.permute.xlu1 %3100 }
 0x22f   : > { %1014 = vst.msk [vmem:[#allocation2 + $0x170] sm:$0xff] %vm967_vm7, %v7377_v40  ;;  %1015 = vst.msk [vmem:[#allocation2 + $0x178] sm:$0xff] %vm967_vm7, %v7377_v40 }
 0x230   : > { %1021 = vst.msk [vmem:[#allocation2 + $0x20] sm:$0xff] %vm1016_vm8, %v7377_v40  ;;  %1017 = vst.msk [vmem:[#allocation2] sm:$0xff] %vm1016_vm8, %v7377_v40 }
 0x231   : > { %1018 = vst.msk [vmem:[#allocation2 + $0x8] sm:$0xff] %vm1016_vm8, %v7377_v40  ;;  %1019 = vst.msk [vmem:[#allocation2 + $0x10] sm:$0xff] %vm1016_vm8, %v7377_v40  ;;  %v8040_v44 = vpop.permute.xlu0 %3095 }
 0x232   : > { %1020 = vst.msk [vmem:[#allocation2 + $0x18] sm:$0xff] %vm1016_vm8, %v7377_v40  ;;  %1022 = vst.msk [vmem:[#allocation2 + $0x28] sm:$0xff] %vm1016_vm8, %v7377_v40  ;;  %v8042_v45 = vpop.permute.xlu1 %3302 }
 0x233   : > { %1023 = vst.msk [vmem:[#allocation2 + $0x30] sm:$0xff] %vm1016_vm8, %v7377_v40  ;;  %1024 = vst.msk [vmem:[#allocation2 + $0x38] sm:$0xff] %vm1016_vm8, %v7377_v40 }
 0x234   : > { %1417 = vxpose.xlu1.b32.start [1/2] (short) (narrow) %v965_v17, 32  ;;  %1025 = vst.msk [vmem:[#allocation2 + $0x40] sm:$0xff] %vm1016_vm8, %v7377_v40  ;;  %1026 = vst.msk [vmem:[#allocation2 + $0x48] sm:$0xff] %vm1016_vm8, %v7377_v40 }
 0x235   : > { %1385 = vxpose.xlu0.b32.start [1/2] (short) (narrow) %v963_v19, 32  ;;  %1027 = vst.msk [vmem:[#allocation2 + $0x50] sm:$0xff] %vm1016_vm8, %v7377_v40  ;;  %1028 = vst.msk [vmem:[#allocation2 + $0x58] sm:$0xff] %vm1016_vm8, %v7377_v40  ;;  %v8044_v46 = vpop.permute.xlu0 %3297 }
 0x236   : > { %1029 = vst.msk [vmem:[#allocation2 + $0x60] sm:$0xff] %vm1016_vm8, %v7377_v40  ;;  %1030 = vst.msk [vmem:[#allocation2 + $0x68] sm:$0xff] %vm1016_vm8, %v7377_v40  ;;  %v8046_v47 = vpop.permute.xlu1 %3312 }
 0x237   : > { %1031 = vst.msk [vmem:[#allocation2 + $0x70] sm:$0xff] %vm1016_vm8, %v7377_v40  ;;  %1032 = vst.msk [vmem:[#allocation2 + $0x78] sm:$0xff] %vm1016_vm8, %v7377_v40 }
 0x238   : > { %1418 = vxpose.xlu1.b32.end [2/2] (short) (narrow) %v966_v62, 32  ;;  %1033 = vst.msk [vmem:[#allocation2 + $0x80] sm:$0xff] %vm1016_vm8, %v7377_v40  ;;  %1034 = vst.msk [vmem:[#allocation2 + $0x88] sm:$0xff] %vm1016_vm8, %v7377_v40 }
 0x239   : > { %1386 = vxpose.xlu0.b32.end [2/2] (short) (narrow) %v964_v24, 32  ;;  %1035 = vst.msk [vmem:[#allocation2 + $0x90] sm:$0xff] %vm1016_vm8, %v7377_v40  ;;  %1036 = vst.msk [vmem:[#allocation2 + $0x98] sm:$0xff] %vm1016_vm8, %v7377_v40  ;;  %v8048_v48 = vpop.permute.xlu0 %3307 }
 0x23a   : > { %1037 = vst.msk [vmem:[#allocation2 + $0xa0] sm:$0xff] %vm1016_vm8, %v7377_v40  ;;  %1038 = vst.msk [vmem:[#allocation2 + $0xa8] sm:$0xff] %vm1016_vm8, %v7377_v40 }
 0x23b   : > { %1039 = vst.msk [vmem:[#allocation2 + $0xb0] sm:$0xff] %vm1016_vm8, %v7377_v40  ;;  %1040 = vst.msk [vmem:[#allocation2 + $0xb8] sm:$0xff] %vm1016_vm8, %v7377_v40 }
 0x23c   : > { %1041 = vst.msk [vmem:[#allocation2 + $0xc0] sm:$0xff] %vm1016_vm8, %v7377_v40  ;;  %1042 = vst.msk [vmem:[#allocation2 + $0xc8] sm:$0xff] %vm1016_vm8, %v7377_v40 }
 0x23d   : > { %1043 = vst.msk [vmem:[#allocation2 + $0xd0] sm:$0xff] %vm1016_vm8, %v7377_v40  ;;  %1044 = vst.msk [vmem:[#allocation2 + $0xd8] sm:$0xff] %vm1016_vm8, %v7377_v40 }
 0x23e   : > { %1045 = vst.msk [vmem:[#allocation2 + $0xe0] sm:$0xff] %vm1016_vm8, %v7377_v40  ;;  %1046 = vst.msk [vmem:[#allocation2 + $0xe8] sm:$0xff] %vm1016_vm8, %v7377_v40 }
 0x23f   : > { %1047 = vst.msk [vmem:[#allocation2 + $0xf0] sm:$0xff] %vm1016_vm8, %v7377_v40  ;;  %1048 = vst.msk [vmem:[#allocation2 + $0xf8] sm:$0xff] %vm1016_vm8, %v7377_v40 }
 0x240   : > { %1049 = vst.msk [vmem:[#allocation2 + $0x100] sm:$0xff] %vm1016_vm8, %v7377_v40  ;;  %1050 = vst.msk [vmem:[#allocation2 + $0x108] sm:$0xff] %vm1016_vm8, %v7377_v40 }
 0x241   : > { %1051 = vst.msk [vmem:[#allocation2 + $0x110] sm:$0xff] %vm1016_vm8, %v7377_v40  ;;  %1052 = vst.msk [vmem:[#allocation2 + $0x118] sm:$0xff] %vm1016_vm8, %v7377_v40 }
 0x242   : > { %1053 = vst.msk [vmem:[#allocation2 + $0x120] sm:$0xff] %vm1016_vm8, %v7377_v40  ;;  %1054 = vst.msk [vmem:[#allocation2 + $0x128] sm:$0xff] %vm1016_vm8, %v7377_v40 }
 0x243   : > { %1055 = vst.msk [vmem:[#allocation2 + $0x130] sm:$0xff] %vm1016_vm8, %v7377_v40  ;;  %1056 = vst.msk [vmem:[#allocation2 + $0x138] sm:$0xff] %vm1016_vm8, %v7377_v40 }
 0x244   : > { %1057 = vst.msk [vmem:[#allocation2 + $0x140] sm:$0xff] %vm1016_vm8, %v7377_v40  ;;  %1058 = vst.msk [vmem:[#allocation2 + $0x148] sm:$0xff] %vm1016_vm8, %v7377_v40 }
 0x245   : > { %1059 = vst.msk [vmem:[#allocation2 + $0x150] sm:$0xff] %vm1016_vm8, %v7377_v40  ;;  %1060 = vst.msk [vmem:[#allocation2 + $0x158] sm:$0xff] %vm1016_vm8, %v7377_v40 }
 0x246   : > { %1061 = vst.msk [vmem:[#allocation2 + $0x160] sm:$0xff] %vm1016_vm8, %v7377_v40  ;;  %1062 = vst.msk [vmem:[#allocation2 + $0x168] sm:$0xff] %vm1016_vm8, %v7377_v40 }
 0x247   : > { %1063 = vst.msk [vmem:[#allocation2 + $0x170] sm:$0xff] %vm1016_vm8, %v7377_v40  ;;  %1064 = vst.msk [vmem:[#allocation2 + $0x178] sm:$0xff] %vm1016_vm8, %v7377_v40 }
 0x273   : > { %v1113_v49 = vpop.trf.xlu1 }
 0x274   : > { %1505 = vrot.lane.b32.xlu1 %v1113_v49, %s7378_s11  ;;  %v1081_v50 = vpop.trf.xlu0 }
 0x275   : > { %1497 = vrot.lane.b32.xlu0 %v1081_v50, %s7378_s11 }
 0x277   : > { %v1114_v52 = vpop.trf.xlu1 }
 0x278   : > { %v1082_v53 = vpop.trf.xlu0 }
 0x279   : > { %1507 = vrot.lane.b32.xlu0 %v1114_v52, %s7378_s11  ;;  %1499 = vrot.lane.b32.xlu1 %v1082_v53, %s7378_s11 }
 0x27b   : > { %v1115_v55 = vpop.trf.xlu1 }
 0x27c   : > { %v1083_v56 = vpop.trf.xlu0 }
 0x27d   : > { %1509 = vrot.lane.b32.xlu1 %v1115_v55, %s7378_s11 }
 0x27f   : > { %v1116_v57 = vpop.trf.xlu1 }
 0x280   : > { %1511 = vrot.lane.b32.xlu0 %v1116_v57, %s7378_s11  ;;  %v1084_v58 = vpop.trf.xlu0 }
 0x283   : > { %v1177_v59 = vpop.trf.xlu1 }
 0x284   : > { %1521 = vrot.lane.b32.xlu1 %v1177_v59, %s7378_s11  ;;  %v1145_v61 = vpop.trf.xlu0 }
 0x287   : > { %v1178_v63 = vpop.trf.xlu1 }
 0x288   : > { %1523 = vrot.lane.b32.xlu0 %v1178_v63, %s7378_s11  ;;  %1501 = vrot.lane.b32.xlu1 %v1083_v56, %s7378_s11  ;;  %v1146_v1 = vpop.trf.xlu0 }
 0x28b   : > { %v1179_v3 = vpop.trf.xlu1 }
 0x28c   : > { %1513 = vrot.lane.b32.xlu1 %v1145_v61, %s7378_s11  ;;  %1515 = vrot.lane.b32.xlu0 %v1146_v1, %s7378_s11  ;;  %v1147_v4 = vpop.trf.xlu0 }
 0x28f   : > { %v1180_v5 = vpop.trf.xlu1 }
 0x290   : > { %1503 = vrot.lane.b32.xlu1 %v1084_v58, %s7378_s11  ;;  %1527 = vrot.lane.b32.xlu0 %v1180_v5, %s7378_s11  ;;  %v1148_v7 = vpop.trf.xlu0 }
 0x293   : > { %v1241_v9 = vpop.trf.xlu1 }
 0x294   : > { %1525 = vrot.lane.b32.xlu1 %v1179_v3, %s7378_s11  ;;  %v1209_v10 = vpop.trf.xlu0 }
 0x297   : > { %v1242_v22 = vpop.trf.xlu1 }
 0x298   : > { %1537 = vrot.lane.b32.xlu1 %v1241_v9, %s7378_s11  ;;  %1539 = vrot.lane.b32.xlu0 %v1242_v22, %s7378_s11  ;;  %v1210_v13 = vpop.trf.xlu0 }
 0x29b   : > { %v1243_v15 = vpop.trf.xlu1 }
 0x29c   : > { %1517 = vrot.lane.b32.xlu1 %v1147_v4, %s7378_s11  ;;  %1519 = vrot.lane.b32.xlu0 %v1148_v7, %s7378_s11  ;;  %v1211_v16 = vpop.trf.xlu0 }
 0x29f   : > { %v1244_v17 = vpop.trf.xlu1 }
 0x2a0   : > { %1529 = vrot.lane.b32.xlu1 %v1209_v10, %s7378_s11  ;;  %1531 = vrot.lane.b32.xlu0 %v1210_v13, %s7378_s11  ;;  %v1212_v18 = vpop.trf.xlu0 }
 0x2a3   : > { %v1305_v19 = vpop.trf.xlu1 }
 0x2a4   : > { %1541 = vrot.lane.b32.xlu1 %v1243_v15, %s7378_s11  ;;  %1543 = vrot.lane.b32.xlu0 %v1244_v17, %s7378_s11  ;;  %v1273_v62 = vpop.trf.xlu0 }
 0x2a7   : > { %v1306_v24 = vpop.trf.xlu1 }
 0x2a8   : > { %1553 = vrot.lane.b32.xlu1 %v1305_v19, %s7378_s11  ;;  %1555 = vrot.lane.b32.xlu0 %v1306_v24, %s7378_s11  ;;  %v1274_v40 = vpop.trf.xlu0 }
 0x2ab   : > { %v1307_v49 = vpop.trf.xlu1 }
 0x2ac   : > { %1533 = vrot.lane.b32.xlu1 %v1211_v16, %s7378_s11  ;;  %1535 = vrot.lane.b32.xlu0 %v1212_v18, %s7378_s11  ;;  %v1275_v50 = vpop.trf.xlu0 }
 0x2af   : > { %v1308_v52 = vpop.trf.xlu1 }
 0x2b0   : > { %1545 = vrot.lane.b32.xlu1 %v1273_v62, %s7378_s11  ;;  %1547 = vrot.lane.b32.xlu0 %v1274_v40, %s7378_s11  ;;  %v1276_v53 = vpop.trf.xlu0 }
 0x2b3   : > { %v1369_v55 = vpop.trf.xlu1 }
 0x2b4   : > { %1557 = vrot.lane.b32.xlu1 %v1307_v49, %s7378_s11  ;;  %1559 = vrot.lane.b32.xlu0 %v1308_v52, %s7378_s11  ;;  %v1337_v56 = vpop.trf.xlu0 }
 0x2b7   : > { %v1370_v57 = vpop.trf.xlu1 }
 0x2b8   : > { %1569 = vrot.lane.b32.xlu1 %v1369_v55, %s7378_s11  ;;  %1571 = vrot.lane.b32.xlu0 %v1370_v57, %s7378_s11  ;;  %v1338_v58 = vpop.trf.xlu0 }
 0x2bb   : > { %v1371_v59 = vpop.trf.xlu1 }
 0x2bc   : > { %1549 = vrot.lane.b32.xlu1 %v1275_v50, %s7378_s11  ;;  %1551 = vrot.lane.b32.xlu0 %v1276_v53, %s7378_s11  ;;  %v1339_v61 = vpop.trf.xlu0 }
 0x2bf   : > { %v1372_v63 = vpop.trf.xlu1 }
 0x2c0   : > { %1561 = vrot.lane.b32.xlu1 %v1337_v56, %s7378_s11  ;;  %1563 = vrot.lane.b32.xlu0 %v1338_v58, %s7378_s11  ;;  %v1340_v1 = vpop.trf.xlu0 }
 0x2c3   : > { %v1433_v3 = vpop.trf.xlu1 }
 0x2c4   : > { %1573 = vrot.lane.b32.xlu1 %v1371_v59, %s7378_s11  ;;  %1575 = vrot.lane.b32.xlu0 %v1372_v63, %s7378_s11  ;;  %v1401_v4 = vpop.trf.xlu0 }
 0x2c7   : > { %v1434_v5 = vpop.trf.xlu1 }
 0x2c8   : > { %1585 = vrot.lane.b32.xlu1 %v1433_v3, %s7378_s11  ;;  %1587 = vrot.lane.b32.xlu0 %v1434_v5, %s7378_s11  ;;  %v1402_v7 = vpop.trf.xlu0 }
 0x2cb   : > { %v1435_v9 = vpop.trf.xlu1 }
 0x2cc   : > { %1565 = vrot.lane.b32.xlu1 %v1339_v61, %s7378_s11  ;;  %1567 = vrot.lane.b32.xlu0 %v1340_v1, %s7378_s11  ;;  %v1403_v10 = vpop.trf.xlu0 }
 0x2cf   : > { %v1436_v22 = vpop.trf.xlu1 }
 0x2d0   : > { %1577 = vrot.lane.b32.xlu1 %v1401_v4, %s7378_s11  ;;  %1579 = vrot.lane.b32.xlu0 %v1402_v7, %s7378_s11  ;;  %v1404_v13 = vpop.trf.xlu0 }
 0x2d4   : > { %1589 = vrot.lane.b32.xlu1 %v1435_v9, %s7378_s11  ;;  %1591 = vrot.lane.b32.xlu0 %v1436_v22, %s7378_s11 }
 0x2d8   : > { %1581 = vrot.lane.b32.xlu1 %v1403_v10, %s7378_s11  ;;  %1583 = vrot.lane.b32.xlu0 %v1404_v13, %s7378_s11 }
 0x2e6   : > { %v1506_v15 = vpop.permute.xlu1 %1505 }
 0x2e7   : > { %1646 = vst.msk [vmem:[#allocation2 + $0x20] sm:$0xff] %vm1641_vm9, %v1506_v15  ;;  %v1498_v16 = vpop.permute.xlu0 %1497 }
 0x2e8   : > { %1642 = vst.msk [vmem:[#allocation2] sm:$0xff] %vm1641_vm9, %v1498_v16 }
 0x2eb   : > { %v1500_v17 = vpop.permute.xlu1 %1499  ;;  %v1508_v18 = vpop.permute.xlu0 %1507 }
 0x2ec   : > { %1643 = vst.msk [vmem:[#allocation2 + $0x8] sm:$0xff] %vm1641_vm9, %v1500_v17  ;;  %1647 = vst.msk [vmem:[#allocation2 + $0x28] sm:$0xff] %vm1641_vm9, %v1508_v18 }
 0x2ee   : > { %v1794_v19 = vld [vmem:[#allocation2 + $0x20] sm:$0xff] }
 0x2ef   : > { %v1510_v62 = vpop.permute.xlu1 %1509  ;;  %v1930_v24 = vmul.f32 %v7776_v38, %v1794_v19  ;;  %v2142_v49 = vmul.f32 %v7802_v0, %v1794_v19  ;;  %v2354_v55 = vmul.f32 %v7812_v14, %v1794_v19  ;;  %v2566_v59 = vmul.f32 %v7820_v26, %v1794_v19  ;;  %v1790_v16 = vld [vmem:[#allocation2] sm:$0xff] }
 0x2f0   : > { %1648 = vst.msk [vmem:[#allocation2 + $0x30] sm:$0xff] %vm1641_vm9, %v1510_v62  ;;  %v2891_v3 = vmul.f32 %v7836_v36, %v1794_v19  ;;  %v3103_v9 = vmul.f32 %v8036_v42, %v1794_v19  ;;  %v3315_v13 = vmul.f32 %v8044_v46, %v1794_v19  ;;  %v1926_v62 = vmul.f32 %v7776_v38, %v1790_v16 }
 0x2f1   : > { %1998 = vrot.lane.b32.xlu0 %v1930_v24, %s12998_s21 }
 0x2f2   : > { %v1512_v40 = vpop.permute.xlu0 %1511 }
 0x2f3   : > { %1649 = vst.msk [vmem:[#allocation2 + $0x38] sm:$0xff] %vm1641_vm9, %v1512_v40  ;;  %v1795_v50 = vld [vmem:[#allocation2 + $0x28] sm:$0xff] }
 0x2f4   : > { %v1931_v52 = vmul.f32 %v7770_v35, %v1795_v50  ;;  %v2143_v56 = vmul.f32 %v7799_v60, %v1795_v50  ;;  %v2355_v61 = vmul.f32 %v7810_v11, %v1795_v50  ;;  %v2567_v4 = vmul.f32 %v7818_v25, %v1795_v50  ;;  %v1791_v19 = vld [vmem:[#allocation2 + $0x8] sm:$0xff] }
 0x2f5   : > { %2210 = vrot.lane.b32.xlu0 %v2142_v49, %s12996_s13  ;;  %v2892_v10 = vmul.f32 %v7834_v34, %v1795_v50  ;;  %v3104_v15 = vmul.f32 %v8034_v41, %v1795_v50  ;;  %v3316_v24 = vmul.f32 %v8042_v45, %v1795_v50 }
 0x2f6   : > { %v1522_v53 = vpop.permute.xlu1 %1521  ;;  %2000 = vrot.lane.b32.xlu1 %v1931_v52, %s12998_s21  ;;  %v2138_v52 = vmul.f32 %v7802_v0, %v1790_v16 }
 0x2f7   : > { %1654 = vst.msk [vmem:[#allocation2 + $0x60] sm:$0xff] %vm1641_vm9, %v1522_v53  ;;  %v1927_v53 = vmul.f32 %v7770_v35, %v1791_v19 }
 0x2f9   : > { %2422 = vrot.lane.b32.xlu0 %v2354_v55, %s12990_s18 }
 0x2fa   : > { %v1502_v57 = vpop.permute.xlu1 %1501  ;;  %2212 = vrot.lane.b32.xlu1 %v2143_v56, %s12996_s13  ;;  %v1524_v58 = vpop.permute.xlu0 %1523  ;;  %v2350_v56 = vmul.f32 %v7812_v14, %v1790_v16 }
 0x2fb   : > { %1644 = vst.msk [vmem:[#allocation2 + $0x10] sm:$0xff] %vm1641_vm9, %v1502_v57  ;;  %1655 = vst.msk [vmem:[#allocation2 + $0x68] sm:$0xff] %vm1641_vm9, %v1524_v58  ;;  %v2139_v57 = vmul.f32 %v7799_v60, %v1791_v19 }
 0x2fd   : > { %2634 = vrot.lane.b32.xlu0 %v2566_v59, %s12988_s22 }
 0x2fe   : > { %v1514_v63 = vpop.permute.xlu1 %1513  ;;  %2424 = vrot.lane.b32.xlu1 %v2355_v61, %s12990_s18  ;;  %v1516_v1 = vpop.permute.xlu0 %1515  ;;  %v2562_v61 = vmul.f32 %v7820_v26, %v1790_v16 }
 0x2ff   : > { %1650 = vst.msk [vmem:[#allocation2 + $0x40] sm:$0xff] %vm1641_vm9, %v1514_v63  ;;  %1651 = vst.msk [vmem:[#allocation2 + $0x48] sm:$0xff] %vm1641_vm9, %v1516_v1  ;;  %v2351_v63 = vmul.f32 %v7810_v11, %v1791_v19  ;;  %v8160_v1 = vld [vmem:[#allocation2 + $0x30] sm:$0xff] }
 0x301   : > { %2955 = vrot.lane.b32.xlu0 %v2891_v3, %s12998_s21 }
 0x302   : > { %v1504_v5 = vpop.permute.xlu1 %1503  ;;  %2636 = vrot.lane.b32.xlu1 %v2567_v4, %s12988_s22  ;;  %v1528_v7 = vpop.permute.xlu0 %1527 }
 0x303   : > { %1645 = vst.msk [vmem:[#allocation2 + $0x18] sm:$0xff] %vm1641_vm9, %v1504_v5  ;;  %1657 = vst.msk [vmem:[#allocation2 + $0x78] sm:$0xff] %vm1641_vm9, %v1528_v7  ;;  %v1932_v5 = vmul.f32 %v7792_v54, %v8160_v1  ;;  %v2563_v7 = vmul.f32 %v7818_v25, %v1791_v19 }
 0x305   : > { %3167 = vrot.lane.b32.xlu0 %v3103_v9, %s12996_s13  ;;  %v8169_v9 = vld [vmem:[#allocation2 + $0x60] sm:$0xff] }
 0x306   : > { %v1526_v22 = vpop.permute.xlu1 %1525  ;;  %2957 = vrot.lane.b32.xlu1 %v2892_v10, %s12998_s21  ;;  %v8172_v10 = vld [vmem:[#allocation2 + $0x38] sm:$0xff] }
 0x307   : > { %1656 = vst.msk [vmem:[#allocation2 + $0x70] sm:$0xff] %vm1641_vm9, %v1526_v22  ;;  %v1933_v16 = vmul.f32 %v7787_v51, %v8172_v10 }
 0x309   : > { %3379 = vrot.lane.b32.xlu0 %v3315_v13, %s12990_s18 }
 0x30a   : > { %v1538_v17 = vpop.permute.xlu1 %1537  ;;  %3169 = vrot.lane.b32.xlu1 %v3104_v15, %s12996_s13  ;;  %v1540_v18 = vpop.permute.xlu0 %1539  ;;  %v1938_v15 = vmul.f32 %v7776_v38, %v8169_v9 }
 0x30b   : > { %1662 = vst.msk [vmem:[#allocation2 + $0xa0] sm:$0xff] %vm1641_vm9, %v1538_v17  ;;  %1663 = vst.msk [vmem:[#allocation2 + $0xa8] sm:$0xff] %vm1641_vm9, %v1540_v18  ;;  %v8182_v17 = vld [vmem:[#allocation2 + $0x68] sm:$0xff] }
 0x30c   : > { %v1939_v19 = vmul.f32 %v7770_v35, %v8182_v17 }
 0x30d   : > { %1990 = vrot.lane.b32.xlu0 %v1926_v62, %s12998_s21 }
 0x30e   : > { %v1518_v40 = vpop.permute.xlu1 %1517  ;;  %3381 = vrot.lane.b32.xlu1 %v3316_v24, %s12990_s18  ;;  %v1520_v49 = vpop.permute.xlu0 %1519  ;;  %v2144_v24 = vmul.f32 %v7807_v8, %v8160_v1 }
 0x30f   : > { %1652 = vst.msk [vmem:[#allocation2 + $0x50] sm:$0xff] %vm1641_vm9, %v1518_v40  ;;  %1653 = vst.msk [vmem:[#allocation2 + $0x58] sm:$0xff] %vm1641_vm9, %v1520_v49 }
 0x311   : > { %2202 = vrot.lane.b32.xlu0 %v2138_v52, %s12996_s13  ;;  %v2150_v52 = vmul.f32 %v7802_v0, %v8169_v9 }
 0x312   : > { %v1530_v55 = vpop.permute.xlu1 %1529  ;;  %1992 = vrot.lane.b32.xlu1 %v1927_v53, %s12998_s21  ;;  %v1532_v50 = vpop.permute.xlu0 %1531  ;;  %v2145_v53 = vmul.f32 %v7804_v6, %v8172_v10 }
 0x313   : > { %1658 = vst.msk [vmem:[#allocation2 + $0x80] sm:$0xff] %vm1641_vm9, %v1530_v55  ;;  %1659 = vst.msk [vmem:[#allocation2 + $0x88] sm:$0xff] %vm1641_vm9, %v1532_v50 }
 0x315   : > { %2414 = vrot.lane.b32.xlu0 %v2350_v56, %s12990_s18  ;;  %v2356_v56 = vmul.f32 %v7816_v21, %v8160_v1 }
 0x316   : > { %v1542_v58 = vpop.permute.xlu1 %1541  ;;  %2204 = vrot.lane.b32.xlu1 %v2139_v57, %s12996_s13  ;;  %v1544_v59 = vpop.permute.xlu0 %1543  ;;  %v2151_v57 = vmul.f32 %v7799_v60, %v8182_v17 }
 0x317   : > { %1664 = vst.msk [vmem:[#allocation2 + $0xb0] sm:$0xff] %vm1641_vm9, %v1542_v58  ;;  %1665 = vst.msk [vmem:[#allocation2 + $0xb8] sm:$0xff] %vm1641_vm9, %v1544_v59 }
 0x319   : > { %2626 = vrot.lane.b32.xlu0 %v2562_v61, %s12988_s22  ;;  %v2362_v61 = vmul.f32 %v7812_v14, %v8169_v9 }
 0x31a   : > { %v1554_v3 = vpop.permute.xlu1 %1553  ;;  %2416 = vrot.lane.b32.xlu1 %v2351_v63, %s12990_s18  ;;  %v1556_v4 = vpop.permute.xlu0 %1555  ;;  %v2357_v63 = vmul.f32 %v7814_v20, %v8172_v10 }
 0x31b   : > { %1670 = vst.msk [vmem:[#allocation2 + $0xe0] sm:$0xff] %vm1641_vm9, %v1554_v3  ;;  %1671 = vst.msk [vmem:[#allocation2 + $0xe8] sm:$0xff] %vm1641_vm9, %v1556_v4 }
 0x31d   : > { %2002 = vrot.lane.b32.xlu0 %v1932_v5, %s12998_s21  ;;  %v2568_v5 = vmul.f32 %v7824_v29, %v8160_v1 }
 0x31e   : > { %v1534_v22 = vpop.permute.xlu1 %1533  ;;  %2628 = vrot.lane.b32.xlu1 %v2563_v7, %s12988_s22  ;;  %v1536_v13 = vpop.permute.xlu0 %1535  ;;  %v2363_v7 = vmul.f32 %v7810_v11, %v8182_v17 }
 0x31f   : > { %1660 = vst.msk [vmem:[#allocation2 + $0x90] sm:$0xff] %vm1641_vm9, %v1534_v22  ;;  %1661 = vst.msk [vmem:[#allocation2 + $0x98] sm:$0xff] %vm1641_vm9, %v1536_v13 }
 0x321   : > { %2014 = vrot.lane.b32.xlu0 %v1938_v15, %s12998_s21  ;;  %v2574_v15 = vmul.f32 %v7820_v26, %v8169_v9 }
 0x322   : > { %v1546_v18 = vpop.permute.xlu1 %1545  ;;  %2004 = vrot.lane.b32.xlu1 %v1933_v16, %s12998_s21  ;;  %v1548_v62 = vpop.permute.xlu0 %1547  ;;  %v2569_v16 = vmul.f32 %v7822_v28, %v8172_v10 }
 0x323   : > { %1666 = vst.msk [vmem:[#allocation2 + $0xc0] sm:$0xff] %vm1641_vm9, %v1546_v18  ;;  %1667 = vst.msk [vmem:[#allocation2 + $0xc8] sm:$0xff] %vm1641_vm9, %v1548_v62 }
 0x325   : > { %2214 = vrot.lane.b32.xlu0 %v2144_v24, %s12996_s13  ;;  %v2893_v24 = vmul.f32 %v7840_v39, %v8160_v1 }
 0x326   : > { %v1558_v40 = vpop.permute.xlu1 %1557  ;;  %2016 = vrot.lane.b32.xlu1 %v1939_v19, %s12998_s21  ;;  %v1560_v49 = vpop.permute.xlu0 %1559  ;;  %v2575_v19 = vmul.f32 %v7818_v25, %v8182_v17 }
 0x327   : > { %1672 = vst.msk [vmem:[#allocation2 + $0xf0] sm:$0xff] %vm1641_vm9, %v1558_v40  ;;  %1673 = vst.msk [vmem:[#allocation2 + $0xf8] sm:$0xff] %vm1641_vm9, %v1560_v49 }
 0x329   : > { %2226 = vrot.lane.b32.xlu0 %v2150_v52, %s12996_s13  ;;  %v2899_v52 = vmul.f32 %v7836_v36, %v8169_v9 }
 0x32a   : > { %v1570_v55 = vpop.permute.xlu1 %1569  ;;  %2216 = vrot.lane.b32.xlu1 %v2145_v53, %s12996_s13  ;;  %v1572_v50 = vpop.permute.xlu0 %1571  ;;  %v2894_v53 = vmul.f32 %v7838_v37, %v8172_v10 }
 0x32b   : > { %1678 = vst.msk [vmem:[#allocation2 + $0x120] sm:$0xff] %vm1641_vm9, %v1570_v55  ;;  %1679 = vst.msk [vmem:[#allocation2 + $0x128] sm:$0xff] %vm1641_vm9, %v1572_v50 }
 0x32d   : > { %2426 = vrot.lane.b32.xlu0 %v2356_v56, %s12990_s18  ;;  %v3105_v56 = vmul.f32 %v8040_v44, %v8160_v1 }
 0x32e   : > { %v1550_v58 = vpop.permute.xlu1 %1549  ;;  %2228 = vrot.lane.b32.xlu1 %v2151_v57, %s12996_s13  ;;  %v1552_v59 = vpop.permute.xlu0 %1551  ;;  %v2900_v57 = vmul.f32 %v7834_v34, %v8182_v17 }
 0x32f   : > { %1668 = vst.msk [vmem:[#allocation2 + $0xd0] sm:$0xff] %vm1641_vm9, %v1550_v58  ;;  %1669 = vst.msk [vmem:[#allocation2 + $0xd8] sm:$0xff] %vm1641_vm9, %v1552_v59 }
 0x331   : > { %2438 = vrot.lane.b32.xlu0 %v2362_v61, %s12990_s18  ;;  %v3111_v61 = vmul.f32 %v8036_v42, %v8169_v9 }
 0x332   : > { %v1562_v3 = vpop.permute.xlu1 %1561  ;;  %2428 = vrot.lane.b32.xlu1 %v2357_v63, %s12990_s18  ;;  %v1564_v4 = vpop.permute.xlu0 %1563  ;;  %v3106_v63 = vmul.f32 %v8038_v43, %v8172_v10 }
 0x333   : > { %1674 = vst.msk [vmem:[#allocation2 + $0x100] sm:$0xff] %vm1641_vm9, %v1562_v3  ;;  %1675 = vst.msk [vmem:[#allocation2 + $0x108] sm:$0xff] %vm1641_vm9, %v1564_v4 }
 0x335   : > { %2638 = vrot.lane.b32.xlu0 %v2568_v5, %s12988_s22  ;;  %v3317_v5 = vmul.f32 %v8048_v48, %v8160_v1 }
 0x336   : > { %v1574_v22 = vpop.permute.xlu1 %1573  ;;  %2440 = vrot.lane.b32.xlu1 %v2363_v7, %s12990_s18  ;;  %v1576_v13 = vpop.permute.xlu0 %1575  ;;  %v3112_v7 = vmul.f32 %v8034_v41, %v8182_v17 }
 0x337   : > { %1680 = vst.msk [vmem:[#allocation2 + $0x130] sm:$0xff] %vm1641_vm9, %v1574_v22  ;;  %1681 = vst.msk [vmem:[#allocation2 + $0x138] sm:$0xff] %vm1641_vm9, %v1576_v13  ;;  %v3323_v22 = vmul.f32 %v8044_v46, %v8169_v9  ;;  %v3318_v13 = vmul.f32 %v8046_v47, %v8172_v10 }
 0x339   : > { %2650 = vrot.lane.b32.xlu0 %v2574_v15, %s12988_s22  ;;  %v1792_v15 = vld [vmem:[#allocation2 + $0x10] sm:$0xff] }
 0x33a   : > { %v1586_v18 = vpop.permute.xlu1 %1585  ;;  %2640 = vrot.lane.b32.xlu1 %v2569_v16, %s12988_s22  ;;  %v1588_v62 = vpop.permute.xlu0 %1587  ;;  %v1928_v1 = vmul.f32 %v7792_v54, %v1792_v15  ;;  %v3324_v16 = vmul.f32 %v8042_v45, %v8182_v17 }
 0x33b   : > { %1686 = vst.msk [vmem:[#allocation2 + $0x160] sm:$0xff] %vm1641_vm9, %v1586_v18  ;;  %1687 = vst.msk [vmem:[#allocation2 + $0x168] sm:$0xff] %vm1641_vm9, %v1588_v62  ;;  %v1798_v18 = vld [vmem:[#allocation2 + $0x40] sm:$0xff]  ;;  %v1793_v62 = vld [vmem:[#allocation2 + $0x18] sm:$0xff] }
 0x33c   : > { %v1934_v9 = vmul.f32 %v7776_v38, %v1798_v18  ;;  %v1929_v10 = vmul.f32 %v7787_v51, %v1793_v62  ;;  %v2146_v17 = vmul.f32 %v7802_v0, %v1798_v18 }
 0x33d   : > { %2959 = vrot.lane.b32.xlu0 %v2893_v24, %s12998_s21  ;;  %v1799_v24 = vld [vmem:[#allocation2 + $0x48] sm:$0xff] }
 0x33e   : > { %v1566_v40 = vpop.permute.xlu1 %1565  ;;  %2652 = vrot.lane.b32.xlu1 %v2575_v19, %s12988_s22  ;;  %v1568_v49 = vpop.permute.xlu0 %1567  ;;  %v2140_v19 = vmul.f32 %v7807_v8, %v1792_v15 }
 0x33f   : > { %1676 = vst.msk [vmem:[#allocation2 + $0x110] sm:$0xff] %vm1641_vm9, %v1566_v40  ;;  %1677 = vst.msk [vmem:[#allocation2 + $0x118] sm:$0xff] %vm1641_vm9, %v1568_v49  ;;  %v1935_v40 = vmul.f32 %v7770_v35, %v1799_v24  ;;  %v2141_v49 = vmul.f32 %v7804_v6, %v1793_v62 }
 0x341   : > { %2971 = vrot.lane.b32.xlu0 %v2899_v52, %s12998_s21 }
 0x342   : > { %2961 = vrot.lane.b32.xlu1 %v2894_v53, %s12998_s21  ;;  %v1578_v55 = vpop.permute.xlu1 %1577  ;;  %v1580_v50 = vpop.permute.xlu0 %1579  ;;  %v2352_v53 = vmul.f32 %v7816_v21, %v1792_v15 }
 0x343   : > { %1682 = vst.msk [vmem:[#allocation2 + $0x140] sm:$0xff] %vm1641_vm9, %v1578_v55  ;;  %1683 = vst.msk [vmem:[#allocation2 + $0x148] sm:$0xff] %vm1641_vm9, %v1580_v50  ;;  %v2147_v55 = vmul.f32 %v7799_v60, %v1799_v24 }
 0x345   : > { %3171 = vrot.lane.b32.xlu0 %v3105_v56, %s12996_s13  ;;  %v2358_v56 = vmul.f32 %v7812_v14, %v1798_v18 }
 0x346   : > { %2973 = vrot.lane.b32.xlu1 %v2900_v57, %s12998_s21  ;;  %v1590_v58 = vpop.permute.xlu1 %1589  ;;  %v1592_v59 = vpop.permute.xlu0 %1591 }
 0x347   : > { %1688 = vst.msk [vmem:[#allocation2 + $0x170] sm:$0xff] %vm1641_vm9, %v1590_v58  ;;  %1689 = vst.msk [vmem:[#allocation2 + $0x178] sm:$0xff] %vm1641_vm9, %v1592_v59  ;;  %v2353_v58 = vmul.f32 %v7814_v20, %v1793_v62 }
 0x349   : > { %3183 = vrot.lane.b32.xlu0 %v3111_v61, %s12996_s13  ;;  %v2564_v61 = vmul.f32 %v7824_v29, %v1792_v15  ;;  %v2895_v15 = vmul.f32 %v7836_v36, %v1798_v18 }
 0x34a   : > { %3173 = vrot.lane.b32.xlu1 %v3106_v63, %s12996_s13  ;;  %v1582_v3 = vpop.permute.xlu1 %1581  ;;  %v1584_v4 = vpop.permute.xlu0 %1583 }
 0x34b   : > { %1684 = vst.msk [vmem:[#allocation2 + $0x150] sm:$0xff] %vm1641_vm9, %v1582_v3  ;;  %1685 = vst.msk [vmem:[#allocation2 + $0x158] sm:$0xff] %vm1641_vm9, %v1584_v4  ;;  %v2359_v3 = vmul.f32 %v7810_v11, %v1799_v24 }
 0x34d   : > { %3383 = vrot.lane.b32.xlu0 %v3317_v5, %s12990_s18  ;;  %v2570_v5 = vmul.f32 %v7820_v26, %v1798_v18 }
 0x34e   : > { %3185 = vrot.lane.b32.xlu1 %v3112_v7, %s12996_s13 }
 0x351   : > { %3395 = vrot.lane.b32.xlu0 %v3323_v22, %s12990_s18  ;;  %v2565_v22 = vmul.f32 %v7822_v28, %v1793_v62  ;;  %v3107_v62 = vmul.f32 %v8036_v42, %v1798_v18 }
 0x352   : > { %3385 = vrot.lane.b32.xlu1 %v3318_v13, %s12990_s18 }
 0x355   : > { %1994 = vrot.lane.b32.xlu0 %v1928_v1, %s12998_s21 }
 0x356   : > { %3397 = vrot.lane.b32.xlu1 %v3324_v16, %s12990_s18  ;;  %v2571_v16 = vmul.f32 %v7818_v25, %v1799_v24 }
 0x359   : > { %2006 = vrot.lane.b32.xlu0 %v1934_v9, %s12998_s21 }
 0x35a   : > { %1996 = vrot.lane.b32.xlu1 %v1929_v10, %s12998_s21 }
 0x35d   : > { %2206 = vrot.lane.b32.xlu0 %v2140_v19, %s12996_s13  ;;  %v2896_v19 = vmul.f32 %v7834_v34, %v1799_v24 }
 0x35e   : > { %2008 = vrot.lane.b32.xlu1 %v1935_v40, %s12998_s21 }
 0x361   : > { %2218 = vrot.lane.b32.xlu0 %v2146_v17, %s12996_s13  ;;  %v3319_v17 = vmul.f32 %v8044_v46, %v1798_v18  ;;  %v8359_v18 = vld [vmem:[#allocation2 + $0xa0] sm:$0xff] }
 0x362   : > { %2208 = vrot.lane.b32.xlu1 %v2141_v49, %s12996_s13 }
 0x363   : > { %v8296_v52 = vpop.permute.xlu0 %1998 }
 0x365   : > { %2418 = vrot.lane.b32.xlu0 %v2352_v53, %s12990_s18  ;;  %v3108_v53 = vmul.f32 %v8034_v41, %v1799_v24 }
 0x366   : > { %2220 = vrot.lane.b32.xlu1 %v2147_v55, %s12996_s13  ;;  %v8348_v55 = vld [vmem:[#allocation2 + $0x70] sm:$0xff] }
 0x367   : > { %v8302_v50 = vpop.permute.xlu0 %2210 }
 0x368   : > { %13056 = vst [vmem:[#allocation8_spill] sm:$0xff] %v8302_v50  ;;  %v8305_v57 = vpop.permute.xlu1 %2000  ;;  %v8808_v50 = vld [vmem:[#allocation2 + $0xc8] sm:$0xff] }
 0x369   : > { %2430 = vrot.lane.b32.xlu0 %v2358_v56, %s12990_s18 }
 0x36a   : > { %2420 = vrot.lane.b32.xlu1 %v2353_v58, %s12990_s18  ;;  %v1940_v58 = vmul.f32 %v7792_v54, %v8348_v55 }
 0x36b   : > { %v8310_v59 = vpop.permute.xlu0 %2422 }
 0x36c   : > { %13057 = vst [vmem:[#allocation9_spill] sm:$0xff] %v8310_v59  ;;  %v8313_v63 = vpop.permute.xlu1 %2212 }
 0x36d   : > { %13058 = vst [vmem:[#allocation10_spill] sm:$0xff] %v8313_v63  ;;  %2630 = vrot.lane.b32.xlu0 %v2564_v61, %s12988_s22  ;;  %v8781_v63 = vld [vmem:[#allocation2 + $0x90] sm:$0xff] }
 0x36e   : > { %2432 = vrot.lane.b32.xlu1 %v2359_v3, %s12990_s18  ;;  %v3320_v3 = vmul.f32 %v8042_v45, %v1799_v24  ;;  %v8374_v24 = vld [vmem:[#allocation2 + $0xa8] sm:$0xff] }
 0x36f   : > { %v8318_v4 = vpop.permute.xlu0 %2634 }
 0x370   : > { %13059 = vst [vmem:[#allocation11_spill] sm:$0xff] %v8318_v4  ;;  %v8321_v7 = vpop.permute.xlu1 %2424 }
 0x371   : > { %13060 = vst [vmem:[#allocation12_spill] sm:$0xff] %v8321_v7  ;;  %2642 = vrot.lane.b32.xlu0 %v2570_v5, %s12988_s22  ;;  %v8362_v5 = vld [vmem:[#allocation2 + $0x78] sm:$0xff]  ;;  %v8643_v7 = vld [vmem:[#allocation2 + $0xb0] sm:$0xff] }
 0x372   : > { %2632 = vrot.lane.b32.xlu1 %v2565_v22, %s12988_s22 }
 0x373   : > { %v8326_v13 = vpop.permute.xlu0 %2955 }
 0x374   : > { %13061 = vst [vmem:[#allocation13_spill] sm:$0xff] %v8326_v13  ;;  %v8329_v1 = vpop.permute.xlu1 %2636 }
 0x375   : > { %13062 = vst [vmem:[#allocation14_spill] sm:$0xff] %v8329_v1  ;;  %2963 = vrot.lane.b32.xlu0 %v2895_v15, %s12998_s21  ;;  %v1946_v15 = vmul.f32 %v7776_v38, %v8359_v18 }
 0x376   : > { %2644 = vrot.lane.b32.xlu1 %v2571_v16, %s12988_s22 }
 0x377   : > { %v8334_v9 = vpop.permute.xlu0 %3167 }
 0x378   : > { %13063 = vst [vmem:[#allocation15_spill] sm:$0xff] %v8334_v9  ;;  %v8337_v10 = vpop.permute.xlu1 %2957 }
 0x379   : > { %13064 = vst [vmem:[#allocation16_spill] sm:$0xff] %v8337_v10  ;;  %3175 = vrot.lane.b32.xlu0 %v3107_v62, %s12996_s13  ;;  %v1941_v62 = vmul.f32 %v7787_v51, %v8362_v5  ;;  %v2365_v10 = vmul.f32 %v7814_v20, %v8362_v5 }
 0x37a   : > { %2965 = vrot.lane.b32.xlu1 %v2896_v19, %s12998_s21 }
 0x37b   : > { %v8342_v40 = vpop.permute.xlu0 %3379 }
 0x37c   : > { %13065 = vst [vmem:[#allocation17_spill] sm:$0xff] %v8342_v40  ;;  %v8345_v49 = vpop.permute.xlu1 %3169 }
 0x37d   : > { %13066 = vst [vmem:[#allocation18_spill] sm:$0xff] %v8345_v49  ;;  %3387 = vrot.lane.b32.xlu0 %v3319_v17, %s12990_s18  ;;  %v2152_v17 = vmul.f32 %v7807_v8, %v8348_v55  ;;  %v2159_v49 = vmul.f32 %v7799_v60, %v8374_v24 }
 0x37e   : > { %3177 = vrot.lane.b32.xlu1 %v3108_v53, %s12996_s13 }
 0x37f   : > { %v8352_v56 = vpop.permute.xlu0 %1990 }
 0x380   : > { %v8356_v61 = vpop.permute.xlu1 %3381 }
 0x381   : > { %13067 = vst [vmem:[#allocation19_spill] sm:$0xff] %v8356_v61  ;;  %2018 = vrot.lane.b32.xlu0 %v1940_v58, %s12998_s21  ;;  %v1947_v58 = vmul.f32 %v7770_v35, %v8374_v24  ;;  %v2153_v61 = vmul.f32 %v7804_v6, %v8362_v5 }
 0x382   : > { %3389 = vrot.lane.b32.xlu1 %v3320_v3, %s12990_s18 }
 0x383   : > { %v8365_v22 = vpop.permute.xlu0 %2202 }
 0x384   : > { %v8369_v16 = vpop.permute.xlu1 %1992 }
 0x385   : > { %2030 = vrot.lane.b32.xlu0 %v1946_v15, %s12998_s21  ;;  %v2158_v15 = vmul.f32 %v7802_v0, %v8359_v18 }
 0x386   : > { %2020 = vrot.lane.b32.xlu1 %v1941_v62, %s12998_s21 }
 0x387   : > { %v8377_v19 = vpop.permute.xlu0 %2414 }
 0x388   : > { %v8381_v53 = vpop.permute.xlu1 %2204 }
 0x389   : > { %2230 = vrot.lane.b32.xlu0 %v2152_v17, %s12996_s13  ;;  %v2364_v17 = vmul.f32 %v7816_v21, %v8348_v55 }
 0x38a   : > { %2032 = vrot.lane.b32.xlu1 %v1947_v58, %s12998_s21 }
 0x38b   : > { %v8387_v3 = vpop.permute.xlu0 %2626 }
 0x38c   : > { %v8391_v62 = vpop.permute.xlu1 %2416 }
 0x38d   : > { %2242 = vrot.lane.b32.xlu0 %v2158_v15, %s12996_s13  ;;  %v2370_v15 = vmul.f32 %v7812_v14, %v8359_v18 }
 0x38e   : > { %2232 = vrot.lane.b32.xlu1 %v2153_v61, %s12996_s13 }
 0x38f   : > { %v8397_v40 = vpop.permute.xlu0 %2002 }
 0x390   : > { %13068 = vst [vmem:[#allocation20_spill] sm:$0xff] %v8397_v40  ;;  %v8401_v58 = vpop.permute.xlu1 %2628 }
 0x391   : > { %2442 = vrot.lane.b32.xlu0 %v2364_v17, %s12990_s18  ;;  %v2576_v17 = vmul.f32 %v7824_v29, %v8348_v55 }
 0x392   : > { %2244 = vrot.lane.b32.xlu1 %v2159_v49, %s12996_s13 }
 0x393   : > { %v8407_v9 = vpop.permute.xlu0 %2014 }
 0x394   : > { %13069 = vst [vmem:[#allocation21_spill] sm:$0xff] %v8407_v9  ;;  %v8411_v61 = vpop.permute.xlu1 %2004  ;;  %v2371_v9 = vmul.f32 %v7810_v11, %v8374_v24 }
 0x395   : > { %13070 = vst [vmem:[#allocation22_spill] sm:$0xff] %v8411_v61  ;;  %2454 = vrot.lane.b32.xlu0 %v2370_v15, %s12990_s18  ;;  %v2582_v15 = vmul.f32 %v7820_v26, %v8359_v18 }
 0x396   : > { %2444 = vrot.lane.b32.xlu1 %v2365_v10, %s12990_s18 }
 0x397   : > { %v8417_v40 = vpop.permute.xlu0 %2214 }
 0x398   : > { %13071 = vst [vmem:[#allocation23_spill] sm:$0xff] %v8417_v40  ;;  %v8421_v49 = vpop.permute.xlu1 %2016  ;;  %v2577_v40 = vmul.f32 %v7822_v28, %v8362_v5 }
 0x399   : > { %13072 = vst [vmem:[#allocation24_spill] sm:$0xff] %v8421_v49  ;;  %2654 = vrot.lane.b32.xlu0 %v2576_v17, %s12988_s22  ;;  %v2901_v17 = vmul.f32 %v7840_v39, %v8348_v55 }
 0x39a   : > { %2456 = vrot.lane.b32.xlu1 %v2371_v9, %s12990_s18 }
 0x39b   : > { %v8427_v61 = vpop.permute.xlu0 %2226 }
 0x39c   : > { %13073 = vst [vmem:[#allocation25_spill] sm:$0xff] %v8427_v61  ;;  %v8431_v10 = vpop.permute.xlu1 %2216  ;;  %v2583_v61 = vmul.f32 %v7818_v25, %v8374_v24 }
 0x39d   : > { %13074 = vst [vmem:[#allocation26_spill] sm:$0xff] %v8431_v10  ;;  %2666 = vrot.lane.b32.xlu0 %v2582_v15, %s12988_s22  ;;  %v2907_v15 = vmul.f32 %v7836_v36, %v8359_v18 }
 0x39e   : > { %2656 = vrot.lane.b32.xlu1 %v2577_v40, %s12988_s22 }
 0x39f   : > { %v8437_v49 = vpop.permute.xlu0 %2426 }
 0x3a0   : > { %13075 = vst [vmem:[#allocation27_spill] sm:$0xff] %v8437_v49  ;;  %v8441_v9 = vpop.permute.xlu1 %2228  ;;  %v2902_v49 = vmul.f32 %v7838_v37, %v8362_v5 }
 0x3a1   : > { %13076 = vst [vmem:[#allocation28_spill] sm:$0xff] %v8441_v9  ;;  %2975 = vrot.lane.b32.xlu0 %v2901_v17, %s12998_s21  ;;  %v3113_v17 = vmul.f32 %v8040_v44, %v8348_v55 }
 0x3a2   : > { %2668 = vrot.lane.b32.xlu1 %v2583_v61, %s12988_s22 }
 0x3a3   : > { %v8447_v10 = vpop.permute.xlu0 %2438 }
 0x3a4   : > { %13077 = vst [vmem:[#allocation29_spill] sm:$0xff] %v8447_v10  ;;  %v8451_v40 = vpop.permute.xlu1 %2428  ;;  %v2908_v10 = vmul.f32 %v7834_v34, %v8374_v24 }
 0x3a5   : > { %13078 = vst [vmem:[#allocation30_spill] sm:$0xff] %v8451_v40  ;;  %2987 = vrot.lane.b32.xlu0 %v2907_v15, %s12998_s21  ;;  %v3119_v15 = vmul.f32 %v8036_v42, %v8359_v18 }
 0x3a6   : > { %2977 = vrot.lane.b32.xlu1 %v2902_v49, %s12998_s21 }
 0x3a7   : > { %v8457_v9 = vpop.permute.xlu0 %2638 }
 0x3a8   : > { %13079 = vst [vmem:[#allocation31_spill] sm:$0xff] %v8457_v9  ;;  %v8461_v61 = vpop.permute.xlu1 %2440  ;;  %v3114_v9 = vmul.f32 %v8038_v43, %v8362_v5 }
 0x3a9   : > { %13080 = vst [vmem:[#allocation32_spill] sm:$0xff] %v8461_v61  ;;  %3187 = vrot.lane.b32.xlu0 %v3113_v17, %s12996_s13  ;;  %v3325_v17 = vmul.f32 %v8048_v48, %v8348_v55  ;;  %v8495_v55 = vld [vmem:[#allocation2 + $0x50] sm:$0xff] }
 0x3aa   : > { %2989 = vrot.lane.b32.xlu1 %v2908_v10, %s12998_s21 }
 0x3ab   : > { %v8467_v40 = vpop.permute.xlu0 %2650 }
 0x3ac   : > { %13081 = vst [vmem:[#allocation33_spill] sm:$0xff] %v8467_v40  ;;  %v8471_v49 = vpop.permute.xlu1 %2640  ;;  %v3120_v40 = vmul.f32 %v8034_v41, %v8374_v24 }
 0x3ad   : > { %13082 = vst [vmem:[#allocation34_spill] sm:$0xff] %v8471_v49  ;;  %3199 = vrot.lane.b32.xlu0 %v3119_v15, %s12996_s13  ;;  %v3331_v15 = vmul.f32 %v8044_v46, %v8359_v18  ;;  %v3332_v18 = vmul.f32 %v8042_v45, %v8374_v24  ;;  %v8522_v24 = vld [vmem:[#allocation2 + $0x88] sm:$0xff] }
 0x3ae   : > { %3189 = vrot.lane.b32.xlu1 %v3114_v9, %s12996_s13  ;;  %v2367_v1 = vmul.f32 %v7810_v11, %v8522_v24 }
 0x3af   : > { %v8477_v61 = vpop.permute.xlu0 %2959 }
 0x3b0   : > { %13083 = vst [vmem:[#allocation35_spill] sm:$0xff] %v8477_v61  ;;  %v8481_v10 = vpop.permute.xlu1 %2652  ;;  %v3326_v61 = vmul.f32 %v8046_v47, %v8362_v5  ;;  %v8510_v5 = vld [vmem:[#allocation2 + $0x58] sm:$0xff] }
 0x3b1   : > { %13084 = vst [vmem:[#allocation36_spill] sm:$0xff] %v8481_v10  ;;  %3399 = vrot.lane.b32.xlu0 %v3325_v17, %s12990_s18  ;;  %v2361_v13 = vmul.f32 %v7814_v20, %v8510_v5 }
 0x3b2   : > { %3201 = vrot.lane.b32.xlu1 %v3120_v40, %s12996_s13  ;;  %v1936_v40 = vmul.f32 %v7792_v54, %v8495_v55 }
 0x3b3   : > { %v8487_v49 = vpop.permute.xlu0 %2971 }
 0x3b4   : > { %13085 = vst [vmem:[#allocation37_spill] sm:$0xff] %v8487_v49  ;;  %v8491_v9 = vpop.permute.xlu1 %2961  ;;  %v1943_v49 = vmul.f32 %v7770_v35, %v8522_v24 }
 0x3b5   : > { %13086 = vst [vmem:[#allocation38_spill] sm:$0xff] %v8491_v9  ;;  %3411 = vrot.lane.b32.xlu0 %v3331_v15, %s12990_s18  ;;  %v8507_v9 = vld [vmem:[#allocation2 + $0x80] sm:$0xff] }
 0x3b6   : > { %3401 = vrot.lane.b32.xlu1 %v3326_v61, %s12990_s18  ;;  %v1942_v61 = vmul.f32 %v7776_v38, %v8507_v9 }
 0x3b7   : > { %v8499_v10 = vpop.permute.xlu0 %3171 }
 0x3b8   : > { %13087 = vst [vmem:[#allocation39_spill] sm:$0xff] %v8499_v10  ;;  %v8503_v17 = vpop.permute.xlu1 %2973 }
 0x3b9   : > { %13088 = vst [vmem:[#allocation40_spill] sm:$0xff] %v8503_v17  ;;  %2010 = vrot.lane.b32.xlu0 %v1936_v40, %s12998_s21  ;;  %v1937_v17 = vmul.f32 %v7787_v51, %v8510_v5 }
 0x3ba   : > { %3413 = vrot.lane.b32.xlu1 %v3332_v18, %s12990_s18  ;;  %v2148_v18 = vmul.f32 %v7807_v8, %v8495_v55 }
 0x3bb   : > { %v8513_v15 = vpop.permute.xlu0 %3183 }
 0x3bc   : > { %13089 = vst [vmem:[#allocation41_spill] sm:$0xff] %v8513_v15  ;;  %v8517_v10 = vpop.permute.xlu1 %3173 }
 0x3bd   : > { %13090 = vst [vmem:[#allocation42_spill] sm:$0xff] %v8517_v10  ;;  %2022 = vrot.lane.b32.xlu0 %v1942_v61, %s12998_s21  ;;  %v2154_v61 = vmul.f32 %v7802_v0, %v8507_v9 }
 0x3be   : > { %2012 = vrot.lane.b32.xlu1 %v1937_v17, %s12998_s21 }
 0x3bf   : > { %v8525_v40 = vpop.permute.xlu0 %3383 }
 0x3c0   : > { %13091 = vst [vmem:[#allocation43_spill] sm:$0xff] %v8525_v40  ;;  %v8529_v15 = vpop.permute.xlu1 %3185  ;;  %v2149_v40 = vmul.f32 %v7804_v6, %v8510_v5 }
 0x3c1   : > { %13092 = vst [vmem:[#allocation44_spill] sm:$0xff] %v8529_v15  ;;  %2222 = vrot.lane.b32.xlu0 %v2148_v18, %s12996_s13  ;;  %v2360_v18 = vmul.f32 %v7816_v21, %v8495_v55 }
 0x3c2   : > { %2024 = vrot.lane.b32.xlu1 %v1943_v49, %s12998_s21 }
 0x3c3   : > { %v8535_v10 = vpop.permute.xlu0 %3395 }
 0x3c4   : > { %13093 = vst [vmem:[#allocation45_spill] sm:$0xff] %v8535_v10  ;;  %v8539_v17 = vpop.permute.xlu1 %3385  ;;  %v2155_v10 = vmul.f32 %v7799_v60, %v8522_v24 }
 0x3c5   : > { %13094 = vst [vmem:[#allocation46_spill] sm:$0xff] %v8539_v17  ;;  %2234 = vrot.lane.b32.xlu0 %v2154_v61, %s12996_s13  ;;  %v2366_v61 = vmul.f32 %v7812_v14, %v8507_v9 }
 0x3c6   : > { %2224 = vrot.lane.b32.xlu1 %v2149_v40, %s12996_s13 }
 0x3c7   : > { %v8545_v15 = vpop.permute.xlu0 %1994 }
 0x3c8   : > { %13095 = vst [vmem:[#allocation47_spill] sm:$0xff] %v8545_v15  ;;  %v8549_v49 = vpop.permute.xlu1 %3397  ;;  %v8796_v15 = vld [vmem:[#allocation2 + $0x98] sm:$0xff] }
 0x3c9   : > { %13096 = vst [vmem:[#allocation48_spill] sm:$0xff] %v8549_v49  ;;  %2434 = vrot.lane.b32.xlu0 %v2360_v18, %s12990_s18  ;;  %v2572_v18 = vmul.f32 %v7824_v29, %v8495_v55 }
 0x3ca   : > { %2236 = vrot.lane.b32.xlu1 %v2155_v10, %s12996_s13 }
 0x3cb   : > { %v8555_v17 = vpop.permute.xlu0 %2006 }
 0x3cc   : > { %13097 = vst [vmem:[#allocation49_spill] sm:$0xff] %v8555_v17  ;;  %v8559_v40 = vpop.permute.xlu1 %1996  ;;  %v8670_v17 = vld [vmem:[#allocation2 + $0xe8] sm:$0xff] }
 0x3cd   : > { %13098 = vst [vmem:[#allocation50_spill] sm:$0xff] %v8559_v40  ;;  %2446 = vrot.lane.b32.xlu0 %v2366_v61, %s12990_s18  ;;  %v2578_v61 = vmul.f32 %v7820_v26, %v8507_v9  ;;  %v2573_v40 = vmul.f32 %v7822_v28, %v8510_v5  ;;  %v1955_v59 = vmul.f32 %v7770_v35, %v8670_v17 }
 0x3ce   : > { %2436 = vrot.lane.b32.xlu1 %v2361_v13, %s12990_s18 }
 0x3cf   : > { %v8565_v49 = vpop.permute.xlu0 %2206 }
 0x3d0   : > { %13099 = vst [vmem:[#allocation51_spill] sm:$0xff] %v8565_v49  ;;  %v8569_v10 = vpop.permute.xlu1 %2008  ;;  %v8658_v49 = vld [vmem:[#allocation2 + $0xb8] sm:$0xff] }
 0x3d1   : > { %13100 = vst [vmem:[#allocation52_spill] sm:$0xff] %v8569_v10  ;;  %2646 = vrot.lane.b32.xlu0 %v2572_v18, %s12988_s22  ;;  %v2897_v18 = vmul.f32 %v7840_v39, %v8495_v55 }
 0x3d2   : > { %2448 = vrot.lane.b32.xlu1 %v2367_v1, %s12990_s18 }
 0x3d3   : > { %v8575_v4 = vpop.permute.xlu0 %2218 }
 0x3d4   : > { %13101 = vst [vmem:[#allocation53_spill] sm:$0xff] %v8575_v4  ;;  %v8579_v13 = vpop.permute.xlu1 %2208  ;;  %v2579_v4 = vmul.f32 %v7818_v25, %v8522_v24 }
 0x3d5   : > { %13102 = vst [vmem:[#allocation54_spill] sm:$0xff] %v8579_v13  ;;  %2658 = vrot.lane.b32.xlu0 %v2578_v61, %s12988_s22  ;;  %v2903_v61 = vmul.f32 %v7836_v36, %v8507_v9 }
 0x3d6   : > { %2648 = vrot.lane.b32.xlu1 %v2573_v40, %s12988_s22 }
 0x3d7   : > { %v8585_v10 = vpop.permute.xlu0 %2418 }
 0x3d8   : > { %13103 = vst [vmem:[#allocation55_spill] sm:$0xff] %v8585_v10  ;;  %v8589_v1 = vpop.permute.xlu1 %2220  ;;  %v2898_v10 = vmul.f32 %v7838_v37, %v8510_v5 }
 0x3d9   : > { %13104 = vst [vmem:[#allocation56_spill] sm:$0xff] %v8589_v1  ;;  %2967 = vrot.lane.b32.xlu0 %v2897_v18, %s12998_s21  ;;  %v3109_v18 = vmul.f32 %v8040_v44, %v8495_v55 }
 0x3da   : > { %2660 = vrot.lane.b32.xlu1 %v2579_v4, %s12988_s22 }
 0x3db   : > { %v8595_v13 = vpop.permute.xlu0 %2430 }
 0x3dc   : > { %13105 = vst [vmem:[#allocation57_spill] sm:$0xff] %v8595_v13  ;;  %v8599_v40 = vpop.permute.xlu1 %2420  ;;  %v2904_v13 = vmul.f32 %v7834_v34, %v8522_v24 }
 0x3dd   : > { %13106 = vst [vmem:[#allocation58_spill] sm:$0xff] %v8599_v40  ;;  %2979 = vrot.lane.b32.xlu0 %v2903_v61, %s12998_s21  ;;  %v3115_v61 = vmul.f32 %v8036_v42, %v8507_v9 }
 0x3de   : > { %2969 = vrot.lane.b32.xlu1 %v2898_v10, %s12998_s21 }
 0x3df   : > { %v8605_v1 = vpop.permute.xlu0 %2630 }
 0x3e0   : > { %13107 = vst [vmem:[#allocation59_spill] sm:$0xff] %v8605_v1  ;;  %v8609_v4 = vpop.permute.xlu1 %2432  ;;  %v3110_v1 = vmul.f32 %v8038_v43, %v8510_v5 }
 0x3e1   : > { %13108 = vst [vmem:[#allocation60_spill] sm:$0xff] %v8609_v4  ;;  %3179 = vrot.lane.b32.xlu0 %v3109_v18, %s12996_s13  ;;  %v3321_v18 = vmul.f32 %v8048_v48, %v8495_v55 }
 0x3e2   : > { %2981 = vrot.lane.b32.xlu1 %v2904_v13, %s12998_s21 }
 0x3e3   : > { %v8615_v40 = vpop.permute.xlu0 %2642 }
 0x3e4   : > { %13109 = vst [vmem:[#allocation61_spill] sm:$0xff] %v8615_v40  ;;  %v8619_v10 = vpop.permute.xlu1 %2632  ;;  %v3116_v40 = vmul.f32 %v8034_v41, %v8522_v24 }
 0x3e5   : > { %13110 = vst [vmem:[#allocation62_spill] sm:$0xff] %v8619_v10  ;;  %3191 = vrot.lane.b32.xlu0 %v3115_v61, %s12996_s13  ;;  %v3327_v61 = vmul.f32 %v8044_v46, %v8507_v9 }
 0x3e6   : > { %3181 = vrot.lane.b32.xlu1 %v3110_v1, %s12996_s13 }
 0x3e7   : > { %v8625_v4 = vpop.permute.xlu0 %2963 }
 0x3e8   : > { %13111 = vst [vmem:[#allocation63_spill] sm:$0xff] %v8625_v4  ;;  %v8629_v13 = vpop.permute.xlu1 %2644  ;;  %v3322_v4 = vmul.f32 %v8046_v47, %v8510_v5 }
 0x3e9   : > { %13112 = vst [vmem:[#allocation64_spill] sm:$0xff] %v8629_v13  ;;  %3391 = vrot.lane.b32.xlu0 %v3321_v18, %s12990_s18 }
 0x3ea   : > { %3193 = vrot.lane.b32.xlu1 %v3116_v40, %s12996_s13  ;;  %v1948_v40 = vmul.f32 %v7792_v54, %v8643_v7 }
 0x3eb   : > { %v8635_v10 = vpop.permute.xlu0 %3175 }
 0x3ec   : > { %13113 = vst [vmem:[#allocation65_spill] sm:$0xff] %v8635_v10  ;;  %v8639_v1 = vpop.permute.xlu1 %2965  ;;  %v3328_v10 = vmul.f32 %v8042_v45, %v8522_v24 }
 0x3ed   : > { %13114 = vst [vmem:[#allocation66_spill] sm:$0xff] %v8639_v1  ;;  %3403 = vrot.lane.b32.xlu0 %v3327_v61, %s12990_s18  ;;  %v8655_v1 = vld [vmem:[#allocation2 + $0xe0] sm:$0xff] }
 0x3ee   : > { %3393 = vrot.lane.b32.xlu1 %v3322_v4, %s12990_s18  ;;  %v1954_v4 = vmul.f32 %v7776_v38, %v8655_v1 }
 0x3ef   : > { %v8647_v13 = vpop.permute.xlu0 %3387 }
 0x3f0   : > { %13115 = vst [vmem:[#allocation67_spill] sm:$0xff] %v8647_v13  ;;  %v8651_v18 = vpop.permute.xlu1 %3177 }
 0x3f1   : > { %13116 = vst [vmem:[#allocation68_spill] sm:$0xff] %v8651_v18  ;;  %2034 = vrot.lane.b32.xlu0 %v1948_v40, %s12998_s21  ;;  %v1949_v18 = vmul.f32 %v7787_v51, %v8658_v49 }
 0x3f2   : > { %3405 = vrot.lane.b32.xlu1 %v3328_v10, %s12990_s18  ;;  %v2160_v10 = vmul.f32 %v7807_v8, %v8643_v7 }
 0x3f3   : > { %v8661_v61 = vpop.permute.xlu0 %2018 }
 0x3f4   : > { %13117 = vst [vmem:[#allocation69_spill] sm:$0xff] %v8661_v61  ;;  %v8665_v13 = vpop.permute.xlu1 %3389 }
 0x3f5   : > { %13118 = vst [vmem:[#allocation70_spill] sm:$0xff] %v8665_v13  ;;  %2046 = vrot.lane.b32.xlu0 %v1954_v4, %s12998_s21  ;;  %v2166_v4 = vmul.f32 %v7802_v0, %v8655_v1 }
 0x3f6   : > { %2036 = vrot.lane.b32.xlu1 %v1949_v18, %s12998_s21 }
 0x3f7   : > { %v8673_v40 = vpop.permute.xlu0 %2030 }
 0x3f8   : > { %13119 = vst [vmem:[#allocation71_spill] sm:$0xff] %v8673_v40  ;;  %v8677_v61 = vpop.permute.xlu1 %2020  ;;  %v2161_v40 = vmul.f32 %v7804_v6, %v8658_v49 }
 0x3f9   : > { %13120 = vst [vmem:[#allocation72_spill] sm:$0xff] %v8677_v61  ;;  %2246 = vrot.lane.b32.xlu0 %v2160_v10, %s12996_s13  ;;  %v2372_v10 = vmul.f32 %v7816_v21, %v8643_v7 }
 0x3fa   : > { %2048 = vrot.lane.b32.xlu1 %v1955_v59, %s12998_s21 }
 0x3fb   : > { %v8683_v13 = vpop.permute.xlu0 %2230 }
 0x3fc   : > { %13121 = vst [vmem:[#allocation73_spill] sm:$0xff] %v8683_v13  ;;  %v8687_v18 = vpop.permute.xlu1 %2032  ;;  %v2167_v13 = vmul.f32 %v7799_v60, %v8670_v17 }
 0x3fd   : > { %13122 = vst [vmem:[#allocation74_spill] sm:$0xff] %v8687_v18  ;;  %2258 = vrot.lane.b32.xlu0 %v2166_v4, %s12996_s13  ;;  %v2378_v4 = vmul.f32 %v7812_v14, %v8655_v1 }
 0x3fe   : > { %2248 = vrot.lane.b32.xlu1 %v2161_v40, %s12996_s13 }
 0x3ff   : > { %v8693_v61 = vpop.permute.xlu0 %2242 }
 0x400   : > { %13123 = vst [vmem:[#allocation75_spill] sm:$0xff] %v8693_v61  ;;  %v8697_v59 = vpop.permute.xlu1 %2232  ;;  %v2373_v61 = vmul.f32 %v7814_v20, %v8658_v49 }
 0x401   : > { %13124 = vst [vmem:[#allocation76_spill] sm:$0xff] %v8697_v59  ;;  %2458 = vrot.lane.b32.xlu0 %v2372_v10, %s12990_s18  ;;  %v2584_v10 = vmul.f32 %v7824_v29, %v8643_v7 }
 0x402   : > { %2260 = vrot.lane.b32.xlu1 %v2167_v13, %s12996_s13 }
 0x403   : > { %v8703_v18 = vpop.permute.xlu0 %2442 }
 0x404   : > { %13125 = vst [vmem:[#allocation77_spill] sm:$0xff] %v8703_v18  ;;  %v8707_v40 = vpop.permute.xlu1 %2244  ;;  %v2379_v18 = vmul.f32 %v7810_v11, %v8670_v17 }
 0x405   : > { %13126 = vst [vmem:[#allocation78_spill] sm:$0xff] %v8707_v40  ;;  %2470 = vrot.lane.b32.xlu0 %v2378_v4, %s12990_s18  ;;  %v2590_v4 = vmul.f32 %v7820_v26, %v8655_v1 }
 0x406   : > { %2460 = vrot.lane.b32.xlu1 %v2373_v61, %s12990_s18 }
 0x407   : > { %v8713_v59 = vpop.permute.xlu0 %2454 }
 0x408   : > { %13127 = vst [vmem:[#allocation79_spill] sm:$0xff] %v8713_v59  ;;  %v8717_v13 = vpop.permute.xlu1 %2444  ;;  %v2585_v59 = vmul.f32 %v7822_v28, %v8658_v49 }
 0x409   : > { %13128 = vst [vmem:[#allocation80_spill] sm:$0xff] %v8717_v13  ;;  %2670 = vrot.lane.b32.xlu0 %v2584_v10, %s12988_s22  ;;  %v2909_v10 = vmul.f32 %v7840_v39, %v8643_v7 }
 0x40a   : > { %2472 = vrot.lane.b32.xlu1 %v2379_v18, %s12990_s18 }
 0x40b   : > { %v8723_v40 = vpop.permute.xlu0 %2654 }
 0x40c   : > { %13129 = vst [vmem:[#allocation81_spill] sm:$0xff] %v8723_v40  ;;  %v8727_v61 = vpop.permute.xlu1 %2456  ;;  %v2591_v40 = vmul.f32 %v7818_v25, %v8670_v17 }
 0x40d   : > { %13130 = vst [vmem:[#allocation82_spill] sm:$0xff] %v8727_v61  ;;  %2682 = vrot.lane.b32.xlu0 %v2590_v4, %s12988_s22  ;;  %v2915_v4 = vmul.f32 %v7836_v36, %v8655_v1 }
 0x40e   : > { %2672 = vrot.lane.b32.xlu1 %v2585_v59, %s12988_s22 }
 0x40f   : > { %v8733_v13 = vpop.permute.xlu0 %2666 }
 0x410   : > { %13131 = vst [vmem:[#allocation83_spill] sm:$0xff] %v8733_v13  ;;  %v8737_v18 = vpop.permute.xlu1 %2656  ;;  %v2910_v13 = vmul.f32 %v7838_v37, %v8658_v49 }
 0x411   : > { %13132 = vst [vmem:[#allocation84_spill] sm:$0xff] %v8737_v18  ;;  %2991 = vrot.lane.b32.xlu0 %v2909_v10, %s12998_s21  ;;  %v3121_v10 = vmul.f32 %v8040_v44, %v8643_v7 }
 0x412   : > { %2684 = vrot.lane.b32.xlu1 %v2591_v40, %s12988_s22 }
 0x413   : > { %v8743_v61 = vpop.permute.xlu0 %2975 }
 0x414   : > { %13133 = vst [vmem:[#allocation85_spill] sm:$0xff] %v8743_v61  ;;  %v8747_v59 = vpop.permute.xlu1 %2668  ;;  %v2916_v61 = vmul.f32 %v7834_v34, %v8670_v17 }
 0x415   : > { %13134 = vst [vmem:[#allocation86_spill] sm:$0xff] %v8747_v59  ;;  %3003 = vrot.lane.b32.xlu0 %v2915_v4, %s12998_s21  ;;  %v3127_v4 = vmul.f32 %v8036_v42, %v8655_v1 }
 0x416   : > { %2993 = vrot.lane.b32.xlu1 %v2910_v13, %s12998_s21 }
 0x417   : > { %v8753_v18 = vpop.permute.xlu0 %2987 }
 0x418   : > { %13135 = vst [vmem:[#allocation87_spill] sm:$0xff] %v8753_v18  ;;  %v8757_v40 = vpop.permute.xlu1 %2977  ;;  %v3122_v18 = vmul.f32 %v8038_v43, %v8658_v49 }
 0x419   : > { %13136 = vst [vmem:[#allocation88_spill] sm:$0xff] %v8757_v40  ;;  %3203 = vrot.lane.b32.xlu0 %v3121_v10, %s12996_s13  ;;  %v3333_v10 = vmul.f32 %v8048_v48, %v8643_v7 }
 0x41a   : > { %3005 = vrot.lane.b32.xlu1 %v2916_v61, %s12998_s21 }
 0x41b   : > { %v8763_v59 = vpop.permute.xlu0 %3187 }
 0x41c   : > { %13137 = vst [vmem:[#allocation89_spill] sm:$0xff] %v8763_v59  ;;  %v8767_v13 = vpop.permute.xlu1 %2989  ;;  %v3128_v59 = vmul.f32 %v8034_v41, %v8670_v17 }
 0x41d   : > { %13138 = vst [vmem:[#allocation90_spill] sm:$0xff] %v8767_v13  ;;  %3215 = vrot.lane.b32.xlu0 %v3127_v4, %s12996_s13 }
 0x41e   : > { %3205 = vrot.lane.b32.xlu1 %v3122_v18, %s12996_s13  ;;  %v1944_v18 = vmul.f32 %v7792_v54, %v8781_v63 }
 0x41f   : > { %v8773_v40 = vpop.permute.xlu0 %3199 }
 0x420   : > { %13139 = vst [vmem:[#allocation91_spill] sm:$0xff] %v8773_v40  ;;  %v8777_v61 = vpop.permute.xlu1 %3189  ;;  %v3334_v40 = vmul.f32 %v8046_v47, %v8658_v49 }
 0x421   : > { %13140 = vst [vmem:[#allocation92_spill] sm:$0xff] %v8777_v61  ;;  %3415 = vrot.lane.b32.xlu0 %v3333_v10, %s12990_s18  ;;  %v8793_v61 = vld [vmem:[#allocation2 + $0xc0] sm:$0xff] }
 0x422   : > { %3217 = vrot.lane.b32.xlu1 %v3128_v59, %s12996_s13  ;;  %v1950_v59 = vmul.f32 %v7776_v38, %v8793_v61  ;;  %v1951_v38 = vmul.f32 %v7770_v35, %v8808_v50  ;;  %v2368_v35 = vmul.f32 %v7816_v21, %v8781_v63 }
 0x423   : > { %v8785_v13 = vpop.permute.xlu0 %3399 }
 0x424   : > { %13141 = vst [vmem:[#allocation93_spill] sm:$0xff] %v8785_v13  ;;  %v8789_v4 = vpop.permute.xlu1 %3201 }
 0x425   : > { %13142 = vst [vmem:[#allocation94_spill] sm:$0xff] %v8789_v4  ;;  %2026 = vrot.lane.b32.xlu0 %v1944_v18, %s12998_s21  ;;  %v1945_v4 = vmul.f32 %v7787_v51, %v8796_v15 }
 0x426   : > { %3417 = vrot.lane.b32.xlu1 %v3334_v40, %s12990_s18  ;;  %v2156_v40 = vmul.f32 %v7807_v8, %v8781_v63 }
 0x427   : > { %v8799_v10 = vpop.permute.xlu0 %3411 }
 0x428   : > { %13143 = vst [vmem:[#allocation95_spill] sm:$0xff] %v8799_v10  ;;  %v8803_v13 = vpop.permute.xlu1 %3401 }
 0x429   : > { %13144 = vst [vmem:[#allocation96_spill] sm:$0xff] %v8803_v13  ;;  %2038 = vrot.lane.b32.xlu0 %v1950_v59, %s12998_s21  ;;  %v2162_v59 = vmul.f32 %v7802_v0, %v8793_v61 }
 0x42a   : > { %2028 = vrot.lane.b32.xlu1 %v1945_v4, %s12998_s21 }
 0x42b   : > { %v8811_v18 = vpop.permute.xlu0 %2010 }
 0x42c   : > { %13145 = vst [vmem:[#allocation97_spill] sm:$0xff] %v8811_v18  ;;  %v8815_v10 = vpop.permute.xlu1 %3413  ;;  %v2157_v18 = vmul.f32 %v7804_v6, %v8796_v15 }
 0x42d   : > { %13146 = vst [vmem:[#allocation98_spill] sm:$0xff] %v8815_v10  ;;  %2238 = vrot.lane.b32.xlu0 %v2156_v40, %s12996_s13 }
 0x42e   : > { %2040 = vrot.lane.b32.xlu1 %v1951_v38, %s12998_s21  ;;  %v2163_v38 = vmul.f32 %v7799_v60, %v8808_v50  ;;  %v2580_v60 = vmul.f32 %v7824_v29, %v8781_v63 }
 0x42f   : > { %v8821_v13 = vpop.permute.xlu0 %2022 }
 0x430   : > { %v8825_v4 = vpop.permute.xlu1 %2012 }
 0x431   : > { %13147 = vst [vmem:[#allocation99_spill] sm:$0xff] %v8825_v4  ;;  %2250 = vrot.lane.b32.xlu0 %v2162_v59, %s12996_s13  ;;  %v2374_v59 = vmul.f32 %v7812_v14, %v8793_v61  ;;  %v2369_v4 = vmul.f32 %v7814_v20, %v8796_v15 }
 0x432   : > { %2240 = vrot.lane.b32.xlu1 %v2157_v18, %s12996_s13 }
 0x433   : > { %v8831_v10 = vpop.permute.xlu0 %2222 }
 0x434   : > { %v8835_v40 = vpop.permute.xlu1 %2024 }
 0x435   : > { %13148 = vst [vmem:[#allocation100_spill] sm:$0xff] %v8835_v40  ;;  %2450 = vrot.lane.b32.xlu0 %v2368_v35, %s12990_s18 }
 0x436   : > { %2252 = vrot.lane.b32.xlu1 %v2163_v38, %s12996_s13  ;;  %v2375_v38 = vmul.f32 %v7810_v11, %v8808_v50  ;;  %v2905_v11 = vmul.f32 %v7840_v39, %v8781_v63 }
 0x437   : > { %v8841_v0 = vpop.permute.xlu0 %2234 }
 0x438   : > { %13149 = vst [vmem:[#allocation101_spill] sm:$0xff] %v8841_v0  ;;  %v8845_v18 = vpop.permute.xlu1 %2224 }
 0x439   : > { %13150 = vst [vmem:[#allocation102_spill] sm:$0xff] %v8845_v18  ;;  %2462 = vrot.lane.b32.xlu0 %v2374_v59, %s12990_s18  ;;  %v2586_v59 = vmul.f32 %v7820_v26, %v8793_v61  ;;  %v2581_v18 = vmul.f32 %v7822_v28, %v8796_v15 }
 0x43a   : > { %2452 = vrot.lane.b32.xlu1 %v2369_v4, %s12990_s18 }
 0x43b   : > { %v8851_v40 = vpop.permute.xlu0 %2434 }
 0x43c   : > { %13151 = vst [vmem:[#allocation103_spill] sm:$0xff] %v8851_v40  ;;  %v8855_v35 = vpop.permute.xlu1 %2236 }
 0x43d   : > { %13152 = vst [vmem:[#allocation104_spill] sm:$0xff] %v8855_v35  ;;  %2662 = vrot.lane.b32.xlu0 %v2580_v60, %s12988_s22 }
 0x43e   : > { %2464 = vrot.lane.b32.xlu1 %v2375_v38, %s12990_s18  ;;  %v2587_v38 = vmul.f32 %v7818_v25, %v8808_v50  ;;  %v3117_v25 = vmul.f32 %v8040_v44, %v8781_v63 }
 0x43f   : > { %v8861_v14 = vpop.permute.xlu0 %2446 }
 0x440   : > { %13153 = vst [vmem:[#allocation105_spill] sm:$0xff] %v8861_v14  ;;  %v8865_v4 = vpop.permute.xlu1 %2436  ;;  %v8983_v14 = vld [vmem:[#allocation2 + $0xd0] sm:$0xff] }
 0x441   : > { %13154 = vst [vmem:[#allocation106_spill] sm:$0xff] %v8865_v4  ;;  %2674 = vrot.lane.b32.xlu0 %v2586_v59, %s12988_s22  ;;  %v2911_v59 = vmul.f32 %v7836_v36, %v8793_v61  ;;  %v2906_v4 = vmul.f32 %v7838_v37, %v8796_v15 }
 0x442   : > { %2664 = vrot.lane.b32.xlu1 %v2581_v18, %s12988_s22 }
 0x443   : > { %v8871_v35 = vpop.permute.xlu0 %2646 }
 0x444   : > { %13155 = vst [vmem:[#allocation107_spill] sm:$0xff] %v8871_v35  ;;  %v8875_v60 = vpop.permute.xlu1 %2448 }
 0x445   : > { %13156 = vst [vmem:[#allocation108_spill] sm:$0xff] %v8875_v60  ;;  %2983 = vrot.lane.b32.xlu0 %v2905_v11, %s12998_s21 }
 0x446   : > { %2676 = vrot.lane.b32.xlu1 %v2587_v38, %s12988_s22  ;;  %v2912_v38 = vmul.f32 %v7834_v34, %v8808_v50 }
 0x447   : > { %v8881_v26 = vpop.permute.xlu0 %2658 }
 0x448   : > { %13157 = vst [vmem:[#allocation109_spill] sm:$0xff] %v8881_v26  ;;  %v8885_v18 = vpop.permute.xlu1 %2648  ;;  %v8919_v26 = vld [vmem:[#allocation2 + $0xf0] sm:$0xff] }
 0x449   : > { %13158 = vst [vmem:[#allocation110_spill] sm:$0xff] %v8885_v18  ;;  %2995 = vrot.lane.b32.xlu0 %v2911_v59, %s12998_s21  ;;  %v3123_v59 = vmul.f32 %v8036_v42, %v8793_v61 }
 0x44a   : > { %2985 = vrot.lane.b32.xlu1 %v2906_v4, %s12998_s21 }
 0x44b   : > { %v8891_v60 = vpop.permute.xlu0 %2967 }
 0x44c   : > { %13159 = vst [vmem:[#allocation111_spill] sm:$0xff] %v8891_v60  ;;  %v8895_v11 = vpop.permute.xlu1 %2660  ;;  %v3118_v60 = vmul.f32 %v8038_v43, %v8796_v15 }
 0x44d   : > { %13160 = vst [vmem:[#allocation112_spill] sm:$0xff] %v8895_v11  ;;  %3195 = vrot.lane.b32.xlu0 %v3117_v25, %s12996_s13  ;;  %v3329_v25 = vmul.f32 %v8048_v48, %v8781_v63 }
 0x44e   : > { %2997 = vrot.lane.b32.xlu1 %v2912_v38, %s12998_s21 }
 0x44f   : > { %v8901_v18 = vpop.permute.xlu0 %2979 }
 0x450   : > { %13161 = vst [vmem:[#allocation113_spill] sm:$0xff] %v8901_v18  ;;  %v8905_v4 = vpop.permute.xlu1 %2969  ;;  %v3124_v18 = vmul.f32 %v8034_v41, %v8808_v50 }
 0x451   : > { %13162 = vst [vmem:[#allocation114_spill] sm:$0xff] %v8905_v4  ;;  %3207 = vrot.lane.b32.xlu0 %v3123_v59, %s12996_s13 }
 0x452   : > { %3197 = vrot.lane.b32.xlu1 %v3118_v60, %s12996_s13  ;;  %v1956_v60 = vmul.f32 %v7792_v54, %v8919_v26 }
 0x453   : > { %v8911_v11 = vpop.permute.xlu0 %3179 }
 0x454   : > { %13163 = vst [vmem:[#allocation115_spill] sm:$0xff] %v8911_v11  ;;  %v8915_v38 = vpop.permute.xlu1 %2981  ;;  %v3330_v11 = vmul.f32 %v8046_v47, %v8796_v15 }
 0x455   : > { %13164 = vst [vmem:[#allocation116_spill] sm:$0xff] %v8915_v38  ;;  %3407 = vrot.lane.b32.xlu0 %v3329_v25, %s12990_s18  ;;  %v8932_v38 = vld [vmem:[#allocation2 + $0xf8] sm:$0xff] }
 0x456   : > { %3209 = vrot.lane.b32.xlu1 %v3124_v18, %s12996_s13  ;;  %v2168_v18 = vmul.f32 %v7807_v8, %v8919_v26 }
 0x457   : > { %v8923_v4 = vpop.permute.xlu0 %3191 }
 0x458   : > { %13165 = vst [vmem:[#allocation117_spill] sm:$0xff] %v8923_v4  ;;  %v8927_v59 = vpop.permute.xlu1 %3181  ;;  %v1957_v4 = vmul.f32 %v7787_v51, %v8932_v38 }
 0x459   : > { %13166 = vst [vmem:[#allocation118_spill] sm:$0xff] %v8927_v59  ;;  %2050 = vrot.lane.b32.xlu0 %v1956_v60, %s12998_s21  ;;  %v2380_v60 = vmul.f32 %v7816_v21, %v8919_v26 }
 0x45a   : > { %3409 = vrot.lane.b32.xlu1 %v3330_v11, %s12990_s18 }
 0x45b   : > { %v8935_v35 = vpop.permute.xlu0 %3391 }
 0x45c   : > { %13167 = vst [vmem:[#allocation119_spill] sm:$0xff] %v8935_v35  ;;  %v8939_v25 = vpop.permute.xlu1 %3193  ;;  %v2169_v35 = vmul.f32 %v7804_v6, %v8932_v38 }
 0x45d   : > { %13168 = vst [vmem:[#allocation120_spill] sm:$0xff] %v8939_v25  ;;  %2262 = vrot.lane.b32.xlu0 %v2168_v18, %s12996_s13  ;;  %v2592_v18 = vmul.f32 %v7824_v29, %v8919_v26 }
 0x45e   : > { %2052 = vrot.lane.b32.xlu1 %v1957_v4, %s12998_s21 }
 0x45f   : > { %v8945_v59 = vpop.permute.xlu0 %3403 }
 0x460   : > { %13169 = vst [vmem:[#allocation121_spill] sm:$0xff] %v8945_v59  ;;  %v8949_v11 = vpop.permute.xlu1 %3393  ;;  %v2381_v59 = vmul.f32 %v7814_v20, %v8932_v38 }
 0x461   : > { %13170 = vst [vmem:[#allocation122_spill] sm:$0xff] %v8949_v11  ;;  %2474 = vrot.lane.b32.xlu0 %v2380_v60, %s12990_s18  ;;  %v2917_v60 = vmul.f32 %v7840_v39, %v8919_v26 }
 0x462   : > { %2264 = vrot.lane.b32.xlu1 %v2169_v35, %s12996_s13 }
 0x463   : > { %v8955_v25 = vpop.permute.xlu0 %2034 }
 0x464   : > { %13171 = vst [vmem:[#allocation123_spill] sm:$0xff] %v8955_v25  ;;  %v8959_v4 = vpop.permute.xlu1 %3405  ;;  %v2593_v25 = vmul.f32 %v7822_v28, %v8932_v38 }
 0x465   : > { %13172 = vst [vmem:[#allocation124_spill] sm:$0xff] %v8959_v4  ;;  %2686 = vrot.lane.b32.xlu0 %v2592_v18, %s12988_s22  ;;  %v3129_v18 = vmul.f32 %v8040_v44, %v8919_v26 }
 0x466   : > { %2476 = vrot.lane.b32.xlu1 %v2381_v59, %s12990_s18 }
 0x467   : > { %v8965_v11 = vpop.permute.xlu0 %2046 }
 0x468   : > { %13173 = vst [vmem:[#allocation125_spill] sm:$0xff] %v8965_v11  ;;  %v8969_v35 = vpop.permute.xlu1 %2036  ;;  %v2918_v11 = vmul.f32 %v7838_v37, %v8932_v38 }
 0x469   : > { %13174 = vst [vmem:[#allocation126_spill] sm:$0xff] %v8969_v35  ;;  %3007 = vrot.lane.b32.xlu0 %v2917_v60, %s12998_s21 }
 0x46a   : > { %2688 = vrot.lane.b32.xlu1 %v2593_v25, %s12988_s22  ;;  %v1952_v25 = vmul.f32 %v7792_v54, %v8983_v14 }
 0x46b   : > { %v8975_v4 = vpop.permute.xlu0 %2246 }
 0x46c   : > { %13175 = vst [vmem:[#allocation127_spill] sm:$0xff] %v8975_v4  ;;  %v8979_v59 = vpop.permute.xlu1 %2048  ;;  %v3130_v4 = vmul.f32 %v8038_v43, %v8932_v38 }
 0x46d   : > { %13176 = vst [vmem:[#allocation128_spill] sm:$0xff] %v8979_v59  ;;  %3219 = vrot.lane.b32.xlu0 %v3129_v18, %s12996_s13  ;;  %v8996_v59 = vld [vmem:[#allocation2 + $0xd8] sm:$0xff] }
 0x46e   : > { %3009 = vrot.lane.b32.xlu1 %v2918_v11, %s12998_s21  ;;  %v2164_v11 = vmul.f32 %v7807_v8, %v8983_v14  ;;  %v1953_v54 = vmul.f32 %v7787_v51, %v8996_v59  ;;  %v2588_v51 = vmul.f32 %v7824_v29, %v8983_v14  ;;  %v9037_v29 = vld [vmem:[#allocation2 + $0x100] sm:$0xff] }
 0x46f   : > { %v8987_v35 = vpop.permute.xlu0 %2258 }
 0x470   : > { %13177 = vst [vmem:[#allocation129_spill] sm:$0xff] %v8987_v35  ;;  %v8991_v60 = vpop.permute.xlu1 %2248 }
 0x471   : > { %13178 = vst [vmem:[#allocation130_spill] sm:$0xff] %v8991_v60  ;;  %2042 = vrot.lane.b32.xlu0 %v1952_v25, %s12998_s21  ;;  %v2376_v25 = vmul.f32 %v7816_v21, %v8983_v14 }
 0x472   : > { %3221 = vrot.lane.b32.xlu1 %v3130_v4, %s12996_s13 }
 0x473   : > { %v8999_v40 = vpop.permute.xlu0 %2458 }
 0x474   : > { %13179 = vst [vmem:[#allocation131_spill] sm:$0xff] %v8999_v40  ;;  %v9003_v18 = vpop.permute.xlu1 %2260  ;;  %v2165_v40 = vmul.f32 %v7804_v6, %v8996_v59  ;;  %v2913_v6 = vmul.f32 %v7840_v39, %v8983_v14 }
 0x475   : > { %13180 = vst [vmem:[#allocation132_spill] sm:$0xff] %v9003_v18  ;;  %2254 = vrot.lane.b32.xlu0 %v2164_v11, %s12996_s13  ;;  %v3342_v18 = vmul.f32 %v8046_v47, %v8932_v38 }
 0x476   : > { %2044 = vrot.lane.b32.xlu1 %v1953_v54, %s12998_s21  ;;  %v2377_v54 = vmul.f32 %v7814_v20, %v8996_v59 }
 0x477   : > { %v9009_v60 = vpop.permute.xlu0 %2470 }
 0x478   : > { %13181 = vst [vmem:[#allocation133_spill] sm:$0xff] %v9009_v60  ;;  %v9013_v4 = vpop.permute.xlu1 %2460 }
 0x479   : > { %13182 = vst [vmem:[#allocation134_spill] sm:$0xff] %v9013_v4  ;;  %2466 = vrot.lane.b32.xlu0 %v2376_v25, %s12990_s18  ;;  %v2589_v25 = vmul.f32 %v7822_v28, %v8996_v59  ;;  %v9071_v4 = vld [vmem:[#allocation2 + $0x110] sm:$0xff] }
 0x47a   : > { %2256 = vrot.lane.b32.xlu1 %v2165_v40, %s12996_s13 }
 0x47b   : > { %v9019_v8 = vpop.permute.xlu0 %2670 }
 0x47c   : > { %13183 = vst [vmem:[#allocation135_spill] sm:$0xff] %v9019_v8  ;;  %v9023_v11 = vpop.permute.xlu1 %2472 }
 0x47d   : > { %13184 = vst [vmem:[#allocation136_spill] sm:$0xff] %v9023_v11  ;;  %2678 = vrot.lane.b32.xlu0 %v2588_v51, %s12988_s22  ;;  %v2919_v51 = vmul.f32 %v7836_v36, %v9037_v29  ;;  %v2914_v11 = vmul.f32 %v7838_v37, %v8996_v59 }
 0x47e   : > { %2468 = vrot.lane.b32.xlu1 %v2377_v54, %s12990_s18 }
 0x47f   : > { %v9029_v21 = vpop.permute.xlu0 %2682 }
 0x480   : > { %13185 = vst [vmem:[#allocation137_spill] sm:$0xff] %v9029_v21  ;;  %v9033_v40 = vpop.permute.xlu1 %2672 }
 0x481   : > { %13186 = vst [vmem:[#allocation138_spill] sm:$0xff] %v9033_v40  ;;  %2999 = vrot.lane.b32.xlu0 %v2913_v6, %s12998_s21  ;;  %v9050_v40 = vld [vmem:[#allocation2 + $0x108] sm:$0xff]  ;;  %v3125_v6 = vmul.f32 %v8040_v44, %v8983_v14 }
 0x482   : > { %2680 = vrot.lane.b32.xlu1 %v2589_v25, %s12988_s22  ;;  %v2920_v36 = vmul.f32 %v7834_v34, %v9050_v40  ;;  %v3344_v8 = vmul.f32 %v8042_v45, %v9050_v40 }
 0x483   : > { %v9041_v20 = vpop.permute.xlu0 %2991 }
 0x484   : > { %13187 = vst [vmem:[#allocation139_spill] sm:$0xff] %v9041_v20  ;;  %v9045_v54 = vpop.permute.xlu1 %2684 }
 0x485   : > { %13188 = vst [vmem:[#allocation140_spill] sm:$0xff] %v9045_v54  ;;  %3011 = vrot.lane.b32.xlu0 %v2919_v51, %s12998_s21  ;;  %v3131_v51 = vmul.f32 %v8036_v42, %v9037_v29  ;;  %v3132_v42 = vmul.f32 %v8034_v41, %v9050_v40 }
 0x486   : > { %3001 = vrot.lane.b32.xlu1 %v2914_v11, %s12998_s21 }
 0x487   : > { %v9053_v28 = vpop.permute.xlu0 %3003 }
 0x488   : > { %13189 = vst [vmem:[#allocation141_spill] sm:$0xff] %v9053_v28  ;;  %v9057_v25 = vpop.permute.xlu1 %2993  ;;  %v3126_v28 = vmul.f32 %v8038_v43, %v8996_v59 }
 0x489   : > { %13190 = vst [vmem:[#allocation142_spill] sm:$0xff] %v9057_v25  ;;  %3211 = vrot.lane.b32.xlu0 %v3125_v6, %s12996_s13  ;;  %v2921_v6 = vmul.f32 %v7840_v39, %v9071_v4  ;;  %v9094_v39 = vld [vmem:[#allocation2 + $0x118] sm:$0xff] }
 0x48a   : > { %3013 = vrot.lane.b32.xlu1 %v2920_v36, %s12998_s21 }
 0x48b   : > { %v9063_v54 = vpop.permute.xlu0 %3203 }
 0x48c   : > { %13191 = vst [vmem:[#allocation143_spill] sm:$0xff] %v9063_v54  ;;  %v9067_v11 = vpop.permute.xlu1 %3005 }
 0x48d   : > { %13192 = vst [vmem:[#allocation144_spill] sm:$0xff] %v9067_v11  ;;  %3223 = vrot.lane.b32.xlu0 %v3131_v51, %s12996_s13  ;;  %v3133_v51 = vmul.f32 %v8040_v44, %v9071_v4  ;;  %v2922_v44 = vmul.f32 %v7838_v37, %v9094_v39  ;;  %v3339_v37 = vmul.f32 %v8044_v46, %v8655_v1 }
 0x48e   : > { %3213 = vrot.lane.b32.xlu1 %v3126_v28, %s12996_s13 }
 0x48f   : > { %v9075_v34 = vpop.permute.xlu0 %3215 }
 0x490   : > { %13193 = vst [vmem:[#allocation145_spill] sm:$0xff] %v9075_v34  ;;  %v9079_v36 = vpop.permute.xlu1 %3205  ;;  %v3336_v34 = vmul.f32 %v8042_v45, %v8808_v50 }
 0x491   : > { %13194 = vst [vmem:[#allocation146_spill] sm:$0xff] %v9079_v36  ;;  %3015 = vrot.lane.b32.xlu0 %v2921_v6, %s12998_s21  ;;  %v3335_v6 = vmul.f32 %v8044_v46, %v8793_v61 }
 0x492   : > { %3225 = vrot.lane.b32.xlu1 %v3132_v42, %s12996_s13 }
 0x493   : > { %v9085_v11 = vpop.permute.xlu0 %3415 }
 0x494   : > { %13195 = vst [vmem:[#allocation147_spill] sm:$0xff] %v9085_v11  ;;  %v9089_v28 = vpop.permute.xlu1 %3217  ;;  %v3134_v11 = vmul.f32 %v8038_v43, %v9094_v39  ;;  %v3341_v43 = vmul.f32 %v8048_v48, %v8919_v26 }
 0x495   : > { %13196 = vst [vmem:[#allocation148_spill] sm:$0xff] %v9089_v28  ;;  %3227 = vrot.lane.b32.xlu0 %v3133_v51, %s12996_s13  ;;  %v3337_v51 = vmul.f32 %v8048_v48, %v8983_v14 }
 0x496   : > { %3421 = vrot.lane.b32.xlu1 %v3336_v34, %s12990_s18 }
 0x497   : > { %v9097_v41 = vpop.permute.xlu0 %2026 }
 0x498   : > { %13197 = vst [vmem:[#allocation149_spill] sm:$0xff] %v9097_v41  ;;  %v9101_v42 = vpop.permute.xlu1 %3417 }
 0x499   : > { %13198 = vst [vmem:[#allocation150_spill] sm:$0xff] %v9101_v42  ;;  %3419 = vrot.lane.b32.xlu0 %v3335_v6, %s12990_s18 }
 0x49a   : > { %3017 = vrot.lane.b32.xlu1 %v2922_v44, %s12998_s21  ;;  %v3338_v44 = vmul.f32 %v8046_v47, %v8996_v59 }
 0x49b   : > { %v9107_v28 = vpop.permute.xlu0 %2038 }
 0x49c   : > { %13199 = vst [vmem:[#allocation151_spill] sm:$0xff] %v9107_v28  ;;  %v9111_v34 = vpop.permute.xlu1 %2028 }
 0x49d   : > { %13200 = vst [vmem:[#allocation152_spill] sm:$0xff] %v9111_v34  ;;  %3423 = vrot.lane.b32.xlu0 %v3337_v51, %s12990_s18  ;;  %v3340_v51 = vmul.f32 %v8042_v45, %v8670_v17  ;;  %v1728_v45 = vld [vmem:[%s12984_s5 + $0x130] sm:$0xff] }
 0x49e   : > { %3229 = vrot.lane.b32.xlu1 %v3134_v11, %s12996_s13 }
 0x49f   : > { %v9117_v42 = vpop.permute.xlu0 %2238 }
 0x4a0   : > { %13201 = vst [vmem:[#allocation153_spill] sm:$0xff] %v9117_v42  ;;  %v9121_v6 = vpop.permute.xlu1 %2040 }
 0x4a1   : > { %13202 = vst [vmem:[#allocation154_spill] sm:$0xff] %v9121_v6  ;;  %3427 = vrot.lane.b32.xlu0 %v3339_v37, %s12990_s18  ;;  %v3343_v37 = vmul.f32 %v8044_v46, %v9037_v29  ;;  %v1726_v46 = vld [vmem:[%s12984_s5 + $0x120] sm:$0xff]  ;;  %v9591_v6 = vld [vmem:[#allocation2 + $0xf0] sm:$0xff] }
 0x4a2   : > { %3425 = vrot.lane.b32.xlu1 %v3338_v44, %s12990_s18 }
 0x4a3   : > { %v9127_v36 = vpop.permute.xlu0 %2250 }
 0x4a4   : > { %13203 = vst [vmem:[#allocation155_spill] sm:$0xff] %v9127_v36  ;;  %v9131_v11 = vpop.permute.xlu1 %2240 }
 0x4a5   : > { %13204 = vst [vmem:[#allocation156_spill] sm:$0xff] %v9131_v11  ;;  %3431 = vrot.lane.b32.xlu0 %v3341_v43, %s12990_s18  ;;  %v3345_v43 = vmul.f32 %v8048_v48, %v9071_v4  ;;  %v3346_v48 = vmul.f32 %v8046_v47, %v9094_v39  ;;  %v1729_v47 = vld [vmem:[%s12984_s5 + $0x138] sm:$0xff] }
 0x4a6   : > { %3429 = vrot.lane.b32.xlu1 %v3340_v51, %s12990_s18 }
 0x4a7   : > { %v9137_v54 = vpop.permute.xlu0 %2450 }
 0x4a8   : > { %13205 = vst [vmem:[#allocation157_spill] sm:$0xff] %v9137_v54  ;;  %v9141_v44 = vpop.permute.xlu1 %2252 }
 0x4a9   : > { %13206 = vst [vmem:[#allocation158_spill] sm:$0xff] %v9141_v44  ;;  %3435 = vrot.lane.b32.xlu0 %v3343_v37, %s12990_s18 }
 0x4aa   : > { %3433 = vrot.lane.b32.xlu1 %v3342_v18, %s12990_s18 }
 0x4ab   : > { %v9147_v21 = vpop.permute.xlu0 %2462 }
 0x4ac   : > { %13207 = vst [vmem:[#allocation159_spill] sm:$0xff] %v9147_v21  ;;  %v9151_v51 = vpop.permute.xlu1 %2452 }
 0x4ad   : > { %13208 = vst [vmem:[#allocation160_spill] sm:$0xff] %v9151_v51  ;;  %3439 = vrot.lane.b32.xlu0 %v3345_v43, %s12990_s18 }
 0x4ae   : > { %3437 = vrot.lane.b32.xlu1 %v3344_v8, %s12990_s18  ;;  %v1727_v8 = vld [vmem:[%s12984_s5 + $0x128] sm:$0xff] }
 0x4af   : > { %v9160_v37 = vpop.permute.xlu0 %2662 }
 0x4b0   : > { %13209 = vst [vmem:[#allocation161_spill] sm:$0xff] %v9160_v37  ;;  %v9162_v18 = vpop.permute.xlu1 %2464 }
 0x4b1   : > { %13210 = vst [vmem:[#allocation162_spill] sm:$0xff] %v9162_v18  ;;  %3509 = vperm.xlu0 %7100, %v1726_v46  }
 0x4b2   : > { %3441 = vrot.lane.b32.xlu1 %v3346_v48, %s12990_s18  ;;  %s6773_s18 = sadd.s32 %s7358_s29, %s6912_s1 }
 0x4b3   : > { %v9170_v43 = vpop.permute.xlu0 %2674  ;;  %s6913_s30 = sshll.u32 %s6773_s18, 7 }
 0x4b4   : > { %13211 = vst [vmem:[#allocation163_spill] sm:$0xff] %v9170_v43  ;;  %v9175_v25 = vpop.permute.xlu1 %2664 }
 0x4b5   : > { %13212 = vst [vmem:[#allocation164_spill] sm:$0xff] %v9175_v25  ;;  %3519 = vperm.xlu0 %7100, %v1728_v45  }
 0x4b6   : > { %3514 = vperm.xlu1 %7099, %v1727_v8  }
 0x4b7   : > { %v9177_v60 = vpop.permute.xlu0 %2983 }
 0x4b8   : > { %13213 = vst [vmem:[#allocation165_spill] sm:$0xff] %v9177_v60  ;;  %v9182_v46 = vpop.permute.xlu1 %2676 }
 0x4b9   : > { %13214 = vst [vmem:[#allocation166_spill] sm:$0xff] %v9182_v46 }
 0x4ba   : > { %3524 = vperm.xlu1 %7099, %v1729_v47  }
 0x4bb   : > { %v9184_v48 = vpop.permute.xlu0 %2995 }
 0x4bc   : > { %13215 = vst [vmem:[#allocation167_spill] sm:$0xff] %v9184_v48  ;;  %v9186_v43 = vpop.permute.xlu1 %2985 }
 0x4bd   : > { %13216 = vst [vmem:[#allocation168_spill] sm:$0xff] %v9186_v43 }
 0x4bf   : > { %v9188_v20 = vpop.permute.xlu0 %3195 }
 0x4c0   : > { %13217 = vst [vmem:[#allocation169_spill] sm:$0xff] %v9188_v20  ;;  %v9190_v18 = vpop.permute.xlu1 %2997 }
 0x4c1   : > { %13218 = vst [vmem:[#allocation170_spill] sm:$0xff] %v9190_v18 }
 0x4c3   : > { %v9192_v35 = vpop.permute.xlu0 %3207 }
 0x4c4   : > { %13219 = vst [vmem:[#allocation171_spill] sm:$0xff] %v9192_v35  ;;  %v9194_v45 = vpop.permute.xlu1 %3197 }
 0x4c5   : > { %13220 = vst [vmem:[#allocation172_spill] sm:$0xff] %v9194_v45 }
 0x4c7   : > { %v9196_v8 = vpop.permute.xlu0 %3407 }
 0x4c8   : > { %13221 = vst [vmem:[#allocation173_spill] sm:$0xff] %v9196_v8  ;;  %v9198_v60 = vpop.permute.xlu1 %3209 }
 0x4c9   : > { %13222 = vst [vmem:[#allocation174_spill] sm:$0xff] %v9198_v60 }
 0x4cb   : > { %v9200_v21 = vpop.permute.xlu0 %2050 }
 0x4cc   : > { %13223 = vst [vmem:[#allocation175_spill] sm:$0xff] %v9200_v21  ;;  %v9202_v46 = vpop.permute.xlu1 %3409 }
 0x4cd   : > { %13224 = vst [vmem:[#allocation176_spill] sm:$0xff] %v9202_v46 }
 0x4cf   : > { %v9204_v47 = vpop.permute.xlu0 %2262 }
 0x4d0   : > { %13225 = vst [vmem:[#allocation177_spill] sm:$0xff] %v9204_v47  ;;  %v9206_v48 = vpop.permute.xlu1 %2052 }
 0x4d1   : > { %13226 = vst [vmem:[#allocation178_spill] sm:$0xff] %v9206_v48 }
 0x4d3   : > { %v9208_v43 = vpop.permute.xlu0 %2474 }
 0x4d4   : > { %13227 = vst [vmem:[#allocation179_spill] sm:$0xff] %v9208_v43  ;;  %v9210_v20 = vpop.permute.xlu1 %2264 }
 0x4d5   : > { %13228 = vst [vmem:[#allocation180_spill] sm:$0xff] %v9210_v20 }
 0x4d7   : > { %v9212_v18 = vpop.permute.xlu0 %2686 }
 0x4d8   : > { %13229 = vst [vmem:[#allocation181_spill] sm:$0xff] %v9212_v18  ;;  %v9214_v35 = vpop.permute.xlu1 %2476 }
 0x4d9   : > { %13230 = vst [vmem:[#allocation182_spill] sm:$0xff] %v9214_v35 }
 0x4db   : > { %v9216_v45 = vpop.permute.xlu0 %3007 }
 0x4dc   : > { %13231 = vst [vmem:[#allocation183_spill] sm:$0xff] %v9216_v45  ;;  %v9218_v8 = vpop.permute.xlu1 %2688 }
 0x4dd   : > { %13232 = vst [vmem:[#allocation184_spill] sm:$0xff] %v9218_v8 }
 0x4df   : > { %v9220_v60 = vpop.permute.xlu0 %3219 }
 0x4e0   : > { %13233 = vst [vmem:[#allocation185_spill] sm:$0xff] %v9220_v60  ;;  %v9222_v21 = vpop.permute.xlu1 %3009 }
 0x4e1   : > { %13234 = vst [vmem:[#allocation186_spill] sm:$0xff] %v9222_v21 }
 0x4e3   : > { %v9224_v46 = vpop.permute.xlu0 %2042 }
 0x4e4   : > { %13235 = vst [vmem:[#allocation187_spill] sm:$0xff] %v9224_v46  ;;  %v9226_v47 = vpop.permute.xlu1 %3221 }
 0x4e5   : > { %13236 = vst [vmem:[#allocation188_spill] sm:$0xff] %v9226_v47 }
 0x4e7   : > { %v9228_v48 = vpop.permute.xlu0 %2254 }
 0x4e8   : > { %13237 = vst [vmem:[#allocation189_spill] sm:$0xff] %v9228_v48  ;;  %v9230_v43 = vpop.permute.xlu1 %2044 }
 0x4e9   : > { %13238 = vst [vmem:[#allocation190_spill] sm:$0xff] %v9230_v43 }
 0x4eb   : > { %v9232_v20 = vpop.permute.xlu0 %2466 }
 0x4ec   : > { %13239 = vst [vmem:[#allocation191_spill] sm:$0xff] %v9232_v20  ;;  %v9234_v18 = vpop.permute.xlu1 %2256 }
 0x4ed   : > { %13240 = vst [vmem:[#allocation192_spill] sm:$0xff] %v9234_v18 }
 0x4ef   : > { %v9236_v35 = vpop.permute.xlu0 %2678 }
 0x4f0   : > { %13241 = vst [vmem:[#allocation193_spill] sm:$0xff] %v9236_v35  ;;  %v9238_v45 = vpop.permute.xlu1 %2468 }
 0x4f1   : > { %13242 = vst [vmem:[#allocation194_spill] sm:$0xff] %v9238_v45 }
 0x4f3   : > { %v9240_v8 = vpop.permute.xlu0 %2999 }
 0x4f4   : > { %13243 = vst [vmem:[#allocation195_spill] sm:$0xff] %v9240_v8  ;;  %v9242_v60 = vpop.permute.xlu1 %2680 }
 0x4f5   : > { %13244 = vst [vmem:[#allocation196_spill] sm:$0xff] %v9242_v60 }
 0x4f7   : > { %v9244_v21 = vpop.permute.xlu0 %3011 }
 0x4f8   : > { %13245 = vst [vmem:[#allocation197_spill] sm:$0xff] %v9244_v21  ;;  %v9246_v46 = vpop.permute.xlu1 %3001 }
 0x4f9   : > { %13246 = vst [vmem:[#allocation198_spill] sm:$0xff] %v9246_v46 }
 0x4fb   : > { %v9248_v47 = vpop.permute.xlu0 %3211 }
 0x4fc   : > { %13247 = vst [vmem:[#allocation199_spill] sm:$0xff] %v9248_v47  ;;  %v9250_v48 = vpop.permute.xlu1 %3013 }
 0x4fd   : > { %13248 = vst [vmem:[#allocation200_spill] sm:$0xff] %v9250_v48 }
 0x4ff   : > { %v9252_v43 = vpop.permute.xlu0 %3223 }
 0x500   : > { %13249 = vst [vmem:[#allocation201_spill] sm:$0xff] %v9252_v43  ;;  %v9254_v20 = vpop.permute.xlu1 %3213 }
 0x501   : > { %13250 = vst [vmem:[#allocation202_spill] sm:$0xff] %v9254_v20 }
 0x503   : > { %v9256_v18 = vpop.permute.xlu0 %3015 }
 0x504   : > { %13251 = vst [vmem:[#allocation203_spill] sm:$0xff] %v9256_v18  ;;  %v9258_v35 = vpop.permute.xlu1 %3225 }
 0x505   : > { %13252 = vst [vmem:[#allocation204_spill] sm:$0xff] %v9258_v35 }
 0x507   : > { %v9260_v45 = vpop.permute.xlu0 %3227 }
 0x508   : > { %13253 = vst [vmem:[#allocation205_spill] sm:$0xff] %v9260_v45  ;;  %v9262_v8 = vpop.permute.xlu1 %3421 }
 0x509   : > { %13254 = vst [vmem:[#allocation206_spill] sm:$0xff] %v9262_v8 }
 0x50b   : > { %v9266_v21 = vpop.permute.xlu0 %3419 }
 0x50c   : > { %v9264_v60 = vpop.permute.xlu1 %3017  ;;  %13256 = vst [vmem:[#allocation208_spill] sm:$0xff] %v9266_v21 }
 0x50d   : > { %13255 = vst [vmem:[#allocation207_spill] sm:$0xff] %v9264_v60 }
 0x50f   : > { %v9270_v47 = vpop.permute.xlu0 %3423 }
 0x510   : > { %v9268_v46 = vpop.permute.xlu1 %3229  ;;  %13258 = vst [vmem:[#allocation210_spill] sm:$0xff] %v9270_v47  ;;  %v7123_v47 = vld [vmem:[#allocation2 + $0x20] sm:$0xff] }
 0x511   : > { %13257 = vst [vmem:[#allocation209_spill] sm:$0xff] %v9268_v46 }
 0x513   : > { %v9274_v43 = vpop.permute.xlu0 %3427 }
 0x514   : > { %v9272_v48 = vpop.permute.xlu1 %3425  ;;  %13260 = vst [vmem:[#allocation212_spill] sm:$0xff] %v9274_v43  ;;  %v7125_v43 = vld [vmem:[#allocation2 + $0x28] sm:$0xff] }
 0x515   : > { %13259 = vst [vmem:[#allocation211_spill] sm:$0xff] %v9272_v48 }
 0x517   : > { %v9278_v18 = vpop.permute.xlu0 %3431 }
 0x518   : > { %v9276_v20 = vpop.permute.xlu1 %3429  ;;  %13262 = vst [vmem:[#allocation214_spill] sm:$0xff] %v9278_v18 }
 0x519   : > { %13261 = vst [vmem:[#allocation213_spill] sm:$0xff] %v9276_v20 }
 0x51b   : > { %v9282_v45 = vpop.permute.xlu0 %3435 }
 0x51c   : > { %v9280_v35 = vpop.permute.xlu1 %3433  ;;  %13264 = vst [vmem:[#allocation216_spill] sm:$0xff] %v9282_v45 }
 0x51d   : > { %13263 = vst [vmem:[#allocation215_spill] sm:$0xff] %v9280_v35  ;;  %v7124_v35 = vld [vmem:[#allocation2 + $0x30] sm:$0xff] }
 0x51f   : > { %v9286_v60 = vpop.permute.xlu0 %3439 }
 0x520   : > { %v9284_v8 = vpop.permute.xlu1 %3437  ;;  %13266 = vst [vmem:[#allocation218_spill] sm:$0xff] %v9286_v60  ;;  %v7126_v60 = vld [vmem:[#allocation2 + $0x40] sm:$0xff] }
 0x521   : > { %13265 = vst [vmem:[#allocation217_spill] sm:$0xff] %v9284_v8 }
 0x524   : > { %v9290_v46 = vpop.permute.xlu1 %3441 }
 0x525   : > { %13267 = vst [vmem:[#allocation219_spill] sm:$0xff] %v9290_v46 }
 0x530   : > { %v9288_v21 = vpop.permute.xlu0 %3509 }
 0x531   : > { %v3527_v48 = vmul.f32 %v7123_v47, %v9288_v21  ;;  %v3531_v47 = vmul.f32 %v7126_v60, %v9288_v21 }
 0x533   : > { %3591 = vrot.lane.b32.xlu0 %v3527_v48, %s12988_s22  ;;  %v7127_v48 = vld [vmem:[#allocation2 + $0x38] sm:$0xff] }
 0x534   : > { %v9294_v20 = vpop.permute.xlu0 %3519 }
 0x535   : > { %v9296_v18 = vpop.permute.xlu1 %3514  ;;  %v3529_v45 = vmul.f32 %v7124_v35, %v9294_v20  ;;  %v3533_v35 = vmul.f32 %v9294_v20, %v8495_v55 }
 0x536   : > { %v3528_v8 = vmul.f32 %v7125_v43, %v9296_v18  ;;  %v7128_v43 = vld [vmem:[#allocation2 + $0x48] sm:$0xff] }
 0x537   : > { %3595 = vrot.lane.b32.xlu0 %v3529_v45, %s12988_s22  ;;  %v3532_v45 = vmul.f32 %v7128_v43, %v9296_v18 }
 0x538   : > { %3593 = vrot.lane.b32.xlu1 %v3528_v8, %s12988_s22  ;;  %v7129_v8 = vld [vmem:[#allocation2 + $0x60] sm:$0xff] }
 0x539   : > { %v9302_v46 = vpop.permute.xlu1 %3524  ;;  %v3535_v60 = vmul.f32 %v7129_v8, %v9288_v21  ;;  %v3541_v8 = vmul.f32 %v9294_v20, %v8781_v63  ;;  %v3545_v63 = vmul.f32 %v9294_v20, %v8643_v7  ;;  %v3549_v7 = vmul.f32 %v9294_v20, %v8983_v14 }
 0x53a   : > { %v3530_v44 = vmul.f32 %v7127_v48, %v9302_v46  ;;  %v3534_v48 = vmul.f32 %v9302_v46, %v8510_v5  ;;  %v3553_v14 = vmul.f32 %v9294_v20, %v8919_v26  ;;  %v3557_v26 = vmul.f32 %v9294_v20, %v9071_v4 }
 0x53b   : > { %3599 = vrot.lane.b32.xlu0 %v3531_v47, %s12988_s22  ;;  %v7131_v47 = vld [vmem:[#allocation2 + $0x68] sm:$0xff] }
 0x53c   : > { %3597 = vrot.lane.b32.xlu1 %v3530_v44, %s12988_s22  ;;  %v7130_v44 = vld [vmem:[#allocation2 + $0x70] sm:$0xff]  ;;  %v3536_v43 = vmul.f32 %v7131_v47, %v9296_v18  ;;  %v3547_v47 = vmul.f32 %v9288_v21, %v8793_v61  ;;  %v3551_v61 = vmul.f32 %v9288_v21, %v8655_v1  ;;  %v3555_v1 = vmul.f32 %v9288_v21, %v9037_v29 }
 0x53d   : > { %v3537_v55 = vmul.f32 %v7130_v44, %v9294_v20  ;;  %v3542_v44 = vmul.f32 %v9302_v46, %v8796_v15  ;;  %v3546_v15 = vmul.f32 %v9302_v46, %v8658_v49  ;;  %v3550_v49 = vmul.f32 %v9302_v46, %v8996_v59  ;;  %v1732_v20 = vld [vmem:[%s12984_s5 + $0x150] sm:$0xff] }
 0x53e   : > { %v3554_v59 = vmul.f32 %v9302_v46, %v8932_v38  ;;  %v3558_v38 = vmul.f32 %v9302_v46, %v9094_v39 }
 0x53f   : > { %3603 = vrot.lane.b32.xlu0 %v3533_v35, %s12988_s22  ;;  %v3539_v35 = vmul.f32 %v9288_v21, %v8507_v9 }
 0x540   : > { %3601 = vrot.lane.b32.xlu1 %v3532_v45, %s12988_s22  ;;  %v7132_v45 = vld [vmem:[#allocation2 + $0x78] sm:$0xff] }
 0x541   : > { %v3538_v5 = vmul.f32 %v7132_v45, %v9302_v46  ;;  %v1733_v46 = vld [vmem:[%s12984_s5 + $0x158] sm:$0xff]  ;;  %v1736_v45 = vld [vmem:[%s12984_s5 + $0x170] sm:$0xff] }
 0x543   : > { %3607 = vrot.lane.b32.xlu0 %v3535_v60, %s12988_s22  ;;  %v3540_v60 = vmul.f32 %v9296_v18, %v8522_v24 }
 0x544   : > { %3605 = vrot.lane.b32.xlu1 %v3534_v48, %s12988_s22  ;;  %v7133_v48 = vld [vmem:[#allocation2 + $0xa0] sm:$0xff] }
 0x545   : > { %v3543_v9 = vmul.f32 %v7133_v48, %v9288_v21  ;;  %v1730_v21 = vld [vmem:[%s12984_s5 + $0x140] sm:$0xff] }
 0x547   : > { %3611 = vrot.lane.b32.xlu0 %v3537_v55, %s12988_s22  ;;  %v7134_v55 = vld [vmem:[#allocation2 + $0xa8] sm:$0xff] }
 0x548   : > { %3609 = vrot.lane.b32.xlu1 %v3536_v43, %s12988_s22  ;;  %v3544_v24 = vmul.f32 %v7134_v55, %v9296_v18  ;;  %v3548_v43 = vmul.f32 %v9296_v18, %v8808_v50  ;;  %v3552_v50 = vmul.f32 %v9296_v18, %v8670_v17  ;;  %v3556_v17 = vmul.f32 %v9296_v18, %v9050_v40  ;;  %v1731_v18 = vld [vmem:[%s12984_s5 + $0x148] sm:$0xff] }
 0x54b   : > { %3615 = vrot.lane.b32.xlu0 %v3539_v35, %s12988_s22  ;;  %v1734_v35 = vld [vmem:[%s12984_s5 + $0x160] sm:$0xff] }
 0x54c   : > { %3613 = vrot.lane.b32.xlu1 %v3538_v5, %s12988_s22  ;;  %v1735_v5 = vld [vmem:[%s12984_s5 + $0x168] sm:$0xff] }
 0x54f   : > { %3619 = vrot.lane.b32.xlu0 %v3541_v8, %s12988_s22  ;;  %v1737_v8 = vld [vmem:[%s12984_s5 + $0x178] sm:$0xff] }
 0x550   : > { %3617 = vrot.lane.b32.xlu1 %v3540_v60, %s12988_s22 }
 0x553   : > { %3623 = vrot.lane.b32.xlu0 %v3543_v9, %s12988_s22 }
 0x554   : > { %3621 = vrot.lane.b32.xlu1 %v3542_v44, %s12988_s22 }
 0x557   : > { %3627 = vrot.lane.b32.xlu0 %v3545_v63, %s12988_s22 }
 0x558   : > { %3625 = vrot.lane.b32.xlu1 %v3544_v24, %s12988_s22 }
 0x55b   : > { %3631 = vrot.lane.b32.xlu0 %v3547_v47, %s12988_s22 }
 0x55c   : > { %3629 = vrot.lane.b32.xlu1 %v3546_v15, %s12988_s22 }
 0x55f   : > { %3635 = vrot.lane.b32.xlu0 %v3549_v7, %s12988_s22 }
 0x560   : > { %3633 = vrot.lane.b32.xlu1 %v3548_v43, %s12988_s22 }
 0x563   : > { %3639 = vrot.lane.b32.xlu0 %v3551_v61, %s12988_s22 }
 0x564   : > { %3637 = vrot.lane.b32.xlu1 %v3550_v49, %s12988_s22 }
 0x567   : > { %3643 = vrot.lane.b32.xlu0 %v3553_v14, %s12988_s22 }
 0x568   : > { %3641 = vrot.lane.b32.xlu1 %v3552_v50, %s12988_s22 }
 0x56b   : > { %3647 = vrot.lane.b32.xlu0 %v3555_v1, %s12988_s22 }
 0x56c   : > { %3645 = vrot.lane.b32.xlu1 %v3554_v59, %s12988_s22 }
 0x56f   : > { %3651 = vrot.lane.b32.xlu0 %v3557_v26, %s12988_s22 }
 0x570   : > { %3649 = vrot.lane.b32.xlu1 %v3556_v17, %s12988_s22 }
 0x573   : > { %3754 = vperm.xlu0 %7100, %v1730_v21  }
 0x574   : > { %3653 = vrot.lane.b32.xlu1 %v3558_v38, %s12988_s22 }
 0x577   : > { %3764 = vperm.xlu0 %7100, %v1732_v20  }
 0x578   : > { %3759 = vperm.xlu1 %7099, %v1731_v18  }
 0x57b   : > { %3838 = vperm.xlu0 %7100, %v1734_v35  }
 0x57c   : > { %3769 = vperm.xlu1 %7099, %v1733_v46  }
 0x57f   : > { %3848 = vperm.xlu0 %7100, %v1736_v45  }
 0x580   : > { %3843 = vperm.xlu1 %7099, %v1735_v5  }
 0x584   : > { %3853 = vperm.xlu1 %7099, %v1737_v8  }
 0x5a5   : > { %v9406_v60 = vpop.permute.xlu0 %3591 }
 0x5a6   : > { %13268 = vst [vmem:[#allocation220_spill] sm:$0xff] %v9406_v60  ;;  %v9581_v60 = vld [vmem:[#allocation2 + $0xe0] sm:$0xff] }
 0x5a9   : > { %v9408_v48 = vpop.permute.xlu0 %3595 }
 0x5aa   : > { %13269 = vst [vmem:[#allocation221_spill] sm:$0xff] %v9408_v48  ;;  %v9410_v9 = vpop.permute.xlu1 %3593 }
 0x5ab   : > { %13270 = vst [vmem:[#allocation222_spill] sm:$0xff] %v9410_v9  ;;  %v9571_v9 = vld [vmem:[#allocation2 + $0xd0] sm:$0xff] }
 0x5ad   : > { %v9412_v44 = vpop.permute.xlu0 %3599 }
 0x5ae   : > { %13271 = vst [vmem:[#allocation223_spill] sm:$0xff] %v9412_v44  ;;  %v9414_v63 = vpop.permute.xlu1 %3597 }
 0x5af   : > { %13272 = vst [vmem:[#allocation224_spill] sm:$0xff] %v9414_v63  ;;  %v9561_v63 = vld [vmem:[#allocation2 + $0xc0] sm:$0xff] }
 0x5b1   : > { %v9416_v55 = vpop.permute.xlu0 %3603 }
 0x5b2   : > { %13273 = vst [vmem:[#allocation225_spill] sm:$0xff] %v9416_v55  ;;  %v9418_v24 = vpop.permute.xlu1 %3601 }
 0x5b3   : > { %13274 = vst [vmem:[#allocation226_spill] sm:$0xff] %v9418_v24  ;;  %v9551_v24 = vld [vmem:[#allocation2 + $0xb0] sm:$0xff] }
 0x5b5   : > { %v9420_v47 = vpop.permute.xlu0 %3607 }
 0x5b6   : > { %13275 = vst [vmem:[#allocation227_spill] sm:$0xff] %v9420_v47  ;;  %v9422_v15 = vpop.permute.xlu1 %3605 }
 0x5b7   : > { %13276 = vst [vmem:[#allocation228_spill] sm:$0xff] %v9422_v15  ;;  %v9541_v15 = vld [vmem:[#allocation2 + $0xa0] sm:$0xff] }
 0x5b9   : > { %v9424_v7 = vpop.permute.xlu0 %3611 }
 0x5ba   : > { %13277 = vst [vmem:[#allocation229_spill] sm:$0xff] %v9424_v7  ;;  %v9426_v43 = vpop.permute.xlu1 %3609 }
 0x5bb   : > { %13278 = vst [vmem:[#allocation230_spill] sm:$0xff] %v9426_v43  ;;  %v9531_v43 = vld [vmem:[#allocation2 + $0x90] sm:$0xff] }
 0x5bd   : > { %v9428_v61 = vpop.permute.xlu0 %3615 }
 0x5be   : > { %13279 = vst [vmem:[#allocation231_spill] sm:$0xff] %v9428_v61  ;;  %v9430_v49 = vpop.permute.xlu1 %3613 }
 0x5bf   : > { %13280 = vst [vmem:[#allocation232_spill] sm:$0xff] %v9430_v49  ;;  %v9521_v49 = vld [vmem:[#allocation2 + $0x80] sm:$0xff] }
 0x5c1   : > { %v9432_v14 = vpop.permute.xlu0 %3619 }
 0x5c2   : > { %13281 = vst [vmem:[#allocation233_spill] sm:$0xff] %v9432_v14  ;;  %v9434_v50 = vpop.permute.xlu1 %3617 }
 0x5c3   : > { %13282 = vst [vmem:[#allocation234_spill] sm:$0xff] %v9434_v50  ;;  %v9511_v50 = vld [vmem:[#allocation2 + $0x70] sm:$0xff] }
 0x5c5   : > { %v9436_v1 = vpop.permute.xlu0 %3623 }
 0x5c6   : > { %13283 = vst [vmem:[#allocation235_spill] sm:$0xff] %v9436_v1  ;;  %v9438_v59 = vpop.permute.xlu1 %3621 }
 0x5c7   : > { %13284 = vst [vmem:[#allocation236_spill] sm:$0xff] %v9438_v59 }
 0x5c9   : > { %v9440_v26 = vpop.permute.xlu0 %3627 }
 0x5ca   : > { %13285 = vst [vmem:[#allocation237_spill] sm:$0xff] %v9440_v26  ;;  %v9442_v17 = vpop.permute.xlu1 %3625 }
 0x5cb   : > { %13286 = vst [vmem:[#allocation238_spill] sm:$0xff] %v9442_v17 }
 0x5cd   : > { %v9446_v38 = vpop.permute.xlu0 %3631 }
 0x5ce   : > { %v9444_v21 = vpop.permute.xlu1 %3629  ;;  %13288 = vst [vmem:[#allocation240_spill] sm:$0xff] %v9446_v38 }
 0x5cf   : > { %13287 = vst [vmem:[#allocation239_spill] sm:$0xff] %v9444_v21 }
 0x5d1   : > { %v9450_v18 = vpop.permute.xlu0 %3635 }
 0x5d2   : > { %v9448_v20 = vpop.permute.xlu1 %3633  ;;  %13290 = vst [vmem:[#allocation242_spill] sm:$0xff] %v9450_v18 }
 0x5d3   : > { %13289 = vst [vmem:[#allocation241_spill] sm:$0xff] %v9448_v20 }
 0x5d5   : > { %v9454_v46 = vpop.permute.xlu0 %3639 }
 0x5d6   : > { %v9452_v35 = vpop.permute.xlu1 %3637  ;;  %13292 = vst [vmem:[#allocation244_spill] sm:$0xff] %v9454_v46 }
 0x5d7   : > { %13291 = vst [vmem:[#allocation243_spill] sm:$0xff] %v9452_v35 }
 0x5d9   : > { %v9458_v5 = vpop.permute.xlu0 %3643 }
 0x5da   : > { %v9456_v45 = vpop.permute.xlu1 %3641  ;;  %13294 = vst [vmem:[#allocation246_spill] sm:$0xff] %v9458_v5 }
 0x5db   : > { %13293 = vst [vmem:[#allocation245_spill] sm:$0xff] %v9456_v45  ;;  %v9478_v45 = vld [vmem:[#allocation2 + $0x40] sm:$0xff] }
 0x5dd   : > { %v9462_v26 = vpop.permute.xlu0 %3647 }
 0x5de   : > { %v9460_v8 = vpop.permute.xlu1 %3645  ;;  %13296 = vst [vmem:[#allocation248_spill] sm:$0xff] %v9462_v26 }
 0x5df   : > { %13295 = vst [vmem:[#allocation247_spill] sm:$0xff] %v9460_v8 }
 0x5e1   : > { %v9466_v21 = vpop.permute.xlu0 %3651 }
 0x5e2   : > { %v9464_v17 = vpop.permute.xlu1 %3649  ;;  %13298 = vst [vmem:[#allocation250_spill] sm:$0xff] %v9466_v21  ;;  %v9487_v21 = vld [vmem:[#allocation2 + $0x50] sm:$0xff] }
 0x5e3   : > { %13297 = vst [vmem:[#allocation249_spill] sm:$0xff] %v9464_v17 }
 0x5e6   : > { %v9470_v20 = vpop.permute.xlu1 %3653 }
 0x5e7   : > { %13300 = vst [vmem:[#allocation252_spill] sm:$0xff] %v9470_v20 }
 0x5f2   : > { %v9468_v38 = vpop.permute.xlu0 %3754 }
 0x5f3   : > { %13299 = vst [vmem:[#allocation251_spill] sm:$0xff] %v9468_v38  ;;  %v9505_v38 = vld [vmem:[#allocation2 + $0x58] sm:$0xff] }
 0x5f6   : > { %v9472_v18 = vpop.permute.xlu0 %3764 }
 0x5f7   : > { %13301 = vst [vmem:[#allocation253_spill] sm:$0xff] %v9472_v18  ;;  %v9474_v35 = vpop.permute.xlu1 %3759 }
 0x5f8   : > { %13302 = vst [vmem:[#allocation254_spill] sm:$0xff] %v9474_v35  ;;  %v9493_v35 = vld [vmem:[#allocation2 + $0x48] sm:$0xff] }
 0x5fa   : > { %v9476_v46 = vpop.permute.xlu0 %3838 }
 0x5fb   : > { %v9480_v5 = vpop.permute.xlu1 %3769  ;;  %v3856_v8 = vmul.f32 %v9476_v46, %v9478_v45  ;;  %v3880_v28 = vmul.f32 %v9476_v46, %v9037_v29 }
 0x5fc   : > { %13303 = vst [vmem:[#allocation255_spill] sm:$0xff] %v9480_v5  ;;  %v9499_v5 = vld [vmem:[#allocation2 + $0x60] sm:$0xff] }
 0x5fd   : > { %3920 = vrot.lane.b32.xlu0 %v3856_v8, %s12998_s21  ;;  %v3860_v59 = vmul.f32 %v9476_v46, %v9499_v5 }
 0x5fe   : > { %v9485_v17 = vpop.permute.xlu0 %3848 }
 0x5ff   : > { %v9489_v20 = vpop.permute.xlu1 %3843  ;;  %v3858_v26 = vmul.f32 %v9485_v17, %v9487_v21  ;;  %v3882_v37 = vmul.f32 %v9485_v17, %v9071_v4 }
 0x600   : > { %v3857_v18 = vmul.f32 %v9489_v20, %v9493_v35 }
 0x601   : > { %3924 = vrot.lane.b32.xlu0 %v3858_v26, %s12998_s21  ;;  %v3862_v26 = vmul.f32 %v9485_v17, %v9511_v50 }
 0x602   : > { %3922 = vrot.lane.b32.xlu1 %v3857_v18, %s12998_s21  ;;  %v9515_v18 = vld [vmem:[#allocation2 + $0x68] sm:$0xff] }
 0x603   : > { %v9501_v8 = vpop.permute.xlu1 %3853  ;;  %v3861_v14 = vmul.f32 %v9489_v20, %v9515_v18 }
 0x604   : > { %v3859_v1 = vmul.f32 %v9501_v8, %v9505_v38 }
 0x605   : > { %3928 = vrot.lane.b32.xlu0 %v3860_v59, %s12998_s21  ;;  %v3864_v59 = vmul.f32 %v9476_v46, %v9521_v49 }
 0x606   : > { %3926 = vrot.lane.b32.xlu1 %v3859_v1, %s12998_s21  ;;  %v9525_v1 = vld [vmem:[#allocation2 + $0x78] sm:$0xff] }
 0x607   : > { %v3863_v61 = vmul.f32 %v9501_v8, %v9525_v1 }
 0x609   : > { %3932 = vrot.lane.b32.xlu0 %v3862_v26, %s12998_s21  ;;  %v3866_v26 = vmul.f32 %v9485_v17, %v9531_v43 }
 0x60a   : > { %3930 = vrot.lane.b32.xlu1 %v3861_v14, %s12998_s21  ;;  %v9535_v14 = vld [vmem:[#allocation2 + $0x88] sm:$0xff] }
 0x60b   : > { %v3865_v7 = vmul.f32 %v9489_v20, %v9535_v14 }
 0x60d   : > { %3936 = vrot.lane.b32.xlu0 %v3864_v59, %s12998_s21  ;;  %v3868_v59 = vmul.f32 %v9476_v46, %v9541_v15 }
 0x60e   : > { %3934 = vrot.lane.b32.xlu1 %v3863_v61, %s12998_s21  ;;  %v9545_v61 = vld [vmem:[#allocation2 + $0x98] sm:$0xff] }
 0x60f   : > { %v3867_v47 = vmul.f32 %v9501_v8, %v9545_v61 }
 0x611   : > { %3940 = vrot.lane.b32.xlu0 %v3866_v26, %s12998_s21  ;;  %v3870_v26 = vmul.f32 %v9485_v17, %v9551_v24 }
 0x612   : > { %3938 = vrot.lane.b32.xlu1 %v3865_v7, %s12998_s21  ;;  %v9555_v7 = vld [vmem:[#allocation2 + $0xa8] sm:$0xff] }
 0x613   : > { %v3869_v55 = vmul.f32 %v9489_v20, %v9555_v7 }
 0x615   : > { %3944 = vrot.lane.b32.xlu0 %v3868_v59, %s12998_s21  ;;  %v3872_v59 = vmul.f32 %v9476_v46, %v9561_v63 }
 0x616   : > { %3942 = vrot.lane.b32.xlu1 %v3867_v47, %s12998_s21  ;;  %v9565_v47 = vld [vmem:[#allocation2 + $0xb8] sm:$0xff] }
 0x617   : > { %v3871_v44 = vmul.f32 %v9501_v8, %v9565_v47 }
 0x619   : > { %3948 = vrot.lane.b32.xlu0 %v3870_v26, %s12998_s21  ;;  %v3874_v26 = vmul.f32 %v9485_v17, %v9571_v9 }
 0x61a   : > { %3946 = vrot.lane.b32.xlu1 %v3869_v55, %s12998_s21  ;;  %v9575_v55 = vld [vmem:[#allocation2 + $0xc8] sm:$0xff] }
 0x61b   : > { %v3873_v48 = vmul.f32 %v9489_v20, %v9575_v55 }
 0x61d   : > { %3952 = vrot.lane.b32.xlu0 %v3872_v59, %s12998_s21  ;;  %v3876_v59 = vmul.f32 %v9476_v46, %v9581_v60 }
 0x61e   : > { %3950 = vrot.lane.b32.xlu1 %v3871_v44, %s12998_s21  ;;  %v9585_v44 = vld [vmem:[#allocation2 + $0xd8] sm:$0xff] }
 0x61f   : > { %v3875_v36 = vmul.f32 %v9501_v8, %v9585_v44 }
 0x621   : > { %3956 = vrot.lane.b32.xlu0 %v3874_v26, %s12998_s21  ;;  %v3878_v26 = vmul.f32 %v9485_v17, %v9591_v6 }
 0x622   : > { %3954 = vrot.lane.b32.xlu1 %v3873_v48, %s12998_s21  ;;  %v9595_v48 = vld [vmem:[#allocation2 + $0xe8] sm:$0xff] }
 0x623   : > { %v3877_v25 = vmul.f32 %v9489_v20, %v9595_v48 }
 0x625   : > { %3960 = vrot.lane.b32.xlu0 %v3876_v59, %s12998_s21  ;;  %v9603_v59 = vld [vmem:[#allocation2 + $0xf8] sm:$0xff] }
 0x626   : > { %3958 = vrot.lane.b32.xlu1 %v3875_v36, %s12998_s21  ;;  %v3879_v36 = vmul.f32 %v9501_v8, %v9603_v59 }
 0x629   : > { %3964 = vrot.lane.b32.xlu0 %v3878_v26, %s12998_s21  ;;  %v3881_v26 = vmul.f32 %v9489_v20, %v9050_v40 }
 0x62a   : > { %3962 = vrot.lane.b32.xlu1 %v3877_v25, %s12998_s21  ;;  %v9615_v25 = vld [vmem:[#allocation2 + $0x120] sm:$0xff] }
 0x62b   : > { %v3884_v51 = vmul.f32 %v9476_v46, %v9615_v25  ;;  %v9636_v46 = vld [vmem:[#allocation2 + $0x138] sm:$0xff] }
 0x62d   : > { %3968 = vrot.lane.b32.xlu0 %v3880_v28, %s12998_s21  ;;  %v3883_v28 = vmul.f32 %v9501_v8, %v9094_v39 }
 0x62e   : > { %3966 = vrot.lane.b32.xlu1 %v3879_v36, %s12998_s21  ;;  %v9623_v36 = vld [vmem:[#allocation2 + $0x130] sm:$0xff] }
 0x62f   : > { %v3886_v54 = vmul.f32 %v9485_v17, %v9623_v36  ;;  %v1740_v17 = vld [vmem:[%s12984_s5 + $0x190] sm:$0xff] }
 0x631   : > { %3972 = vrot.lane.b32.xlu0 %v3882_v37, %s12998_s21  ;;  %v9627_v37 = vld [vmem:[#allocation2 + $0x128] sm:$0xff] }
 0x632   : > { %3970 = vrot.lane.b32.xlu1 %v3881_v26, %s12998_s21  ;;  %v3885_v26 = vmul.f32 %v9489_v20, %v9627_v37  ;;  %v1741_v20 = vld [vmem:[%s12984_s5 + $0x198] sm:$0xff] }
 0x635   : > { %3976 = vrot.lane.b32.xlu0 %v3884_v51, %s12998_s21  ;;  %v1738_v51 = vld [vmem:[%s12984_s5 + $0x180] sm:$0xff] }
 0x636   : > { %3974 = vrot.lane.b32.xlu1 %v3883_v28, %s12998_s21  ;;  %v3887_v28 = vmul.f32 %v9501_v8, %v9636_v46 }
 0x639   : > { %3980 = vrot.lane.b32.xlu0 %v3886_v54, %s12998_s21  ;;  %v1739_v54 = vld [vmem:[%s12984_s5 + $0x188] sm:$0xff] }
 0x63a   : > { %3978 = vrot.lane.b32.xlu1 %v3885_v26, %s12998_s21 }
 0x63d   : > { %4050 = vperm.xlu0 %7100, %v1738_v51  }
 0x63e   : > { %3982 = vrot.lane.b32.xlu1 %v3887_v28, %s12998_s21  ;;  %s13438_s21 = smov 127  }
 0x641   : > { %4060 = vperm.xlu0 %7100, %v1740_v17  }
 0x642   : > { %4055 = vperm.xlu1 %7099, %v1739_v54  }
 0x646   : > { %4065 = vperm.xlu1 %7099, %v1741_v20  }
 0x66f   : > { %v9650_v26 = vpop.permute.xlu0 %3920 }
 0x670   : > { %13304 = vst [vmem:[#allocation256_spill] sm:$0xff] %v9650_v26 }
 0x673   : > { %v9652_v8 = vpop.permute.xlu0 %3924 }
 0x674   : > { %13305 = vst [vmem:[#allocation257_spill] sm:$0xff] %v9652_v8  ;;  %v9654_v51 = vpop.permute.xlu1 %3922 }
 0x675   : > { %13306 = vst [vmem:[#allocation258_spill] sm:$0xff] %v9654_v51 }
 0x677   : > { %v9656_v28 = vpop.permute.xlu0 %3928 }
 0x678   : > { %13307 = vst [vmem:[#allocation259_spill] sm:$0xff] %v9656_v28  ;;  %v9658_v11 = vpop.permute.xlu1 %3926 }
 0x679   : > { %13308 = vst [vmem:[#allocation260_spill] sm:$0xff] %v9658_v11 }
 0x67b   : > { %v9660_v42 = vpop.permute.xlu0 %3932 }
 0x67c   : > { %13309 = vst [vmem:[#allocation261_spill] sm:$0xff] %v9660_v42  ;;  %v9662_v34 = vpop.permute.xlu1 %3930 }
 0x67d   : > { %13310 = vst [vmem:[#allocation262_spill] sm:$0xff] %v9662_v34 }
 0x67f   : > { %v9664_v17 = vpop.permute.xlu0 %3936 }
 0x680   : > { %13311 = vst [vmem:[#allocation263_spill] sm:$0xff] %v9664_v17  ;;  %v9666_v54 = vpop.permute.xlu1 %3934 }
 0x681   : > { %13312 = vst [vmem:[#allocation264_spill] sm:$0xff] %v9666_v54 }
 0x683   : > { %v9668_v41 = vpop.permute.xlu0 %3940 }
 0x684   : > { %13313 = vst [vmem:[#allocation265_spill] sm:$0xff] %v9668_v41  ;;  %v9670_v20 = vpop.permute.xlu1 %3938 }
 0x685   : > { %13314 = vst [vmem:[#allocation266_spill] sm:$0xff] %v9670_v20 }
 0x687   : > { %v9672_v26 = vpop.permute.xlu0 %3944 }
 0x688   : > { %13315 = vst [vmem:[#allocation267_spill] sm:$0xff] %v9672_v26  ;;  %v9674_v8 = vpop.permute.xlu1 %3942 }
 0x689   : > { %13316 = vst [vmem:[#allocation268_spill] sm:$0xff] %v9674_v8 }
 0x68b   : > { %v9676_v51 = vpop.permute.xlu0 %3948 }
 0x68c   : > { %13317 = vst [vmem:[#allocation269_spill] sm:$0xff] %v9676_v51  ;;  %v9678_v28 = vpop.permute.xlu1 %3946 }
 0x68d   : > { %13318 = vst [vmem:[#allocation270_spill] sm:$0xff] %v9678_v28 }
 0x68f   : > { %v9680_v11 = vpop.permute.xlu0 %3952 }
 0x690   : > { %13319 = vst [vmem:[#allocation271_spill] sm:$0xff] %v9680_v11  ;;  %v9682_v42 = vpop.permute.xlu1 %3950 }
 0x691   : > { %13320 = vst [vmem:[#allocation272_spill] sm:$0xff] %v9682_v42 }
 0x693   : > { %v9684_v34 = vpop.permute.xlu0 %3956 }
 0x694   : > { %13321 = vst [vmem:[#allocation273_spill] sm:$0xff] %v9684_v34  ;;  %v9686_v17 = vpop.permute.xlu1 %3954 }
 0x695   : > { %13322 = vst [vmem:[#allocation274_spill] sm:$0xff] %v9686_v17 }
 0x697   : > { %v9690_v41 = vpop.permute.xlu0 %3960 }
 0x698   : > { %v9688_v54 = vpop.permute.xlu1 %3958  ;;  %13324 = vst [vmem:[#allocation276_spill] sm:$0xff] %v9690_v41 }
 0x699   : > { %13323 = vst [vmem:[#allocation275_spill] sm:$0xff] %v9688_v54 }
 0x69b   : > { %v9694_v26 = vpop.permute.xlu0 %3964 }
 0x69c   : > { %v9692_v20 = vpop.permute.xlu1 %3962  ;;  %13326 = vst [vmem:[#allocation278_spill] sm:$0xff] %v9694_v26 }
 0x69d   : > { %13325 = vst [vmem:[#allocation277_spill] sm:$0xff] %v9692_v20 }
 0x69f   : > { %v9698_v51 = vpop.permute.xlu0 %3968 }
 0x6a0   : > { %v9696_v8 = vpop.permute.xlu1 %3966  ;;  %13328 = vst [vmem:[#allocation280_spill] sm:$0xff] %v9698_v51 }
 0x6a1   : > { %13327 = vst [vmem:[#allocation279_spill] sm:$0xff] %v9696_v8 }
 0x6a3   : > { %v9702_v11 = vpop.permute.xlu0 %3972 }
 0x6a4   : > { %v9700_v28 = vpop.permute.xlu1 %3970  ;;  %13330 = vst [vmem:[#allocation282_spill] sm:$0xff] %v9702_v11 }
 0x6a5   : > { %13329 = vst [vmem:[#allocation281_spill] sm:$0xff] %v9700_v28 }
 0x6a7   : > { %v9706_v34 = vpop.permute.xlu0 %3976 }
 0x6a8   : > { %v9704_v42 = vpop.permute.xlu1 %3974  ;;  %13332 = vst [vmem:[#allocation284_spill] sm:$0xff] %v9706_v34 }
 0x6a9   : > { %13331 = vst [vmem:[#allocation283_spill] sm:$0xff] %v9704_v42 }
 0x6ab   : > { %v9710_v54 = vpop.permute.xlu0 %3980 }
 0x6ac   : > { %v9708_v17 = vpop.permute.xlu1 %3978  ;;  %13334 = vst [vmem:[#allocation286_spill] sm:$0xff] %v9710_v54 }
 0x6ad   : > { %13333 = vst [vmem:[#allocation285_spill] sm:$0xff] %v9708_v17 }
 0x6b0   : > { %v9712_v20 = vpop.permute.xlu1 %3982 }
 0x6b1   : > { %13335 = vst [vmem:[#allocation287_spill] sm:$0xff] %v9712_v20 }
 0x6bc   : > { %v4051_v41 = vpop.permute.xlu0 %4050 }
 0x6bd   : > { %v4068_v26 = vmul.f32 %v4051_v41, %v9478_v45  ;;  %v4072_v54 = vmul.f32 %v4051_v41, %v9499_v5 }
 0x6bf   : > { %4132 = vrot.lane.b32.xlu0 %v4068_v26, %s12996_s13 }
 0x6c0   : > { %v4061_v8 = vpop.permute.xlu0 %4060 }
 0x6c1   : > { %v4056_v51 = vpop.permute.xlu1 %4055  ;;  %v4070_v28 = vmul.f32 %v4061_v8, %v9487_v21  ;;  %v4074_v26 = vmul.f32 %v4061_v8, %v9511_v50 }
 0x6c2   : > { %v4069_v11 = vmul.f32 %v4056_v51, %v9493_v35  ;;  %v4073_v20 = vmul.f32 %v4056_v51, %v9515_v18 }
 0x6c3   : > { %4136 = vrot.lane.b32.xlu0 %v4070_v28, %s12996_s13  ;;  %v4076_v28 = vmul.f32 %v4051_v41, %v9521_v49 }
 0x6c4   : > { %4134 = vrot.lane.b32.xlu1 %v4069_v11, %s12996_s13 }
 0x6c5   : > { %v4066_v17 = vpop.permute.xlu1 %4065 }
 0x6c6   : > { %v4071_v42 = vmul.f32 %v4066_v17, %v9505_v38  ;;  %v4075_v11 = vmul.f32 %v4066_v17, %v9525_v1 }
 0x6c7   : > { %4140 = vrot.lane.b32.xlu0 %v4072_v54, %s12996_s13  ;;  %v4078_v54 = vmul.f32 %v4061_v8, %v9531_v43 }
 0x6c8   : > { %4138 = vrot.lane.b32.xlu1 %v4071_v42, %s12996_s13  ;;  %v4077_v42 = vmul.f32 %v4056_v51, %v9535_v14 }
 0x6cb   : > { %4144 = vrot.lane.b32.xlu0 %v4074_v26, %s12996_s13  ;;  %v4080_v26 = vmul.f32 %v4051_v41, %v9541_v15 }
 0x6cc   : > { %4142 = vrot.lane.b32.xlu1 %v4073_v20, %s12996_s13  ;;  %v4079_v20 = vmul.f32 %v4066_v17, %v9545_v61 }
 0x6cf   : > { %4148 = vrot.lane.b32.xlu0 %v4076_v28, %s12996_s13  ;;  %v4082_v28 = vmul.f32 %v4061_v8, %v9551_v24 }
 0x6d0   : > { %4146 = vrot.lane.b32.xlu1 %v4075_v11, %s12996_s13  ;;  %v4081_v11 = vmul.f32 %v4056_v51, %v9555_v7 }
 0x6d3   : > { %4152 = vrot.lane.b32.xlu0 %v4078_v54, %s12996_s13  ;;  %v4084_v54 = vmul.f32 %v4051_v41, %v9561_v63 }
 0x6d4   : > { %4150 = vrot.lane.b32.xlu1 %v4077_v42, %s12996_s13  ;;  %v4083_v42 = vmul.f32 %v4066_v17, %v9565_v47 }
 0x6d7   : > { %4156 = vrot.lane.b32.xlu0 %v4080_v26, %s12996_s13  ;;  %v4086_v26 = vmul.f32 %v4061_v8, %v9571_v9 }
 0x6d8   : > { %4154 = vrot.lane.b32.xlu1 %v4079_v20, %s12996_s13  ;;  %v4085_v20 = vmul.f32 %v4056_v51, %v9575_v55 }
 0x6db   : > { %4160 = vrot.lane.b32.xlu0 %v4082_v28, %s12996_s13  ;;  %v4088_v28 = vmul.f32 %v4051_v41, %v9581_v60 }
 0x6dc   : > { %4158 = vrot.lane.b32.xlu1 %v4081_v11, %s12996_s13  ;;  %v4087_v11 = vmul.f32 %v4066_v17, %v9585_v44 }
 0x6df   : > { %4164 = vrot.lane.b32.xlu0 %v4084_v54, %s12996_s13  ;;  %v4090_v54 = vmul.f32 %v4061_v8, %v9591_v6 }
 0x6e0   : > { %4162 = vrot.lane.b32.xlu1 %v4083_v42, %s12996_s13  ;;  %v4089_v42 = vmul.f32 %v4056_v51, %v9595_v48 }
 0x6e3   : > { %4168 = vrot.lane.b32.xlu0 %v4086_v26, %s12996_s13  ;;  %v4092_v26 = vmul.f32 %v4051_v41, %v9037_v29  ;;  %v4098_v29 = vmul.f32 %v4061_v8, %v9623_v36 }
 0x6e4   : > { %4166 = vrot.lane.b32.xlu1 %v4085_v20, %s12996_s13  ;;  %v4091_v20 = vmul.f32 %v4066_v17, %v9603_v59 }
 0x6e7   : > { %4172 = vrot.lane.b32.xlu0 %v4088_v28, %s12996_s13  ;;  %v4094_v28 = vmul.f32 %v4061_v8, %v9071_v4  ;;  %v1742_v4 = vld [vmem:[%s12984_s5 + $0x1a0] sm:$0xff]  ;;  %v1745_v8 = vld [vmem:[%s12984_s5 + $0x1b8] sm:$0xff] }
 0x6e8   : > { %4170 = vrot.lane.b32.xlu1 %v4087_v11, %s12996_s13  ;;  %v4093_v11 = vmul.f32 %v4056_v51, %v9050_v40  ;;  %v4099_v40 = vmul.f32 %v4066_v17, %v9636_v46 }
 0x6eb   : > { %4176 = vrot.lane.b32.xlu0 %v4090_v54, %s12996_s13  ;;  %v4096_v54 = vmul.f32 %v4051_v41, %v9615_v25  ;;  %v1743_v41 = vld [vmem:[%s12984_s5 + $0x1a8] sm:$0xff] }
 0x6ec   : > { %4174 = vrot.lane.b32.xlu1 %v4089_v42, %s12996_s13  ;;  %v4095_v42 = vmul.f32 %v4066_v17, %v9094_v39  ;;  %v1744_v39 = vld [vmem:[%s12984_s5 + $0x1b0] sm:$0xff] }
 0x6ef   : > { %4180 = vrot.lane.b32.xlu0 %v4092_v26, %s12996_s13  ;;  %v4097_v26 = vmul.f32 %v4056_v51, %v9627_v37 }
 0x6f0   : > { %4178 = vrot.lane.b32.xlu1 %v4091_v20, %s12996_s13 }
 0x6f3   : > { %4184 = vrot.lane.b32.xlu0 %v4094_v28, %s12996_s13 }
 0x6f4   : > { %4182 = vrot.lane.b32.xlu1 %v4093_v11, %s12996_s13 }
 0x6f7   : > { %4188 = vrot.lane.b32.xlu0 %v4096_v54, %s12996_s13 }
 0x6f8   : > { %4186 = vrot.lane.b32.xlu1 %v4095_v42, %s12996_s13 }
 0x6fb   : > { %4192 = vrot.lane.b32.xlu0 %v4098_v29, %s12996_s13 }
 0x6fc   : > { %4190 = vrot.lane.b32.xlu1 %v4097_v26, %s12996_s13 }
 0x6ff   : > { %4262 = vperm.xlu0 %7100, %v1742_v4  }
 0x700   : > { %4194 = vrot.lane.b32.xlu1 %v4099_v40, %s12996_s13 }
 0x703   : > { %4272 = vperm.xlu0 %7100, %v1744_v39  }
 0x704   : > { %4267 = vperm.xlu1 %7099, %v1743_v41  }
 0x708   : > { %4277 = vperm.xlu1 %7099, %v1745_v8  }
 0x731   : > { %v9790_v51 = vpop.permute.xlu0 %4132 }
 0x732   : > { %13336 = vst [vmem:[#allocation288_spill] sm:$0xff] %v9790_v51 }
 0x735   : > { %v9792_v17 = vpop.permute.xlu0 %4136 }
 0x736   : > { %13337 = vst [vmem:[#allocation289_spill] sm:$0xff] %v9792_v17  ;;  %v9794_v20 = vpop.permute.xlu1 %4134 }
 0x737   : > { %13338 = vst [vmem:[#allocation290_spill] sm:$0xff] %v9794_v20  ;;  %v9933_v20 = vld [vmem:[#allocation2 + $0x118] sm:$0xff] }
 0x739   : > { %v9796_v28 = vpop.permute.xlu0 %4140 }
 0x73a   : > { %13339 = vst [vmem:[#allocation291_spill] sm:$0xff] %v9796_v28  ;;  %v9798_v11 = vpop.permute.xlu1 %4138  ;;  %v9926_v28 = vld [vmem:[#allocation2 + $0x108] sm:$0xff] }
 0x73b   : > { %13340 = vst [vmem:[#allocation292_spill] sm:$0xff] %v9798_v11 }
 0x73d   : > { %v9800_v54 = vpop.permute.xlu0 %4144 }
 0x73e   : > { %13341 = vst [vmem:[#allocation293_spill] sm:$0xff] %v9800_v54  ;;  %v9802_v42 = vpop.permute.xlu1 %4142 }
 0x73f   : > { %13342 = vst [vmem:[#allocation294_spill] sm:$0xff] %v9802_v42 }
 0x741   : > { %v9804_v29 = vpop.permute.xlu0 %4148 }
 0x742   : > { %13343 = vst [vmem:[#allocation295_spill] sm:$0xff] %v9804_v29  ;;  %v9806_v26 = vpop.permute.xlu1 %4146 }
 0x743   : > { %13344 = vst [vmem:[#allocation296_spill] sm:$0xff] %v9806_v26 }
 0x745   : > { %v9808_v4 = vpop.permute.xlu0 %4152 }
 0x746   : > { %13345 = vst [vmem:[#allocation297_spill] sm:$0xff] %v9808_v4  ;;  %v9810_v40 = vpop.permute.xlu1 %4150 }
 0x747   : > { %13346 = vst [vmem:[#allocation298_spill] sm:$0xff] %v9810_v40 }
 0x749   : > { %v9812_v39 = vpop.permute.xlu0 %4156 }
 0x74a   : > { %13347 = vst [vmem:[#allocation299_spill] sm:$0xff] %v9812_v39  ;;  %v9814_v41 = vpop.permute.xlu1 %4154 }
 0x74b   : > { %13348 = vst [vmem:[#allocation300_spill] sm:$0xff] %v9814_v41 }
 0x74d   : > { %v9816_v8 = vpop.permute.xlu0 %4160 }
 0x74e   : > { %13349 = vst [vmem:[#allocation301_spill] sm:$0xff] %v9816_v8  ;;  %v9818_v34 = vpop.permute.xlu1 %4158 }
 0x74f   : > { %13350 = vst [vmem:[#allocation302_spill] sm:$0xff] %v9818_v34 }
 0x751   : > { %v9820_v11 = vpop.permute.xlu0 %4164 }
 0x752   : > { %13351 = vst [vmem:[#allocation303_spill] sm:$0xff] %v9820_v11  ;;  %v9822_v54 = vpop.permute.xlu1 %4162 }
 0x753   : > { %13352 = vst [vmem:[#allocation304_spill] sm:$0xff] %v9822_v54 }
 0x755   : > { %v9824_v42 = vpop.permute.xlu0 %4168 }
 0x756   : > { %13353 = vst [vmem:[#allocation305_spill] sm:$0xff] %v9824_v42  ;;  %v9826_v29 = vpop.permute.xlu1 %4166 }
 0x757   : > { %13354 = vst [vmem:[#allocation306_spill] sm:$0xff] %v9826_v29 }
 0x759   : > { %v9830_v4 = vpop.permute.xlu0 %4172 }
 0x75a   : > { %v9828_v26 = vpop.permute.xlu1 %4170  ;;  %13356 = vst [vmem:[#allocation308_spill] sm:$0xff] %v9830_v4 }
 0x75b   : > { %13355 = vst [vmem:[#allocation307_spill] sm:$0xff] %v9828_v26 }
 0x75d   : > { %v9834_v39 = vpop.permute.xlu0 %4176 }
 0x75e   : > { %v9832_v40 = vpop.permute.xlu1 %4174  ;;  %13358 = vst [vmem:[#allocation310_spill] sm:$0xff] %v9834_v39 }
 0x75f   : > { %13357 = vst [vmem:[#allocation309_spill] sm:$0xff] %v9832_v40 }
 0x761   : > { %v9838_v8 = vpop.permute.xlu0 %4180 }
 0x762   : > { %v9836_v41 = vpop.permute.xlu1 %4178  ;;  %13360 = vst [vmem:[#allocation312_spill] sm:$0xff] %v9838_v8 }
 0x763   : > { %13359 = vst [vmem:[#allocation311_spill] sm:$0xff] %v9836_v41 }
 0x765   : > { %v9842_v11 = vpop.permute.xlu0 %4184 }
 0x766   : > { %v9840_v34 = vpop.permute.xlu1 %4182  ;;  %13362 = vst [vmem:[#allocation314_spill] sm:$0xff] %v9842_v11 }
 0x767   : > { %13361 = vst [vmem:[#allocation313_spill] sm:$0xff] %v9840_v34 }
 0x769   : > { %v9846_v42 = vpop.permute.xlu0 %4188 }
 0x76a   : > { %v9844_v54 = vpop.permute.xlu1 %4186  ;;  %13364 = vst [vmem:[#allocation316_spill] sm:$0xff] %v9846_v42 }
 0x76b   : > { %13363 = vst [vmem:[#allocation315_spill] sm:$0xff] %v9844_v54 }
 0x76d   : > { %v9850_v26 = vpop.permute.xlu0 %4192 }
 0x76e   : > { %v9848_v29 = vpop.permute.xlu1 %4190  ;;  %13366 = vst [vmem:[#allocation318_spill] sm:$0xff] %v9850_v26 }
 0x76f   : > { %13365 = vst [vmem:[#allocation317_spill] sm:$0xff] %v9848_v29 }
 0x772   : > { %v9852_v40 = vpop.permute.xlu1 %4194 }
 0x773   : > { %13367 = vst [vmem:[#allocation319_spill] sm:$0xff] %v9852_v40 }
 0x77e   : > { %v4263_v4 = vpop.permute.xlu0 %4262 }
 0x77f   : > { %v4280_v39 = vmul.f32 %v4263_v4, %v9478_v45  ;;  %v4284_v40 = vmul.f32 %v4263_v4, %v9499_v5 }
 0x781   : > { %4344 = vrot.lane.b32.xlu0 %v4280_v39, %s13368_s25 }
 0x782   : > { %v9856_v41 = vpop.permute.xlu0 %4272 }
 0x783   : > { %v9858_v34 = vpop.permute.xlu1 %4267  ;;  %v4282_v54 = vmul.f32 %v9856_v41, %v9487_v21  ;;  %v4286_v39 = vmul.f32 %v9856_v41, %v9511_v50 }
 0x784   : > { %v4281_v42 = vmul.f32 %v9858_v34, %v9493_v35  ;;  %v4285_v11 = vmul.f32 %v9858_v34, %v9515_v18  ;;  %v4309_v17 = vmul.f32 %v9858_v34, %v9627_v37 }
 0x785   : > { %4348 = vrot.lane.b32.xlu0 %v4282_v54, %s13368_s25  ;;  %v4288_v54 = vmul.f32 %v4263_v4, %v9521_v49 }
 0x786   : > { %4346 = vrot.lane.b32.xlu1 %v4281_v42, %s13368_s25 }
 0x787   : > { %v4278_v29 = vpop.permute.xlu1 %4277 }
 0x788   : > { %v4283_v26 = vmul.f32 %v4278_v29, %v9505_v38  ;;  %v4287_v42 = vmul.f32 %v4278_v29, %v9525_v1  ;;  %v4303_v8 = vmul.f32 %v4278_v29, %v9603_v59 }
 0x789   : > { %4352 = vrot.lane.b32.xlu0 %v4284_v40, %s13368_s25  ;;  %v4289_v40 = vmul.f32 %v9858_v34, %v9535_v14 }
 0x78a   : > { %4350 = vrot.lane.b32.xlu1 %v4283_v26, %s13368_s25  ;;  %v4290_v26 = vmul.f32 %v9856_v41, %v9531_v43 }
 0x78d   : > { %4356 = vrot.lane.b32.xlu0 %v4286_v39, %s13368_s25  ;;  %v4291_v39 = vmul.f32 %v4278_v29, %v9545_v61 }
 0x78e   : > { %4354 = vrot.lane.b32.xlu1 %v4285_v11, %s13368_s25  ;;  %v4292_v11 = vmul.f32 %v4263_v4, %v9541_v15 }
 0x791   : > { %4360 = vrot.lane.b32.xlu0 %v4288_v54, %s13368_s25  ;;  %v4294_v54 = vmul.f32 %v9856_v41, %v9551_v24 }
 0x792   : > { %4358 = vrot.lane.b32.xlu1 %v4287_v42, %s13368_s25  ;;  %v4293_v42 = vmul.f32 %v9858_v34, %v9555_v7 }
 0x795   : > { %4364 = vrot.lane.b32.xlu0 %v4290_v26, %s13368_s25  ;;  %v4296_v26 = vmul.f32 %v4263_v4, %v9561_v63 }
 0x796   : > { %4362 = vrot.lane.b32.xlu1 %v4289_v40, %s13368_s25  ;;  %v4295_v40 = vmul.f32 %v4278_v29, %v9565_v47 }
 0x799   : > { %4368 = vrot.lane.b32.xlu0 %v4292_v11, %s13368_s25  ;;  %v4298_v11 = vmul.f32 %v9856_v41, %v9571_v9 }
 0x79a   : > { %4366 = vrot.lane.b32.xlu1 %v4291_v39, %s13368_s25  ;;  %v4297_v39 = vmul.f32 %v9858_v34, %v9575_v55 }
 0x79d   : > { %4372 = vrot.lane.b32.xlu0 %v4294_v54, %s13368_s25  ;;  %v4300_v54 = vmul.f32 %v4263_v4, %v9581_v60 }
 0x79e   : > { %4370 = vrot.lane.b32.xlu1 %v4293_v42, %s13368_s25  ;;  %v4299_v42 = vmul.f32 %v4278_v29, %v9585_v44 }
 0x7a1   : > { %4376 = vrot.lane.b32.xlu0 %v4296_v26, %s13368_s25  ;;  %v4302_v26 = vmul.f32 %v9856_v41, %v9591_v6 }
 0x7a2   : > { %4374 = vrot.lane.b32.xlu1 %v4295_v40, %s13368_s25  ;;  %v4301_v40 = vmul.f32 %v9858_v34, %v9595_v48 }
 0x7a5   : > { %4380 = vrot.lane.b32.xlu0 %v4298_v11, %s13368_s25  ;;  %v9916_v11 = vld [vmem:[#allocation2 + $0x100] sm:$0xff] }
 0x7a6   : > { %4378 = vrot.lane.b32.xlu1 %v4297_v39, %s13368_s25  ;;  %v4304_v39 = vmul.f32 %v9916_v11, %v4263_v4 }
 0x7a9   : > { %4384 = vrot.lane.b32.xlu0 %v4300_v54, %s13368_s25  ;;  %v9922_v54 = vld [vmem:[#allocation2 + $0x110] sm:$0xff] }
 0x7aa   : > { %4382 = vrot.lane.b32.xlu1 %v4299_v42, %s13368_s25  ;;  %v4306_v42 = vmul.f32 %v9922_v54, %v9856_v41 }
 0x7ad   : > { %4388 = vrot.lane.b32.xlu0 %v4302_v26, %s13368_s25  ;;  %v4305_v26 = vmul.f32 %v9926_v28, %v9858_v34  ;;  %v1747_v34 = vld [vmem:[%s12984_s5 + $0x1c8] sm:$0xff] }
 0x7ae   : > { %4386 = vrot.lane.b32.xlu1 %v4301_v40, %s13368_s25  ;;  %v4308_v40 = vmul.f32 %v4263_v4, %v9615_v25  ;;  %v1746_v4 = vld [vmem:[%s12984_s5 + $0x1c0] sm:$0xff] }
 0x7b1   : > { %4392 = vrot.lane.b32.xlu0 %v4304_v39, %s13368_s25  ;;  %v4310_v39 = vmul.f32 %v9856_v41, %v9623_v36  ;;  %v1748_v41 = vld [vmem:[%s12984_s5 + $0x1d0] sm:$0xff] }
 0x7b2   : > { %4390 = vrot.lane.b32.xlu1 %v4303_v8, %s13368_s25  ;;  %v4307_v8 = vmul.f32 %v9933_v20, %v4278_v29 }
 0x7b5   : > { %4396 = vrot.lane.b32.xlu0 %v4306_v42, %s13368_s25  ;;  %v4311_v42 = vmul.f32 %v4278_v29, %v9636_v46 }
 0x7b6   : > { %4394 = vrot.lane.b32.xlu1 %v4305_v26, %s13368_s25 }
 0x7b9   : > { %4400 = vrot.lane.b32.xlu0 %v4308_v40, %s13368_s25 }
 0x7ba   : > { %4398 = vrot.lane.b32.xlu1 %v4307_v8, %s13368_s25 }
 0x7bd   : > { %4404 = vrot.lane.b32.xlu0 %v4310_v39, %s13368_s25 }
 0x7be   : > { %4402 = vrot.lane.b32.xlu1 %v4309_v17, %s13368_s25  ;;  %v1749_v17 = vld [vmem:[%s12984_s5 + $0x1d8] sm:$0xff] }
 0x7c1   : > { %4474 = vperm.xlu0 %7100, %v1746_v4  }
 0x7c2   : > { %4406 = vrot.lane.b32.xlu1 %v4311_v42, %s13368_s25 }
 0x7c5   : > { %4484 = vperm.xlu0 %7100, %v1748_v41  }
 0x7c6   : > { %4479 = vperm.xlu1 %7099, %v1747_v34  }
 0x7ca   : > { %4489 = vperm.xlu1 %7099, %v1749_v17  }
 0x7f3   : > { %v9958_v26 = vpop.permute.xlu0 %4344 }
 0x7f4   : > { %13369 = vst [vmem:[#allocation320_spill] sm:$0xff] %v9958_v26 }
 0x7f7   : > { %v9960_v29 = vpop.permute.xlu0 %4348 }
 0x7f8   : > { %13370 = vst [vmem:[#allocation321_spill] sm:$0xff] %v9960_v29  ;;  %v9962_v40 = vpop.permute.xlu1 %4346 }
 0x7f9   : > { %13371 = vst [vmem:[#allocation322_spill] sm:$0xff] %v9962_v40 }
 0x7fb   : > { %v9964_v8 = vpop.permute.xlu0 %4352 }
 0x7fc   : > { %13372 = vst [vmem:[#allocation323_spill] sm:$0xff] %v9964_v8  ;;  %v9966_v39 = vpop.permute.xlu1 %4350 }
 0x7fd   : > { %13373 = vst [vmem:[#allocation324_spill] sm:$0xff] %v9966_v39 }
 0x7ff   : > { %v9968_v4 = vpop.permute.xlu0 %4356 }
 0x800   : > { %13374 = vst [vmem:[#allocation325_spill] sm:$0xff] %v9968_v4  ;;  %v9970_v42 = vpop.permute.xlu1 %4354 }
 0x801   : > { %13375 = vst [vmem:[#allocation326_spill] sm:$0xff] %v9970_v42 }
 0x803   : > { %v9972_v41 = vpop.permute.xlu0 %4360 }
 0x804   : > { %13376 = vst [vmem:[#allocation327_spill] sm:$0xff] %v9972_v41  ;;  %v9974_v34 = vpop.permute.xlu1 %4358 }
 0x805   : > { %13377 = vst [vmem:[#allocation328_spill] sm:$0xff] %v9974_v34 }
 0x807   : > { %v9976_v51 = vpop.permute.xlu0 %4364 }
 0x808   : > { %13378 = vst [vmem:[#allocation329_spill] sm:$0xff] %v9976_v51  ;;  %v9978_v17 = vpop.permute.xlu1 %4362 }
 0x809   : > { %13379 = vst [vmem:[#allocation330_spill] sm:$0xff] %v9978_v17 }
 0x80b   : > { %v9980_v26 = vpop.permute.xlu0 %4368 }
 0x80c   : > { %13380 = vst [vmem:[#allocation331_spill] sm:$0xff] %v9980_v26  ;;  %v9982_v29 = vpop.permute.xlu1 %4366 }
 0x80d   : > { %13381 = vst [vmem:[#allocation332_spill] sm:$0xff] %v9982_v29 }
 0x80f   : > { %v9984_v40 = vpop.permute.xlu0 %4372 }
 0x810   : > { %13382 = vst [vmem:[#allocation333_spill] sm:$0xff] %v9984_v40  ;;  %v9986_v8 = vpop.permute.xlu1 %4370 }
 0x811   : > { %13383 = vst [vmem:[#allocation334_spill] sm:$0xff] %v9986_v8 }
 0x813   : > { %v9988_v39 = vpop.permute.xlu0 %4376 }
 0x814   : > { %13384 = vst [vmem:[#allocation335_spill] sm:$0xff] %v9988_v39  ;;  %v9990_v4 = vpop.permute.xlu1 %4374 }
 0x815   : > { %13385 = vst [vmem:[#allocation336_spill] sm:$0xff] %v9990_v4 }
 0x817   : > { %v9992_v42 = vpop.permute.xlu0 %4380 }
 0x818   : > { %13386 = vst [vmem:[#allocation337_spill] sm:$0xff] %v9992_v42  ;;  %v9994_v41 = vpop.permute.xlu1 %4378 }
 0x819   : > { %13387 = vst [vmem:[#allocation338_spill] sm:$0xff] %v9994_v41 }
 0x81b   : > { %v9998_v51 = vpop.permute.xlu0 %4384 }
 0x81c   : > { %v9996_v34 = vpop.permute.xlu1 %4382  ;;  %13389 = vst [vmem:[#allocation340_spill] sm:$0xff] %v9998_v51 }
 0x81d   : > { %13388 = vst [vmem:[#allocation339_spill] sm:$0xff] %v9996_v34 }
 0x81f   : > { %v10002_v26 = vpop.permute.xlu0 %4388 }
 0x820   : > { %v10000_v17 = vpop.permute.xlu1 %4386  ;;  %13391 = vst [vmem:[#allocation342_spill] sm:$0xff] %v10002_v26 }
 0x821   : > { %13390 = vst [vmem:[#allocation341_spill] sm:$0xff] %v10000_v17 }
 0x823   : > { %v10006_v40 = vpop.permute.xlu0 %4392 }
 0x824   : > { %v10004_v29 = vpop.permute.xlu1 %4390  ;;  %13393 = vst [vmem:[#allocation344_spill] sm:$0xff] %v10006_v40 }
 0x825   : > { %13392 = vst [vmem:[#allocation343_spill] sm:$0xff] %v10004_v29 }
 0x827   : > { %v10010_v39 = vpop.permute.xlu0 %4396 }
 0x828   : > { %v10008_v8 = vpop.permute.xlu1 %4394  ;;  %13395 = vst [vmem:[#allocation346_spill] sm:$0xff] %v10010_v39 }
 0x829   : > { %13394 = vst [vmem:[#allocation345_spill] sm:$0xff] %v10008_v8 }
 0x82b   : > { %v10014_v42 = vpop.permute.xlu0 %4400 }
 0x82c   : > { %v10012_v4 = vpop.permute.xlu1 %4398  ;;  %13397 = vst [vmem:[#allocation348_spill] sm:$0xff] %v10014_v42 }
 0x82d   : > { %13396 = vst [vmem:[#allocation347_spill] sm:$0xff] %v10012_v4 }
 0x82f   : > { %v10018_v34 = vpop.permute.xlu0 %4404 }
 0x830   : > { %v10016_v41 = vpop.permute.xlu1 %4402  ;;  %13399 = vst [vmem:[#allocation350_spill] sm:$0xff] %v10018_v34 }
 0x831   : > { %13398 = vst [vmem:[#allocation349_spill] sm:$0xff] %v10016_v41 }
 0x834   : > { %v10020_v17 = vpop.permute.xlu1 %4406 }
 0x835   : > { %13400 = vst [vmem:[#allocation351_spill] sm:$0xff] %v10020_v17  ;;  %v10225_v17 = vld [vmem:[#allocation2 + $0xa0] sm:$0xff] }
 0x840   : > { %v4475_v51 = vpop.permute.xlu0 %4474 }
 0x841   : > { %v4492_v26 = vmul.f32 %v4475_v51, %v9478_v45  ;;  %v4496_v34 = vmul.f32 %v4475_v51, %v9499_v5 }
 0x843   : > { %4556 = vrot.lane.b32.xlu0 %v4492_v26, %s13401_s24 }
 0x844   : > { %v4485_v29 = vpop.permute.xlu0 %4484 }
 0x845   : > { %v4480_v40 = vpop.permute.xlu1 %4479  ;;  %v4494_v8 = vmul.f32 %v4485_v29, %v9487_v21  ;;  %v4498_v45 = vmul.f32 %v4485_v29, %v9511_v50  ;;  %v4500_v21 = vmul.f32 %v4475_v51, %v9521_v49  ;;  %v4504_v50 = vmul.f32 %v4475_v51, %v9541_v15 }
 0x846   : > { %v4493_v39 = vmul.f32 %v4480_v40, %v9493_v35  ;;  %v4497_v26 = vmul.f32 %v4480_v40, %v9515_v18  ;;  %v4501_v5 = vmul.f32 %v4480_v40, %v9535_v14  ;;  %v4506_v49 = vmul.f32 %v4485_v29, %v9551_v24 }
 0x847   : > { %4560 = vrot.lane.b32.xlu0 %v4494_v8, %s13401_s24  ;;  %v4510_v15 = vmul.f32 %v4485_v29, %v9571_v9  ;;  %v4512_v24 = vmul.f32 %v4475_v51, %v9581_v60  ;;  %v4516_v9 = vmul.f32 %v9916_v11, %v4475_v51  ;;  %v4518_v60 = vmul.f32 %v9922_v54, %v4485_v29  ;;  %v1755_v54 = vld [vmem:[%s12984_s5 + $0x208] sm:$0xff] }
 0x848   : > { %4558 = vrot.lane.b32.xlu1 %v4493_v39, %s13401_s24  ;;  %v4521_v11 = vmul.f32 %v4480_v40, %v9627_v37  ;;  %v1754_v37 = vld [vmem:[%s12984_s5 + $0x200] sm:$0xff] }
 0x849   : > { %v4490_v41 = vpop.permute.xlu1 %4489 }
 0x84a   : > { %v4495_v4 = vmul.f32 %v4490_v41, %v9505_v38  ;;  %v4499_v35 = vmul.f32 %v4490_v41, %v9525_v1  ;;  %v4502_v38 = vmul.f32 %v4485_v29, %v9531_v43  ;;  %v4503_v18 = vmul.f32 %v4490_v41, %v9545_v61 }
 0x84b   : > { %4564 = vrot.lane.b32.xlu0 %v4496_v34, %s13401_s24  ;;  %v4505_v1 = vmul.f32 %v4480_v40, %v9555_v7  ;;  %v4508_v43 = vmul.f32 %v4475_v51, %v9561_v63  ;;  %v4507_v14 = vmul.f32 %v4490_v41, %v9565_v47  ;;  %v4509_v61 = vmul.f32 %v4480_v40, %v9575_v55 }
 0x84c   : > { %4562 = vrot.lane.b32.xlu1 %v4495_v4, %s13401_s24  ;;  %v4511_v7 = vmul.f32 %v4490_v41, %v9585_v44  ;;  %v4514_v63 = vmul.f32 %v4485_v29, %v9591_v6  ;;  %v4513_v47 = vmul.f32 %v4480_v40, %v9595_v48  ;;  %v4515_v55 = vmul.f32 %v4490_v41, %v9603_v59 }
 0x84d   : > { %v4517_v44 = vmul.f32 %v9926_v28, %v4480_v40  ;;  %v4520_v6 = vmul.f32 %v4475_v51, %v9615_v25  ;;  %v4519_v48 = vmul.f32 %v9933_v20, %v4490_v41  ;;  %v4522_v59 = vmul.f32 %v4485_v29, %v9623_v36  ;;  %v1750_v28 = vld [vmem:[%s12984_s5 + $0x1e0] sm:$0xff]  ;;  %v1752_v51 = vld [vmem:[%s12984_s5 + $0x1f0] sm:$0xff]  ;;  %v1751_v36 = vld [vmem:[%s12984_s5 + $0x1e8] sm:$0xff] }
 0x84e   : > { %v4523_v25 = vmul.f32 %v4490_v41, %v9636_v46  ;;  %v1753_v46 = vld [vmem:[%s12984_s5 + $0x1f8] sm:$0xff]  ;;  %v1756_v20 = vld [vmem:[%s12984_s5 + $0x210] sm:$0xff] }
 0x84f   : > { %4568 = vrot.lane.b32.xlu0 %v4498_v45, %s13401_s24  ;;  %v1757_v29 = vld [vmem:[%s12984_s5 + $0x218] sm:$0xff] }
 0x850   : > { %4566 = vrot.lane.b32.xlu1 %v4497_v26, %s13401_s24 }
 0x853   : > { %4572 = vrot.lane.b32.xlu0 %v4500_v21, %s13401_s24 }
 0x854   : > { %4570 = vrot.lane.b32.xlu1 %v4499_v35, %s13401_s24 }
 0x857   : > { %4576 = vrot.lane.b32.xlu0 %v4502_v38, %s13401_s24 }
 0x858   : > { %4574 = vrot.lane.b32.xlu1 %v4501_v5, %s13401_s24 }
 0x85b   : > { %4580 = vrot.lane.b32.xlu0 %v4504_v50, %s13401_s24 }
 0x85c   : > { %4578 = vrot.lane.b32.xlu1 %v4503_v18, %s13401_s24 }
 0x85f   : > { %4584 = vrot.lane.b32.xlu0 %v4506_v49, %s13401_s24 }
 0x860   : > { %4582 = vrot.lane.b32.xlu1 %v4505_v1, %s13401_s24 }
 0x863   : > { %4588 = vrot.lane.b32.xlu0 %v4508_v43, %s13401_s24 }
 0x864   : > { %4586 = vrot.lane.b32.xlu1 %v4507_v14, %s13401_s24 }
 0x867   : > { %4592 = vrot.lane.b32.xlu0 %v4510_v15, %s13401_s24 }
 0x868   : > { %4590 = vrot.lane.b32.xlu1 %v4509_v61, %s13401_s24 }
 0x86b   : > { %4596 = vrot.lane.b32.xlu0 %v4512_v24, %s13401_s24 }
 0x86c   : > { %4594 = vrot.lane.b32.xlu1 %v4511_v7, %s13401_s24 }
 0x86f   : > { %4600 = vrot.lane.b32.xlu0 %v4514_v63, %s13401_s24 }
 0x870   : > { %4598 = vrot.lane.b32.xlu1 %v4513_v47, %s13401_s24 }
 0x873   : > { %4604 = vrot.lane.b32.xlu0 %v4516_v9, %s13401_s24 }
 0x874   : > { %4602 = vrot.lane.b32.xlu1 %v4515_v55, %s13401_s24 }
 0x877   : > { %4608 = vrot.lane.b32.xlu0 %v4518_v60, %s13401_s24 }
 0x878   : > { %4606 = vrot.lane.b32.xlu1 %v4517_v44, %s13401_s24 }
 0x87b   : > { %4612 = vrot.lane.b32.xlu0 %v4520_v6, %s13401_s24 }
 0x87c   : > { %4610 = vrot.lane.b32.xlu1 %v4519_v48, %s13401_s24 }
 0x87f   : > { %4616 = vrot.lane.b32.xlu0 %v4522_v59, %s13401_s24 }
 0x880   : > { %4614 = vrot.lane.b32.xlu1 %v4521_v11, %s13401_s24 }
 0x883   : > { %4719 = vperm.xlu0 %7100, %v1750_v28  }
 0x884   : > { %4618 = vrot.lane.b32.xlu1 %v4523_v25, %s13401_s24 }
 0x887   : > { %4729 = vperm.xlu0 %7100, %v1752_v51  }
 0x888   : > { %4724 = vperm.xlu1 %7099, %v1751_v36  }
 0x88b   : > { %4803 = vperm.xlu0 %7100, %v1754_v37   ;;  %v10182_v37 = vld [vmem:[#allocation2 + $0x60] sm:$0xff] }
 0x88c   : > { %4734 = vperm.xlu1 %7099, %v1753_v46  }
 0x88f   : > { %4813 = vperm.xlu0 %7100, %v1756_v20  }
 0x890   : > { %4808 = vperm.xlu1 %7099, %v1755_v54  }
 0x894   : > { %4818 = vperm.xlu1 %7099, %v1757_v29   ;;  %v10191_v29 = vld [vmem:[#allocation2 + $0x70] sm:$0xff] }
 0x8b5   : > { %v10110_v40 = vpop.permute.xlu0 %4556 }
 0x8b6   : > { %13402 = vst [vmem:[#allocation352_spill] sm:$0xff] %v10110_v40 }
 0x8b9   : > { %v10112_v8 = vpop.permute.xlu0 %4560 }
 0x8ba   : > { %13403 = vst [vmem:[#allocation353_spill] sm:$0xff] %v10112_v8  ;;  %v10114_v39 = vpop.permute.xlu1 %4558 }
 0x8bb   : > { %13404 = vst [vmem:[#allocation354_spill] sm:$0xff] %v10114_v39 }
 0x8bd   : > { %v10116_v4 = vpop.permute.xlu0 %4564 }
 0x8be   : > { %13405 = vst [vmem:[#allocation355_spill] sm:$0xff] %v10116_v4  ;;  %v10118_v41 = vpop.permute.xlu1 %4562 }
 0x8bf   : > { %13406 = vst [vmem:[#allocation356_spill] sm:$0xff] %v10118_v41 }
 0x8c1   : > { %v10120_v34 = vpop.permute.xlu0 %4568 }
 0x8c2   : > { %13407 = vst [vmem:[#allocation357_spill] sm:$0xff] %v10120_v34  ;;  %v10122_v45 = vpop.permute.xlu1 %4566  ;;  %v10235_v34 = vld [vmem:[#allocation2 + $0xb0] sm:$0xff] }
 0x8c3   : > { %13408 = vst [vmem:[#allocation358_spill] sm:$0xff] %v10122_v45  ;;  %v10335_v45 = vld [vmem:[#allocation2 + $0x150] sm:$0xff] }
 0x8c5   : > { %v10124_v26 = vpop.permute.xlu0 %4572 }
 0x8c6   : > { %13409 = vst [vmem:[#allocation359_spill] sm:$0xff] %v10124_v26  ;;  %v10126_v21 = vpop.permute.xlu1 %4570 }
 0x8c7   : > { %13410 = vst [vmem:[#allocation360_spill] sm:$0xff] %v10126_v21  ;;  %v10325_v21 = vld [vmem:[#allocation2 + $0x140] sm:$0xff] }
 0x8c9   : > { %v10128_v35 = vpop.permute.xlu0 %4576 }
 0x8ca   : > { %13411 = vst [vmem:[#allocation361_spill] sm:$0xff] %v10128_v35  ;;  %v10130_v38 = vpop.permute.xlu1 %4574 }
 0x8cb   : > { %13412 = vst [vmem:[#allocation362_spill] sm:$0xff] %v10130_v38 }
 0x8cd   : > { %v10132_v5 = vpop.permute.xlu0 %4580 }
 0x8ce   : > { %13413 = vst [vmem:[#allocation363_spill] sm:$0xff] %v10132_v5  ;;  %v10134_v50 = vpop.permute.xlu1 %4578  ;;  %v10305_v5 = vld [vmem:[#allocation2 + $0x120] sm:$0xff] }
 0x8cf   : > { %13414 = vst [vmem:[#allocation364_spill] sm:$0xff] %v10134_v50 }
 0x8d1   : > { %v10136_v18 = vpop.permute.xlu0 %4584 }
 0x8d2   : > { %13415 = vst [vmem:[#allocation365_spill] sm:$0xff] %v10136_v18  ;;  %v10138_v49 = vpop.permute.xlu1 %4582  ;;  %v10295_v18 = vld [vmem:[#allocation2 + $0x110] sm:$0xff] }
 0x8d3   : > { %13416 = vst [vmem:[#allocation366_spill] sm:$0xff] %v10138_v49 }
 0x8d5   : > { %v10140_v1 = vpop.permute.xlu0 %4588 }
 0x8d6   : > { %13417 = vst [vmem:[#allocation367_spill] sm:$0xff] %v10140_v1  ;;  %v10142_v43 = vpop.permute.xlu1 %4586  ;;  %v10285_v1 = vld [vmem:[#allocation2 + $0x100] sm:$0xff] }
 0x8d7   : > { %13418 = vst [vmem:[#allocation368_spill] sm:$0xff] %v10142_v43 }
 0x8d9   : > { %v10144_v14 = vpop.permute.xlu0 %4592 }
 0x8da   : > { %13419 = vst [vmem:[#allocation369_spill] sm:$0xff] %v10144_v14  ;;  %v10146_v15 = vpop.permute.xlu1 %4590  ;;  %v10275_v14 = vld [vmem:[#allocation2 + $0xf0] sm:$0xff] }
 0x8db   : > { %13420 = vst [vmem:[#allocation370_spill] sm:$0xff] %v10146_v15 }
 0x8dd   : > { %v10150_v24 = vpop.permute.xlu0 %4596 }
 0x8de   : > { %v10148_v61 = vpop.permute.xlu1 %4594  ;;  %13422 = vst [vmem:[#allocation372_spill] sm:$0xff] %v10150_v24 }
 0x8df   : > { %13421 = vst [vmem:[#allocation371_spill] sm:$0xff] %v10148_v61  ;;  %v10255_v61 = vld [vmem:[#allocation2 + $0xd0] sm:$0xff] }
 0x8e1   : > { %v10154_v63 = vpop.permute.xlu0 %4600 }
 0x8e2   : > { %v10152_v7 = vpop.permute.xlu1 %4598  ;;  %13424 = vst [vmem:[#allocation374_spill] sm:$0xff] %v10154_v63 }
 0x8e3   : > { %13423 = vst [vmem:[#allocation373_spill] sm:$0xff] %v10152_v7  ;;  %v10245_v7 = vld [vmem:[#allocation2 + $0xc0] sm:$0xff] }
 0x8e5   : > { %v10158_v9 = vpop.permute.xlu0 %4604 }
 0x8e6   : > { %v10156_v47 = vpop.permute.xlu1 %4602  ;;  %13426 = vst [vmem:[#allocation376_spill] sm:$0xff] %v10158_v9 }
 0x8e7   : > { %13425 = vst [vmem:[#allocation375_spill] sm:$0xff] %v10156_v47  ;;  %v10209_v47 = vld [vmem:[#allocation2 + $0x78] sm:$0xff] }
 0x8e9   : > { %v10162_v60 = vpop.permute.xlu0 %4608 }
 0x8ea   : > { %v10160_v55 = vpop.permute.xlu1 %4606  ;;  %13428 = vst [vmem:[#allocation378_spill] sm:$0xff] %v10162_v60 }
 0x8eb   : > { %13427 = vst [vmem:[#allocation377_spill] sm:$0xff] %v10160_v55  ;;  %v10215_v55 = vld [vmem:[#allocation2 + $0x90] sm:$0xff] }
 0x8ed   : > { %v10166_v6 = vpop.permute.xlu0 %4612 }
 0x8ee   : > { %v10164_v44 = vpop.permute.xlu1 %4610  ;;  %13430 = vst [vmem:[#allocation380_spill] sm:$0xff] %v10166_v6  ;;  %v10203_v6 = vld [vmem:[#allocation2 + $0x80] sm:$0xff] }
 0x8ef   : > { %13429 = vst [vmem:[#allocation379_spill] sm:$0xff] %v10164_v44 }
 0x8f1   : > { %v10170_v59 = vpop.permute.xlu0 %4616 }
 0x8f2   : > { %v10168_v48 = vpop.permute.xlu1 %4614  ;;  %13432 = vst [vmem:[#allocation382_spill] sm:$0xff] %v10170_v59  ;;  %v10197_v59 = vld [vmem:[#allocation2 + $0x68] sm:$0xff] }
 0x8f3   : > { %13431 = vst [vmem:[#allocation381_spill] sm:$0xff] %v10168_v48 }
 0x8f6   : > { %v10174_v28 = vpop.permute.xlu1 %4618 }
 0x8f7   : > { %13434 = vst [vmem:[#allocation384_spill] sm:$0xff] %v10174_v28 }
 0x902   : > { %v10172_v11 = vpop.permute.xlu0 %4719 }
 0x903   : > { %13433 = vst [vmem:[#allocation383_spill] sm:$0xff] %v10172_v11  ;;  %v10315_v11 = vld [vmem:[#allocation2 + $0x130] sm:$0xff] }
 0x906   : > { %v10176_v25 = vpop.permute.xlu0 %4729 }
 0x907   : > { %13435 = vst [vmem:[#allocation385_spill] sm:$0xff] %v10176_v25  ;;  %v10178_v51 = vpop.permute.xlu1 %4724  ;;  %v10265_v25 = vld [vmem:[#allocation2 + $0xe0] sm:$0xff] }
 0x908   : > { %13436 = vst [vmem:[#allocation386_spill] sm:$0xff] %v10178_v51 }
 0x90a   : > { %v10180_v36 = vpop.permute.xlu0 %4803 }
 0x90b   : > { %v10184_v46 = vpop.permute.xlu1 %4734  ;;  %v4821_v20 = vmul.f32 %v10180_v36, %v10182_v37  ;;  %v4825_v60 = vmul.f32 %v10180_v36, %v10203_v6 }
 0x90c   : > { %13437 = vst [vmem:[#allocation387_spill] sm:$0xff] %v10184_v46 }
 0x90d   : > { %4885 = vrot.lane.b32.xlu0 %v4821_v20, %s13438_s21 }
 0x90e   : > { %v10189_v54 = vpop.permute.xlu0 %4813 }
 0x90f   : > { %v10193_v28 = vpop.permute.xlu1 %4808  ;;  %v4823_v48 = vmul.f32 %v10189_v54, %v10191_v29 }
 0x910   : > { %v4822_v44 = vmul.f32 %v10193_v28, %v10197_v59 }
 0x911   : > { %4889 = vrot.lane.b32.xlu0 %v4823_v48, %s13438_s21  ;;  %v10219_v48 = vld [vmem:[#allocation2 + $0x88] sm:$0xff] }
 0x912   : > { %4887 = vrot.lane.b32.xlu1 %v4822_v44, %s13438_s21  ;;  %v4827_v44 = vmul.f32 %v10189_v54, %v10215_v55  ;;  %v4826_v9 = vmul.f32 %v10193_v28, %v10219_v48 }
 0x913   : > { %v10205_v20 = vpop.permute.xlu1 %4818 }
 0x914   : > { %v4824_v63 = vmul.f32 %v10205_v20, %v10209_v47 }
 0x915   : > { %4893 = vrot.lane.b32.xlu0 %v4825_v60, %s13438_s21  ;;  %v4829_v60 = vmul.f32 %v10180_v36, %v10225_v17 }
 0x916   : > { %4891 = vrot.lane.b32.xlu1 %v4824_v63, %s13438_s21  ;;  %v10229_v63 = vld [vmem:[#allocation2 + $0x98] sm:$0xff] }
 0x917   : > { %v4828_v42 = vmul.f32 %v10205_v20, %v10229_v63 }
 0x919   : > { %4897 = vrot.lane.b32.xlu0 %v4827_v44, %s13438_s21  ;;  %v4831_v44 = vmul.f32 %v10189_v54, %v10235_v34 }
 0x91a   : > { %4895 = vrot.lane.b32.xlu1 %v4826_v9, %s13438_s21  ;;  %v10239_v9 = vld [vmem:[#allocation2 + $0xa8] sm:$0xff] }
 0x91b   : > { %v4830_v46 = vmul.f32 %v10193_v28, %v10239_v9 }
 0x91d   : > { %4901 = vrot.lane.b32.xlu0 %v4829_v60, %s13438_s21  ;;  %v4833_v60 = vmul.f32 %v10180_v36, %v10245_v7 }
 0x91e   : > { %4899 = vrot.lane.b32.xlu1 %v4828_v42, %s13438_s21  ;;  %v10249_v42 = vld [vmem:[#allocation2 + $0xb8] sm:$0xff] }
 0x91f   : > { %v4832_v51 = vmul.f32 %v10205_v20, %v10249_v42 }
 0x921   : > { %4905 = vrot.lane.b32.xlu0 %v4831_v44, %s13438_s21  ;;  %v4835_v44 = vmul.f32 %v10189_v54, %v10255_v61 }
 0x922   : > { %4903 = vrot.lane.b32.xlu1 %v4830_v46, %s13438_s21  ;;  %v10259_v46 = vld [vmem:[#allocation2 + $0xc8] sm:$0xff] }
 0x923   : > { %v4834_v24 = vmul.f32 %v10193_v28, %v10259_v46 }
 0x925   : > { %4909 = vrot.lane.b32.xlu0 %v4833_v60, %s13438_s21  ;;  %v4837_v60 = vmul.f32 %v10180_v36, %v10265_v25 }
 0x926   : > { %4907 = vrot.lane.b32.xlu1 %v4832_v51, %s13438_s21  ;;  %v10269_v51 = vld [vmem:[#allocation2 + $0xd8] sm:$0xff] }
 0x927   : > { %v4836_v15 = vmul.f32 %v10205_v20, %v10269_v51 }
 0x929   : > { %4913 = vrot.lane.b32.xlu0 %v4835_v44, %s13438_s21  ;;  %v4839_v44 = vmul.f32 %v10189_v54, %v10275_v14 }
 0x92a   : > { %4911 = vrot.lane.b32.xlu1 %v4834_v24, %s13438_s21  ;;  %v10279_v24 = vld [vmem:[#allocation2 + $0xe8] sm:$0xff] }
 0x92b   : > { %v4838_v43 = vmul.f32 %v10193_v28, %v10279_v24 }
 0x92d   : > { %4917 = vrot.lane.b32.xlu0 %v4837_v60, %s13438_s21  ;;  %v4841_v60 = vmul.f32 %v10180_v36, %v10285_v1 }
 0x92e   : > { %4915 = vrot.lane.b32.xlu1 %v4836_v15, %s13438_s21  ;;  %v10289_v15 = vld [vmem:[#allocation2 + $0xf8] sm:$0xff] }
 0x92f   : > { %v4840_v49 = vmul.f32 %v10205_v20, %v10289_v15 }
 0x931   : > { %4921 = vrot.lane.b32.xlu0 %v4839_v44, %s13438_s21  ;;  %v4843_v44 = vmul.f32 %v10189_v54, %v10295_v18 }
 0x932   : > { %4919 = vrot.lane.b32.xlu1 %v4838_v43, %s13438_s21  ;;  %v10299_v43 = vld [vmem:[#allocation2 + $0x108] sm:$0xff] }
 0x933   : > { %v4842_v50 = vmul.f32 %v10193_v28, %v10299_v43 }
 0x935   : > { %4925 = vrot.lane.b32.xlu0 %v4841_v60, %s13438_s21  ;;  %v4845_v60 = vmul.f32 %v10180_v36, %v10305_v5 }
 0x936   : > { %4923 = vrot.lane.b32.xlu1 %v4840_v49, %s13438_s21  ;;  %v10309_v49 = vld [vmem:[#allocation2 + $0x118] sm:$0xff] }
 0x937   : > { %v4844_v38 = vmul.f32 %v10205_v20, %v10309_v49 }
 0x939   : > { %4929 = vrot.lane.b32.xlu0 %v4843_v44, %s13438_s21  ;;  %v4847_v44 = vmul.f32 %v10189_v54, %v10315_v11 }
 0x93a   : > { %4927 = vrot.lane.b32.xlu1 %v4842_v50, %s13438_s21  ;;  %v10319_v50 = vld [vmem:[#allocation2 + $0x128] sm:$0xff] }
 0x93b   : > { %v4846_v35 = vmul.f32 %v10193_v28, %v10319_v50 }
 0x93d   : > { %4933 = vrot.lane.b32.xlu0 %v4845_v60, %s13438_s21  ;;  %v4849_v60 = vmul.f32 %v10180_v36, %v10325_v21  ;;  %v1758_v36 = vld [vmem:[%s12984_s5 + $0x220] sm:$0xff] }
 0x93e   : > { %4931 = vrot.lane.b32.xlu1 %v4844_v38, %s13438_s21  ;;  %v10329_v38 = vld [vmem:[#allocation2 + $0x138] sm:$0xff] }
 0x93f   : > { %v4848_v26 = vmul.f32 %v10205_v20, %v10329_v38 }
 0x941   : > { %4937 = vrot.lane.b32.xlu0 %v4847_v44, %s13438_s21  ;;  %v4851_v44 = vmul.f32 %v10189_v54, %v10335_v45  ;;  %v1761_v54 = vld [vmem:[%s12984_s5 + $0x238] sm:$0xff] }
 0x942   : > { %4935 = vrot.lane.b32.xlu1 %v4846_v35, %s13438_s21  ;;  %v10339_v35 = vld [vmem:[#allocation2 + $0x148] sm:$0xff] }
 0x943   : > { %v4850_v41 = vmul.f32 %v10193_v28, %v10339_v35  ;;  %v1760_v28 = vld [vmem:[%s12984_s5 + $0x230] sm:$0xff] }
 0x945   : > { %4941 = vrot.lane.b32.xlu0 %v4849_v60, %s13438_s21  ;;  %v10348_v60 = vld [vmem:[#allocation2 + $0x158] sm:$0xff] }
 0x946   : > { %4939 = vrot.lane.b32.xlu1 %v4848_v26, %s13438_s21  ;;  %v4852_v26 = vmul.f32 %v10205_v20, %v10348_v60 }
 0x949   : > { %4945 = vrot.lane.b32.xlu0 %v4851_v44, %s13438_s21 }
 0x94a   : > { %4943 = vrot.lane.b32.xlu1 %v4850_v41, %s13438_s21  ;;  %v1759_v41 = vld [vmem:[%s12984_s5 + $0x228] sm:$0xff] }
 0x94d   : > { %5015 = vperm.xlu0 %7100, %v1758_v36  }
 0x94e   : > { %4947 = vrot.lane.b32.xlu1 %v4852_v26, %s13438_s21 }
 0x951   : > { %5025 = vperm.xlu0 %7100, %v1760_v28  }
 0x952   : > { %5020 = vperm.xlu1 %7099, %v1759_v41  }
 0x956   : > { %5030 = vperm.xlu1 %7099, %v1761_v54  }
 0x97f   : > { %v10362_v44 = vpop.permute.xlu0 %4885 }
 0x980   : > { %13439 = vst [vmem:[#allocation388_spill] sm:$0xff] %v10362_v44 }
 0x983   : > { %v10364_v20 = vpop.permute.xlu0 %4889 }
 0x984   : > { %13440 = vst [vmem:[#allocation389_spill] sm:$0xff] %v10364_v20  ;;  %v10366_v36 = vpop.permute.xlu1 %4887 }
 0x985   : > { %13441 = vst [vmem:[#allocation390_spill] sm:$0xff] %v10366_v36 }
 0x987   : > { %v10368_v26 = vpop.permute.xlu0 %4893 }
 0x988   : > { %13442 = vst [vmem:[#allocation391_spill] sm:$0xff] %v10368_v26  ;;  %v10370_v4 = vpop.permute.xlu1 %4891 }
 0x989   : > { %13443 = vst [vmem:[#allocation392_spill] sm:$0xff] %v10370_v4 }
 0x98b   : > { %v10372_v39 = vpop.permute.xlu0 %4897 }
 0x98c   : > { %13444 = vst [vmem:[#allocation393_spill] sm:$0xff] %v10372_v39  ;;  %v10374_v8 = vpop.permute.xlu1 %4895 }
 0x98d   : > { %13445 = vst [vmem:[#allocation394_spill] sm:$0xff] %v10374_v8 }
 0x98f   : > { %v10376_v28 = vpop.permute.xlu0 %4901 }
 0x990   : > { %13446 = vst [vmem:[#allocation395_spill] sm:$0xff] %v10376_v28  ;;  %v10378_v41 = vpop.permute.xlu1 %4899 }
 0x991   : > { %13447 = vst [vmem:[#allocation396_spill] sm:$0xff] %v10378_v41 }
 0x993   : > { %v10380_v40 = vpop.permute.xlu0 %4905 }
 0x994   : > { %13448 = vst [vmem:[#allocation397_spill] sm:$0xff] %v10380_v40  ;;  %v10382_v54 = vpop.permute.xlu1 %4903 }
 0x995   : > { %13449 = vst [vmem:[#allocation398_spill] sm:$0xff] %v10382_v54 }
 0x997   : > { %v10384_v44 = vpop.permute.xlu0 %4909 }
 0x998   : > { %13450 = vst [vmem:[#allocation399_spill] sm:$0xff] %v10384_v44  ;;  %v10386_v20 = vpop.permute.xlu1 %4907 }
 0x999   : > { %13451 = vst [vmem:[#allocation400_spill] sm:$0xff] %v10386_v20 }
 0x99b   : > { %v10388_v36 = vpop.permute.xlu0 %4913 }
 0x99c   : > { %13452 = vst [vmem:[#allocation401_spill] sm:$0xff] %v10388_v36  ;;  %v10390_v26 = vpop.permute.xlu1 %4911 }
 0x99d   : > { %13453 = vst [vmem:[#allocation402_spill] sm:$0xff] %v10390_v26 }
 0x99f   : > { %v10392_v4 = vpop.permute.xlu0 %4917 }
 0x9a0   : > { %13454 = vst [vmem:[#allocation403_spill] sm:$0xff] %v10392_v4  ;;  %v10394_v39 = vpop.permute.xlu1 %4915 }
 0x9a1   : > { %13455 = vst [vmem:[#allocation404_spill] sm:$0xff] %v10394_v39 }
 0x9a3   : > { %v10396_v8 = vpop.permute.xlu0 %4921 }
 0x9a4   : > { %13456 = vst [vmem:[#allocation405_spill] sm:$0xff] %v10396_v8  ;;  %v10398_v28 = vpop.permute.xlu1 %4919 }
 0x9a5   : > { %13457 = vst [vmem:[#allocation406_spill] sm:$0xff] %v10398_v28 }
 0x9a7   : > { %v10402_v40 = vpop.permute.xlu0 %4925 }
 0x9a8   : > { %v10400_v41 = vpop.permute.xlu1 %4923  ;;  %13459 = vst [vmem:[#allocation408_spill] sm:$0xff] %v10402_v40 }
 0x9a9   : > { %13458 = vst [vmem:[#allocation407_spill] sm:$0xff] %v10400_v41 }
 0x9ab   : > { %v10406_v44 = vpop.permute.xlu0 %4929 }
 0x9ac   : > { %v10404_v54 = vpop.permute.xlu1 %4927  ;;  %13461 = vst [vmem:[#allocation410_spill] sm:$0xff] %v10406_v44 }
 0x9ad   : > { %13460 = vst [vmem:[#allocation409_spill] sm:$0xff] %v10404_v54 }
 0x9af   : > { %v10410_v36 = vpop.permute.xlu0 %4933 }
 0x9b0   : > { %v10408_v20 = vpop.permute.xlu1 %4931  ;;  %13463 = vst [vmem:[#allocation412_spill] sm:$0xff] %v10410_v36 }
 0x9b1   : > { %13462 = vst [vmem:[#allocation411_spill] sm:$0xff] %v10408_v20 }
 0x9b3   : > { %v10414_v4 = vpop.permute.xlu0 %4937 }
 0x9b4   : > { %v10412_v26 = vpop.permute.xlu1 %4935  ;;  %13465 = vst [vmem:[#allocation414_spill] sm:$0xff] %v10414_v4 }
 0x9b5   : > { %13464 = vst [vmem:[#allocation413_spill] sm:$0xff] %v10412_v26 }
 0x9b7   : > { %v10418_v8 = vpop.permute.xlu0 %4941 }
 0x9b8   : > { %v10416_v39 = vpop.permute.xlu1 %4939  ;;  %13467 = vst [vmem:[#allocation416_spill] sm:$0xff] %v10418_v8 }
 0x9b9   : > { %13466 = vst [vmem:[#allocation415_spill] sm:$0xff] %v10416_v39 }
 0x9bb   : > { %v10422_v41 = vpop.permute.xlu0 %4945 }
 0x9bc   : > { %v10420_v28 = vpop.permute.xlu1 %4943  ;;  %13469 = vst [vmem:[#allocation418_spill] sm:$0xff] %v10422_v41 }
 0x9bd   : > { %13468 = vst [vmem:[#allocation417_spill] sm:$0xff] %v10420_v28 }
 0x9c0   : > { %v10424_v54 = vpop.permute.xlu1 %4947 }
 0x9c1   : > { %13470 = vst [vmem:[#allocation419_spill] sm:$0xff] %v10424_v54 }
 0x9cc   : > { %v5016_v40 = vpop.permute.xlu0 %5015 }
 0x9cd   : > { %v5033_v44 = vmul.f32 %v5016_v40, %v10182_v37  ;;  %v5037_v41 = vmul.f32 %v5016_v40, %v10203_v6 }
 0x9cf   : > { %5097 = vrot.lane.b32.xlu0 %v5033_v44, %s13471_s19 }
 0x9d0   : > { %v5026_v20 = vpop.permute.xlu0 %5025 }
 0x9d1   : > { %v5021_v36 = vpop.permute.xlu1 %5020  ;;  %v5035_v26 = vmul.f32 %v5026_v20, %v10191_v29  ;;  %v5039_v44 = vmul.f32 %v5026_v20, %v10215_v55 }
 0x9d2   : > { %v5034_v4 = vmul.f32 %v5021_v36, %v10197_v59  ;;  %v5038_v54 = vmul.f32 %v5021_v36, %v10219_v48 }
 0x9d3   : > { %5101 = vrot.lane.b32.xlu0 %v5035_v26, %s13471_s19  ;;  %v5041_v26 = vmul.f32 %v5016_v40, %v10225_v17 }
 0x9d4   : > { %5099 = vrot.lane.b32.xlu1 %v5034_v4, %s13471_s19 }
 0x9d5   : > { %v5031_v39 = vpop.permute.xlu1 %5030 }
 0x9d6   : > { %v5036_v28 = vmul.f32 %v5031_v39, %v10209_v47  ;;  %v5040_v4 = vmul.f32 %v5031_v39, %v10229_v63 }
 0x9d7   : > { %5105 = vrot.lane.b32.xlu0 %v5037_v41, %s13471_s19  ;;  %v5043_v41 = vmul.f32 %v5026_v20, %v10235_v34 }
 0x9d8   : > { %5103 = vrot.lane.b32.xlu1 %v5036_v28, %s13471_s19  ;;  %v5042_v28 = vmul.f32 %v5021_v36, %v10239_v9 }
 0x9db   : > { %5109 = vrot.lane.b32.xlu0 %v5039_v44, %s13471_s19  ;;  %v5045_v44 = vmul.f32 %v5016_v40, %v10245_v7 }
 0x9dc   : > { %5107 = vrot.lane.b32.xlu1 %v5038_v54, %s13471_s19  ;;  %v5044_v54 = vmul.f32 %v5031_v39, %v10249_v42 }
 0x9df   : > { %5113 = vrot.lane.b32.xlu0 %v5041_v26, %s13471_s19  ;;  %v5047_v26 = vmul.f32 %v5026_v20, %v10255_v61 }
 0x9e0   : > { %5111 = vrot.lane.b32.xlu1 %v5040_v4, %s13471_s19  ;;  %v5046_v4 = vmul.f32 %v5021_v36, %v10259_v46 }
 0x9e3   : > { %5117 = vrot.lane.b32.xlu0 %v5043_v41, %s13471_s19  ;;  %v5049_v41 = vmul.f32 %v5016_v40, %v10265_v25 }
 0x9e4   : > { %5115 = vrot.lane.b32.xlu1 %v5042_v28, %s13471_s19  ;;  %v5048_v28 = vmul.f32 %v5031_v39, %v10269_v51 }
 0x9e7   : > { %5121 = vrot.lane.b32.xlu0 %v5045_v44, %s13471_s19  ;;  %v5051_v44 = vmul.f32 %v5026_v20, %v10275_v14 }
 0x9e8   : > { %5119 = vrot.lane.b32.xlu1 %v5044_v54, %s13471_s19  ;;  %v5050_v54 = vmul.f32 %v5021_v36, %v10279_v24 }
 0x9eb   : > { %5125 = vrot.lane.b32.xlu0 %v5047_v26, %s13471_s19  ;;  %v5053_v26 = vmul.f32 %v5016_v40, %v10285_v1 }
 0x9ec   : > { %5123 = vrot.lane.b32.xlu1 %v5046_v4, %s13471_s19  ;;  %v5052_v4 = vmul.f32 %v5031_v39, %v10289_v15 }
 0x9ef   : > { %5129 = vrot.lane.b32.xlu0 %v5049_v41, %s13471_s19  ;;  %v5055_v41 = vmul.f32 %v5026_v20, %v10295_v18 }
 0x9f0   : > { %5127 = vrot.lane.b32.xlu1 %v5048_v28, %s13471_s19  ;;  %v5054_v28 = vmul.f32 %v5021_v36, %v10299_v43 }
 0x9f3   : > { %5133 = vrot.lane.b32.xlu0 %v5051_v44, %s13471_s19  ;;  %v5057_v44 = vmul.f32 %v5016_v40, %v10305_v5 }
 0x9f4   : > { %5131 = vrot.lane.b32.xlu1 %v5050_v54, %s13471_s19  ;;  %v5056_v54 = vmul.f32 %v5031_v39, %v10309_v49 }
 0x9f7   : > { %5137 = vrot.lane.b32.xlu0 %v5053_v26, %s13471_s19  ;;  %v5059_v26 = vmul.f32 %v5026_v20, %v10315_v11 }
 0x9f8   : > { %5135 = vrot.lane.b32.xlu1 %v5052_v4, %s13471_s19  ;;  %v5058_v4 = vmul.f32 %v5021_v36, %v10319_v50 }
 0x9fb   : > { %5141 = vrot.lane.b32.xlu0 %v5055_v41, %s13471_s19  ;;  %v5061_v41 = vmul.f32 %v5016_v40, %v10325_v21  ;;  %v5064_v40 = vmul.f32 %v5031_v39, %v10348_v60 }
 0x9fc   : > { %5139 = vrot.lane.b32.xlu1 %v5054_v28, %s13471_s19  ;;  %v5060_v28 = vmul.f32 %v5031_v39, %v10329_v38 }
 0x9ff   : > { %5145 = vrot.lane.b32.xlu0 %v5057_v44, %s13471_s19  ;;  %v5063_v44 = vmul.f32 %v5026_v20, %v10335_v45  ;;  %v1763_v20 = vld [vmem:[%s12984_s5 + $0x248] sm:$0xff] }
 0xa00   : > { %5143 = vrot.lane.b32.xlu1 %v5056_v54, %s13471_s19  ;;  %v5062_v54 = vmul.f32 %v5021_v36, %v10339_v35  ;;  %v1765_v36 = vld [vmem:[%s12984_s5 + $0x258] sm:$0xff] }
 0xa03   : > { %5149 = vrot.lane.b32.xlu0 %v5059_v26, %s13471_s19  ;;  %v1762_v26 = vld [vmem:[%s12984_s5 + $0x240] sm:$0xff] }
 0xa04   : > { %5147 = vrot.lane.b32.xlu1 %v5058_v4, %s13471_s19  ;;  %v1764_v4 = vld [vmem:[%s12984_s5 + $0x250] sm:$0xff] }
 0xa07   : > { %5153 = vrot.lane.b32.xlu0 %v5061_v41, %s13471_s19 }
 0xa08   : > { %5151 = vrot.lane.b32.xlu1 %v5060_v28, %s13471_s19 }
 0xa0b   : > { %5157 = vrot.lane.b32.xlu0 %v5063_v44, %s13471_s19 }
 0xa0c   : > { %5155 = vrot.lane.b32.xlu1 %v5062_v54, %s13471_s19 }
 0xa0f   : > { %5227 = vperm.xlu0 %7100, %v1762_v26  }
 0xa10   : > { %5159 = vrot.lane.b32.xlu1 %v5064_v40, %s13471_s19 }
 0xa13   : > { %5237 = vperm.xlu0 %7100, %v1764_v4  }
 0xa14   : > { %5232 = vperm.xlu1 %7099, %v1763_v20  }
 0xa18   : > { %5242 = vperm.xlu1 %7099, %v1765_v36  }
 0xa41   : > { %v10502_v41 = vpop.permute.xlu0 %5097 }
 0xa42   : > { %13472 = vst [vmem:[#allocation420_spill] sm:$0xff] %v10502_v41 }
 0xa45   : > { %v10504_v39 = vpop.permute.xlu0 %5101 }
 0xa46   : > { %13473 = vst [vmem:[#allocation421_spill] sm:$0xff] %v10504_v39  ;;  %v10506_v28 = vpop.permute.xlu1 %5099 }
 0xa47   : > { %13474 = vst [vmem:[#allocation422_spill] sm:$0xff] %v10506_v28 }
 0xa49   : > { %v10508_v44 = vpop.permute.xlu0 %5105 }
 0xa4a   : > { %13475 = vst [vmem:[#allocation423_spill] sm:$0xff] %v10508_v44  ;;  %v10510_v54 = vpop.permute.xlu1 %5103 }
 0xa4b   : > { %13476 = vst [vmem:[#allocation424_spill] sm:$0xff] %v10510_v54 }
 0xa4d   : > { %v10512_v26 = vpop.permute.xlu0 %5109 }
 0xa4e   : > { %13477 = vst [vmem:[#allocation425_spill] sm:$0xff] %v10512_v26  ;;  %v10514_v40 = vpop.permute.xlu1 %5107 }
 0xa4f   : > { %13478 = vst [vmem:[#allocation426_spill] sm:$0xff] %v10514_v40 }
 0xa51   : > { %v10516_v4 = vpop.permute.xlu0 %5113 }
 0xa52   : > { %13479 = vst [vmem:[#allocation427_spill] sm:$0xff] %v10516_v4  ;;  %v10518_v20 = vpop.permute.xlu1 %5111 }
 0xa53   : > { %13480 = vst [vmem:[#allocation428_spill] sm:$0xff] %v10518_v20 }
 0xa55   : > { %v10520_v8 = vpop.permute.xlu0 %5117 }
 0xa56   : > { %13481 = vst [vmem:[#allocation429_spill] sm:$0xff] %v10520_v8  ;;  %v10522_v36 = vpop.permute.xlu1 %5115 }
 0xa57   : > { %13482 = vst [vmem:[#allocation430_spill] sm:$0xff] %v10522_v36 }
 0xa59   : > { %v10524_v41 = vpop.permute.xlu0 %5121 }
 0xa5a   : > { %13483 = vst [vmem:[#allocation431_spill] sm:$0xff] %v10524_v41  ;;  %v10526_v39 = vpop.permute.xlu1 %5119 }
 0xa5b   : > { %13484 = vst [vmem:[#allocation432_spill] sm:$0xff] %v10526_v39 }
 0xa5d   : > { %v10528_v28 = vpop.permute.xlu0 %5125 }
 0xa5e   : > { %13485 = vst [vmem:[#allocation433_spill] sm:$0xff] %v10528_v28  ;;  %v10530_v44 = vpop.permute.xlu1 %5123 }
 0xa5f   : > { %13486 = vst [vmem:[#allocation434_spill] sm:$0xff] %v10530_v44 }
 0xa61   : > { %v10532_v54 = vpop.permute.xlu0 %5129 }
 0xa62   : > { %13487 = vst [vmem:[#allocation435_spill] sm:$0xff] %v10532_v54  ;;  %v10534_v26 = vpop.permute.xlu1 %5127 }
 0xa63   : > { %13488 = vst [vmem:[#allocation436_spill] sm:$0xff] %v10534_v26 }
 0xa65   : > { %v10536_v40 = vpop.permute.xlu0 %5133 }
 0xa66   : > { %13489 = vst [vmem:[#allocation437_spill] sm:$0xff] %v10536_v40  ;;  %v10538_v4 = vpop.permute.xlu1 %5131 }
 0xa67   : > { %13490 = vst [vmem:[#allocation438_spill] sm:$0xff] %v10538_v4 }
 0xa69   : > { %v10542_v8 = vpop.permute.xlu0 %5137 }
 0xa6a   : > { %v10540_v20 = vpop.permute.xlu1 %5135  ;;  %13492 = vst [vmem:[#allocation440_spill] sm:$0xff] %v10542_v8 }
 0xa6b   : > { %13491 = vst [vmem:[#allocation439_spill] sm:$0xff] %v10540_v20 }
 0xa6d   : > { %v10546_v41 = vpop.permute.xlu0 %5141 }
 0xa6e   : > { %v10544_v36 = vpop.permute.xlu1 %5139  ;;  %13494 = vst [vmem:[#allocation442_spill] sm:$0xff] %v10546_v41 }
 0xa6f   : > { %13493 = vst [vmem:[#allocation441_spill] sm:$0xff] %v10544_v36 }
 0xa71   : > { %v10550_v28 = vpop.permute.xlu0 %5145 }
 0xa72   : > { %v10548_v39 = vpop.permute.xlu1 %5143  ;;  %13496 = vst [vmem:[#allocation444_spill] sm:$0xff] %v10550_v28 }
 0xa73   : > { %13495 = vst [vmem:[#allocation443_spill] sm:$0xff] %v10548_v39 }
 0xa75   : > { %v10554_v54 = vpop.permute.xlu0 %5149 }
 0xa76   : > { %v10552_v44 = vpop.permute.xlu1 %5147  ;;  %13498 = vst [vmem:[#allocation446_spill] sm:$0xff] %v10554_v54 }
 0xa77   : > { %13497 = vst [vmem:[#allocation445_spill] sm:$0xff] %v10552_v44 }
 0xa79   : > { %v10558_v40 = vpop.permute.xlu0 %5153 }
 0xa7a   : > { %v10556_v26 = vpop.permute.xlu1 %5151  ;;  %13500 = vst [vmem:[#allocation448_spill] sm:$0xff] %v10558_v40 }
 0xa7b   : > { %13499 = vst [vmem:[#allocation447_spill] sm:$0xff] %v10556_v26 }
 0xa7d   : > { %v10562_v20 = vpop.permute.xlu0 %5157 }
 0xa7e   : > { %v10560_v4 = vpop.permute.xlu1 %5155  ;;  %13502 = vst [vmem:[#allocation450_spill] sm:$0xff] %v10562_v20 }
 0xa7f   : > { %13501 = vst [vmem:[#allocation449_spill] sm:$0xff] %v10560_v4 }
 0xa82   : > { %v10564_v36 = vpop.permute.xlu1 %5159 }
 0xa83   : > { %13503 = vst [vmem:[#allocation451_spill] sm:$0xff] %v10564_v36 }
 0xa8e   : > { %v5228_v8 = vpop.permute.xlu0 %5227 }
 0xa8f   : > { %v5245_v41 = vmul.f32 %v5228_v8, %v10182_v37  ;;  %v5249_v20 = vmul.f32 %v5228_v8, %v10203_v6 }
 0xa91   : > { %5309 = vrot.lane.b32.xlu0 %v5245_v41, %s13368_s25 }
 0xa92   : > { %v5238_v39 = vpop.permute.xlu0 %5237 }
 0xa93   : > { %v5233_v28 = vpop.permute.xlu1 %5232  ;;  %v5247_v44 = vmul.f32 %v5238_v39, %v10191_v29  ;;  %v5251_v41 = vmul.f32 %v5238_v39, %v10215_v55 }
 0xa94   : > { %v5246_v54 = vmul.f32 %v5233_v28, %v10197_v59  ;;  %v5250_v36 = vmul.f32 %v5233_v28, %v10219_v48 }
 0xa95   : > { %5313 = vrot.lane.b32.xlu0 %v5247_v44, %s13368_s25  ;;  %v5253_v44 = vmul.f32 %v5228_v8, %v10225_v17 }
 0xa96   : > { %5311 = vrot.lane.b32.xlu1 %v5246_v54, %s13368_s25 }
 0xa97   : > { %v5243_v26 = vpop.permute.xlu1 %5242 }
 0xa98   : > { %v5248_v4 = vmul.f32 %v5243_v26, %v10209_v47  ;;  %v5252_v54 = vmul.f32 %v5243_v26, %v10229_v63 }
 0xa99   : > { %5317 = vrot.lane.b32.xlu0 %v5249_v20, %s13368_s25  ;;  %v5255_v20 = vmul.f32 %v5238_v39, %v10235_v34 }
 0xa9a   : > { %5315 = vrot.lane.b32.xlu1 %v5248_v4, %s13368_s25  ;;  %v5254_v4 = vmul.f32 %v5233_v28, %v10239_v9 }
 0xa9d   : > { %5321 = vrot.lane.b32.xlu0 %v5251_v41, %s13368_s25  ;;  %v5257_v41 = vmul.f32 %v5228_v8, %v10245_v7 }
 0xa9e   : > { %5319 = vrot.lane.b32.xlu1 %v5250_v36, %s13368_s25  ;;  %v5256_v36 = vmul.f32 %v5243_v26, %v10249_v42 }
 0xaa1   : > { %5325 = vrot.lane.b32.xlu0 %v5253_v44, %s13368_s25  ;;  %v5259_v44 = vmul.f32 %v5238_v39, %v10255_v61 }
 0xaa2   : > { %5323 = vrot.lane.b32.xlu1 %v5252_v54, %s13368_s25  ;;  %v5258_v54 = vmul.f32 %v5233_v28, %v10259_v46 }
 0xaa5   : > { %5329 = vrot.lane.b32.xlu0 %v5255_v20, %s13368_s25  ;;  %v5261_v20 = vmul.f32 %v5228_v8, %v10265_v25 }
 0xaa6   : > { %5327 = vrot.lane.b32.xlu1 %v5254_v4, %s13368_s25  ;;  %v5260_v4 = vmul.f32 %v5243_v26, %v10269_v51 }
 0xaa9   : > { %5333 = vrot.lane.b32.xlu0 %v5257_v41, %s13368_s25  ;;  %v5263_v41 = vmul.f32 %v5238_v39, %v10275_v14 }
 0xaaa   : > { %5331 = vrot.lane.b32.xlu1 %v5256_v36, %s13368_s25  ;;  %v5262_v36 = vmul.f32 %v5233_v28, %v10279_v24 }
 0xaad   : > { %5337 = vrot.lane.b32.xlu0 %v5259_v44, %s13368_s25  ;;  %v5265_v44 = vmul.f32 %v5228_v8, %v10285_v1 }
 0xaae   : > { %5335 = vrot.lane.b32.xlu1 %v5258_v54, %s13368_s25  ;;  %v5264_v54 = vmul.f32 %v5243_v26, %v10289_v15 }
 0xab1   : > { %5341 = vrot.lane.b32.xlu0 %v5261_v20, %s13368_s25  ;;  %v5267_v20 = vmul.f32 %v5238_v39, %v10295_v18 }
 0xab2   : > { %5339 = vrot.lane.b32.xlu1 %v5260_v4, %s13368_s25  ;;  %v5266_v4 = vmul.f32 %v5233_v28, %v10299_v43 }
 0xab5   : > { %5345 = vrot.lane.b32.xlu0 %v5263_v41, %s13368_s25  ;;  %v5269_v41 = vmul.f32 %v5228_v8, %v10305_v5 }
 0xab6   : > { %5343 = vrot.lane.b32.xlu1 %v5262_v36, %s13368_s25  ;;  %v5268_v36 = vmul.f32 %v5243_v26, %v10309_v49 }
 0xab9   : > { %5349 = vrot.lane.b32.xlu0 %v5265_v44, %s13368_s25  ;;  %v5271_v44 = vmul.f32 %v5238_v39, %v10315_v11 }
 0xaba   : > { %5347 = vrot.lane.b32.xlu1 %v5264_v54, %s13368_s25  ;;  %v5270_v54 = vmul.f32 %v5233_v28, %v10319_v50 }
 0xabd   : > { %5353 = vrot.lane.b32.xlu0 %v5267_v20, %s13368_s25  ;;  %v5273_v20 = vmul.f32 %v5228_v8, %v10325_v21  ;;  %v5276_v8 = vmul.f32 %v5243_v26, %v10348_v60 }
 0xabe   : > { %5351 = vrot.lane.b32.xlu1 %v5266_v4, %s13368_s25  ;;  %v5272_v4 = vmul.f32 %v5243_v26, %v10329_v38 }
 0xac1   : > { %5357 = vrot.lane.b32.xlu0 %v5269_v41, %s13368_s25  ;;  %v5275_v41 = vmul.f32 %v5238_v39, %v10335_v45  ;;  %v1767_v39 = vld [vmem:[%s12984_s5 + $0x268] sm:$0xff] }
 0xac2   : > { %5355 = vrot.lane.b32.xlu1 %v5268_v36, %s13368_s25  ;;  %v5274_v36 = vmul.f32 %v5233_v28, %v10339_v35  ;;  %v1769_v28 = vld [vmem:[%s12984_s5 + $0x278] sm:$0xff] }
 0xac5   : > { %5361 = vrot.lane.b32.xlu0 %v5271_v44, %s13368_s25  ;;  %v1766_v44 = vld [vmem:[%s12984_s5 + $0x260] sm:$0xff] }
 0xac6   : > { %5359 = vrot.lane.b32.xlu1 %v5270_v54, %s13368_s25  ;;  %v1768_v54 = vld [vmem:[%s12984_s5 + $0x270] sm:$0xff] }
 0xac9   : > { %5365 = vrot.lane.b32.xlu0 %v5273_v20, %s13368_s25 }
 0xaca   : > { %5363 = vrot.lane.b32.xlu1 %v5272_v4, %s13368_s25 }
 0xacd   : > { %5369 = vrot.lane.b32.xlu0 %v5275_v41, %s13368_s25 }
 0xace   : > { %5367 = vrot.lane.b32.xlu1 %v5274_v36, %s13368_s25 }
 0xad1   : > { %5439 = vperm.xlu0 %7100, %v1766_v44  }
 0xad2   : > { %5371 = vrot.lane.b32.xlu1 %v5276_v8, %s13368_s25 }
 0xad5   : > { %5449 = vperm.xlu0 %7100, %v1768_v54  }
 0xad6   : > { %5444 = vperm.xlu1 %7099, %v1767_v39  }
 0xada   : > { %5454 = vperm.xlu1 %7099, %v1769_v28  }
 0xb03   : > { %v10642_v20 = vpop.permute.xlu0 %5309 }
 0xb04   : > { %13504 = vst [vmem:[#allocation452_spill] sm:$0xff] %v10642_v20 }
 0xb07   : > { %v10644_v26 = vpop.permute.xlu0 %5313 }
 0xb08   : > { %13505 = vst [vmem:[#allocation453_spill] sm:$0xff] %v10644_v26  ;;  %v10646_v4 = vpop.permute.xlu1 %5311 }
 0xb09   : > { %13506 = vst [vmem:[#allocation454_spill] sm:$0xff] %v10646_v4 }
 0xb0b   : > { %v10648_v41 = vpop.permute.xlu0 %5317 }
 0xb0c   : > { %13507 = vst [vmem:[#allocation455_spill] sm:$0xff] %v10648_v41  ;;  %v10650_v36 = vpop.permute.xlu1 %5315 }
 0xb0d   : > { %13508 = vst [vmem:[#allocation456_spill] sm:$0xff] %v10650_v36 }
 0xb0f   : > { %v10652_v44 = vpop.permute.xlu0 %5321 }
 0xb10   : > { %13509 = vst [vmem:[#allocation457_spill] sm:$0xff] %v10652_v44  ;;  %v10654_v8 = vpop.permute.xlu1 %5319 }
 0xb11   : > { %13510 = vst [vmem:[#allocation458_spill] sm:$0xff] %v10654_v8 }
 0xb13   : > { %v10656_v54 = vpop.permute.xlu0 %5325 }
 0xb14   : > { %13511 = vst [vmem:[#allocation459_spill] sm:$0xff] %v10656_v54  ;;  %v10658_v39 = vpop.permute.xlu1 %5323 }
 0xb15   : > { %13512 = vst [vmem:[#allocation460_spill] sm:$0xff] %v10658_v39 }
 0xb17   : > { %v10660_v40 = vpop.permute.xlu0 %5329 }
 0xb18   : > { %13513 = vst [vmem:[#allocation461_spill] sm:$0xff] %v10660_v40  ;;  %v10662_v28 = vpop.permute.xlu1 %5327 }
 0xb19   : > { %13514 = vst [vmem:[#allocation462_spill] sm:$0xff] %v10662_v28 }
 0xb1b   : > { %v10664_v20 = vpop.permute.xlu0 %5333 }
 0xb1c   : > { %13515 = vst [vmem:[#allocation463_spill] sm:$0xff] %v10664_v20  ;;  %v10666_v26 = vpop.permute.xlu1 %5331 }
 0xb1d   : > { %13516 = vst [vmem:[#allocation464_spill] sm:$0xff] %v10666_v26 }
 0xb1f   : > { %v10668_v4 = vpop.permute.xlu0 %5337 }
 0xb20   : > { %13517 = vst [vmem:[#allocation465_spill] sm:$0xff] %v10668_v4  ;;  %v10670_v41 = vpop.permute.xlu1 %5335 }
 0xb21   : > { %13518 = vst [vmem:[#allocation466_spill] sm:$0xff] %v10670_v41 }
 0xb23   : > { %v10672_v36 = vpop.permute.xlu0 %5341 }
 0xb24   : > { %13519 = vst [vmem:[#allocation467_spill] sm:$0xff] %v10672_v36  ;;  %v10674_v44 = vpop.permute.xlu1 %5339 }
 0xb25   : > { %13520 = vst [vmem:[#allocation468_spill] sm:$0xff] %v10674_v44 }
 0xb27   : > { %v10676_v8 = vpop.permute.xlu0 %5345 }
 0xb28   : > { %13521 = vst [vmem:[#allocation469_spill] sm:$0xff] %v10676_v8  ;;  %v10678_v54 = vpop.permute.xlu1 %5343 }
 0xb29   : > { %13522 = vst [vmem:[#allocation470_spill] sm:$0xff] %v10678_v54 }
 0xb2b   : > { %v10682_v40 = vpop.permute.xlu0 %5349 }
 0xb2c   : > { %v10680_v39 = vpop.permute.xlu1 %5347  ;;  %13524 = vst [vmem:[#allocation472_spill] sm:$0xff] %v10682_v40 }
 0xb2d   : > { %13523 = vst [vmem:[#allocation471_spill] sm:$0xff] %v10680_v39 }
 0xb2f   : > { %v10686_v20 = vpop.permute.xlu0 %5353 }
 0xb30   : > { %v10684_v28 = vpop.permute.xlu1 %5351  ;;  %13526 = vst [vmem:[#allocation474_spill] sm:$0xff] %v10686_v20 }
 0xb31   : > { %13525 = vst [vmem:[#allocation473_spill] sm:$0xff] %v10684_v28 }
 0xb33   : > { %v10690_v4 = vpop.permute.xlu0 %5357 }
 0xb34   : > { %v10688_v26 = vpop.permute.xlu1 %5355  ;;  %13528 = vst [vmem:[#allocation476_spill] sm:$0xff] %v10690_v4 }
 0xb35   : > { %13527 = vst [vmem:[#allocation475_spill] sm:$0xff] %v10688_v26 }
 0xb37   : > { %v10694_v36 = vpop.permute.xlu0 %5361 }
 0xb38   : > { %v10692_v41 = vpop.permute.xlu1 %5359  ;;  %13530 = vst [vmem:[#allocation478_spill] sm:$0xff] %v10694_v36 }
 0xb39   : > { %13529 = vst [vmem:[#allocation477_spill] sm:$0xff] %v10692_v41 }
 0xb3b   : > { %v10698_v8 = vpop.permute.xlu0 %5365 }
 0xb3c   : > { %v10696_v44 = vpop.permute.xlu1 %5363  ;;  %13532 = vst [vmem:[#allocation480_spill] sm:$0xff] %v10698_v8 }
 0xb3d   : > { %13531 = vst [vmem:[#allocation479_spill] sm:$0xff] %v10696_v44 }
 0xb3f   : > { %v10702_v39 = vpop.permute.xlu0 %5369 }
 0xb40   : > { %v10700_v54 = vpop.permute.xlu1 %5367  ;;  %13534 = vst [vmem:[#allocation482_spill] sm:$0xff] %v10702_v39 }
 0xb41   : > { %13533 = vst [vmem:[#allocation481_spill] sm:$0xff] %v10700_v54 }
 0xb44   : > { %v10704_v28 = vpop.permute.xlu1 %5371 }
 0xb45   : > { %13535 = vst [vmem:[#allocation483_spill] sm:$0xff] %v10704_v28  ;;  %v10881_v28 = vld [vmem:[#allocation2 + $0x88] sm:$0xff] }
 0xb50   : > { %v5440_v40 = vpop.permute.xlu0 %5439 }
 0xb51   : > { %v5457_v20 = vmul.f32 %v5440_v40, %v10182_v37  ;;  %v5461_v39 = vmul.f32 %v5440_v40, %v10203_v6 }
 0xb53   : > { %5521 = vrot.lane.b32.xlu0 %v5457_v20, %s13401_s24 }
 0xb54   : > { %v5450_v26 = vpop.permute.xlu0 %5449 }
 0xb55   : > { %v5445_v4 = vpop.permute.xlu1 %5444  ;;  %v5459_v41 = vmul.f32 %v5450_v26, %v10191_v29  ;;  %v5463_v37 = vmul.f32 %v5450_v26, %v10215_v55  ;;  %v5469_v55 = vmul.f32 %v5440_v40, %v10245_v7  ;;  %v5475_v7 = vmul.f32 %v5450_v26, %v10275_v14 }
 0xb56   : > { %v5458_v36 = vmul.f32 %v5445_v4, %v10197_v59  ;;  %v5462_v20 = vmul.f32 %v5445_v4, %v10219_v48  ;;  %v5465_v59 = vmul.f32 %v5440_v40, %v10225_v17  ;;  %v5466_v6 = vmul.f32 %v5445_v4, %v10239_v9 }
 0xb57   : > { %5525 = vrot.lane.b32.xlu0 %v5459_v41, %s13401_s24  ;;  %v5471_v17 = vmul.f32 %v5450_v26, %v10255_v61  ;;  %v5477_v61 = vmul.f32 %v5440_v40, %v10285_v1  ;;  %v5481_v14 = vmul.f32 %v5440_v40, %v10305_v5  ;;  %v5483_v1 = vmul.f32 %v5450_v26, %v10315_v11  ;;  %v1770_v11 = vld [vmem:[%s12984_s5 + $0x280] sm:$0xff] }
 0xb58   : > { %5523 = vrot.lane.b32.xlu1 %v5458_v36, %s13401_s24  ;;  %v5487_v5 = vmul.f32 %v5450_v26, %v10335_v45  ;;  %v1771_v45 = vld [vmem:[%s12984_s5 + $0x288] sm:$0xff] }
 0xb59   : > { %v5455_v44 = vpop.permute.xlu1 %5454 }
 0xb5a   : > { %v5460_v54 = vmul.f32 %v5455_v44, %v10209_v47  ;;  %v5464_v29 = vmul.f32 %v5455_v44, %v10229_v63  ;;  %v5467_v47 = vmul.f32 %v5450_v26, %v10235_v34  ;;  %v5468_v48 = vmul.f32 %v5455_v44, %v10249_v42 }
 0xb5b   : > { %5529 = vrot.lane.b32.xlu0 %v5461_v39, %s13401_s24  ;;  %v5470_v63 = vmul.f32 %v5445_v4, %v10259_v46  ;;  %v5473_v34 = vmul.f32 %v5440_v40, %v10265_v25  ;;  %v5472_v9 = vmul.f32 %v5455_v44, %v10269_v51  ;;  %v5474_v42 = vmul.f32 %v5445_v4, %v10279_v24 }
 0xb5c   : > { %5527 = vrot.lane.b32.xlu1 %v5460_v54, %s13401_s24  ;;  %v5476_v46 = vmul.f32 %v5455_v44, %v10289_v15  ;;  %v5479_v25 = vmul.f32 %v5450_v26, %v10295_v18  ;;  %v5478_v51 = vmul.f32 %v5445_v4, %v10299_v43  ;;  %v5480_v24 = vmul.f32 %v5455_v44, %v10309_v49  ;;  %v1777_v26 = vld [vmem:[%s12984_s5 + $0x2b8] sm:$0xff] }
 0xb5d   : > { %v5482_v15 = vmul.f32 %v5445_v4, %v10319_v50  ;;  %v5485_v18 = vmul.f32 %v5440_v40, %v10325_v21  ;;  %v5484_v43 = vmul.f32 %v5455_v44, %v10329_v38  ;;  %v5486_v49 = vmul.f32 %v5445_v4, %v10339_v35  ;;  %v1772_v50 = vld [vmem:[%s12984_s5 + $0x290] sm:$0xff]  ;;  %v1774_v38 = vld [vmem:[%s12984_s5 + $0x2a0] sm:$0xff]  ;;  %v1773_v35 = vld [vmem:[%s12984_s5 + $0x298] sm:$0xff] }
 0xb5e   : > { %v5488_v21 = vmul.f32 %v5455_v44, %v10348_v60  ;;  %v1776_v60 = vld [vmem:[%s12984_s5 + $0x2b0] sm:$0xff]  ;;  %v1775_v40 = vld [vmem:[%s12984_s5 + $0x2a8] sm:$0xff] }
 0xb5f   : > { %5533 = vrot.lane.b32.xlu0 %v5463_v37, %s13401_s24 }
 0xb60   : > { %5531 = vrot.lane.b32.xlu1 %v5462_v20, %s13401_s24 }
 0xb63   : > { %5537 = vrot.lane.b32.xlu0 %v5465_v59, %s13401_s24 }
 0xb64   : > { %5535 = vrot.lane.b32.xlu1 %v5464_v29, %s13401_s24 }
 0xb67   : > { %5541 = vrot.lane.b32.xlu0 %v5467_v47, %s13401_s24 }
 0xb68   : > { %5539 = vrot.lane.b32.xlu1 %v5466_v6, %s13401_s24 }
 0xb6b   : > { %5545 = vrot.lane.b32.xlu0 %v5469_v55, %s13401_s24 }
 0xb6c   : > { %5543 = vrot.lane.b32.xlu1 %v5468_v48, %s13401_s24 }
 0xb6f   : > { %5549 = vrot.lane.b32.xlu0 %v5471_v17, %s13401_s24 }
 0xb70   : > { %5547 = vrot.lane.b32.xlu1 %v5470_v63, %s13401_s24 }
 0xb73   : > { %5553 = vrot.lane.b32.xlu0 %v5473_v34, %s13401_s24 }
 0xb74   : > { %5551 = vrot.lane.b32.xlu1 %v5472_v9, %s13401_s24 }
 0xb77   : > { %5557 = vrot.lane.b32.xlu0 %v5475_v7, %s13401_s24 }
 0xb78   : > { %5555 = vrot.lane.b32.xlu1 %v5474_v42, %s13401_s24 }
 0xb7b   : > { %5561 = vrot.lane.b32.xlu0 %v5477_v61, %s13401_s24 }
 0xb7c   : > { %5559 = vrot.lane.b32.xlu1 %v5476_v46, %s13401_s24 }
 0xb7f   : > { %5565 = vrot.lane.b32.xlu0 %v5479_v25, %s13401_s24 }
 0xb80   : > { %5563 = vrot.lane.b32.xlu1 %v5478_v51, %s13401_s24 }
 0xb83   : > { %5569 = vrot.lane.b32.xlu0 %v5481_v14, %s13401_s24 }
 0xb84   : > { %5567 = vrot.lane.b32.xlu1 %v5480_v24, %s13401_s24 }
 0xb87   : > { %5573 = vrot.lane.b32.xlu0 %v5483_v1, %s13401_s24 }
 0xb88   : > { %5571 = vrot.lane.b32.xlu1 %v5482_v15, %s13401_s24 }
 0xb8b   : > { %5577 = vrot.lane.b32.xlu0 %v5485_v18, %s13401_s24 }
 0xb8c   : > { %5575 = vrot.lane.b32.xlu1 %v5484_v43, %s13401_s24 }
 0xb8f   : > { %5581 = vrot.lane.b32.xlu0 %v5487_v5, %s13401_s24 }
 0xb90   : > { %5579 = vrot.lane.b32.xlu1 %v5486_v49, %s13401_s24 }
 0xb93   : > { %5684 = vperm.xlu0 %7100, %v1770_v11  }
 0xb94   : > { %5583 = vrot.lane.b32.xlu1 %v5488_v21, %s13401_s24 }
 0xb97   : > { %5694 = vperm.xlu0 %7100, %v1772_v50  }
 0xb98   : > { %5689 = vperm.xlu1 %7099, %v1771_v45  }
 0xb9b   : > { %5768 = vperm.xlu0 %7100, %v1774_v38   ;;  %v10866_v38 = vld [vmem:[#allocation2 + $0x80] sm:$0xff] }
 0xb9c   : > { %5699 = vperm.xlu1 %7099, %v1773_v35  }
 0xb9f   : > { %5778 = vperm.xlu0 %7100, %v1776_v60  }
 0xba0   : > { %5773 = vperm.xlu1 %7099, %v1775_v40  }
 0xba4   : > { %5783 = vperm.xlu1 %7099, %v1777_v26   ;;  %v10875_v26 = vld [vmem:[#allocation2 + $0x90] sm:$0xff] }
 0xbc5   : > { %v10794_v4 = vpop.permute.xlu0 %5521 }
 0xbc6   : > { %13536 = vst [vmem:[#allocation484_spill] sm:$0xff] %v10794_v4 }
 0xbc9   : > { %v10796_v41 = vpop.permute.xlu0 %5525 }
 0xbca   : > { %13537 = vst [vmem:[#allocation485_spill] sm:$0xff] %v10796_v41  ;;  %v10798_v36 = vpop.permute.xlu1 %5523 }
 0xbcb   : > { %13538 = vst [vmem:[#allocation486_spill] sm:$0xff] %v10798_v36  ;;  %v11019_v36 = vld [vmem:[#allocation2 + $0x170] sm:$0xff] }
 0xbcd   : > { %v10800_v44 = vpop.permute.xlu0 %5529 }
 0xbce   : > { %13539 = vst [vmem:[#allocation487_spill] sm:$0xff] %v10800_v44  ;;  %v10802_v54 = vpop.permute.xlu1 %5527 }
 0xbcf   : > { %13540 = vst [vmem:[#allocation488_spill] sm:$0xff] %v10802_v54  ;;  %v11009_v54 = vld [vmem:[#allocation2 + $0x160] sm:$0xff] }
 0xbd1   : > { %v10804_v39 = vpop.permute.xlu0 %5533 }
 0xbd2   : > { %13541 = vst [vmem:[#allocation489_spill] sm:$0xff] %v10804_v39  ;;  %v10806_v37 = vpop.permute.xlu1 %5531  ;;  %v10919_v39 = vld [vmem:[#allocation2 + $0xd0] sm:$0xff] }
 0xbd3   : > { %13542 = vst [vmem:[#allocation490_spill] sm:$0xff] %v10806_v37  ;;  %13575 = vst [vmem:[#allocation523_spill] sm:$0xff] %v10919_v39 }
 0xbd5   : > { %v10808_v20 = vpop.permute.xlu0 %5537 }
 0xbd6   : > { %13543 = vst [vmem:[#allocation491_spill] sm:$0xff] %v10808_v20  ;;  %v10810_v59 = vpop.permute.xlu1 %5535 }
 0xbd7   : > { %13544 = vst [vmem:[#allocation492_spill] sm:$0xff] %v10810_v59 }
 0xbd9   : > { %v10812_v29 = vpop.permute.xlu0 %5541 }
 0xbda   : > { %13545 = vst [vmem:[#allocation493_spill] sm:$0xff] %v10812_v29  ;;  %v10814_v47 = vpop.permute.xlu1 %5539  ;;  %v10999_v29 = vld [vmem:[#allocation2 + $0x150] sm:$0xff] }
 0xbdb   : > { %13546 = vst [vmem:[#allocation494_spill] sm:$0xff] %v10814_v47 }
 0xbdd   : > { %v10816_v6 = vpop.permute.xlu0 %5545 }
 0xbde   : > { %13547 = vst [vmem:[#allocation495_spill] sm:$0xff] %v10816_v6  ;;  %v10818_v55 = vpop.permute.xlu1 %5543  ;;  %v10989_v6 = vld [vmem:[#allocation2 + $0x140] sm:$0xff] }
 0xbdf   : > { %13548 = vst [vmem:[#allocation496_spill] sm:$0xff] %v10818_v55 }
 0xbe1   : > { %v10820_v48 = vpop.permute.xlu0 %5549 }
 0xbe2   : > { %13549 = vst [vmem:[#allocation497_spill] sm:$0xff] %v10820_v48  ;;  %v10822_v17 = vpop.permute.xlu1 %5547  ;;  %v10979_v48 = vld [vmem:[#allocation2 + $0x130] sm:$0xff] }
 0xbe3   : > { %13550 = vst [vmem:[#allocation498_spill] sm:$0xff] %v10822_v17 }
 0xbe5   : > { %v10824_v63 = vpop.permute.xlu0 %5553 }
 0xbe6   : > { %13551 = vst [vmem:[#allocation499_spill] sm:$0xff] %v10824_v63  ;;  %v10826_v34 = vpop.permute.xlu1 %5551  ;;  %v10969_v63 = vld [vmem:[#allocation2 + $0x120] sm:$0xff] }
 0xbe7   : > { %13552 = vst [vmem:[#allocation500_spill] sm:$0xff] %v10826_v34  ;;  %13585 = vst [vmem:[#allocation533_spill] sm:$0xff] %v10969_v63 }
 0xbe9   : > { %v10828_v9 = vpop.permute.xlu0 %5557 }
 0xbea   : > { %13553 = vst [vmem:[#allocation501_spill] sm:$0xff] %v10828_v9  ;;  %v10830_v7 = vpop.permute.xlu1 %5555  ;;  %v10959_v9 = vld [vmem:[#allocation2 + $0x110] sm:$0xff] }
 0xbeb   : > { %13554 = vst [vmem:[#allocation502_spill] sm:$0xff] %v10830_v7  ;;  %13583 = vst [vmem:[#allocation531_spill] sm:$0xff] %v10959_v9 }
 0xbed   : > { %v10834_v61 = vpop.permute.xlu0 %5561 }
 0xbee   : > { %v10832_v42 = vpop.permute.xlu1 %5559  ;;  %13556 = vst [vmem:[#allocation504_spill] sm:$0xff] %v10834_v61  ;;  %v10949_v61 = vld [vmem:[#allocation2 + $0x100] sm:$0xff] }
 0xbef   : > { %13555 = vst [vmem:[#allocation503_spill] sm:$0xff] %v10832_v42  ;;  %v10939_v42 = vld [vmem:[#allocation2 + $0xf0] sm:$0xff]  ;;  %13581 = vst [vmem:[#allocation529_spill] sm:$0xff] %v10949_v61 }
 0xbf0   : > { %13579 = vst [vmem:[#allocation527_spill] sm:$0xff] %v10939_v42 }
 0xbf1   : > { %v10838_v25 = vpop.permute.xlu0 %5565 }
 0xbf2   : > { %v10836_v46 = vpop.permute.xlu1 %5563  ;;  %13558 = vst [vmem:[#allocation506_spill] sm:$0xff] %v10838_v25  ;;  %v10899_v25 = vld [vmem:[#allocation2 + $0xb0] sm:$0xff] }
 0xbf3   : > { %13557 = vst [vmem:[#allocation505_spill] sm:$0xff] %v10836_v46  ;;  %v10929_v46 = vld [vmem:[#allocation2 + $0xe0] sm:$0xff] }
 0xbf4   : > { %13577 = vst [vmem:[#allocation525_spill] sm:$0xff] %v10929_v46 }
 0xbf5   : > { %v10842_v14 = vpop.permute.xlu0 %5569 }
 0xbf6   : > { %v10840_v51 = vpop.permute.xlu1 %5567  ;;  %13560 = vst [vmem:[#allocation508_spill] sm:$0xff] %v10842_v14 }
 0xbf7   : > { %13559 = vst [vmem:[#allocation507_spill] sm:$0xff] %v10840_v51  ;;  %v10887_v51 = vld [vmem:[#allocation2 + $0xa0] sm:$0xff] }
 0xbf9   : > { %v10846_v1 = vpop.permute.xlu0 %5573 }
 0xbfa   : > { %v10844_v24 = vpop.permute.xlu1 %5571  ;;  %13562 = vst [vmem:[#allocation510_spill] sm:$0xff] %v10846_v1  ;;  %v10893_v1 = vld [vmem:[#allocation2 + $0x98] sm:$0xff] }
 0xbfb   : > { %13561 = vst [vmem:[#allocation509_spill] sm:$0xff] %v10844_v24  ;;  %v10909_v24 = vld [vmem:[#allocation2 + $0xc0] sm:$0xff] }
 0xbfc   : > { %13573 = vst [vmem:[#allocation521_spill] sm:$0xff] %v10909_v24 }
 0xbfd   : > { %v10850_v18 = vpop.permute.xlu0 %5577 }
 0xbfe   : > { %v10848_v15 = vpop.permute.xlu1 %5575  ;;  %13564 = vst [vmem:[#allocation512_spill] sm:$0xff] %v10850_v18 }
 0xbff   : > { %13563 = vst [vmem:[#allocation511_spill] sm:$0xff] %v10848_v15 }
 0xc01   : > { %v10854_v5 = vpop.permute.xlu0 %5581 }
 0xc02   : > { %v10852_v43 = vpop.permute.xlu1 %5579  ;;  %13566 = vst [vmem:[#allocation514_spill] sm:$0xff] %v10854_v5 }
 0xc03   : > { %13565 = vst [vmem:[#allocation513_spill] sm:$0xff] %v10852_v43 }
 0xc06   : > { %v10858_v11 = vpop.permute.xlu1 %5583 }
 0xc07   : > { %13568 = vst [vmem:[#allocation516_spill] sm:$0xff] %v10858_v11 }
 0xc12   : > { %v10856_v49 = vpop.permute.xlu0 %5684 }
 0xc13   : > { %13567 = vst [vmem:[#allocation515_spill] sm:$0xff] %v10856_v49 }
 0xc16   : > { %v10860_v21 = vpop.permute.xlu0 %5694 }
 0xc17   : > { %13569 = vst [vmem:[#allocation517_spill] sm:$0xff] %v10860_v21  ;;  %v10862_v50 = vpop.permute.xlu1 %5689 }
 0xc18   : > { %13570 = vst [vmem:[#allocation518_spill] sm:$0xff] %v10862_v50 }
 0xc1a   : > { %v10864_v45 = vpop.permute.xlu0 %5768 }
 0xc1b   : > { %v10868_v35 = vpop.permute.xlu1 %5699  ;;  %v5786_v60 = vmul.f32 %v10864_v45, %v10866_v38  ;;  %v5790_v43 = vmul.f32 %v10864_v45, %v10887_v51 }
 0xc1c   : > { %13571 = vst [vmem:[#allocation519_spill] sm:$0xff] %v10868_v35 }
 0xc1d   : > { %5850 = vrot.lane.b32.xlu0 %v5786_v60, %s13438_s21 }
 0xc1e   : > { %v10873_v40 = vpop.permute.xlu0 %5778 }
 0xc1f   : > { %v10877_v11 = vpop.permute.xlu1 %5773  ;;  %v5788_v5 = vmul.f32 %v10873_v40, %v10875_v26 }
 0xc20   : > { %v5787_v15 = vmul.f32 %v10877_v11, %v10881_v28 }
 0xc21   : > { %5854 = vrot.lane.b32.xlu0 %v5788_v5, %s13438_s21  ;;  %v10903_v5 = vld [vmem:[#allocation2 + $0xa8] sm:$0xff] }
 0xc22   : > { %5852 = vrot.lane.b32.xlu1 %v5787_v15, %s13438_s21  ;;  %v5792_v15 = vmul.f32 %v10873_v40, %v10899_v25  ;;  %13572 = vst [vmem:[#allocation520_spill] sm:$0xff] %v10903_v5  ;;  %v5791_v8 = vmul.f32 %v10877_v11, %v10903_v5 }
 0xc23   : > { %v10889_v60 = vpop.permute.xlu1 %5783 }
 0xc24   : > { %v5789_v18 = vmul.f32 %v10889_v60, %v10893_v1 }
 0xc25   : > { %5858 = vrot.lane.b32.xlu0 %v5790_v43, %s13438_s21  ;;  %v5794_v43 = vmul.f32 %v10864_v45, %v10909_v24 }
 0xc26   : > { %5856 = vrot.lane.b32.xlu1 %v5789_v18, %s13438_s21  ;;  %v10913_v18 = vld [vmem:[#allocation2 + $0xb8] sm:$0xff] }
 0xc27   : > { %13574 = vst [vmem:[#allocation522_spill] sm:$0xff] %v10913_v18  ;;  %v5793_v14 = vmul.f32 %v10889_v60, %v10913_v18 }
 0xc29   : > { %5862 = vrot.lane.b32.xlu0 %v5792_v15, %s13438_s21  ;;  %v5796_v15 = vmul.f32 %v10873_v40, %v10919_v39 }
 0xc2a   : > { %5860 = vrot.lane.b32.xlu1 %v5791_v8, %s13438_s21  ;;  %v10923_v8 = vld [vmem:[#allocation2 + $0xc8] sm:$0xff] }
 0xc2b   : > { %13576 = vst [vmem:[#allocation524_spill] sm:$0xff] %v10923_v8  ;;  %v5795_v37 = vmul.f32 %v10877_v11, %v10923_v8 }
 0xc2d   : > { %5866 = vrot.lane.b32.xlu0 %v5794_v43, %s13438_s21  ;;  %v5798_v43 = vmul.f32 %v10864_v45, %v10929_v46 }
 0xc2e   : > { %5864 = vrot.lane.b32.xlu1 %v5793_v14, %s13438_s21  ;;  %v10933_v14 = vld [vmem:[#allocation2 + $0xd8] sm:$0xff] }
 0xc2f   : > { %13578 = vst [vmem:[#allocation526_spill] sm:$0xff] %v10933_v14  ;;  %v5797_v44 = vmul.f32 %v10889_v60, %v10933_v14 }
 0xc31   : > { %5870 = vrot.lane.b32.xlu0 %v5796_v15, %s13438_s21  ;;  %v5800_v15 = vmul.f32 %v10873_v40, %v10939_v42 }
 0xc32   : > { %5868 = vrot.lane.b32.xlu1 %v5795_v37, %s13438_s21  ;;  %v10943_v37 = vld [vmem:[#allocation2 + $0xe8] sm:$0xff] }
 0xc33   : > { %13580 = vst [vmem:[#allocation528_spill] sm:$0xff] %v10943_v37  ;;  %v5799_v7 = vmul.f32 %v10877_v11, %v10943_v37 }
 0xc35   : > { %5874 = vrot.lane.b32.xlu0 %v5798_v43, %s13438_s21  ;;  %v5802_v43 = vmul.f32 %v10864_v45, %v10949_v61 }
 0xc36   : > { %5872 = vrot.lane.b32.xlu1 %v5797_v44, %s13438_s21  ;;  %v10953_v44 = vld [vmem:[#allocation2 + $0xf8] sm:$0xff] }
 0xc37   : > { %13582 = vst [vmem:[#allocation530_spill] sm:$0xff] %v10953_v44  ;;  %v5801_v34 = vmul.f32 %v10889_v60, %v10953_v44 }
 0xc39   : > { %5878 = vrot.lane.b32.xlu0 %v5800_v15, %s13438_s21  ;;  %v5804_v15 = vmul.f32 %v10873_v40, %v10959_v9 }
 0xc3a   : > { %5876 = vrot.lane.b32.xlu1 %v5799_v7, %s13438_s21  ;;  %v10963_v7 = vld [vmem:[#allocation2 + $0x108] sm:$0xff] }
 0xc3b   : > { %13584 = vst [vmem:[#allocation532_spill] sm:$0xff] %v10963_v7  ;;  %v5803_v17 = vmul.f32 %v10877_v11, %v10963_v7 }
 0xc3d   : > { %5882 = vrot.lane.b32.xlu0 %v5802_v43, %s13438_s21  ;;  %v5806_v43 = vmul.f32 %v10864_v45, %v10969_v63 }
 0xc3e   : > { %5880 = vrot.lane.b32.xlu1 %v5801_v34, %s13438_s21  ;;  %v10973_v34 = vld [vmem:[#allocation2 + $0x118] sm:$0xff] }
 0xc3f   : > { %13586 = vst [vmem:[#allocation534_spill] sm:$0xff] %v10973_v34  ;;  %v5805_v55 = vmul.f32 %v10889_v60, %v10973_v34 }
 0xc41   : > { %5886 = vrot.lane.b32.xlu0 %v5804_v15, %s13438_s21  ;;  %v5808_v15 = vmul.f32 %v10873_v40, %v10979_v48 }
 0xc42   : > { %5884 = vrot.lane.b32.xlu1 %v5803_v17, %s13438_s21  ;;  %v10983_v17 = vld [vmem:[#allocation2 + $0x128] sm:$0xff] }
 0xc43   : > { %13587 = vst [vmem:[#allocation535_spill] sm:$0xff] %v10983_v17  ;;  %v5807_v47 = vmul.f32 %v10877_v11, %v10983_v17 }
 0xc45   : > { %5890 = vrot.lane.b32.xlu0 %v5806_v43, %s13438_s21  ;;  %v5810_v43 = vmul.f32 %v10864_v45, %v10989_v6 }
 0xc46   : > { %5888 = vrot.lane.b32.xlu1 %v5805_v55, %s13438_s21  ;;  %v10993_v55 = vld [vmem:[#allocation2 + $0x138] sm:$0xff] }
 0xc47   : > { %v5809_v59 = vmul.f32 %v10889_v60, %v10993_v55 }
 0xc49   : > { %5894 = vrot.lane.b32.xlu0 %v5808_v15, %s13438_s21  ;;  %v5812_v15 = vmul.f32 %v10873_v40, %v10999_v29 }
 0xc4a   : > { %5892 = vrot.lane.b32.xlu1 %v5807_v47, %s13438_s21  ;;  %v11003_v47 = vld [vmem:[#allocation2 + $0x148] sm:$0xff] }
 0xc4b   : > { %v5811_v20 = vmul.f32 %v10877_v11, %v11003_v47 }
 0xc4d   : > { %5898 = vrot.lane.b32.xlu0 %v5810_v43, %s13438_s21  ;;  %v5814_v43 = vmul.f32 %v10864_v45, %v11009_v54  ;;  %v1778_v45 = vld [vmem:[%s12984_s5 + $0x2c0] sm:$0xff] }
 0xc4e   : > { %5896 = vrot.lane.b32.xlu1 %v5809_v59, %s13438_s21  ;;  %v11013_v59 = vld [vmem:[#allocation2 + $0x158] sm:$0xff] }
 0xc4f   : > { %v5813_v35 = vmul.f32 %v10889_v60, %v11013_v59 }
 0xc51   : > { %5902 = vrot.lane.b32.xlu0 %v5812_v15, %s13438_s21  ;;  %v5816_v15 = vmul.f32 %v10873_v40, %v11019_v36  ;;  %v1781_v40 = vld [vmem:[%s12984_s5 + $0x2d8] sm:$0xff] }
 0xc52   : > { %5900 = vrot.lane.b32.xlu1 %v5811_v20, %s13438_s21  ;;  %v11023_v20 = vld [vmem:[#allocation2 + $0x168] sm:$0xff] }
 0xc53   : > { %v5815_v41 = vmul.f32 %v10877_v11, %v11023_v20  ;;  %v1780_v11 = vld [vmem:[%s12984_s5 + $0x2d0] sm:$0xff] }
 0xc55   : > { %5906 = vrot.lane.b32.xlu0 %v5814_v43, %s13438_s21  ;;  %v11032_v43 = vld [vmem:[#allocation2 + $0x178] sm:$0xff] }
 0xc56   : > { %5904 = vrot.lane.b32.xlu1 %v5813_v35, %s13438_s21  ;;  %v5817_v35 = vmul.f32 %v10889_v60, %v11032_v43 }
 0xc59   : > { %5910 = vrot.lane.b32.xlu0 %v5816_v15, %s13438_s21 }
 0xc5a   : > { %5908 = vrot.lane.b32.xlu1 %v5815_v41, %s13438_s21  ;;  %v1779_v41 = vld [vmem:[%s12984_s5 + $0x2c8] sm:$0xff] }
 0xc5d   : > { %5980 = vperm.xlu0 %7100, %v1778_v45  }
 0xc5e   : > { %5912 = vrot.lane.b32.xlu1 %v5817_v35, %s13438_s21  ;;  %s7383_s21 = smov [#allocation4]  }
 0xc5f   : > { %s7284_s14 = sshll.u32 %s7383_s21, 4  ;;  %s7285_s14 = int_to_ptr.vmem [resolvable:$false] %s7284_s14 }
 0xc60   : > { %s7286_s17 = scalar_lea.vmem %s7285_s14, 256 }
 0xc61   : > { %5990 = vperm.xlu0 %7100, %v1780_v11  }
 0xc62   : > { %5985 = vperm.xlu1 %7099, %v1779_v41  }
 0xc66   : > { %5995 = vperm.xlu1 %7099, %v1781_v40  }
 0xc8f   : > { %v11046_v15 = vpop.permute.xlu0 %5850 }
 0xc90   : > { %13588 = vst [vmem:[#allocation536_spill] sm:$0xff] %v11046_v15 }
 0xc93   : > { %v11048_v60 = vpop.permute.xlu0 %5854 }
 0xc94   : > { %13589 = vst [vmem:[#allocation537_spill] sm:$0xff] %v11048_v60  ;;  %v11050_v45 = vpop.permute.xlu1 %5852 }
 0xc95   : > { %13590 = vst [vmem:[#allocation538_spill] sm:$0xff] %v11050_v45 }
 0xc97   : > { %v11052_v35 = vpop.permute.xlu0 %5858 }
 0xc98   : > { %13591 = vst [vmem:[#allocation539_spill] sm:$0xff] %v11052_v35  ;;  %v11054_v50 = vpop.permute.xlu1 %5856 }
 0xc99   : > { %13592 = vst [vmem:[#allocation540_spill] sm:$0xff] %v11054_v50 }
 0xc9b   : > { %v11056_v21 = vpop.permute.xlu0 %5862 }
 0xc9c   : > { %13593 = vst [vmem:[#allocation541_spill] sm:$0xff] %v11056_v21  ;;  %v11058_v4 = vpop.permute.xlu1 %5860 }
 0xc9d   : > { %13594 = vst [vmem:[#allocation542_spill] sm:$0xff] %v11058_v4 }
 0xc9f   : > { %v11060_v11 = vpop.permute.xlu0 %5866 }
 0xca0   : > { %13595 = vst [vmem:[#allocation543_spill] sm:$0xff] %v11060_v11  ;;  %v11062_v41 = vpop.permute.xlu1 %5864 }
 0xca1   : > { %13596 = vst [vmem:[#allocation544_spill] sm:$0xff] %v11062_v41 }
 0xca3   : > { %v11064_v49 = vpop.permute.xlu0 %5870 }
 0xca4   : > { %13597 = vst [vmem:[#allocation545_spill] sm:$0xff] %v11064_v49  ;;  %v11066_v40 = vpop.permute.xlu1 %5868 }
 0xca5   : > { %13598 = vst [vmem:[#allocation546_spill] sm:$0xff] %v11066_v40 }
 0xca7   : > { %v11068_v15 = vpop.permute.xlu0 %5874 }
 0xca8   : > { %13599 = vst [vmem:[#allocation547_spill] sm:$0xff] %v11068_v15  ;;  %v11070_v60 = vpop.permute.xlu1 %5872 }
 0xca9   : > { %13600 = vst [vmem:[#allocation548_spill] sm:$0xff] %v11070_v60 }
 0xcab   : > { %v11072_v45 = vpop.permute.xlu0 %5878 }
 0xcac   : > { %13601 = vst [vmem:[#allocation549_spill] sm:$0xff] %v11072_v45  ;;  %v11074_v35 = vpop.permute.xlu1 %5876 }
 0xcad   : > { %13602 = vst [vmem:[#allocation550_spill] sm:$0xff] %v11074_v35 }
 0xcaf   : > { %v11076_v50 = vpop.permute.xlu0 %5882 }
 0xcb0   : > { %13603 = vst [vmem:[#allocation551_spill] sm:$0xff] %v11076_v50  ;;  %v11078_v21 = vpop.permute.xlu1 %5880 }
 0xcb1   : > { %13604 = vst [vmem:[#allocation552_spill] sm:$0xff] %v11078_v21 }
 0xcb3   : > { %v11080_v4 = vpop.permute.xlu0 %5886 }
 0xcb4   : > { %13605 = vst [vmem:[#allocation553_spill] sm:$0xff] %v11080_v4  ;;  %v11082_v11 = vpop.permute.xlu1 %5884 }
 0xcb5   : > { %13606 = vst [vmem:[#allocation554_spill] sm:$0xff] %v11082_v11 }
 0xcb7   : > { %v11086_v49 = vpop.permute.xlu0 %5890 }
 0xcb8   : > { %v11084_v41 = vpop.permute.xlu1 %5888  ;;  %13608 = vst [vmem:[#allocation556_spill] sm:$0xff] %v11086_v49 }
 0xcb9   : > { %13607 = vst [vmem:[#allocation555_spill] sm:$0xff] %v11084_v41 }
 0xcbb   : > { %v11090_v15 = vpop.permute.xlu0 %5894 }
 0xcbc   : > { %v11088_v40 = vpop.permute.xlu1 %5892  ;;  %13610 = vst [vmem:[#allocation558_spill] sm:$0xff] %v11090_v15 }
 0xcbd   : > { %13609 = vst [vmem:[#allocation557_spill] sm:$0xff] %v11088_v40 }
 0xcbf   : > { %v11094_v45 = vpop.permute.xlu0 %5898 }
 0xcc0   : > { %v11092_v60 = vpop.permute.xlu1 %5896  ;;  %13612 = vst [vmem:[#allocation560_spill] sm:$0xff] %v11094_v45 }
 0xcc1   : > { %13611 = vst [vmem:[#allocation559_spill] sm:$0xff] %v11092_v60 }
 0xcc3   : > { %v11098_v50 = vpop.permute.xlu0 %5902 }
 0xcc4   : > { %v11096_v35 = vpop.permute.xlu1 %5900  ;;  %13614 = vst [vmem:[#allocation562_spill] sm:$0xff] %v11098_v50 }
 0xcc5   : > { %13613 = vst [vmem:[#allocation561_spill] sm:$0xff] %v11096_v35 }
 0xcc7   : > { %v11102_v4 = vpop.permute.xlu0 %5906 }
 0xcc8   : > { %v11100_v21 = vpop.permute.xlu1 %5904  ;;  %13616 = vst [vmem:[#allocation564_spill] sm:$0xff] %v11102_v4 }
 0xcc9   : > { %13615 = vst [vmem:[#allocation563_spill] sm:$0xff] %v11100_v21 }
 0xccb   : > { %v11106_v41 = vpop.permute.xlu0 %5910 }
 0xccc   : > { %v11104_v11 = vpop.permute.xlu1 %5908  ;;  %13618 = vst [vmem:[#allocation566_spill] sm:$0xff] %v11106_v41 }
 0xccd   : > { %13617 = vst [vmem:[#allocation565_spill] sm:$0xff] %v11104_v11 }
 0xcd0   : > { %v11108_v40 = vpop.permute.xlu1 %5912 }
 0xcd1   : > { %13619 = vst [vmem:[#allocation567_spill] sm:$0xff] %v11108_v40 }
 0xcdc   : > { %v5981_v49 = vpop.permute.xlu0 %5980 }
 0xcdd   : > { %v5998_v15 = vmul.f32 %v5981_v49, %v10866_v38  ;;  %v6002_v41 = vmul.f32 %v5981_v49, %v10887_v51 }
 0xcdf   : > { %6062 = vrot.lane.b32.xlu0 %v5998_v15, %s13471_s19 }
 0xce0   : > { %v5991_v60 = vpop.permute.xlu0 %5990 }
 0xce1   : > { %v5986_v45 = vpop.permute.xlu1 %5985  ;;  %v6000_v35 = vmul.f32 %v5991_v60, %v10875_v26  ;;  %v6004_v15 = vmul.f32 %v5991_v60, %v10899_v25 }
 0xce2   : > { %v5999_v50 = vmul.f32 %v5986_v45, %v10881_v28  ;;  %v6003_v40 = vmul.f32 %v5986_v45, %v10903_v5 }
 0xce3   : > { %6066 = vrot.lane.b32.xlu0 %v6000_v35, %s13471_s19  ;;  %v6006_v35 = vmul.f32 %v5981_v49, %v10909_v24  ;;  %v7165_v24 = vld [vmem:[#allocation2 + $0x98] sm:$0xff] }
 0xce4   : > { %6064 = vrot.lane.b32.xlu1 %v5999_v50, %s13471_s19 }
 0xce5   : > { %v5996_v21 = vpop.permute.xlu1 %5995 }
 0xce6   : > { %v6001_v11 = vmul.f32 %v5996_v21, %v10893_v1  ;;  %v6005_v50 = vmul.f32 %v5996_v21, %v10913_v18 }
 0xce7   : > { %6070 = vrot.lane.b32.xlu0 %v6002_v41, %s13471_s19  ;;  %v6008_v41 = vmul.f32 %v5991_v60, %v10919_v39 }
 0xce8   : > { %6068 = vrot.lane.b32.xlu1 %v6001_v11, %s13471_s19  ;;  %v6007_v11 = vmul.f32 %v5986_v45, %v10923_v8 }
 0xceb   : > { %6074 = vrot.lane.b32.xlu0 %v6004_v15, %s13471_s19  ;;  %v6010_v15 = vmul.f32 %v5981_v49, %v10929_v46  ;;  %v7156_v46 = vld [vmem:[#allocation2 + $0x80] sm:$0xff] }
 0xcec   : > { %6072 = vrot.lane.b32.xlu1 %v6003_v40, %s13471_s19  ;;  %v6009_v40 = vmul.f32 %v5996_v21, %v10933_v14  ;;  %v11351_v5 = vmul.f32 %v7156_v46, %v7828_v31 }
 0xcef   : > { %6078 = vrot.lane.b32.xlu0 %v6006_v35, %s13471_s19  ;;  %v6012_v35 = vmul.f32 %v5991_v60, %v10939_v42  ;;  %v7155_v42 = vld [vmem:[#allocation2 + $0x50] sm:$0xff] }
 0xcf0   : > { %6076 = vrot.lane.b32.xlu1 %v6005_v50, %s13471_s19  ;;  %v6011_v50 = vmul.f32 %v5986_v45, %v10943_v37  ;;  %v11327_v8 = vmul.f32 %v7155_v42, %v7754_v12 }
 0xcf3   : > { %6082 = vrot.lane.b32.xlu0 %v6008_v41, %s13471_s19  ;;  %v6014_v41 = vmul.f32 %v5981_v49, %v10949_v61 }
 0xcf4   : > { %6080 = vrot.lane.b32.xlu1 %v6007_v11, %s13471_s19  ;;  %v6013_v11 = vmul.f32 %v5996_v21, %v10953_v44 }
 0xcf7   : > { %6086 = vrot.lane.b32.xlu0 %v6010_v15, %s13471_s19  ;;  %v6016_v15 = vmul.f32 %v5991_v60, %v10959_v9  ;;  %v7152_v9 = vld [vmem:[#allocation2 + $0x70] sm:$0xff] }
 0xcf8   : > { %6084 = vrot.lane.b32.xlu1 %v6009_v40, %s13471_s19  ;;  %v6015_v40 = vmul.f32 %v5986_v45, %v10963_v7  ;;  %v7150_v7 = vld [vmem:[#allocation2 + $0x18] sm:$0xff]  ;;  %v11312_v37 = vmul.f32 %v7152_v9, %v7754_v12 }
 0xcfa   : > { %13648 = vst [vmem:[#allocation596_spill] sm:$0xff] %v11312_v37  ;;  %v7157_v37 = vld [vmem:[#allocation2 + $0x58] sm:$0xff] }
 0xcfb   : > { %6090 = vrot.lane.b32.xlu0 %v6012_v35, %s13471_s19  ;;  %v6018_v35 = vmul.f32 %v5981_v49, %v10969_v63  ;;  %v7151_v63 = vld [vmem:[#allocation2 + $0x78] sm:$0xff]  ;;  %v11354_v0 = vmul.f32 %v7157_v37, %v7830_v32 }
 0xcfc   : > { %6088 = vrot.lane.b32.xlu1 %v6011_v50, %s13471_s19  ;;  %v6017_v50 = vmul.f32 %v5996_v21, %v10973_v34  ;;  %v11309_v44 = vmul.f32 %v7151_v63, %v7758_v23 }
 0xcfe   : > { %13647 = vst [vmem:[#allocation595_spill] sm:$0xff] %v11309_v44  ;;  %v11330_v44 = vmul.f32 %v7156_v46, %v7749_v2  ;;  %v7161_v46 = vld [vmem:[#allocation2 + $0xb8] sm:$0xff] }
 0xcff   : > { %6094 = vrot.lane.b32.xlu0 %v6014_v41, %s13471_s19  ;;  %v6020_v41 = vmul.f32 %v5991_v60, %v10979_v48  ;;  %v6026_v48 = vmul.f32 %v5981_v49, %v11009_v54  ;;  %v6029_v54 = vmul.f32 %v5996_v21, %v11032_v43  ;;  %v1789_v43 = vld [vmem:[%s12984_s5 + $0x318] sm:$0xff] }
 0xd00   : > { %6092 = vrot.lane.b32.xlu1 %v6013_v11, %s13471_s19  ;;  %v6019_v11 = vmul.f32 %v5986_v45, %v10983_v17  ;;  %v7149_v17 = vld [vmem:[#allocation2 + $0x48] sm:$0xff] }
 0xd01   : > { %v11294_v34 = vmul.f32 %v7149_v17, %v7761_v27 }
 0xd03   : > { %6098 = vrot.lane.b32.xlu0 %v6016_v15, %s13471_s19  ;;  %v6022_v15 = vmul.f32 %v5981_v49, %v10989_v6  ;;  %v6028_v6 = vmul.f32 %v5991_v60, %v11019_v36  ;;  %v1784_v49 = vld [vmem:[%s12984_s5 + $0x2f0] sm:$0xff]  ;;  %v1783_v36 = vld [vmem:[%s12984_s5 + $0x2e8] sm:$0xff] }
 0xd04   : > { %6096 = vrot.lane.b32.xlu1 %v6015_v40, %s13471_s19  ;;  %v6021_v40 = vmul.f32 %v5996_v21, %v10993_v55  ;;  %v6027_v55 = vmul.f32 %v5986_v45, %v11023_v20  ;;  %v1785_v20 = vld [vmem:[%s12984_s5 + $0x2f8] sm:$0xff] }
 0xd07   : > { %6102 = vrot.lane.b32.xlu0 %v6018_v35, %s13471_s19  ;;  %v6024_v35 = vmul.f32 %v5991_v60, %v10999_v29  ;;  %v1782_v29 = vld [vmem:[%s12984_s5 + $0x2e0] sm:$0xff] }
 0xd08   : > { %6100 = vrot.lane.b32.xlu1 %v6017_v50, %s13471_s19  ;;  %v6023_v50 = vmul.f32 %v5986_v45, %v11003_v47  ;;  %v1787_v47 = vld [vmem:[%s12984_s5 + $0x308] sm:$0xff] }
 0xd0b   : > { %6106 = vrot.lane.b32.xlu0 %v6020_v41, %s13471_s19  ;;  %v6025_v41 = vmul.f32 %v5996_v21, %v11013_v59  ;;  %v1786_v21 = vld [vmem:[%s12984_s5 + $0x300] sm:$0xff]  ;;  %v1788_v59 = vld [vmem:[%s12984_s5 + $0x310] sm:$0xff] }
 0xd0c   : > { %6104 = vrot.lane.b32.xlu1 %v6019_v11, %s13471_s19 }
 0xd0f   : > { %6110 = vrot.lane.b32.xlu0 %v6022_v15, %s13471_s19 }
 0xd10   : > { %6108 = vrot.lane.b32.xlu1 %v6021_v40, %s13471_s19 }
 0xd13   : > { %6114 = vrot.lane.b32.xlu0 %v6024_v35, %s13471_s19 }
 0xd14   : > { %6112 = vrot.lane.b32.xlu1 %v6023_v50, %s13471_s19 }
 0xd17   : > { %6118 = vrot.lane.b32.xlu0 %v6026_v48, %s13471_s19 }
 0xd18   : > { %6116 = vrot.lane.b32.xlu1 %v6025_v41, %s13471_s19 }
 0xd1b   : > { %6122 = vrot.lane.b32.xlu0 %v6028_v6, %s13471_s19 }
 0xd1c   : > { %6120 = vrot.lane.b32.xlu1 %v6027_v55, %s13471_s19 }
 0xd1f   : > { %6192 = vperm.xlu0 %7100, %v1782_v29  }
 0xd20   : > { %6124 = vrot.lane.b32.xlu1 %v6029_v54, %s13471_s19  ;;  %s12923_s19 = scalar_lea.hbm %s12986_s7, %s6913_s30 }
 0xd23   : > { %6202 = vperm.xlu0 %7100, %v1784_v49  }
 0xd24   : > { %6197 = vperm.xlu1 %7099, %v1783_v36  }
 0xd27   : > { %6409 = vperm.xlu0 %7100, %v1787_v47  }
 0xd28   : > { %6404 = vperm.xlu1 %7099, %v1786_v21  }
 0xd2b   : > { %6414 = vperm.xlu0 %7100, %v1788_v59  }
 0xd2c   : > { %6207 = vperm.xlu1 %7099, %v1785_v20  }
 0xd30   : > { %6419 = vperm.xlu1 %7099, %v1789_v43  }
 0xd51   : > { %v11198_v60 = vpop.permute.xlu0 %6062 }
 0xd52   : > { %13620 = vst [vmem:[#allocation568_spill] sm:$0xff] %v11198_v60 }
 0xd55   : > { %v11200_v45 = vpop.permute.xlu0 %6066 }
 0xd56   : > { %13621 = vst [vmem:[#allocation569_spill] sm:$0xff] %v11200_v45  ;;  %v11202_v11 = vpop.permute.xlu1 %6064 }
 0xd57   : > { %13622 = vst [vmem:[#allocation570_spill] sm:$0xff] %v11202_v11 }
 0xd59   : > { %v11204_v15 = vpop.permute.xlu0 %6070 }
 0xd5a   : > { %13623 = vst [vmem:[#allocation571_spill] sm:$0xff] %v11204_v15  ;;  %v11206_v40 = vpop.permute.xlu1 %6068 }
 0xd5b   : > { %13624 = vst [vmem:[#allocation572_spill] sm:$0xff] %v11206_v40 }
 0xd5d   : > { %v11208_v35 = vpop.permute.xlu0 %6074 }
 0xd5e   : > { %13625 = vst [vmem:[#allocation573_spill] sm:$0xff] %v11208_v35  ;;  %v11210_v50 = vpop.permute.xlu1 %6072 }
 0xd5f   : > { %13626 = vst [vmem:[#allocation574_spill] sm:$0xff] %v11210_v50 }
 0xd61   : > { %v11212_v48 = vpop.permute.xlu0 %6078 }
 0xd62   : > { %13627 = vst [vmem:[#allocation575_spill] sm:$0xff] %v11212_v48  ;;  %v11214_v41 = vpop.permute.xlu1 %6076 }
 0xd63   : > { %13628 = vst [vmem:[#allocation576_spill] sm:$0xff] %v11214_v41 }
 0xd65   : > { %v11216_v6 = vpop.permute.xlu0 %6082 }
 0xd66   : > { %13629 = vst [vmem:[#allocation577_spill] sm:$0xff] %v11216_v6  ;;  %v11218_v55 = vpop.permute.xlu1 %6080  ;;  %v7146_v6 = vld [vmem:[#allocation2 + $0x68] sm:$0xff] }
 0xd67   : > { %13630 = vst [vmem:[#allocation578_spill] sm:$0xff] %v11218_v55  ;;  %v7144_v55 = vld [vmem:[#allocation2 + $0x38] sm:$0xff]  ;;  %v11277_v48 = vmul.f32 %v7146_v6, %v7761_v27 }
 0xd68   : > { %v11283_v40 = vmul.f32 %v7144_v55, %v7830_v32 }
 0xd69   : > { %v11220_v29 = vpop.permute.xlu0 %6086 }
 0xd6a   : > { %13631 = vst [vmem:[#allocation579_spill] sm:$0xff] %v11220_v29  ;;  %v11222_v54 = vpop.permute.xlu1 %6084  ;;  %v11266_v29 = vmul.f32 %v7144_v55, %v7758_v23  ;;  %v11300_v55 = vmul.f32 %v7150_v7, %v7758_v23  ;;  %v11318_v7 = vmul.f32 %v7152_v9, %v7832_v33  ;;  %v7158_v9 = vld [vmem:[#allocation2 + $0x88] sm:$0xff] }
 0xd6b   : > { %13632 = vst [vmem:[#allocation580_spill] sm:$0xff] %v11222_v54 }
 0xd6c   : > { %13650 = vst [vmem:[#allocation598_spill] sm:$0xff] %v11318_v7 }
 0xd6d   : > { %v11224_v49 = vpop.permute.xlu0 %6090 }
 0xd6e   : > { %13633 = vst [vmem:[#allocation581_spill] sm:$0xff] %v11224_v49  ;;  %v11226_v36 = vpop.permute.xlu1 %6088 }
 0xd6f   : > { %13634 = vst [vmem:[#allocation582_spill] sm:$0xff] %v11226_v36  ;;  %v7139_v36 = vld [vmem:[#allocation2 + $0x20] sm:$0xff] }
 0xd71   : > { %v11228_v47 = vpop.permute.xlu0 %6094 }
 0xd72   : > { %13635 = vst [vmem:[#allocation583_spill] sm:$0xff] %v11228_v47  ;;  %v11230_v21 = vpop.permute.xlu1 %6092  ;;  %v11249_v47 = vmul.f32 %v7139_v36, %v7749_v2 }
 0xd73   : > { %13636 = vst [vmem:[#allocation584_spill] sm:$0xff] %v11230_v21  ;;  %v7140_v21 = vld [vmem:[#allocation2 + $0x28] sm:$0xff] }
 0xd74   : > { %v11263_v49 = vmul.f32 %v7140_v21, %v7826_v30 }
 0xd75   : > { %v11232_v59 = vpop.permute.xlu0 %6098 }
 0xd76   : > { %13637 = vst [vmem:[#allocation585_spill] sm:$0xff] %v11232_v59  ;;  %v11234_v20 = vpop.permute.xlu1 %6096  ;;  %v11252_v59 = vmul.f32 %v7140_v21, %v7761_v27 }
 0xd77   : > { %13638 = vst [vmem:[#allocation586_spill] sm:$0xff] %v11234_v20  ;;  %v7141_v20 = vld [vmem:[#allocation2] sm:$0xff] }
 0xd79   : > { %v11238_v4 = vpop.permute.xlu0 %6102 }
 0xd7a   : > { %v11236_v43 = vpop.permute.xlu1 %6100  ;;  %13640 = vst [vmem:[#allocation588_spill] sm:$0xff] %v11238_v4  ;;  %v7142_v4 = vld [vmem:[#allocation2 + $0x8] sm:$0xff] }
 0xd7b   : > { %13639 = vst [vmem:[#allocation587_spill] sm:$0xff] %v11236_v43  ;;  %v1842_v43 = vmul.f32 %v7141_v20, %v7749_v2 }
 0xd7d   : > { %v11242_v50 = vpop.permute.xlu0 %6106  ;;  %v2086_v39 = vadd.f32 %v8352_v56, %v1842_v43  ;;  %v11369_v43 = vmul.f32 %v7161_v46, %v7758_v23 }
 0xd7e   : > { %v11240_v35 = vpop.permute.xlu1 %6104  ;;  %13642 = vst [vmem:[#allocation590_spill] sm:$0xff] %v11242_v50  ;;  %v11257_v50 = vmul.f32 %v7139_v36, %v7828_v31 }
 0xd7f   : > { %13641 = vst [vmem:[#allocation589_spill] sm:$0xff] %v11240_v35  ;;  %v1843_v35 = vmul.f32 %v7142_v4, %v7761_v27  ;;  %v7145_v4 = vld [vmem:[#allocation2 + $0x60] sm:$0xff]  ;;  %13661 = vst [vmem:[#allocation609_spill] sm:$0xff] %v11369_v43  ;;  %v7166_v43 = vld [vmem:[#allocation2 + $0xc8] sm:$0xff] }
 0xd80   : > { %v11274_v36 = vmul.f32 %v7145_v4, %v7749_v2  ;;  %v11280_v21 = vmul.f32 %v7145_v4, %v7828_v31  ;;  %v11297_v4 = vmul.f32 %v7146_v6, %v7826_v30  ;;  %v7153_v6 = vld [vmem:[#allocation2 + $0xa0] sm:$0xff] }
 0xd81   : > { %v11246_v54 = vpop.permute.xlu0 %6110  ;;  %v11315_v61 = vmul.f32 %v7153_v6, %v7749_v2 }
 0xd82   : > { %v11244_v15 = vpop.permute.xlu1 %6108  ;;  %13644 = vst [vmem:[#allocation592_spill] sm:$0xff] %v11246_v54 }
 0xd83   : > { %13643 = vst [vmem:[#allocation591_spill] sm:$0xff] %v11244_v15  ;;  %v7143_v15 = vld [vmem:[#allocation2 + $0x30] sm:$0xff]  ;;  %13649 = vst [vmem:[#allocation597_spill] sm:$0xff] %v11315_v61  ;;  %v11333_v61 = vmul.f32 %v7157_v37, %v7758_v23  ;;  %v2298_v37 = vadd.f32 %v8365_v22, %v2086_v39  ;;  %v11386_v22 = vmul.f32 %v7166_v43, %v7761_v27 }
 0xd84   : > { %v11260_v54 = vmul.f32 %v7143_v15, %v7754_v12  ;;  %v11269_v41 = vmul.f32 %v7143_v15, %v7832_v33  ;;  %v7147_v15 = vld [vmem:[#allocation2 + $0x10] sm:$0xff] }
 0xd85   : > { %v11285_v11 = vpop.permute.xlu0 %6114  ;;  %v11288_v45 = vmul.f32 %v7147_v15, %v7754_v12  ;;  %v11306_v15 = vmul.f32 %v7149_v17, %v7826_v30  ;;  %v7154_v17 = vld [vmem:[#allocation2 + $0xa8] sm:$0xff] }
 0xd86   : > { %v11271_v20 = vpop.permute.xlu1 %6112  ;;  %13646 = vst [vmem:[#allocation594_spill] sm:$0xff] %v11285_v11  ;;  %v11324_v14 = vmul.f32 %v7154_v17, %v7761_v27  ;;  %v11345_v7 = vmul.f32 %v7154_v17, %v7826_v30 }
 0xd87   : > { %13645 = vst [vmem:[#allocation593_spill] sm:$0xff] %v11271_v20  ;;  %v7148_v20 = vld [vmem:[#allocation2 + $0x40] sm:$0xff] }
 0xd88   : > { %v11291_v60 = vmul.f32 %v7148_v20, %v7749_v2  ;;  %v11303_v11 = vmul.f32 %v7148_v20, %v7828_v31  ;;  %v11321_v20 = vmul.f32 %v7151_v63, %v7830_v32  ;;  %13652 = vst [vmem:[#allocation600_spill] sm:$0xff] %v11324_v14  ;;  %v11336_v63 = vmul.f32 %v7158_v9, %v7761_v27 }
 0xd89   : > { %v11342_v14 = vmul.f32 %v7155_v42, %v7832_v33  ;;  %13655 = vst [vmem:[#allocation603_spill] sm:$0xff] %v11345_v7  ;;  %v2087_v42 = vadd.f32 %v8369_v16, %v1843_v35  ;;  %v7164_v35 = vld [vmem:[#allocation2 + $0xc0] sm:$0xff] }
 0xd8a   : > { %13651 = vst [vmem:[#allocation599_spill] sm:$0xff] %v11321_v20  ;;  %13653 = vst [vmem:[#allocation601_spill] sm:$0xff] %v11336_v63  ;;  %v11339_v20 = vmul.f32 %v7153_v6, %v7828_v31  ;;  %v11347_v18 = vpop.permute.xlu1 %6116  ;;  %v11357_v63 = vmul.f32 %v7158_v9, %v7826_v30  ;;  %v11359_v6 = vpop.permute.xlu0 %6118  ;;  %v7162_v9 = vld [vmem:[#allocation2 + $0xe8] sm:$0xff] }
 0xd8b   : > { %13656 = vst [vmem:[#allocation604_spill] sm:$0xff] %v11347_v18  ;;  %13658 = vst [vmem:[#allocation606_spill] sm:$0xff] %v11359_v6  ;;  %v7160_v18 = vld [vmem:[#allocation2 + $0xe0] sm:$0xff]  ;;  %v11373_v7 = vmul.f32 %v7162_v9, %v7761_v27  ;;  %v7163_v6 = vld [vmem:[#allocation2 + $0x90] sm:$0xff]  ;;  %v11406_v27 = vmul.f32 %v7164_v35, %v7828_v31 }
 0xd8c   : > { %13654 = vst [vmem:[#allocation602_spill] sm:$0xff] %v11339_v20  ;;  %13657 = vst [vmem:[#allocation605_spill] sm:$0xff] %v11357_v63  ;;  %v7159_v20 = vld [vmem:[#allocation2 + $0xb0] sm:$0xff]  ;;  %v11366_v56 = vmul.f32 %v7160_v18, %v7749_v2  ;;  %v11376_v16 = vmul.f32 %v7163_v6, %v7754_v12  ;;  %v11383_v63 = vmul.f32 %v7165_v24, %v7758_v23 }
 0xd8d   : > { %v11363_v17 = vmul.f32 %v7159_v20, %v7754_v12  ;;  %13662 = vst [vmem:[#allocation610_spill] sm:$0xff] %v11373_v7  ;;  %v11389_v39 = vmul.f32 %v7159_v20, %v7832_v33  ;;  %v2510_v7 = vadd.f32 %v8377_v19, %v2298_v37  ;;  %v11409_v20 = vmul.f32 %v7165_v24, %v7830_v32 }
 0xd8e   : > { %13660 = vst [vmem:[#allocation608_spill] sm:$0xff] %v11366_v56  ;;  %13663 = vst [vmem:[#allocation611_spill] sm:$0xff] %v11376_v16  ;;  %v2299_v56 = vadd.f32 %v8381_v53, %v2087_v42  ;;  %v11393_v16 = vmul.f32 %v7160_v18, %v7828_v31  ;;  %v11399_v53 = vmul.f32 %v7163_v6, %v7832_v33  ;;  %v11411_v19 = vpop.permute.xlu1 %6120  ;;  %v11422_v37 = vpop.permute.xlu0 %6122 }
 0xd8f   : > { %13659 = vst [vmem:[#allocation607_spill] sm:$0xff] %v11363_v17  ;;  %v11379_v17 = vmul.f32 %v7164_v35, %v7749_v2  ;;  %v11396_v2 = vmul.f32 %v7161_v46, %v7830_v32  ;;  %13665 = vst [vmem:[#allocation613_spill] sm:$0xff] %v11411_v19  ;;  %v2090_v18 = vadd.f32 %v8296_v52, %v11249_v47  ;;  %v7168_v35 = vld [vmem:[#allocation2 + $0xf8] sm:$0xff] }
 0xd90   : > { %v2511_v42 = vadd.f32 %v8391_v62, %v2299_v56  ;;  %v2722_v46 = vadd.f32 %v8387_v3, %v2510_v7  ;;  %v11417_v6 = vmul.f32 %v7166_v43, %v7826_v30  ;;  %v7167_v62 = vld [vmem:[#allocation2 + $0xf0] sm:$0xff]  ;;  %13667 = vst [vmem:[#allocation615_spill] sm:$0xff] %v11422_v37  ;;  %v2091_v24 = vadd.f32 %v8305_v57, %v11252_v59 }
 0xd91   : > { %13664 = vst [vmem:[#allocation612_spill] sm:$0xff] %v11379_v17  ;;  %v11403_v17 = vmul.f32 %v7162_v9, %v7826_v30  ;;  %v11420_v56 = vmul.f32 %v7167_v62, %v7754_v12  ;;  %v11428_v19 = vmul.f32 %v7168_v35, %v7758_v23  ;;  %v11431_v52 = vmul.f32 %v7167_v62, %v7832_v33  ;;  %v13670_v3 = vld [vmem:[#allocation8_spill] sm:$0xff]  ;;  %v13671_v7 = vld [vmem:[#allocation47_spill] sm:$0xff] }
 0xd92   : > { %v2723_v9 = vadd.f32 %v8401_v58, %v2511_v42  ;;  %v2302_v47 = vadd.f32 %v13670_v3, %v2090_v18  ;;  %v2088_v43 = vadd.f32 %v13671_v7, %v11288_v45  ;;  %v11440_v57 = vmul.f32 %v7168_v35, %v7830_v32  ;;  %v13674_v58 = vld [vmem:[#allocation10_spill] sm:$0xff]  ;;  %v7170_v42 = vld [vmem:[#allocation2 + $0xd8] sm:$0xff] }
 0xd93   : > { %13666 = vst [vmem:[#allocation614_spill] sm:$0xff] %v11420_v56  ;;  %13668 = vst [vmem:[#allocation616_spill] sm:$0xff] %v11428_v19  ;;  %v7169_v56 = vld [vmem:[#allocation2 + $0xd0] sm:$0xff]  ;;  %v2303_v59 = vadd.f32 %v13674_v58, %v2091_v24  ;;  %v11444_v19 = vmul.f32 %v7170_v42, %v7758_v23  ;;  %v7171_v18 = vld [vmem:[#allocation2 + $0x100] sm:$0xff] }
 0xd94   : > { %13669 = vst [vmem:[#allocation617_spill] sm:$0xff] %v11431_v52  ;;  %v11437_v37 = vmul.f32 %v7169_v56, %v7754_v12  ;;  %13673 = vst [vmem:[#allocation47_spill] sm:$0xff] %v11440_v57  ;;  %v11447_v62 = vmul.f32 %v7169_v56, %v7832_v33  ;;  %v11450_v3 = vmul.f32 %v7171_v18, %v7828_v31  ;;  %v13677_v45 = vld [vmem:[#allocation9_spill] sm:$0xff]  ;;  %v13679_v52 = vld [vmem:[#allocation51_spill] sm:$0xff]  ;;  %v11463_v31 = vpop.permute.xlu1 %6124 }
 0xd95   : > { %13675 = vst [vmem:[#allocation10_spill] sm:$0xff] %v11444_v19  ;;  %v2514_v7 = vadd.f32 %v13677_v45, %v2302_v47  ;;  %v2839_v12 = vadd.f32 %v11257_v50, %v2722_v46  ;;  %v13678_v35 = vld [vmem:[#allocation49_spill] sm:$0xff]  ;;  %v2300_v24 = vadd.f32 %v13679_v52, %v2088_v43  ;;  %v13680_v23 = vld [vmem:[#allocation12_spill] sm:$0xff]  ;;  %v2840_v56 = vadd.f32 %v11263_v49, %v2723_v9  ;;  %v13684_v18 = vld [vmem:[#allocation55_spill] sm:$0xff] }
 0xd96   : > { %13672 = vst [vmem:[#allocation8_spill] sm:$0xff] %v11437_v37  ;;  %13676 = vst [vmem:[#allocation618_spill] sm:$0xff] %v11447_v62  ;;  %v2094_v57 = vadd.f32 %v13678_v35, %v11291_v60  ;;  %v2515_v19 = vadd.f32 %v13680_v23, %v2303_v59  ;;  %v13681_v37 = vld [vmem:[#allocation50_spill] sm:$0xff]  ;;  %v13683_v50 = vld [vmem:[#allocation53_spill] sm:$0xff]  ;;  %v11470_v52 = vmul.f32 %v7170_v42, %v7830_v32 }
 0xd97   : > { %v2089_v62 = vadd.f32 %v13681_v37, %v11300_v55  ;;  %13682 = vst [vmem:[#allocation9_spill] sm:$0xff] %v11463_v31  ;;  %v2512_v60 = vadd.f32 %v13684_v18, %v2300_v24  ;;  %v7172_v43 = vld [vmem:[#allocation2 + $0x108] sm:$0xff]  ;;  %v7173_v23 = vld [vmem:[#allocation2 + $0x110] sm:$0xff]  ;;  %v13693_v18 = vld [vmem:[#allocation57_spill] sm:$0xff] }
 0xd98   : > { %v2306_v46 = vadd.f32 %v13683_v50, %v2094_v57  ;;  %13685 = vst [vmem:[#allocation49_spill] sm:$0xff] %v11470_v52  ;;  %v11473_v59 = vmul.f32 %v7172_v43, %v7826_v30  ;;  %v13687_v49 = vld [vmem:[#allocation11_spill] sm:$0xff]  ;;  %v13688_v45 = vld [vmem:[#allocation14_spill] sm:$0xff]  ;;  %v13691_v57 = vld [vmem:[#allocation13_spill] sm:$0xff] }
 0xd99   : > { %v2726_v9 = vadd.f32 %v13687_v49, %v2514_v7  ;;  %v2727_v55 = vadd.f32 %v13688_v45, %v2515_v19  ;;  %v13689_v37 = vld [vmem:[#allocation54_spill] sm:$0xff]  ;;  %v3051_v24 = vadd.f32 %v13691_v57, %v2839_v12  ;;  %v13692_v42 = vld [vmem:[#allocation20_spill] sm:$0xff]  ;;  %v13694_v43 = vld [vmem:[#allocation59_spill] sm:$0xff] }
 0xd9a   : > { %13686 = vst [vmem:[#allocation51_spill] sm:$0xff] %v11473_v59  ;;  %v2301_v35 = vadd.f32 %v13689_v37, %v2089_v62  ;;  %v2092_v50 = vadd.f32 %v13692_v42, %v11260_v54  ;;  %v2518_v30 = vadd.f32 %v13693_v18, %v2306_v46  ;;  %v2724_v31 = vadd.f32 %v13694_v43, %v2512_v60  ;;  %v13695_v19 = vld [vmem:[#allocation16_spill] sm:$0xff]  ;;  %v13696_v62 = vld [vmem:[#allocation21_spill] sm:$0xff]  ;;  %v13698_v54 = vld [vmem:[#allocation22_spill] sm:$0xff] }
 0xd9b   : > { %v3052_v49 = vadd.f32 %v13695_v19, %v2840_v56  ;;  %v2098_v45 = vadd.f32 %v13696_v62, %v11274_v36  ;;  %v13699_v46 = vld [vmem:[#allocation52_spill] sm:$0xff]  ;;  %v13700_v57 = vld [vmem:[#allocation61_spill] sm:$0xff]  ;;  %v13701_v18 = vld [vmem:[#allocation23_spill] sm:$0xff] }
 0xd9c   : > { %v2095_v60 = vadd.f32 %v13699_v46, %v11294_v34  ;;  %v2730_v42 = vadd.f32 %v13700_v57, %v2518_v30  ;;  %v2304_v36 = vadd.f32 %v13701_v18, %v2092_v50  ;;  %v13703_v19 = vld [vmem:[#allocation25_spill] sm:$0xff]  ;;  %v2841_v30 = vadd.f32 %v11269_v41, %v2724_v31  ;;  %v13707_v46 = vld [vmem:[#allocation15_spill] sm:$0xff]  ;;  %v13709_v18 = vld [vmem:[#allocation28_spill] sm:$0xff] }
 0xd9d   : > { %v2310_v62 = vadd.f32 %v13703_v19, %v2098_v45  ;;  %v3263_v57 = vadd.f32 %v13707_v46, %v3051_v24  ;;  %v13713_v31 = vld [vmem:[#allocation18_spill] sm:$0xff]  ;;  %v7191_v59 = vld [vmem:[#allocation2 + $0x50] sm:$0xff] }
 0xd9e   : > { %v11457_v58 = vpop.permute.xlu0 %6192  ;;  %v2847_v41 = vadd.f32 %v11280_v21, %v2730_v42  ;;  %v3264_v24 = vadd.f32 %v13713_v31, %v3052_v49  ;;  %v13720_v49 = vld [vmem:[#allocation34_spill] sm:$0xff] }
 0xd9f   : > { %v6210_v47 = vmul.f32 %v11457_v58, %v10866_v38  ;;  %v11479_v38 = vmul.f32 %v7173_v23, %v7832_v33  ;;  %v13697_v33 = vld [vmem:[#allocation58_spill] sm:$0xff] }
 0xda0   : > { %v2513_v37 = vadd.f32 %v13697_v33, %v2301_v35  ;;  %v13702_v35 = vld [vmem:[#allocation24_spill] sm:$0xff]  ;;  %v13704_v33 = vld [vmem:[#allocation62_spill] sm:$0xff] }
 0xda1   : > { %13690 = vst [vmem:[#allocation12_spill] sm:$0xff] %v11479_v38  ;;  %6274 = vrot.lane.b32.xlu0 %v6210_v47, %s13368_s25  ;;  %v2093_v47 = vadd.f32 %v13698_v54, %v11266_v29  ;;  %v2099_v43 = vadd.f32 %v13702_v35, %v11277_v48  ;;  %v13705_v29 = vld [vmem:[#allocation26_spill] sm:$0xff]  ;;  %v13706_v38 = vld [vmem:[#allocation56_spill] sm:$0xff]  ;;  %v13710_v35 = vld [vmem:[#allocation29_spill] sm:$0xff] }
 0xda2   : > { %v11487_v7 = vpop.permute.xlu0 %6202  ;;  %v2307_v34 = vadd.f32 %v13706_v38, %v2095_v60  ;;  %v2522_v45 = vadd.f32 %v13710_v35, %v2310_v62  ;;  %v13712_v38 = vld [vmem:[#allocation60_spill] sm:$0xff] }
 0xda3   : > { %v11493_v23 = vpop.permute.xlu1 %6197  ;;  %v6212_v12 = vmul.f32 %v11487_v7, %v10875_v26  ;;  %v2725_v26 = vadd.f32 %v13704_v33, %v2513_v37  ;;  %v2305_v54 = vadd.f32 %v13705_v29, %v2093_v47  ;;  %v2311_v48 = vadd.f32 %v13709_v18, %v2099_v43  ;;  %v13716_v43 = vld [vmem:[#allocation33_spill] sm:$0xff]  ;;  %v13718_v18 = vld [vmem:[#allocation64_spill] sm:$0xff] }
 0xda4   : > { %v6211_v56 = vmul.f32 %v11493_v23, %v10881_v28  ;;  %v13708_v28 = vld [vmem:[#allocation27_spill] sm:$0xff]  ;;  %v6214_v37 = vmul.f32 %v11457_v58, %v10887_v51  ;;  %v2519_v60 = vadd.f32 %v13712_v38, %v2307_v34  ;;  %v2734_v46 = vadd.f32 %v13716_v43, %v2522_v45  ;;  %v7174_v35 = vld [vmem:[#allocation2 + $0x118] sm:$0xff] }
 0xda5   : > { %6278 = vrot.lane.b32.xlu0 %v6212_v12, %s13368_s25  ;;  %v2516_v50 = vadd.f32 %v13708_v28, %v2304_v36  ;;  %v13711_v12 = vld [vmem:[#allocation30_spill] sm:$0xff]  ;;  %v13715_v36 = vld [vmem:[#allocation32_spill] sm:$0xff]  ;;  %v2842_v62 = vadd.f32 %v11283_v40, %v2725_v26  ;;  %v13717_v28 = vld [vmem:[#allocation35_spill] sm:$0xff]  ;;  %v11535_v21 = vmul.f32 %v7174_v35, %v7830_v32  ;;  %v2844_v45 = vadd.f32 %v11306_v15, %v2727_v55 }
 0xda6   : > { %6276 = vrot.lane.b32.xlu1 %v6211_v56, %s13368_s25  ;;  %v2517_v47 = vadd.f32 %v13711_v12, %v2305_v54  ;;  %v13714_v56 = vld [vmem:[#allocation31_spill] sm:$0xff]  ;;  %v2523_v29 = vadd.f32 %v13715_v36, %v2311_v48  ;;  %v3053_v51 = vadd.f32 %v13717_v28, %v2841_v30  ;;  %v2843_v54 = vadd.f32 %v11303_v11, %v2726_v9  ;;  %v13722_v26 = vld [vmem:[#allocation37_spill] sm:$0xff]  ;;  %v13734_v28 = vld [vmem:[#allocation520_spill] sm:$0xff] }
 0xda7   : > { %v11518_v19 = vpop.permute.xlu1 %6404  ;;  %v2728_v33 = vadd.f32 %v13714_v56, %v2516_v50  ;;  %v2731_v34 = vadd.f32 %v13718_v18, %v2519_v60  ;;  %13719 = vst [vmem:[#allocation50_spill] sm:$0xff] %v11535_v21  ;;  %v13721_v50 = vld [vmem:[#allocation36_spill] sm:$0xff]  ;;  %v6216_v40 = vmul.f32 %v11487_v7, %v10899_v25  ;;  %v3059_v30 = vadd.f32 %v13722_v26, %v2847_v41  ;;  %v13723_v11 = vld [vmem:[#allocation97_spill] sm:$0xff]  ;;  %v13726_v25 = vld [vmem:[#allocation19_spill] sm:$0xff] }
 0xda8   : > { %v2729_v42 = vadd.f32 %v13720_v49, %v2517_v47  ;;  %v2735_v48 = vadd.f32 %v13721_v50, %v2523_v29  ;;  %v2096_v9 = vadd.f32 %v13723_v11, %v11327_v8  ;;  %v13725_v47 = vld [vmem:[#allocation38_spill] sm:$0xff]  ;;  %v11557_v55 = vadd.f32 %v11351_v5, %v2734_v46  ;;  %v13727_v41 = vld [vmem:[#allocation39_spill] sm:$0xff]  ;;  %v13730_v29 = vld [vmem:[#allocation521_spill] sm:$0xff] }
 0xda9   : > { %6282 = vrot.lane.b32.xlu0 %v6214_v37, %s13368_s25  ;;  %v13724_v37 = vld [vmem:[#allocation17_spill] sm:$0xff]  ;;  %v3054_v60 = vadd.f32 %v13725_v47, %v2842_v62  ;;  %v11554_v15 = vadd.f32 %v11342_v14, %v2728_v33  ;;  %v11560_v31 = vadd.f32 %v13726_v25, %v3264_v24  ;;  %v2848_v8 = vadd.f32 %v11297_v4, %v2731_v34  ;;  %v13728_v14 = vld [vmem:[#allocation99_spill] sm:$0xff]  ;;  %v13738_v49 = vld [vmem:[#allocation102_spill] sm:$0xff] }
 0xdaa   : > { %v11548_v38 = vadd.f32 %v13724_v37, %v3263_v57  ;;  %v2102_v57 = vadd.f32 %v8821_v13, %v11330_v44  ;;  %v3265_v56 = vadd.f32 %v13727_v41, %v3053_v51  ;;  %v2097_v5 = vadd.f32 %v13728_v14, %v11333_v61  ;;  %v13729_v24 = vld [vmem:[#allocation605_spill] sm:$0xff]  ;;  %v13732_v44 = vld [vmem:[#allocation103_spill] sm:$0xff]  ;;  %v13739_v50 = vld [vmem:[#allocation42_spill] sm:$0xff] }
 0xdab   : > { %v11540_v12 = vpop.permute.xlu1 %6207  ;;  %v11572_v33 = vadd.f32 %v11354_v0, %v2729_v42  ;;  %v11575_v36 = vadd.f32 %v13729_v24, %v2735_v48  ;;  %v6218_v4 = vmul.f32 %v11457_v58, %v13730_v29  ;;  %v13731_v43 = vld [vmem:[#allocation101_spill] sm:$0xff]  ;;  %v6215_v51 = vmul.f32 %v11493_v23, %v13734_v28  ;;  %v13735_v18 = vld [vmem:[#allocation63_spill] sm:$0xff]  ;;  %v13737_v0 = vld [vmem:[#allocation100_spill] sm:$0xff] }
 0xdac   : > { %v6213_v32 = vmul.f32 %v11540_v12, %v10893_v1  ;;  %v2308_v1 = vadd.f32 %v8831_v10, %v2096_v9  ;;  %v2314_v13 = vadd.f32 %v13731_v43, %v2102_v57  ;;  %v13733_v46 = vld [vmem:[#allocation41_spill] sm:$0xff]  ;;  %v3055_v61 = vadd.f32 %v13735_v18, %v2843_v54  ;;  %v13742_v37 = vld [vmem:[#allocation107_spill] sm:$0xff]  ;;  %v13745_v57 = vld [vmem:[#allocation104_spill] sm:$0xff] }
 0xdad   : > { %6286 = vrot.lane.b32.xlu0 %v6216_v40, %s13368_s25  ;;  %v3271_v62 = vadd.f32 %v13733_v46, %v3059_v30  ;;  %v13736_v34 = vld [vmem:[#allocation601_spill] sm:$0xff]  ;;  %v2309_v42 = vadd.f32 %v13738_v49, %v2097_v5  ;;  %v3266_v48 = vadd.f32 %v13739_v50, %v3054_v60  ;;  %v13740_v40 = vld [vmem:[#allocation40_spill] sm:$0xff]  ;;  %v13746_v41 = vld [vmem:[#allocation106_spill] sm:$0xff] }
 0xdae   : > { %6280 = vrot.lane.b32.xlu1 %v6213_v32, %s13368_s25  ;;  %v2520_v10 = vadd.f32 %v13732_v44, %v2308_v1  ;;  %v2103_v35 = vadd.f32 %v13737_v0, %v13736_v34  ;;  %v3060_v26 = vadd.f32 %v13740_v40, %v2848_v8  ;;  %v13741_v11 = vld [vmem:[#allocation105_spill] sm:$0xff]  ;;  %v13743_v32 = vld [vmem:[#allocation43_spill] sm:$0xff]  ;;  %v13748_v24 = vld [vmem:[#allocation66_spill] sm:$0xff] }
 0xdaf   : > { %v2526_v9 = vadd.f32 %v13741_v11, %v2314_v13  ;;  %v11594_v47 = vadd.f32 %v13743_v32, %v3265_v56  ;;  %v13744_v54 = vld [vmem:[#allocation65_spill] sm:$0xff]  ;;  %v2521_v14 = vadd.f32 %v13746_v41, %v2309_v42  ;;  %v13747_v60 = vld [vmem:[#allocation523_spill] sm:$0xff]  ;;  %v3056_v8 = vadd.f32 %v13748_v24, %v2844_v45  ;;  %v13751_v56 = vld [vmem:[#allocation522_spill] sm:$0xff] }
 0xdb0   : > { %v2732_v30 = vadd.f32 %v13742_v37, %v2520_v10  ;;  %v3267_v25 = vadd.f32 %v13744_v54, %v3055_v61  ;;  %v2315_v1 = vadd.f32 %v13745_v57, %v2103_v35  ;;  %v6220_v5 = vmul.f32 %v11487_v7, %v13747_v60  ;;  %v13749_v29 = vld [vmem:[#allocation109_spill] sm:$0xff]  ;;  %v13752_v10 = vld [vmem:[#allocation596_spill] sm:$0xff]  ;;  %v13755_v61 = vld [vmem:[#allocation110_spill] sm:$0xff] }
 0xdb1   : > { %6290 = vrot.lane.b32.xlu0 %v6218_v4, %s13368_s25  ;;  %v2738_v4 = vadd.f32 %v13749_v29, %v2526_v9  ;;  %v13750_v43 = vld [vmem:[#allocation45_spill] sm:$0xff]  ;;  %v6217_v44 = vmul.f32 %v11540_v12, %v13751_v56  ;;  %v2733_v34 = vadd.f32 %v13755_v61, %v2521_v14  ;;  %v13756_v0 = vld [vmem:[#allocation46_spill] sm:$0xff]  ;;  %v13758_v49 = vld [vmem:[#allocation71_spill] sm:$0xff] }
 0xdb2   : > { %6284 = vrot.lane.b32.xlu1 %v6215_v51, %s13368_s25  ;;  %v11605_v13 = vadd.f32 %v13750_v43, %v3271_v62  ;;  %v13753_v46 = vld [vmem:[#allocation69_spill] sm:$0xff]  ;;  %v13754_v51 = vld [vmem:[#allocation108_spill] sm:$0xff]  ;;  %v11614_v35 = vadd.f32 %v13756_v0, %v3266_v48  ;;  %v13759_v62 = vld [vmem:[#allocation595_spill] sm:$0xff] }
 0xdb3   : > { %v2100_v28 = vadd.f32 %v13753_v46, %v13752_v10  ;;  %v2527_v18 = vadd.f32 %v13754_v51, %v2315_v1  ;;  %v13757_v45 = vld [vmem:[#allocation597_spill] sm:$0xff]  ;;  %v13760_v50 = vld [vmem:[#allocation72_spill] sm:$0xff]  ;;  %v13761_v11 = vld [vmem:[#allocation598_spill] sm:$0xff] }
 0xdb4   : > { %v2106_v42 = vadd.f32 %v13758_v49, %v13757_v45  ;;  %v2101_v40 = vadd.f32 %v13760_v50, %v13759_v62  ;;  %v2849_v9 = vadd.f32 %v13761_v11, %v2732_v30  ;;  %v13762_v37 = vld [vmem:[#allocation44_spill] sm:$0xff]  ;;  %v13763_v54 = vld [vmem:[#allocation73_spill] sm:$0xff]  ;;  %v13765_v41 = vld [vmem:[#allocation74_spill] sm:$0xff] }
 0xdb5   : > { %6294 = vrot.lane.b32.xlu0 %v6220_v5, %s13368_s25  ;;  %v3272_v32 = vadd.f32 %v13762_v37, %v3060_v26  ;;  %v2312_v57 = vadd.f32 %v13763_v54, %v2100_v28  ;;  %v13764_v1 = vld [vmem:[#allocation600_spill] sm:$0xff]  ;;  %v13767_v5 = vld [vmem:[#allocation525_spill] sm:$0xff]  ;;  %v13768_v29 = vld [vmem:[#allocation75_spill] sm:$0xff] }
 0xdb6   : > { %6288 = vrot.lane.b32.xlu1 %v6217_v44, %s13368_s25  ;;  %v2107_v48 = vadd.f32 %v13765_v41, %v13764_v1  ;;  %v13766_v14 = vld [vmem:[#allocation112_spill] sm:$0xff]  ;;  %v6222_v24 = vmul.f32 %v11457_v58, %v13767_v5  ;;  %v2318_v43 = vadd.f32 %v13768_v29, %v2106_v42  ;;  %v13770_v46 = vld [vmem:[#allocation602_spill] sm:$0xff]  ;;  %v13772_v44 = vld [vmem:[#allocation67_spill] sm:$0xff] }
 0xdb7   : > { %v2739_v60 = vadd.f32 %v13766_v14, %v2527_v18  ;;  %v13769_v56 = vld [vmem:[#allocation76_spill] sm:$0xff]  ;;  %v2855_v30 = vadd.f32 %v13770_v46, %v2738_v4  ;;  %v11636_v61 = vadd.f32 %v13772_v44, %v3267_v25  ;;  %v13774_v45 = vld [vmem:[#allocation77_spill] sm:$0xff]  ;;  %v13775_v18 = vld [vmem:[#allocation599_spill] sm:$0xff] }
 0xdb8   : > { %v2313_v10 = vadd.f32 %v13769_v56, %v2101_v40  ;;  %v13771_v51 = vld [vmem:[#allocation524_spill] sm:$0xff]  ;;  %v2524_v49 = vadd.f32 %v13774_v45, %v2312_v57  ;;  %v2850_v62 = vadd.f32 %v13775_v18, %v2733_v34  ;;  %v13776_v50 = vld [vmem:[#allocation78_spill] sm:$0xff]  ;;  %v13777_v11 = vld [vmem:[#allocation79_spill] sm:$0xff] }
 0xdb9   : > { %v6219_v26 = vmul.f32 %v11493_v23, %v13771_v51  ;;  %v13773_v28 = vld [vmem:[#allocation68_spill] sm:$0xff]  ;;  %6298 = vrot.lane.b32.xlu0 %v6222_v24, %s13368_s25  ;;  %v2319_v42 = vadd.f32 %v13776_v50, %v2107_v48  ;;  %v2530_v40 = vadd.f32 %v13777_v11, %v2318_v43  ;;  %v13779_v54 = vld [vmem:[#allocation85_spill] sm:$0xff]  ;;  %v13781_v14 = vld [vmem:[#allocation603_spill] sm:$0xff] }
 0xdba   : > { %v3268_v0 = vadd.f32 %v13773_v28, %v3056_v8  ;;  %v13778_v37 = vld [vmem:[#allocation80_spill] sm:$0xff]  ;;  %v3061_v1 = vadd.f32 %v13779_v54, %v2849_v9  ;;  %v13780_v25 = vld [vmem:[#allocation81_spill] sm:$0xff]  ;;  %v2856_v8 = vadd.f32 %v13781_v14, %v2739_v60  ;;  %v13782_v5 = vld [vmem:[#allocation611_spill] sm:$0xff] }
 0xdbb   : > { %v2525_v4 = vadd.f32 %v13778_v37, %v2313_v10  ;;  %6292 = vrot.lane.b32.xlu1 %v6219_v26, %s13368_s25  ;;  %v2736_v41 = vadd.f32 %v13780_v25, %v2524_v49  ;;  %v13783_v57 = vld [vmem:[#allocation149_spill] sm:$0xff]  ;;  %v13784_v34 = vld [vmem:[#allocation527_spill] sm:$0xff]  ;;  %v13785_v56 = vld [vmem:[#allocation82_spill] sm:$0xff] }
 0xdbc   : > { %v2104_v29 = vadd.f32 %v13783_v57, %v13782_v5  ;;  %v6224_v24 = vmul.f32 %v11487_v7, %v13784_v34  ;;  %v2531_v48 = vadd.f32 %v13785_v56, %v2319_v42  ;;  %v13786_v46 = vld [vmem:[#allocation83_spill] sm:$0xff]  ;;  %v13788_v44 = vld [vmem:[#allocation526_spill] sm:$0xff]  ;;  %v13789_v26 = vld [vmem:[#allocation84_spill] sm:$0xff] }
 0xdbd   : > { %v2742_v43 = vadd.f32 %v13786_v46, %v2530_v40  ;;  %v13787_v51 = vld [vmem:[#allocation87_spill] sm:$0xff]  ;;  %v6221_v9 = vmul.f32 %v11540_v12, %v13788_v44  ;;  %v2737_v28 = vadd.f32 %v13789_v26, %v2525_v4  ;;  %v13790_v45 = vld [vmem:[#allocation88_spill] sm:$0xff]  ;;  %v13792_v50 = vld [vmem:[#allocation153_spill] sm:$0xff] }
 0xdbe   : > { %v3067_v10 = vadd.f32 %v13787_v51, %v2855_v30  ;;  %v3062_v49 = vadd.f32 %v13790_v45, %v2850_v62  ;;  %v13791_v60 = vld [vmem:[#allocation152_spill] sm:$0xff]  ;;  %v2316_v11 = vadd.f32 %v13792_v50, %v2104_v29  ;;  %6302 = vrot.lane.b32.xlu0 %v6224_v24, %s13368_s25  ;;  %v13793_v37 = vld [vmem:[#allocation70_spill] sm:$0xff]  ;;  %v13795_v30 = vld [vmem:[#allocation89_spill] sm:$0xff] }
 0xdbf   : > { %v2105_v18 = vadd.f32 %v13791_v60, %v11383_v63  ;;  %v11665_v42 = vadd.f32 %v13793_v37, %v3268_v0  ;;  %v13794_v40 = vld [vmem:[#allocation86_spill] sm:$0xff]  ;;  %v3273_v25 = vadd.f32 %v13795_v30, %v3061_v1  ;;  %v13796_v14 = vld [vmem:[#allocation48_spill] sm:$0xff]  ;;  %6296 = vrot.lane.b32.xlu1 %v6221_v9, %s13368_s25  ;;  %v13799_v34 = vld [vmem:[#allocation157_spill] sm:$0xff]  ;;  %v11679_v0 = vadd.f32 %v11399_v53, %v2736_v41 }
 0xdc0   : > { %v2743_v54 = vadd.f32 %v13794_v40, %v2531_v48  ;;  %v11670_v5 = vadd.f32 %v13796_v14, %v3272_v32  ;;  %v13797_v62 = vld [vmem:[#allocation90_spill] sm:$0xff]  ;;  %v13798_v57 = vld [vmem:[#allocation156_spill] sm:$0xff]  ;;  %v2528_v29 = vadd.f32 %v13799_v34, %v2316_v11  ;;  %v13800_v56 = vld [vmem:[#allocation529_spill] sm:$0xff]  ;;  %v11682_v48 = vadd.f32 %v11406_v27, %v2742_v43 }
 0xdc1   : > { %v3068_v4 = vadd.f32 %v13797_v62, %v2856_v8  ;;  %v2317_v63 = vadd.f32 %v13798_v57, %v2105_v18  ;;  %v6226_v24 = vmul.f32 %v11457_v58, %v13800_v56  ;;  %v13801_v1 = vld [vmem:[#allocation91_spill] sm:$0xff]  ;;  %v13802_v46 = vld [vmem:[#allocation528_spill] sm:$0xff]  ;;  %v13804_v9 = vld [vmem:[#allocation161_spill] sm:$0xff]  ;;  %v11690_v45 = vadd.f32 %v11409_v20, %v2737_v28 }
 0xdc2   : > { %v3279_v32 = vadd.f32 %v13801_v1, %v3067_v10  ;;  %v6223_v51 = vmul.f32 %v11493_v23, %v13802_v46  ;;  %v13803_v44 = vld [vmem:[#allocation160_spill] sm:$0xff]  ;;  %v2740_v26 = vadd.f32 %v13804_v9, %v2528_v29  ;;  %v13806_v53 = vld [vmem:[#allocation111_spill] sm:$0xff]  ;;  %v13807_v41 = vld [vmem:[#allocation113_spill] sm:$0xff]  ;;  %v11699_v10 = vadd.f32 %v11417_v6, %v2743_v54 }
 0xdc3   : > { %v2529_v8 = vadd.f32 %v13803_v44, %v2317_v63  ;;  %v13805_v60 = vld [vmem:[#allocation92_spill] sm:$0xff]  ;;  %6306 = vrot.lane.b32.xlu0 %v6226_v24, %s13368_s25  ;;  %v3057_v27 = vadd.f32 %v13806_v53, %v11554_v15  ;;  %v3063_v43 = vadd.f32 %v13807_v41, %v11557_v55  ;;  %v13808_v50 = vld [vmem:[#allocation93_spill] sm:$0xff]  ;;  %v13810_v28 = vld [vmem:[#allocation151_spill] sm:$0xff] }
 0xdc4   : > { %v3274_v18 = vadd.f32 %v13805_v60, %v3062_v49  ;;  %v11702_v11 = vadd.f32 %v13808_v50, %v3273_v25  ;;  %6300 = vrot.lane.b32.xlu1 %v6223_v51, %s13368_s25  ;;  %v13809_v20 = vld [vmem:[#allocation612_spill] sm:$0xff]  ;;  %v13812_v30 = vld [vmem:[#allocation94_spill] sm:$0xff]  ;;  %v13813_v62 = vld [vmem:[#allocation531_spill] sm:$0xff] }
 0xdc5   : > { %v2110_v37 = vadd.f32 %v13810_v28, %v13809_v20  ;;  %v13811_v49 = vld [vmem:[#allocation164_spill] sm:$0xff]  ;;  %v3280_v14 = vadd.f32 %v13812_v30, %v3068_v4  ;;  %v6228_v15 = vmul.f32 %v11487_v7, %v13813_v62  ;;  %v13814_v55 = vld [vmem:[#allocation114_spill] sm:$0xff]  ;;  %v13816_v25 = vld [vmem:[#allocation95_spill] sm:$0xff]  ;;  %v2857_v4 = vadd.f32 %v11389_v39, %v2740_v26 }
 0xdc6   : > { %v2741_v40 = vadd.f32 %v13811_v49, %v2529_v8  ;;  %v3058_v57 = vadd.f32 %v13814_v55, %v11572_v33  ;;  %v13815_v6 = vld [vmem:[#allocation154_spill] sm:$0xff]  ;;  %v11716_v63 = vadd.f32 %v13816_v25, %v3279_v32  ;;  %v13818_v56 = vld [vmem:[#allocation115_spill] sm:$0xff]  ;;  %v13820_v51 = vld [vmem:[#allocation96_spill] sm:$0xff] }
 0xdc7   : > { %v2111_v54 = vadd.f32 %v13815_v6, %v11386_v22  ;;  %v13817_v34 = vld [vmem:[#allocation530_spill] sm:$0xff]  ;;  %v3269_v24 = vadd.f32 %v13818_v56, %v3057_v27  ;;  %v13819_v1 = vld [vmem:[#allocation155_spill] sm:$0xff]  ;;  %v11724_v44 = vadd.f32 %v13820_v51, %v3274_v18  ;;  %6310 = vrot.lane.b32.xlu0 %v6228_v15, %s13368_s25  ;;  %v13821_v33 = vld [vmem:[#allocation116_spill] sm:$0xff] }
 0xdc8   : > { %v6225_v29 = vmul.f32 %v11540_v12, %v13817_v34  ;;  %v2322_v46 = vadd.f32 %v13819_v1, %v2110_v37  ;;  %v3064_v22 = vadd.f32 %v13821_v33, %v11575_v36  ;;  %v13822_v8 = vld [vmem:[#allocation607_spill] sm:$0xff]  ;;  %v13824_v60 = vld [vmem:[#allocation608_spill] sm:$0xff]  ;;  %v13825_v53 = vld [vmem:[#allocation125_spill] sm:$0xff]  ;;  %v2858_v26 = vadd.f32 %v11396_v2, %v2741_v40 }
 0xdc9   : > { %v13823_v32 = vld [vmem:[#allocation123_spill] sm:$0xff]  ;;  %v2114_v41 = vadd.f32 %v13825_v53, %v13824_v60  ;;  %v13826_v50 = vld [vmem:[#allocation158_spill] sm:$0xff]  ;;  %v13829_v37 = vld [vmem:[#allocation533_spill] sm:$0xff] }
 0xdca   : > { %v2108_v9 = vadd.f32 %v13823_v32, %v13822_v8  ;;  %v2323_v27 = vadd.f32 %v13826_v50, %v2111_v54  ;;  %6304 = vrot.lane.b32.xlu1 %v6225_v29, %s13368_s25  ;;  %v13827_v20 = vld [vmem:[#allocation159_spill] sm:$0xff]  ;;  %v13828_v18 = vld [vmem:[#allocation98_spill] sm:$0xff]  ;;  %v6230_v36 = vmul.f32 %v11457_v58, %v13829_v37  ;;  %v13831_v62 = vld [vmem:[#allocation129_spill] sm:$0xff] }
 0xdcb   : > { %v2534_v39 = vadd.f32 %v13827_v20, %v2322_v46  ;;  %v11738_v28 = vadd.f32 %v13828_v18, %v3280_v14  ;;  %v13830_v49 = vld [vmem:[#allocation127_spill] sm:$0xff]  ;;  %v2326_v15 = vadd.f32 %v13831_v62, %v2114_v41  ;;  %v13832_v55 = vld [vmem:[#allocation162_spill] sm:$0xff]  ;;  %v13833_v25 = vld [vmem:[#allocation532_spill] sm:$0xff] }
 0xdcc   : > { %v2320_v30 = vadd.f32 %v13830_v49, %v2108_v9  ;;  %v2535_v6 = vadd.f32 %v13832_v55, %v2323_v27  ;;  %v6227_v54 = vmul.f32 %v11493_v23, %v13833_v25  ;;  %v13834_v34 = vld [vmem:[#allocation117_spill] sm:$0xff]  ;;  %v13835_v56 = vld [vmem:[#allocation118_spill] sm:$0xff]  ;;  %v13836_v2 = vld [vmem:[#allocation139_spill] sm:$0xff]  ;;  %6314 = vrot.lane.b32.xlu0 %v6230_v36, %s13368_s25 }
 0xdcd   : > { %v3275_v29 = vadd.f32 %v13834_v34, %v3063_v43  ;;  %v3270_v1 = vadd.f32 %v13835_v56, %v3058_v57  ;;  %v3069_v40 = vadd.f32 %v13836_v2, %v2857_v4  ;;  %v13837_v14 = vld [vmem:[#allocation163_spill] sm:$0xff]  ;;  %v13838_v51 = vld [vmem:[#allocation609_spill] sm:$0xff]  ;;  %v13839_v33 = vld [vmem:[#allocation126_spill] sm:$0xff] }
 0xdce   : > { %v2746_v46 = vadd.f32 %v13837_v14, %v2534_v39  ;;  %v2109_v8 = vadd.f32 %v13839_v33, %v13838_v51  ;;  %v13840_v32 = vld [vmem:[#allocation131_spill] sm:$0xff]  ;;  %v13841_v60 = vld [vmem:[#allocation133_spill] sm:$0xff]  ;;  %v13842_v41 = vld [vmem:[#allocation166_spill] sm:$0xff]  ;;  %6308 = vrot.lane.b32.xlu1 %v6227_v54, %s13368_s25 }
 0xdcf   : > { %v2532_v9 = vadd.f32 %v13840_v32, %v2320_v30  ;;  %v2538_v53 = vadd.f32 %v13841_v60, %v2326_v15  ;;  %v2747_v50 = vadd.f32 %v13842_v41, %v2535_v6  ;;  %v13843_v43 = vld [vmem:[#allocation119_spill] sm:$0xff]  ;;  %v13844_v57 = vld [vmem:[#allocation610_spill] sm:$0xff]  ;;  %v13845_v4 = vld [vmem:[#allocation128_spill] sm:$0xff] }
 0xdd0   : > { %v11759_v27 = vadd.f32 %v13843_v43, %v3269_v24  ;;  %v2115_v20 = vadd.f32 %v13845_v4, %v13844_v57  ;;  %v13846_v39 = vld [vmem:[#allocation142_spill] sm:$0xff]  ;;  %v13848_v62 = vld [vmem:[#allocation135_spill] sm:$0xff]  ;;  %v13849_v55 = vld [vmem:[#allocation137_spill] sm:$0xff]  ;;  %v11786_v43 = vpop.permute.xlu0 %6409 }
 0xdd1   : > { %v3070_v18 = vadd.f32 %v13846_v39, %v2858_v26  ;;  %v11764_v37 = vld [vmem:[#allocation2 + $0x80] sm:$0xff]  ;;  %v2744_v15 = vadd.f32 %v13848_v62, %v2532_v9  ;;  %v2750_v6 = vadd.f32 %v13849_v55, %v2538_v53  ;;  %v13851_v54 = vld [vmem:[#allocation120_spill] sm:$0xff]  ;;  %v2863_v26 = vadd.f32 %v11393_v16, %v2746_v46  ;;  %v13853_v14 = vld [vmem:[#allocation143_spill] sm:$0xff] }
 0xdd2   : > { %v6422_v36 = vmul.f32 %v11764_v37, %v11518_v19  ;;  %v13847_v49 = vld [vmem:[#allocation130_spill] sm:$0xff]  ;;  %v3276_v34 = vadd.f32 %v13851_v54, %v3064_v22  ;;  %v13852_v56 = vld [vmem:[#allocation132_spill] sm:$0xff]  ;;  %v3281_v51 = vadd.f32 %v13853_v14, %v3069_v40  ;;  %v13854_v33 = vld [vmem:[#allocation121_spill] sm:$0xff]  ;;  %v2864_v41 = vadd.f32 %v11403_v17, %v2747_v50 }
 0xdd3   : > { %v2321_v30 = vadd.f32 %v13847_v49, %v2109_v8  ;;  %v13850_v25 = vld [vmem:[#allocation534_spill] sm:$0xff]  ;;  %v2327_v2 = vadd.f32 %v13852_v56, %v2115_v20  ;;  %v11779_v32 = vadd.f32 %v13854_v33, %v3275_v29  ;;  %v13857_v22 = vld [vmem:[#allocation124_spill] sm:$0xff]  ;;  %v13866_v49 = vld [vmem:[#allocation535_spill] sm:$0xff] }
 0xdd4   : > { %v6229_v24 = vmul.f32 %v11540_v12, %v13850_v25  ;;  %6486 = vrot.lane.b32.xlu0 %v6422_v36, %s13401_s24  ;;  %v13855_v8 = vld [vmem:[#allocation122_spill] sm:$0xff]  ;;  %v11790_v16 = vadd.f32 %v13857_v22, %v3276_v34  ;;  %v13858_v40 = vld [vmem:[#allocation136_spill] sm:$0xff]  ;;  %v11805_v36 = vadd.f32 %v11450_v3, %v2750_v6  ;;  %v13872_v34 = vld [vmem:[#allocation147_spill] sm:$0xff] }
 0xdd5   : > { %v11782_v9 = vadd.f32 %v13855_v8, %v3270_v1  ;;  %v13856_v60 = vld [vmem:[#allocation134_spill] sm:$0xff]  ;;  %v2539_v46 = vadd.f32 %v13858_v40, %v2327_v2  ;;  %v13867_v62 = vld [vmem:[#allocation140_spill] sm:$0xff]  ;;  %v11818_v56 = vadd.f32 %v13872_v34, %v3281_v51  ;;  %v13873_v3 = vld [vmem:[#allocation167_spill] sm:$0xff] }
 0xdd6   : > { %v2533_v53 = vadd.f32 %v13856_v60, %v2321_v30  ;;  %6312 = vrot.lane.b32.xlu1 %v6229_v24, %s13368_s25  ;;  %v13859_v57 = vld [vmem:[#allocation146_spill] sm:$0xff]  ;;  %13865 = vst [vmem:[#allocation14_spill] sm:$0xff] %v11805_v36  ;;  %v6231_v30 = vmul.f32 %v11493_v23, %v13866_v49  ;;  %v13870_v24 = vld [vmem:[#allocation141_spill] sm:$0xff]  ;;  %v13874_v6 = vld [vmem:[#allocation168_spill] sm:$0xff] }
 0xdd7   : > { %v3282_v4 = vadd.f32 %v13859_v57, %v3070_v18  ;;  %v11794_v29 = vld [vmem:[#allocation2 + $0xa0] sm:$0xff]  ;;  %v11810_v55 = vadd.f32 %v13867_v62, %v2539_v46  ;;  %v11815_v54 = vadd.f32 %v13870_v24, %v2863_v26  ;;  %v3066_v2 = vadd.f32 %v13874_v6, %v11690_v45  ;;  %v13875_v14 = vld [vmem:[#allocation8_spill] sm:$0xff]  ;;  %v13876_v33 = vld [vmem:[#allocation187_spill] sm:$0xff] }
 0xdd8   : > { %13860 = vst [vmem:[#allocation53_spill] sm:$0xff] %v11794_v29  ;;  %v6426_v1 = vmul.f32 %v11794_v29, %v11518_v19  ;;  %v13861_v20 = vld [vmem:[#allocation138_spill] sm:$0xff]  ;;  %v13869_v18 = vld [vmem:[#allocation165_spill] sm:$0xff]  ;;  %v2112_v8 = vadd.f32 %v13876_v33, %v13875_v14  ;;  %v13877_v60 = vld [vmem:[#allocation144_spill] sm:$0xff] }
 0xdd9   : > { %v11799_v39 = vadd.f32 %v13861_v20, %v2533_v53  ;;  %v13863_v17 = vld [vmem:[#allocation618_spill] sm:$0xff]  ;;  %13868 = vst [vmem:[#allocation54_spill] sm:$0xff] %v11810_v55  ;;  %v3065_v25 = vadd.f32 %v13869_v18, %v11679_v0  ;;  %13871 = vst [vmem:[#allocation13_spill] sm:$0xff] %v11815_v54  ;;  %v11828_v53 = vadd.f32 %v13877_v60, %v2864_v41  ;;  %v13879_v0 = vld [vmem:[#allocation169_spill] sm:$0xff]  ;;  %v11846_v18 = vpop.permute.xlu0 %6414 }
 0xdda   : > { %v11802_v50 = vadd.f32 %v13863_v17, %v2744_v15  ;;  %6494 = vrot.lane.b32.xlu0 %v6426_v1, %s13401_s24  ;;  %v3071_v15 = vadd.f32 %v13873_v3, %v11682_v48  ;;  %6316 = vrot.lane.b32.xlu1 %v6231_v30, %s13368_s25  ;;  %v13880_v51 = vld [vmem:[#allocation614_spill] sm:$0xff]  ;;  %v13881_v22 = vld [vmem:[#allocation175_spill] sm:$0xff]  ;;  %v13884_v41 = vld [vmem:[#allocation189_spill] sm:$0xff] }
 0xddb   : > { %13862 = vst [vmem:[#allocation55_spill] sm:$0xff] %v11799_v39  ;;  %13878 = vst [vmem:[#allocation20_spill] sm:$0xff] %v11828_v53  ;;  %v3277_v26 = vadd.f32 %v13879_v0, %v3065_v25  ;;  %v2116_v40 = vadd.f32 %v13881_v22, %v13880_v51  ;;  %v13882_v46 = vld [vmem:[#allocation150_spill] sm:$0xff]  ;;  %v2324_v17 = vadd.f32 %v13884_v41, %v2112_v8  ;;  %v13887_v24 = vld [vmem:[#allocation171_spill] sm:$0xff] }
 0xddc   : > { %13864 = vst [vmem:[#allocation11_spill] sm:$0xff] %v11802_v50  ;;  %v11835_v57 = vadd.f32 %v13882_v46, %v3282_v4  ;;  %v11837_v48 = vld [vmem:[#allocation2 + $0xc0] sm:$0xff]  ;;  %v11848_v25 = vld [vmem:[#allocation2 + $0x88] sm:$0xff]  ;;  %v3283_v34 = vadd.f32 %v13887_v24, %v3071_v15  ;;  %v13888_v3 = vld [vmem:[#allocation172_spill] sm:$0xff] }
 0xddd   : > { %v6430_v45 = vmul.f32 %v11837_v48, %v11518_v19  ;;  %v13883_v1 = vld [vmem:[#allocation170_spill] sm:$0xff]  ;;  %v6423_v4 = vmul.f32 %v11848_v25, %v11786_v43  ;;  %v3278_v6 = vadd.f32 %v13888_v3, %v3066_v2  ;;  %v13889_v14 = vld [vmem:[#allocation177_spill] sm:$0xff]  ;;  %v13890_v60 = vld [vmem:[#allocation616_spill] sm:$0xff] }
 0xdde   : > { %v3072_v20 = vadd.f32 %v13883_v1, %v11699_v10  ;;  %v13885_v49 = vld [vmem:[#allocation10_spill] sm:$0xff]  ;;  %v2328_v33 = vadd.f32 %v13889_v14, %v2116_v40  ;;  %v13892_v8 = vld [vmem:[#allocation173_spill] sm:$0xff]  ;;  %v13894_v1 = vld [vmem:[#allocation191_spill] sm:$0xff] }
 0xddf   : > { %v13886_v30 = vld [vmem:[#allocation190_spill] sm:$0xff]  ;;  %6502 = vrot.lane.b32.xlu0 %v6430_v45, %s13401_s24  ;;  %v3489_v51 = vadd.f32 %v13892_v8, %v3277_v26  ;;  %v2536_v41 = vadd.f32 %v13894_v1, %v2324_v17  ;;  %6488 = vrot.lane.b32.xlu1 %v6423_v4, %s13401_s24  ;;  %v13896_v15 = vld [vmem:[#allocation176_spill] sm:$0xff]  ;;  %v13897_v2 = vld [vmem:[#allocation179_spill] sm:$0xff] }
 0xde0   : > { %v2113_v62 = vadd.f32 %v13886_v30, %v13885_v49  ;;  %v13891_v10 = vld [vmem:[#allocation178_spill] sm:$0xff]  ;;  %v13895_v49 = vld [vmem:[#allocation192_spill] sm:$0xff]  ;;  %v3490_v24 = vadd.f32 %v13896_v15, %v3278_v6  ;;  %v11865_v3 = vadd.f32 %v13897_v2, %v2328_v33  ;;  %v13901_v45 = vld [vmem:[#allocation193_spill] sm:$0xff] }
 0xde1   : > { %v2117_v0 = vadd.f32 %v13891_v10, %v13890_v60  ;;  %v13893_v22 = vld [vmem:[#allocation174_spill] sm:$0xff]  ;;  %v13899_v40 = vld [vmem:[#allocation180_spill] sm:$0xff]  ;;  %v13932_v55 = vld [vmem:[#allocation253_spill] sm:$0xff] }
 0xde2   : > { %v3284_v46 = vadd.f32 %v13893_v22, %v3072_v20  ;;  %v2325_v30 = vadd.f32 %v13895_v49, %v2113_v62  ;;  %13898 = vst [vmem:[#allocation57_spill] sm:$0xff] %v11865_v3  ;;  %v11870_v60 = vld [vmem:[#allocation2 + $0x90] sm:$0xff]  ;;  %v11875_v20 = vadd.f32 %v13901_v45, %v2536_v41  ;;  %v13903_v17 = vld [vmem:[#allocation194_spill] sm:$0xff]  ;;  %v13909_v49 = vld [vmem:[#allocation221_spill] sm:$0xff] }
 0xde3   : > { %v11868_v14 = vadd.f32 %v13899_v40, %v2117_v0  ;;  %v6424_v26 = vmul.f32 %v11870_v60, %v11846_v18  ;;  %v13905_v4 = vld [vmem:[#allocation206_spill] sm:$0xff]  ;;  %v13907_v0 = vld [vmem:[#allocation208_spill] sm:$0xff]  ;;  %v11890_v15 = vadd.f32 %v13909_v49, %v11594_v47 }
 0xde4   : > { %13902 = vst [vmem:[#allocation16_spill] sm:$0xff] %v11875_v20  ;;  %v11878_v62 = vadd.f32 %v13903_v17, %v2325_v30  ;;  %v3496_v10 = vadd.f32 %v13905_v4, %v3284_v46  ;;  %v11881_v6 = vld [vmem:[#allocation2 + $0xa8] sm:$0xff]  ;;  %v3495_v8 = vadd.f32 %v13907_v0, %v3283_v34  ;;  %v13908_v22 = vld [vmem:[#allocation220_spill] sm:$0xff]  ;;  %v13913_v34 = vld [vmem:[#allocation225_spill] sm:$0xff] }
 0xde5   : > { %13900 = vst [vmem:[#allocation59_spill] sm:$0xff] %v11868_v14  ;;  %13906 = vst [vmem:[#allocation58_spill] sm:$0xff] %v11881_v6  ;;  %v6427_v33 = vmul.f32 %v11881_v6, %v11786_v43  ;;  %v3687_v1 = vadd.f32 %v13908_v22, %v11548_v38  ;;  %v13910_v41 = vld [vmem:[#allocation222_spill] sm:$0xff]  ;;  %6490 = vrot.lane.b32.xlu0 %v6424_v26, %s13401_s24  ;;  %v13911_v46 = vld [vmem:[#allocation223_spill] sm:$0xff]  ;;  %v11905_v38 = vadd.f32 %v13913_v34, %v11759_v27 }
 0xde6   : > { %13904 = vst [vmem:[#allocation21_spill] sm:$0xff] %v11878_v62  ;;  %v11894_v30 = vadd.f32 %v13910_v41, %v11560_v31  ;;  %v3691_v2 = vadd.f32 %v13911_v46, %v11636_v61  ;;  %v13912_v40 = vld [vmem:[#allocation224_spill] sm:$0xff]  ;;  %v13914_v47 = vld [vmem:[#allocation226_spill] sm:$0xff]  ;;  %v13915_v31 = vld [vmem:[#allocation227_spill] sm:$0xff] }
 0xde7   : > { %v11901_v45 = vadd.f32 %v13912_v40, %v11614_v35  ;;  %v11909_v17 = vadd.f32 %v13914_v47, %v11665_v42  ;;  %6496 = vrot.lane.b32.xlu1 %v6427_v33, %s13401_s24  ;;  %v3695_v26 = vadd.f32 %v13915_v31, %v11605_v13  ;;  %v13916_v4 = vld [vmem:[#allocation228_spill] sm:$0xff]  ;;  %v13917_v35 = vld [vmem:[#allocation229_spill] sm:$0xff]  ;;  %v13918_v42 = vld [vmem:[#allocation230_spill] sm:$0xff] }
 0xde8   : > { %v11916_v61 = vadd.f32 %v13916_v4, %v11782_v9  ;;  %v11920_v0 = vadd.f32 %v13917_v35, %v11702_v11  ;;  %v11922_v22 = vld [vmem:[#allocation2 + $0xe0] sm:$0xff]  ;;  %v11928_v49 = vadd.f32 %v13918_v42, %v11670_v5  ;;  %v13919_v33 = vld [vmem:[#allocation231_spill] sm:$0xff]  ;;  %v13920_v41 = vld [vmem:[#allocation232_spill] sm:$0xff] }
 0xde9   : > { %v6434_v27 = vmul.f32 %v11922_v22, %v11518_v19  ;;  %v3699_v13 = vadd.f32 %v13919_v33, %v11779_v32  ;;  %v11934_v9 = vadd.f32 %v13920_v41, %v11724_v44  ;;  %v11936_v46 = vld [vmem:[#allocation2 + $0xc8] sm:$0xff]  ;;  %v13921_v40 = vld [vmem:[#allocation233_spill] sm:$0xff]  ;;  %v13994_v29 = vld [vmem:[#allocation332_spill] sm:$0xff] }
 0xdea   : > { %v6431_v11 = vmul.f32 %v11936_v46, %v11786_v43  ;;  %v11941_v34 = vadd.f32 %v13921_v40, %v3489_v51  ;;  %v13922_v47 = vld [vmem:[#allocation234_spill] sm:$0xff]  ;;  %v13923_v5 = vld [vmem:[#allocation235_spill] sm:$0xff]  ;;  %v7203_v3 = vld [vmem:[#allocation2 + $0x98] sm:$0xff] }
 0xdeb   : > { %v11945_v31 = vadd.f32 %v13922_v47, %v11790_v16  ;;  %v3703_v4 = vadd.f32 %v13923_v5, %v11716_v63  ;;  %v7183_v32 = vld [vmem:[#allocation2 + $0x40] sm:$0xff]  ;;  %v13924_v35 = vld [vmem:[#allocation251_spill] sm:$0xff]  ;;  %6510 = vrot.lane.b32.xlu0 %v6434_v27, %s13401_s24  ;;  %v13925_v63 = vld [vmem:[#allocation236_spill] sm:$0xff] }
 0xdec   : > { %v3772_v42 = vmul.f32 %v7183_v32, %v13924_v35  ;;  %v7184_v44 = vld [vmem:[#allocation2 + $0x60] sm:$0xff]  ;;  %6504 = vrot.lane.b32.xlu1 %v6431_v11, %s13401_s24  ;;  %v11957_v47 = vadd.f32 %v13925_v63, %v3490_v24  ;;  %v13928_v11 = vld [vmem:[#allocation240_spill] sm:$0xff]  ;;  %v13929_v24 = vld [vmem:[#allocation239_spill] sm:$0xff] }
 0xded   : > { %v3776_v33 = vmul.f32 %v7184_v44, %v13924_v35  ;;  %v7185_v41 = vld [vmem:[#allocation2 + $0x80] sm:$0xff]  ;;  %v3707_v53 = vadd.f32 %v13928_v11, %v3495_v8  ;;  %v11975_v63 = vadd.f32 %v13929_v24, %v11835_v57  ;;  %v7204_v20 = vld [vmem:[#allocation2 + $0xb8] sm:$0xff]  ;;  %v7208_v14 = vld [vmem:[#allocation2 + $0xe8] sm:$0xff] }
 0xdee   : > { %v3780_v36 = vmul.f32 %v7185_v41, %v13924_v35  ;;  %v7186_v51 = vld [vmem:[#allocation2 + $0xa0] sm:$0xff]  ;;  %v11984_v54 = vadd.f32 %v3772_v42, %v3687_v1  ;;  %v7194_v42 = vld [vmem:[#allocation2 + $0xb0] sm:$0xff]  ;;  %v12028_v62 = vld [vmem:[#allocation2 + $0x108] sm:$0xff] }
 0xdef   : > { %v3784_v40 = vmul.f32 %v7186_v51, %v13924_v35  ;;  %v7187_v21 = vld [vmem:[#allocation2 + $0xc0] sm:$0xff]  ;;  %v11989_v57 = vadd.f32 %v3776_v33, %v3691_v2  ;;  %v7196_v2 = vld [vmem:[#allocation2 + $0x48] sm:$0xff]  ;;  %13937 = vst [vmem:[#allocation23_spill] sm:$0xff] %v12028_v62 }
 0xdf0   : > { %v3788_v16 = vmul.f32 %v7187_v21, %v13924_v35  ;;  %v13926_v5 = vld [vmem:[#allocation237_spill] sm:$0xff]  ;;  %v13927_v51 = vld [vmem:[#allocation238_spill] sm:$0xff]  ;;  %v11991_v11 = vadd.f32 %v3780_v36, %v3695_v26 }
 0xdf1   : > { %v11961_v27 = vadd.f32 %v13926_v5, %v11818_v56  ;;  %v7188_v32 = vld [vmem:[#allocation2 + $0xe0] sm:$0xff]  ;;  %v11970_v21 = vadd.f32 %v13927_v51, %v11738_v28  ;;  %v11977_v56 = vld [vmem:[#allocation2 + $0xb0] sm:$0xff]  ;;  %v3774_v28 = vmul.f32 %v7191_v59, %v13932_v55  ;;  %v11993_v24 = vadd.f32 %v3784_v40, %v3699_v13  ;;  %v7198_v40 = vld [vmem:[#allocation2 + $0x88] sm:$0xff] }
 0xdf2   : > { %v3792_v44 = vmul.f32 %v7188_v32, %v13924_v35  ;;  %v11964_v50 = vld [vmem:[#allocation2 + $0x140] sm:$0xff]  ;;  %13930 = vst [vmem:[#allocation22_spill] sm:$0xff] %v11977_v56  ;;  %v6428_v5 = vmul.f32 %v11977_v56, %v11846_v18  ;;  %v7192_v51 = vld [vmem:[#allocation2 + $0x70] sm:$0xff]  ;;  %v11995_v56 = vadd.f32 %v3788_v16, %v3703_v4  ;;  %v3786_v59 = vmul.f32 %v7194_v42, %v13932_v55  ;;  %v7197_v4 = vld [vmem:[#allocation2 + $0x68] sm:$0xff] }
 0xdf3   : > { %v6234_v41 = vmul.f32 %v11964_v50, %v11457_v58  ;;  %v13931_v32 = vld [vmem:[#allocation241_spill] sm:$0xff]  ;;  %v3778_v8 = vmul.f32 %v7192_v51, %v13932_v55  ;;  %v12002_v51 = vld [vmem:[#allocation2 + $0xd0] sm:$0xff]  ;;  %v13933_v26 = vld [vmem:[#allocation254_spill] sm:$0xff] }
 0xdf4   : > { %v11982_v35 = vadd.f32 %v13931_v32, %v3496_v10  ;;  %6498 = vrot.lane.b32.xlu1 %v6428_v5, %s13401_s24  ;;  %v7193_v10 = vld [vmem:[#allocation2 + $0x90] sm:$0xff]  ;;  %v12000_v32 = vadd.f32 %v3792_v44, %v3707_v53  ;;  %v6432_v36 = vmul.f32 %v12002_v51, %v11846_v18  ;;  %v3773_v13 = vmul.f32 %v7196_v2, %v13933_v26  ;;  %v7200_v5 = vld [vmem:[#allocation2 + $0x58] sm:$0xff]  ;;  %v7201_v2 = vld [vmem:[#allocation2 + $0xa8] sm:$0xff] }
 0xdf5   : > { %6322 = vrot.lane.b32.xlu0 %v6234_v41, %s13368_s25  ;;  %v3782_v1 = vmul.f32 %v7193_v10, %v13932_v55  ;;  %v3777_v33 = vmul.f32 %v7197_v4, %v13933_v26  ;;  %v3781_v16 = vmul.f32 %v7198_v40, %v13933_v26  ;;  %v12009_v41 = vld [vmem:[#allocation2 + $0xe8] sm:$0xff]  ;;  %v3806_v44 = vadd.f32 %v3774_v28, %v11890_v15  ;;  %v7202_v4 = vld [vmem:[#allocation2 + $0x78] sm:$0xff]  ;;  %v7205_v28 = vld [vmem:[#allocation2 + $0xd0] sm:$0xff] }
 0xdf6   : > { %13934 = vst [vmem:[#allocation52_spill] sm:$0xff] %v12009_v41  ;;  %v6435_v53 = vmul.f32 %v12009_v41, %v11786_v43  ;;  %v13935_v10 = vld [vmem:[#allocation255_spill] sm:$0xff]  ;;  %v12016_v52 = vadd.f32 %v3778_v8, %v11905_v38  ;;  %v3785_v39 = vmul.f32 %v7201_v2, %v13933_v26  ;;  %v7207_v2 = vld [vmem:[#allocation2 + $0xd8] sm:$0xff]  ;;  %v14030_v41 = vld [vmem:[#allocation386_spill] sm:$0xff] }
 0xdf7   : > { %v3775_v42 = vmul.f32 %v7200_v5, %v13935_v10  ;;  %v3779_v40 = vmul.f32 %v7202_v4, %v13935_v10  ;;  %v3783_v6 = vmul.f32 %v7203_v3, %v13935_v10  ;;  %v3787_v15 = vmul.f32 %v7204_v20, %v13935_v10  ;;  %v7206_v38 = vld [vmem:[#allocation2 + $0xc8] sm:$0xff] }
 0xdf8   : > { %13936 = vst [vmem:[#allocation61_spill] sm:$0xff] %v12016_v52  ;;  %v3790_v5 = vmul.f32 %v7205_v28, %v13932_v55  ;;  %6512 = vrot.lane.b32.xlu1 %v6435_v53, %s13401_s24  ;;  %v3789_v8 = vmul.f32 %v7206_v38, %v13933_v26  ;;  %v3793_v4 = vmul.f32 %v7208_v14, %v13933_v26  ;;  %v12035_v55 = vld [vmem:[#allocation2 + $0x148] sm:$0xff] }
 0xdf9   : > { %6506 = vrot.lane.b32.xlu0 %v6432_v36, %s13401_s24  ;;  %v3791_v36 = vmul.f32 %v7207_v2, %v13935_v10  ;;  %v6439_v3 = vmul.f32 %v12028_v62, %v11786_v43  ;;  %v3805_v20 = vadd.f32 %v3773_v13, %v11894_v30  ;;  %v3814_v28 = vadd.f32 %v3782_v1, %v11920_v0  ;;  %v12060_v13 = vpop.permute.xlu1 %6419 }
 0xdfa   : > { %v3818_v53 = vadd.f32 %v3786_v59, %v11941_v34  ;;  %v6235_v38 = vmul.f32 %v12035_v55, %v11493_v23  ;;  %v3807_v2 = vadd.f32 %v3775_v42, %v11901_v45  ;;  %v3809_v14 = vadd.f32 %v3777_v33, %v11909_v17  ;;  %v12052_v59 = vld [vmem:[#allocation2 + $0x160] sm:$0xff] }
 0xdfb   : > { %v3813_v26 = vadd.f32 %v3781_v16, %v11928_v49  ;;  %v3817_v10 = vadd.f32 %v3785_v39, %v11945_v31  ;;  %v3811_v30 = vadd.f32 %v3779_v40, %v11916_v61  ;;  %v3815_v0 = vadd.f32 %v3783_v6, %v11934_v9  ;;  %v13938_v61 = vld [vmem:[#allocation256_spill] sm:$0xff]  ;;  %v13939_v9 = vld [vmem:[#allocation257_spill] sm:$0xff] }
 0xdfc   : > { %v3819_v34 = vadd.f32 %v3787_v15, %v11957_v47  ;;  %v3822_v1 = vadd.f32 %v3790_v5, %v11961_v27  ;;  %6324 = vrot.lane.b32.xlu1 %v6235_v38, %s13368_s25  ;;  %v3821_v45 = vadd.f32 %v3789_v8, %v11970_v21  ;;  %v3823_v17 = vadd.f32 %v3791_v36, %v11975_v63  ;;  %v13940_v47 = vld [vmem:[#allocation258_spill] sm:$0xff]  ;;  %v13943_v16 = vld [vmem:[#allocation260_spill] sm:$0xff]  ;;  %v13947_v8 = vld [vmem:[#allocation265_spill] sm:$0xff] }
 0xdfd   : > { %6520 = vrot.lane.b32.xlu0 %v6439_v3, %s13401_s24  ;;  %v3825_v49 = vadd.f32 %v3793_v4, %v11982_v35  ;;  %v6238_v39 = vmul.f32 %v12052_v59, %v11457_v58  ;;  %v4016_v6 = vadd.f32 %v13938_v61, %v11984_v54  ;;  %v4018_v31 = vadd.f32 %v13939_v9, %v3806_v44  ;;  %v12062_v33 = vld [vmem:[#allocation2 + $0x100] sm:$0xff]  ;;  %v13942_v35 = vld [vmem:[#allocation259_spill] sm:$0xff]  ;;  %v13946_v44 = vld [vmem:[#allocation264_spill] sm:$0xff] }
 0xdfe   : > { %v4017_v27 = vadd.f32 %v13940_v47, %v3805_v20  ;;  %13941 = vst [vmem:[#allocation24_spill] sm:$0xff] %v12062_v33  ;;  %v6438_v21 = vmul.f32 %v12062_v33, %v11518_v19  ;;  %v4020_v63 = vadd.f32 %v13942_v35, %v11989_v57  ;;  %v4019_v42 = vadd.f32 %v13943_v16, %v3807_v2  ;;  %v13944_v58 = vld [vmem:[#allocation262_spill] sm:$0xff]  ;;  %v13945_v54 = vld [vmem:[#allocation263_spill] sm:$0xff]  ;;  %v13950_v57 = vld [vmem:[#allocation268_spill] sm:$0xff] }
 0xdff   : > { %v4021_v40 = vadd.f32 %v13944_v58, %v3809_v14  ;;  %v4024_v15 = vadd.f32 %v13945_v54, %v11991_v11  ;;  %v4023_v5 = vadd.f32 %v13946_v44, %v3811_v30  ;;  %v4026_v36 = vadd.f32 %v13947_v8, %v3814_v28  ;;  %v13948_v4 = vld [vmem:[#allocation266_spill] sm:$0xff]  ;;  %v13949_v20 = vld [vmem:[#allocation267_spill] sm:$0xff]  ;;  %v13951_v61 = vld [vmem:[#allocation269_spill] sm:$0xff] }
 0xe00   : > { %v4025_v3 = vadd.f32 %v13948_v4, %v3813_v26  ;;  %v4028_v38 = vadd.f32 %v13949_v20, %v11993_v24  ;;  %6518 = vrot.lane.b32.xlu1 %v6438_v21, %s13401_s24  ;;  %v4027_v2 = vadd.f32 %v13950_v57, %v3815_v0  ;;  %v4030_v14 = vadd.f32 %v13951_v61, %v3818_v53  ;;  %v13952_v9 = vld [vmem:[#allocation270_spill] sm:$0xff]  ;;  %v12082_v11 = vld [vmem:[#allocation2 + $0x98] sm:$0xff]  ;;  %v13953_v28 = vld [vmem:[#allocation271_spill] sm:$0xff] }
 0xe01   : > { %6330 = vrot.lane.b32.xlu0 %v6238_v39, %s13368_s25  ;;  %v4029_v47 = vadd.f32 %v13952_v9, %v3817_v10  ;;  %v6425_v30 = vmul.f32 %v12082_v11, %v12060_v13  ;;  %v4032_v39 = vadd.f32 %v13953_v28, %v11995_v56  ;;  %v13954_v26 = vld [vmem:[#allocation272_spill] sm:$0xff]  ;;  %v13955_v16 = vld [vmem:[#allocation273_spill] sm:$0xff]  ;;  %v13956_v53 = vld [vmem:[#allocation274_spill] sm:$0xff] }
 0xe02   : > { %v4031_v35 = vadd.f32 %v13954_v26, %v3819_v34  ;;  %v4034_v24 = vadd.f32 %v13955_v16, %v3822_v1  ;;  %v12090_v58 = vld [vmem:[#allocation2 + $0x130] sm:$0xff]  ;;  %v4033_v21 = vadd.f32 %v13956_v53, %v3821_v45  ;;  %v13959_v4 = vld [vmem:[#allocation277_spill] sm:$0xff]  ;;  %v13962_v61 = vld [vmem:[#allocation290_spill] sm:$0xff] }
 0xe03   : > { %v6232_v0 = vmul.f32 %v12090_v58, %v11487_v7  ;;  %v13957_v10 = vld [vmem:[#allocation276_spill] sm:$0xff]  ;;  %v13958_v44 = vld [vmem:[#allocation275_spill] sm:$0xff]  ;;  %v4037_v20 = vadd.f32 %v13959_v4, %v3825_v49  ;;  %v13961_v57 = vld [vmem:[#allocation289_spill] sm:$0xff]  ;;  %v4229_v9 = vadd.f32 %v13962_v61, %v4017_v27 }
 0xe04   : > { %v4036_v54 = vadd.f32 %v13957_v10, %v12000_v32  ;;  %v4035_v8 = vadd.f32 %v13958_v44, %v3823_v17  ;;  %v13960_v56 = vld [vmem:[#allocation288_spill] sm:$0xff]  ;;  %v4230_v1 = vadd.f32 %v13961_v57, %v4018_v31  ;;  %v13963_v28 = vld [vmem:[#allocation291_spill] sm:$0xff]  ;;  %v13965_v53 = vld [vmem:[#allocation294_spill] sm:$0xff] }
 0xe05   : > { %6492 = vrot.lane.b32.xlu0 %v6425_v30, %s13401_s24  ;;  %v4228_v34 = vadd.f32 %v13960_v56, %v4016_v6  ;;  %v4232_v26 = vadd.f32 %v13963_v28, %v4020_v63  ;;  %6318 = vrot.lane.b32.xlu1 %v6232_v0, %s13368_s25  ;;  %v13964_v45 = vld [vmem:[#allocation292_spill] sm:$0xff]  ;;  %v4233_v32 = vadd.f32 %v13965_v53, %v4021_v40  ;;  %v13966_v10 = vld [vmem:[#allocation295_spill] sm:$0xff]  ;;  %v13969_v31 = vld [vmem:[#allocation297_spill] sm:$0xff] }
 0xe06   : > { %v4231_v16 = vadd.f32 %v13964_v45, %v4019_v42  ;;  %v4236_v17 = vadd.f32 %v13966_v10, %v4024_v15  ;;  %v12108_v44 = vld [vmem:[#allocation2 + $0xf0] sm:$0xff]  ;;  %v4238_v4 = vadd.f32 %v13969_v31, %v4026_v36  ;;  %v13970_v27 = vld [vmem:[#allocation298_spill] sm:$0xff]  ;;  %v13973_v61 = vld [vmem:[#allocation301_spill] sm:$0xff] }
 0xe07   : > { %13967 = vst [vmem:[#allocation25_spill] sm:$0xff] %v12108_v44  ;;  %v6436_v49 = vmul.f32 %v12108_v44, %v11846_v18  ;;  %v13968_v6 = vld [vmem:[#allocation296_spill] sm:$0xff]  ;;  %v4237_v56 = vadd.f32 %v13970_v27, %v4025_v3  ;;  %v12115_v63 = vld [vmem:[#allocation2 + $0x168] sm:$0xff]  ;;  %v4242_v28 = vadd.f32 %v13973_v61, %v4030_v14  ;;  %v13977_v3 = vld [vmem:[#allocation305_spill] sm:$0xff] }
 0xe08   : > { %v4235_v30 = vadd.f32 %v13968_v6, %v4023_v5  ;;  %v6239_v42 = vmul.f32 %v12115_v63, %v11493_v23  ;;  %v13971_v0 = vld [vmem:[#allocation299_spill] sm:$0xff]  ;;  %v13972_v57 = vld [vmem:[#allocation300_spill] sm:$0xff]  ;;  %v13974_v45 = vld [vmem:[#allocation302_spill] sm:$0xff]  ;;  %v4246_v31 = vadd.f32 %v13977_v3, %v4034_v24 }
 0xe09   : > { %v4240_v40 = vadd.f32 %v13971_v0, %v4028_v38  ;;  %v4239_v15 = vadd.f32 %v13972_v57, %v4027_v2  ;;  %v4241_v53 = vadd.f32 %v13974_v45, %v4029_v47  ;;  %6514 = vrot.lane.b32.xlu0 %v6436_v49, %s13401_s24  ;;  %v13975_v5 = vld [vmem:[#allocation303_spill] sm:$0xff]  ;;  %v13976_v36 = vld [vmem:[#allocation304_spill] sm:$0xff]  ;;  %v13978_v27 = vld [vmem:[#allocation306_spill] sm:$0xff] }
 0xe0a   : > { %v4244_v10 = vadd.f32 %v13975_v5, %v4032_v39  ;;  %v4243_v6 = vadd.f32 %v13976_v36, %v4031_v35  ;;  %v4245_v52 = vadd.f32 %v13978_v27, %v4033_v21  ;;  %6332 = vrot.lane.b32.xlu1 %v6239_v42, %s13368_s25  ;;  %v13979_v23 = vld [vmem:[#allocation308_spill] sm:$0xff]  ;;  %v13980_v0 = vld [vmem:[#allocation307_spill] sm:$0xff]  ;;  %v13981_v57 = vld [vmem:[#allocation309_spill] sm:$0xff] }
 0xe0b   : > { %v4248_v38 = vadd.f32 %v13979_v23, %v4036_v54  ;;  %v4247_v2 = vadd.f32 %v13980_v0, %v4035_v8  ;;  %v4249_v14 = vadd.f32 %v13981_v57, %v4037_v20  ;;  %v12132_v61 = vld [vmem:[#allocation2 + $0x128] sm:$0xff]  ;;  %v13983_v39 = vld [vmem:[#allocation320_spill] sm:$0xff]  ;;  %v13984_v35 = vld [vmem:[#allocation321_spill] sm:$0xff] }
 0xe0c   : > { %13982 = vst [vmem:[#allocation62_spill] sm:$0xff] %v12132_v61  ;;  %v6443_v47 = vmul.f32 %v12132_v61, %v11786_v43  ;;  %v4440_v49 = vadd.f32 %v13983_v39, %v4228_v34  ;;  %v4442_v45 = vadd.f32 %v13984_v35, %v4230_v1  ;;  %v13985_v24 = vld [vmem:[#allocation322_spill] sm:$0xff]  ;;  %v12139_v21 = vld [vmem:[#allocation2 + $0xb8] sm:$0xff]  ;;  %v13986_v42 = vld [vmem:[#allocation323_spill] sm:$0xff] }
 0xe0d   : > { %v4441_v5 = vadd.f32 %v13985_v24, %v4229_v9  ;;  %v6429_v54 = vmul.f32 %v12139_v21, %v12060_v13  ;;  %v4444_v8 = vadd.f32 %v13986_v42, %v4232_v26  ;;  %v13987_v36 = vld [vmem:[#allocation324_spill] sm:$0xff]  ;;  %v13988_v3 = vld [vmem:[#allocation326_spill] sm:$0xff]  ;;  %v13989_v23 = vld [vmem:[#allocation327_spill] sm:$0xff]  ;;  %v4451_v26 = vadd.f32 %v13994_v29, %v4239_v15 }
 0xe0e   : > { %v4443_v20 = vadd.f32 %v13987_v36, %v4231_v16  ;;  %v4445_v27 = vadd.f32 %v13988_v3, %v4233_v32  ;;  %v4448_v0 = vadd.f32 %v13989_v23, %v4236_v17  ;;  %6528 = vrot.lane.b32.xlu0 %v6443_v47, %s13401_s24  ;;  %v13990_v34 = vld [vmem:[#allocation328_spill] sm:$0xff]  ;;  %v13991_v1 = vld [vmem:[#allocation329_spill] sm:$0xff]  ;;  %v13992_v9 = vld [vmem:[#allocation330_spill] sm:$0xff] }
 0xe0f   : > { %v4447_v57 = vadd.f32 %v13990_v34, %v4235_v30  ;;  %v4450_v39 = vadd.f32 %v13991_v1, %v4238_v4  ;;  %v4449_v35 = vadd.f32 %v13992_v9, %v4237_v56  ;;  %v13993_v24 = vld [vmem:[#allocation331_spill] sm:$0xff]  ;;  %6500 = vrot.lane.b32.xlu1 %v6429_v54, %s13401_s24  ;;  %v13995_v42 = vld [vmem:[#allocation333_spill] sm:$0xff]  ;;  %v13996_v36 = vld [vmem:[#allocation334_spill] sm:$0xff] }
 0xe10   : > { %v4452_v61 = vadd.f32 %v13993_v24, %v4240_v40  ;;  %v4454_v16 = vadd.f32 %v13995_v42, %v4242_v28  ;;  %v4453_v32 = vadd.f32 %v13996_v36, %v4241_v53  ;;  %v12156_v3 = vld [vmem:[#allocation2 + $0xd8] sm:$0xff]  ;;  %v13998_v30 = vld [vmem:[#allocation335_spill] sm:$0xff]  ;;  %v12163_v40 = vld [vmem:[#allocation2 + $0x120] sm:$0xff] }
 0xe11   : > { %13997 = vst [vmem:[#allocation26_spill] sm:$0xff] %v12156_v3  ;;  %v6433_v17 = vmul.f32 %v12156_v3, %v12060_v13  ;;  %v4456_v47 = vadd.f32 %v13998_v30, %v4244_v10  ;;  %v13999_v4 = vld [vmem:[#allocation336_spill] sm:$0xff]  ;;  %v14000_v56 = vld [vmem:[#allocation337_spill] sm:$0xff]  ;;  %14001 = vst [vmem:[#allocation56_spill] sm:$0xff] %v12163_v40  ;;  %v6442_v29 = vmul.f32 %v12163_v40, %v11518_v19 }
 0xe12   : > { %v4455_v23 = vadd.f32 %v13999_v4, %v4243_v6  ;;  %v4458_v34 = vadd.f32 %v14000_v56, %v4246_v31  ;;  %v14002_v15 = vld [vmem:[#allocation338_spill] sm:$0xff]  ;;  %v14003_v54 = vld [vmem:[#allocation340_spill] sm:$0xff]  ;;  %v14004_v1 = vld [vmem:[#allocation339_spill] sm:$0xff] }
 0xe13   : > { %v4457_v28 = vadd.f32 %v14002_v15, %v4245_v52  ;;  %v4460_v53 = vadd.f32 %v14003_v54, %v4248_v38  ;;  %v4459_v9 = vadd.f32 %v14004_v1, %v4247_v2  ;;  %v14005_v24 = vld [vmem:[#allocation341_spill] sm:$0xff]  ;;  %6508 = vrot.lane.b32.xlu0 %v6433_v17, %s13401_s24  ;;  %v14006_v10 = vld [vmem:[#allocation352_spill] sm:$0xff]  ;;  %v14008_v31 = vld [vmem:[#allocation354_spill] sm:$0xff]  ;;  %6526 = vrot.lane.b32.xlu1 %v6442_v29, %s13401_s24 }
 0xe14   : > { %v4461_v42 = vadd.f32 %v14005_v24, %v4249_v14  ;;  %v4652_v36 = vadd.f32 %v14006_v10, %v4440_v49  ;;  %v14007_v6 = vld [vmem:[#allocation353_spill] sm:$0xff]  ;;  %v4653_v4 = vadd.f32 %v14008_v31, %v4441_v5  ;;  %v14009_v56 = vld [vmem:[#allocation355_spill] sm:$0xff]  ;;  %v14010_v40 = vld [vmem:[#allocation356_spill] sm:$0xff]  ;;  %v6446_v17 = vmul.f32 %v11964_v50, %v11518_v19 }
 0xe15   : > { %v4654_v30 = vadd.f32 %v14007_v6, %v4442_v45  ;;  %v4656_v62 = vadd.f32 %v14009_v56, %v4444_v8  ;;  %v12178_v52 = vadd.f32 %v14010_v40, %v4443_v20  ;;  %v14011_v38 = vld [vmem:[#allocation358_spill] sm:$0xff]  ;;  %v14013_v2 = vld [vmem:[#allocation359_spill] sm:$0xff]  ;;  %v14014_v49 = vld [vmem:[#allocation360_spill] sm:$0xff] }
 0xe16   : > { %v12181_v15 = vadd.f32 %v14011_v38, %v4445_v27  ;;  %v4660_v14 = vadd.f32 %v14013_v2, %v4448_v0  ;;  %v12187_v54 = vadd.f32 %v14014_v49, %v4447_v57  ;;  %v14015_v45 = vld [vmem:[#allocation361_spill] sm:$0xff]  ;;  %v14016_v1 = vld [vmem:[#allocation383_spill] sm:$0xff]  ;;  %v14017_v27 = vld [vmem:[#allocation362_spill] sm:$0xff] }
 0xe17   : > { %v12190_v5 = vadd.f32 %v14015_v45, %v4450_v39  ;;  %v7221_v8 = vld [vmem:[#allocation2 + $0x60] sm:$0xff]  ;;  %v12193_v24 = vld [vmem:[#allocation2 + $0x150] sm:$0xff]  ;;  %v12198_v40 = vadd.f32 %v14017_v27, %v4449_v35  ;;  %6534 = vrot.lane.b32.xlu0 %v6446_v17, %s13401_s24 }
 0xe18   : > { %14012 = vst [vmem:[#allocation15_spill] sm:$0xff] %v12181_v15  ;;  %v4737_v29 = vmul.f32 %v7221_v8, %v14016_v1  ;;  %v6236_v20 = vmul.f32 %v12193_v24, %v11487_v7  ;;  %v14018_v0 = vld [vmem:[#allocation363_spill] sm:$0xff]  ;;  %v14019_v50 = vld [vmem:[#allocation364_spill] sm:$0xff]  ;;  %v14020_v57 = vld [vmem:[#allocation365_spill] sm:$0xff] }
 0xe19   : > { %v4664_v10 = vadd.f32 %v14018_v0, %v4452_v61  ;;  %v12202_v6 = vadd.f32 %v14019_v50, %v4451_v26  ;;  %v4666_v31 = vadd.f32 %v14020_v57, %v4454_v16  ;;  %v14021_v39 = vld [vmem:[#allocation366_spill] sm:$0xff]  ;;  %v14022_v38 = vld [vmem:[#allocation367_spill] sm:$0xff]  ;;  %v14023_v49 = vld [vmem:[#allocation368_spill] sm:$0xff] }
 0xe1a   : > { %v12207_v56 = vadd.f32 %v14021_v39, %v4453_v32  ;;  %v4668_v2 = vadd.f32 %v14022_v38, %v4456_v47  ;;  %v12211_v45 = vadd.f32 %v14023_v49, %v4455_v23  ;;  %v7223_v8 = vld [vmem:[#allocation2 + $0x80] sm:$0xff]  ;;  %6326 = vrot.lane.b32.xlu1 %v6236_v20, %s13368_s25  ;;  %v12220_v0 = vld [vmem:[#allocation2 + $0x138] sm:$0xff]  ;;  %v4769_v57 = vadd.f32 %v4737_v29, %v4652_v36  ;;  %v7227_v39 = vld [vmem:[#allocation2 + $0x70] sm:$0xff] }
 0xe1b   : > { %v4741_v35 = vmul.f32 %v7223_v8, %v14016_v1  ;;  %v14024_v61 = vld [vmem:[#allocation369_spill] sm:$0xff]  ;;  %v6233_v47 = vmul.f32 %v12220_v0, %v11540_v12  ;;  %v14025_v23 = vld [vmem:[#allocation370_spill] sm:$0xff]  ;;  %v14028_v8 = vld [vmem:[#allocation372_spill] sm:$0xff] }
 0xe1c   : > { %v12216_v26 = vadd.f32 %v14024_v61, %v4458_v34  ;;  %v7224_v27 = vld [vmem:[#allocation2 + $0xa0] sm:$0xff]  ;;  %v12225_v50 = vadd.f32 %v14025_v23, %v4457_v28  ;;  %v12228_v34 = vld [vmem:[#allocation2 + $0x110] sm:$0xff]  ;;  %v4672_v61 = vadd.f32 %v14028_v8, %v4460_v53  ;;  %v7229_v15 = vld [vmem:[#allocation2 + $0x68] sm:$0xff] }
 0xe1d   : > { %v4745_v16 = vmul.f32 %v7224_v27, %v14016_v1  ;;  %v7225_v17 = vld [vmem:[#allocation2 + $0xc0] sm:$0xff]  ;;  %14027 = vst [vmem:[#allocation27_spill] sm:$0xff] %v12228_v34  ;;  %v6440_v49 = vmul.f32 %v12228_v34, %v11846_v18  ;;  %v14029_v27 = vld [vmem:[#allocation371_spill] sm:$0xff]  ;;  %v4738_v33 = vmul.f32 %v7229_v15, %v14030_v41  ;;  %6320 = vrot.lane.b32.xlu0 %v6233_v47, %s13368_s25  ;;  %v14032_v23 = vld [vmem:[#allocation388_spill] sm:$0xff] }
 0xe1e   : > { %v4749_v32 = vmul.f32 %v7225_v17, %v14016_v1  ;;  %v14026_v20 = vld [vmem:[#allocation385_spill] sm:$0xff]  ;;  %v12234_v17 = vadd.f32 %v14029_v27, %v4459_v9  ;;  %v12243_v44 = vadd.f32 %v4741_v35, %v4656_v62  ;;  %v7232_v15 = vld [vmem:[#allocation2 + $0xb0] sm:$0xff] }
 0xe1f   : > { %v4739_v38 = vmul.f32 %v7227_v39, %v14026_v20  ;;  %v7230_v3 = vld [vmem:[#allocation2 + $0xe0] sm:$0xff]  ;;  %v4981_v39 = vadd.f32 %v14032_v23, %v4769_v57  ;;  %6522 = vrot.lane.b32.xlu1 %v6440_v49, %s13401_s24  ;;  %v12247_v9 = vadd.f32 %v4745_v16, %v4660_v14  ;;  %v4747_v8 = vmul.f32 %v7232_v15, %v14026_v20  ;;  %v12252_v47 = vld [vmem:[#allocation2 + $0xf8] sm:$0xff]  ;;  %v7234_v62 = vld [vmem:[#allocation2 + $0xd0] sm:$0xff] }
 0xe20   : > { %v4753_v28 = vmul.f32 %v7230_v3, %v14016_v1  ;;  %v14031_v36 = vld [vmem:[#allocation373_spill] sm:$0xff]  ;;  %v12250_v3 = vadd.f32 %v4749_v32, %v4664_v10  ;;  %v4751_v35 = vmul.f32 %v7234_v62, %v14026_v20  ;;  %v14033_v27 = vld [vmem:[#allocation420_spill] sm:$0xff]  ;;  %v6447_v14 = vmul.f32 %v12035_v55, %v11786_v43  ;;  %v7235_v49 = vld [vmem:[#allocation2 + $0xa8] sm:$0xff] }
 0xe21   : > { %v12240_v29 = vadd.f32 %v14031_v36, %v4461_v42  ;;  %v7231_v34 = vld [vmem:[#allocation2 + $0x100] sm:$0xff]  ;;  %v6437_v42 = vmul.f32 %v12252_v47, %v12060_v13  ;;  %v4771_v57 = vadd.f32 %v4739_v38, %v4654_v30  ;;  %v4770_v16 = vadd.f32 %v4738_v33, %v4653_v4  ;;  %v7236_v10 = vld [vmem:[#allocation2 + $0xc8] sm:$0xff]  ;;  %v14035_v62 = vld [vmem:[#allocation452_spill] sm:$0xff] }
 0xe22   : > { %v4757_v53 = vmul.f32 %v7231_v34, %v14016_v1  ;;  %v5193_v34 = vadd.f32 %v14033_v27, %v4981_v39  ;;  %v4746_v36 = vmul.f32 %v7235_v49, %v14030_v41  ;;  %v4750_v32 = vmul.f32 %v7236_v10, %v14030_v41  ;;  %v14034_v30 = vld [vmem:[#allocation389_spill] sm:$0xff]  ;;  %v14036_v27 = vld [vmem:[#allocation515_spill] sm:$0xff]  ;;  %v14037_v33 = vld [vmem:[#allocation390_spill] sm:$0xff] }
 0xe23   : > { %v12262_v23 = vadd.f32 %v4753_v28, %v4668_v2  ;;  %6516 = vrot.lane.b32.xlu0 %v6437_v42, %s13401_s24  ;;  %v4983_v38 = vadd.f32 %v14034_v30, %v4771_v57  ;;  %v5702_v55 = vmul.f32 %v11764_v37, %v14036_v27  ;;  %6536 = vrot.lane.b32.xlu1 %v6447_v14, %s13401_s24  ;;  %v7237_v49 = vld [vmem:[#allocation2 + $0x88] sm:$0xff]  ;;  %v14039_v57 = vld [vmem:[#allocation484_spill] sm:$0xff] }
 0xe24   : > { %v12266_v15 = vadd.f32 %v4757_v53, %v4672_v61  ;;  %v5405_v39 = vadd.f32 %v14035_v62, %v5193_v34  ;;  %v4982_v4 = vadd.f32 %v14037_v33, %v4770_v16  ;;  %v12274_v10 = vmul.f32 %v7237_v49, %v14030_v41  ;;  %v14038_v53 = vld [vmem:[#allocation421_spill] sm:$0xff]  ;;  %v12285_v34 = vld [vmem:[#allocation2 + $0x170] sm:$0xff] }
 0xe25   : > { %v12277_v2 = vadd.f32 %v4747_v8, %v12190_v5  ;;  %v6450_v61 = vmul.f32 %v12052_v59, %v11518_v19  ;;  %v12281_v28 = vadd.f32 %v4751_v35, %v4666_v31  ;;  %v5195_v42 = vadd.f32 %v14038_v53, %v4983_v38  ;;  %v7239_v16 = vld [vmem:[#allocation2 + $0x78] sm:$0xff]  ;;  %v14040_v30 = vld [vmem:[#allocation387_spill] sm:$0xff]  ;;  %v14041_v19 = vld [vmem:[#allocation422_spill] sm:$0xff] }
 0xe26   : > { %v5617_v37 = vadd.f32 %v14039_v57, %v5405_v39  ;;  %v6240_v14 = vmul.f32 %v12285_v34, %v11487_v7  ;;  %v4740_v62 = vmul.f32 %v7239_v16, %v14040_v30  ;;  %v12291_v5 = vadd.f32 %v4746_v36, %v12198_v40  ;;  %v7240_v31 = vld [vmem:[#allocation2 + $0x98] sm:$0xff]  ;;  %v14045_v53 = vld [vmem:[#allocation518_spill] sm:$0xff] }
 0xe27   : > { %v12294_v8 = vadd.f32 %v4750_v32, %v12207_v56  ;;  %v5194_v59 = vadd.f32 %v14041_v19, %v4982_v4  ;;  %6542 = vrot.lane.b32.xlu0 %v6450_v61, %s13401_s24  ;;  %v4744_v35 = vmul.f32 %v7240_v31, %v14040_v30  ;;  %v14042_v38 = vld [vmem:[#allocation453_spill] sm:$0xff]  ;;  %v14044_v56 = vld [vmem:[#allocation454_spill] sm:$0xff]  ;;  %v5703_v4 = vmul.f32 %v11848_v25, %v14045_v53  ;;  %v14047_v16 = vld [vmem:[#allocation536_spill] sm:$0xff] }
 0xe28   : > { %v5407_v39 = vadd.f32 %v14042_v38, %v5195_v42  ;;  %v5734_v33 = vadd.f32 %v5702_v55, %v5617_v37  ;;  %v14043_v7 = vld [vmem:[#allocation517_spill] sm:$0xff]  ;;  %6334 = vrot.lane.b32.xlu1 %v6240_v14, %s13368_s25  ;;  %v6444_v19 = vmul.f32 %v12090_v58, %v11846_v18  ;;  %v7244_v31 = vld [vmem:[#allocation2 + $0xf0] sm:$0xff]  ;;  %v7245_v38 = vld [vmem:[#allocation2 + $0xe8] sm:$0xff] }
 0xe29   : > { %v5704_v49 = vmul.f32 %v11870_v60, %v14043_v7  ;;  %v7241_v40 = vld [vmem:[#allocation2 + $0xb8] sm:$0xff]  ;;  %v5406_v32 = vadd.f32 %v14044_v56, %v5194_v59  ;;  %v4772_v59 = vadd.f32 %v4740_v62, %v12178_v52  ;;  %v4755_v25 = vmul.f32 %v7244_v31, %v14026_v20  ;;  %v14048_v56 = vld [vmem:[#allocation486_spill] sm:$0xff] }
 0xe2a   : > { %v4748_v36 = vmul.f32 %v7241_v40, %v14040_v30  ;;  %v12307_v61 = vld [vmem:[#allocation2 + $0x158] sm:$0xff]  ;;  %v5946_v14 = vadd.f32 %v14047_v16, %v5734_v33  ;;  %v4754_v40 = vmul.f32 %v7245_v38, %v14030_v41  ;;  %v6275_v38 = vpop.permute.xlu0 %6274 }
 0xe2b   : > { %v6237_v57 = vmul.f32 %v12307_v61, %v11540_v12  ;;  %v7243_v42 = vld [vmem:[#allocation2 + $0xd8] sm:$0xff]  ;;  %v5618_v1 = vadd.f32 %v14048_v56, %v5406_v32  ;;  %v6448_v32 = vmul.f32 %v12193_v24, %v11846_v18  ;;  %v14054_v24 = vld [vmem:[#allocation395_spill] sm:$0xff] }
 0xe2c   : > { %v4752_v55 = vmul.f32 %v7243_v42, %v14040_v30  ;;  %v14046_v37 = vld [vmem:[#allocation485_spill] sm:$0xff]  ;;  %v4776_v42 = vadd.f32 %v4744_v35, %v12187_v54  ;;  %v14049_v16 = vld [vmem:[#allocation568_spill] sm:$0xff]  ;;  %6530 = vrot.lane.b32.xlu1 %v6444_v19, %s13401_s24  ;;  %v4780_v31 = vadd.f32 %v4748_v36, %v12202_v6  ;;  %v14053_v36 = vld [vmem:[#allocation538_spill] sm:$0xff]  ;;  %v4989_v19 = vadd.f32 %v14054_v24, %v12247_v9 }
 0xe2d   : > { %v5619_v60 = vadd.f32 %v14046_v37, %v5407_v39  ;;  %6328 = vrot.lane.b32.xlu0 %v6237_v57, %s13368_s25  ;;  %v7246_v39 = vld [vmem:[#allocation2 + $0xf8] sm:$0xff]  ;;  %v6158_v58 = vadd.f32 %v14049_v16, %v5946_v14  ;;  %v5735_v20 = vadd.f32 %v5703_v4, %v5618_v1  ;;  %v7247_v57 = vld [vmem:[#allocation2 + $0x108] sm:$0xff]  ;;  %v4787_v14 = vadd.f32 %v4755_v25, %v12216_v26 }
 0xe2e   : > { %v4756_v33 = vmul.f32 %v7246_v39, %v14040_v30  ;;  %v14050_v52 = vld [vmem:[#allocation392_spill] sm:$0xff]  ;;  %v4758_v54 = vmul.f32 %v7247_v57, %v14030_v41  ;;  %v14051_v35 = vld [vmem:[#allocation537_spill] sm:$0xff]  ;;  %v14057_v26 = vld [vmem:[#allocation519_spill] sm:$0xff]  ;;  %v6445_v9 = vmul.f32 %v12220_v0, %v12060_v13 }
 0xe2f   : > { %v5736_v37 = vadd.f32 %v5704_v49, %v5619_v60  ;;  %v4984_v62 = vadd.f32 %v14050_v52, %v4772_v59  ;;  %v12331_v39 = vadd.f32 %v6275_v38, %v6158_v58  ;;  %v6451_v49 = vmul.f32 %v12115_v63, %v11786_v43  ;;  %v14052_v6 = vld [vmem:[#allocation424_spill] sm:$0xff]  ;;  %v14055_v16 = vld [vmem:[#allocation569_spill] sm:$0xff]  ;;  %v6279_v58 = vpop.permute.xlu0 %6278  ;;  %v6277_v52 = vpop.permute.xlu1 %6276 }
 0xe30   : > { %v4784_v60 = vadd.f32 %v4752_v55, %v12211_v45  ;;  %v5947_v4 = vadd.f32 %v14053_v36, %v5735_v20  ;;  %v4786_v59 = vadd.f32 %v4754_v40, %v12225_v50  ;;  %v14056_v63 = vld [vmem:[#allocation456_spill] sm:$0xff]  ;;  %v5705_v55 = vmul.f32 %v12082_v11, %v14057_v26  ;;  %v14058_v20 = vld [vmem:[#allocation570_spill] sm:$0xff]  ;;  %v14061_v57 = vld [vmem:[#allocation397_spill] sm:$0xff] }
 0xe31   : > { %v5948_v56 = vadd.f32 %v14051_v35, %v5736_v37  ;;  %v5196_v1 = vadd.f32 %v14052_v6, %v4984_v62  ;;  %6538 = vrot.lane.b32.xlu0 %v6448_v32, %s13401_s24  ;;  %v12344_v37 = vadd.f32 %v4756_v33, %v12234_v17  ;;  %6544 = vrot.lane.b32.xlu1 %v6451_v49, %s13401_s24  ;;  %v14059_v17 = vld [vmem:[#allocation427_spill] sm:$0xff]  ;;  %v12360_v62 = vld [vmem:[#allocation2 + $0x118] sm:$0xff] }
 0xe32   : > { %v6159_v25 = vadd.f32 %v14058_v20, %v5947_v4  ;;  %v12355_v50 = vadd.f32 %v4758_v54, %v12240_v29  ;;  %v5201_v40 = vadd.f32 %v14059_v17, %v4989_v19  ;;  %v6441_v38 = vmul.f32 %v12360_v62, %v12060_v13  ;;  %v14060_v11 = vld [vmem:[#allocation396_spill] sm:$0xff]  ;;  %v14063_v29 = vld [vmem:[#allocation398_spill] sm:$0xff]  ;;  %v14064_v6 = vld [vmem:[#allocation399_spill] sm:$0xff] }
 0xe33   : > { %v6160_v43 = vadd.f32 %v14055_v16, %v5948_v56  ;;  %v5408_v45 = vadd.f32 %v14056_v63, %v5196_v1  ;;  %v4988_v32 = vadd.f32 %v14060_v11, %v4776_v42  ;;  %v4991_v35 = vadd.f32 %v14061_v57, %v12277_v2  ;;  %v14062_v56 = vld [vmem:[#allocation488_spill] sm:$0xff]  ;;  %v14065_v36 = vld [vmem:[#allocation459_spill] sm:$0xff]  ;;  %v14067_v19 = vld [vmem:[#allocation401_spill] sm:$0xff]  ;;  %v12382_v63 = vpop.permute.xlu0 %6282 }
 0xe34   : > { %v12368_v49 = vadd.f32 %v6277_v52, %v6159_v25  ;;  %v4990_v54 = vadd.f32 %v14063_v29, %v12291_v5  ;;  %v4993_v1 = vadd.f32 %v14064_v6, %v12250_v3  ;;  %v5413_v4 = vadd.f32 %v14065_v36, %v5201_v40  ;;  %v14066_v2 = vld [vmem:[#allocation400_spill] sm:$0xff]  ;;  %v14068_v3 = vld [vmem:[#allocation402_spill] sm:$0xff]  ;;  %v14069_v20 = vld [vmem:[#allocation429_spill] sm:$0xff] }
 0xe35   : > { %v12358_v33 = vadd.f32 %v6279_v58, %v6160_v43  ;;  %v5620_v0 = vadd.f32 %v14062_v56, %v5408_v45  ;;  %6532 = vrot.lane.b32.xlu0 %v6445_v9, %s13401_s24  ;;  %v5710_v42 = vmul.f32 %v11837_v48, %v14036_v27  ;;  %6524 = vrot.lane.b32.xlu1 %v6441_v38, %s13401_s24  ;;  %v14070_v48 = vld [vmem:[#allocation491_spill] sm:$0xff]  ;;  %v12392_v9 = vld [vmem:[#allocation2 + $0x178] sm:$0xff] }
 0xe36   : > { %v4992_v24 = vadd.f32 %v14066_v2, %v4780_v31  ;;  %v4995_v16 = vadd.f32 %v14067_v19, %v12281_v28  ;;  %v6449_v5 = vmul.f32 %v12307_v61, %v12060_v13  ;;  %v12388_v45 = vadd.f32 %v14068_v3, %v12294_v8  ;;  %v14071_v28 = vld [vmem:[#allocation403_spill] sm:$0xff]  ;;  %v14072_v17 = vld [vmem:[#allocation404_spill] sm:$0xff]  ;;  %v14075_v11 = vld [vmem:[#allocation405_spill] sm:$0xff] }
 0xe37   : > { %v5737_v43 = vadd.f32 %v5705_v55, %v5620_v0  ;;  %v5203_v25 = vadd.f32 %v14069_v20, %v4991_v35  ;;  %v5625_v58 = vadd.f32 %v14070_v48, %v5413_v4  ;;  %v6241_v31 = vmul.f32 %v12392_v9, %v11540_v12  ;;  %v14073_v61 = vld [vmem:[#allocation428_spill] sm:$0xff]  ;;  %v14076_v35 = vld [vmem:[#allocation461_spill] sm:$0xff]  ;;  %v12418_v2 = vpop.permute.xlu0 %6286  ;;  %v14080_v19 = vld [vmem:[#allocation431_spill] sm:$0xff]  ;;  %v6281_v20 = vpop.permute.xlu1 %6280 }
 0xe38   : > { %v4997_v55 = vadd.f32 %v14071_v28, %v12262_v23  ;;  %v12399_v40 = vadd.f32 %v14072_v17, %v4784_v60  ;;  %v5200_v52 = vadd.f32 %v14073_v61, %v4988_v32  ;;  %v14074_v38 = vld [vmem:[#allocation540_spill] sm:$0xff]  ;;  %v12405_v57 = vadd.f32 %v14075_v11, %v4787_v14  ;;  %v6910_v23 = vld [vmem:[#allocation3] ss:$0 sm:$0xff]  ;;  %v14077_v60 = vld [vmem:[#allocation406_spill] sm:$0xff] }
 0xe39   : > { %v5949_v8 = vadd.f32 %v14074_v38, %v5737_v43  ;;  %6540 = vrot.lane.b32.xlu0 %v6449_v5, %s13401_s24  ;;  %v5415_v56 = vadd.f32 %v14076_v35, %v5203_v25  ;;  %v5742_v0 = vadd.f32 %v5710_v42, %v5625_v58  ;;  %v5712_v12 = vmul.f32 %v12002_v51, %v14043_v7  ;;  %v14078_v32 = vld [vmem:[#allocation460_spill] sm:$0xff]  ;;  %v14081_v43 = vld [vmem:[#allocation493_spill] sm:$0xff]  ;;  %v14082_v51 = vld [vmem:[#allocation543_spill] sm:$0xff] }
 0xe3a   : > { %6336 = vrot.lane.b32.xlu1 %v6241_v31, %s13368_s25  ;;  %v12412_v29 = vadd.f32 %v14077_v60, %v4786_v59  ;;  %v5412_v6 = vadd.f32 %v14078_v32, %v5200_v52  ;;  %v5709_v36 = vmul.f32 %v12139_v21, %v14057_v26  ;;  %v14079_v4 = vld [vmem:[#allocation572_spill] sm:$0xff]  ;;  %v5205_v42 = vadd.f32 %v14080_v19, %v4993_v1  ;;  %v14084_v58 = vld [vmem:[#allocation430_spill] sm:$0xff]  ;;  %v14086_v1 = vld [vmem:[#allocation463_spill] sm:$0xff]  ;;  %s285_s25 = sand.u32 1, %s7350_s27  }
 0xe3b   : > { %v6161_v14 = vadd.f32 %v14079_v4, %v5949_v8  ;;  %v5627_v5 = vadd.f32 %v14081_v43, %v5415_v56  ;;  %v5954_v3 = vadd.f32 %v14082_v51, %v5742_v0  ;;  %v6452_v59 = vmul.f32 %v12285_v34, %v11846_v18  ;;  %v14083_v25 = vld [vmem:[#allocation408_spill] sm:$0xff]  ;;  %v14087_v8 = vld [vmem:[#allocation575_spill] sm:$0xff]  ;;  %v14088_v18 = vld [vmem:[#allocation433_spill] sm:$0xff]  ;;  %v6291_v0 = vpop.permute.xlu0 %6290  ;;  %s6762_s29 = scalar_lea.sflag [#allocation5], %s285_s25 }
 0xe3c   : > { %v12427_v48 = vadd.f32 %v14083_v25, %v12266_v15  ;;  %v5202_v21 = vadd.f32 %v14084_v58, %v4990_v54  ;;  %v14085_v31 = vld [vmem:[#allocation492_spill] sm:$0xff]  ;;  %v5417_v61 = vadd.f32 %v14086_v1, %v5205_v42  ;;  %v5714_v38 = vmul.f32 %v11922_v22, %v14036_v27  ;;  %v14089_v34 = vld [vmem:[#allocation462_spill] sm:$0xff]  ;;  %v14091_v32 = vld [vmem:[#allocation545_spill] sm:$0xff]  ;;  %v12446_v22 = vpop.permute.xlu1 %6284 }
 0xe3d   : > { %v5624_v28 = vadd.f32 %v14085_v31, %v5412_v6  ;;  %v12431_v17 = vadd.f32 %v6281_v20, %v6161_v14  ;;  %6726 = vperm.xlu0 %7100, %v6910_v23   ;;  %v5744_v52 = vadd.f32 %v5712_v12, %v5627_v5  ;;  %v6166_v11 = vadd.f32 %v14087_v8, %v5954_v3  ;;  %v14090_v23 = vld [vmem:[#allocation495_spill] sm:$0xff]  ;;  %v14094_v42 = vld [vmem:[#allocation494_spill] sm:$0xff]  ;;  %v14095_v43 = vld [vmem:[#allocation544_spill] sm:$0xff] }
 0xe3e   : > { %6546 = vrot.lane.b32.xlu1 %v6452_v59, %s13401_s24  ;;  %v5207_v15 = vadd.f32 %v14088_v18, %v4995_v16  ;;  %v5414_v35 = vadd.f32 %v14089_v34, %v5202_v21  ;;  %v5711_v56 = vmul.f32 %v11936_v46, %v14045_v53  ;;  %v5629_v60 = vadd.f32 %v14090_v23, %v5417_v61  ;;  %v14092_v16 = vld [vmem:[#allocation407_spill] sm:$0xff]  ;;  %v14096_v51 = vld [vmem:[#allocation465_spill] sm:$0xff]  ;;  %v14101_v1 = vld [vmem:[#allocation576_spill] sm:$0xff] }
 0xe3f   : > { %v5741_v54 = vadd.f32 %v5709_v36, %v5624_v28  ;;  %v5956_v12 = vadd.f32 %v14091_v32, %v5744_v52  ;;  %v12444_v6 = vadd.f32 %v6291_v0, %v6166_v11  ;;  %v6453_v4 = vmul.f32 %v12392_v9, %v12060_v13  ;;  %v14093_v36 = vld [vmem:[#allocation432_spill] sm:$0xff]  ;;  %v14097_v59 = vld [vmem:[#allocation25_spill] sm:$0xff]  ;;  %v14100_v28 = vld [vmem:[#allocation26_spill] sm:$0xff]  ;;  %v6295_v52 = vpop.permute.xlu0 %6294 }
 0xe40   : > { %v12452_v14 = vadd.f32 %v14092_v16, %v12344_v37  ;;  %v5204_v19 = vadd.f32 %v14093_v36, %v4992_v24  ;;  %v5626_v46 = vadd.f32 %v14094_v42, %v5414_v35  ;;  %v5419_v3 = vadd.f32 %v14096_v51, %v5207_v15  ;;  %v14098_v58 = vld [vmem:[#allocation577_spill] sm:$0xff]  ;;  %v14099_v13 = vld [vmem:[#allocation464_spill] sm:$0xff]  ;;  %v14102_v8 = vld [vmem:[#allocation435_spill] sm:$0xff] }
 0xe41   : > { %v5953_v5 = vadd.f32 %v14095_v43, %v5741_v54  ;;  %v5746_v20 = vadd.f32 %v5714_v38, %v5629_v60  ;;  %v5716_v25 = vmul.f32 %v14097_v59, %v14043_v7  ;;  %v6168_v21 = vadd.f32 %v14098_v58, %v5956_v12  ;;  %v14103_v18 = vld [vmem:[#allocation497_spill] sm:$0xff]  ;;  %v14104_v15 = vld [vmem:[#allocation547_spill] sm:$0xff]  ;;  %v6289_v54 = vpop.permute.xlu1 %6288  ;;  %v14105_v0 = vld [vmem:[#allocation434_spill] sm:$0xff] }
 0xe42   : > { %6548 = vrot.lane.b32.xlu1 %v6453_v4, %s13401_s24  ;;  %v5416_v31 = vadd.f32 %v14099_v13, %v5204_v19  ;;  %v5743_v37 = vadd.f32 %v5711_v56, %v5626_v46  ;;  %v5713_v24 = vmul.f32 %v14100_v28, %v14057_v26  ;;  %v5209_v11 = vadd.f32 %v14102_v8, %v4997_v55  ;;  %v14106_v60 = vld [vmem:[#allocation496_spill] sm:$0xff]  ;;  %v14107_v32 = vld [vmem:[#allocation546_spill] sm:$0xff]  ;;  %v14108_v16 = vld [vmem:[#allocation467_spill] sm:$0xff]  ;;  %s12914_s24 = sshll.u32 %s285_s25, 3 }
 0xe43   : > { %v6165_v61 = vadd.f32 %v14101_v1, %v5953_v5  ;;  %v5631_v38 = vadd.f32 %v14103_v18, %v5419_v3  ;;  %v5958_v34 = vadd.f32 %v14104_v15, %v5746_v20  ;;  %v12469_v35 = vadd.f32 %v6295_v52, %v6168_v21  ;;  %v14109_v55 = vld [vmem:[#allocation24_spill] sm:$0xff]  ;;  %v14110_v46 = vld [vmem:[#allocation579_spill] sm:$0xff]  ;;  %v14111_v5 = vld [vmem:[#allocation466_spill] sm:$0xff]  ;;  %v6299_v21 = vpop.permute.xlu0 %6298  ;;  %s287_s22 = scalar_lea.vmem [#allocation4], %s12914_s24 }
 0xe44   : > { %v5206_v23 = vadd.f32 %v14105_v0, %v12388_v45  ;;  %v5628_v56 = vadd.f32 %v14106_v60, %v5416_v31  ;;  %v5955_v12 = vadd.f32 %v14107_v32, %v5743_v37  ;;  %v5421_v36 = vadd.f32 %v14108_v16, %v5209_v11  ;;  %v14112_v20 = vld [vmem:[#allocation52_spill] sm:$0xff]  ;;  %v14113_v59 = vld [vmem:[#allocation578_spill] sm:$0xff]  ;;  %v14114_v13 = vld [vmem:[#allocation437_spill] sm:$0xff]  ;;  %s6777_s13 = sshll.u32 %s287_s22, 4  ;;  %s12925_s13 = int_to_ptr.vmem [resolvable:$true] %s6777_s13 }
 0xe45   : > { %v12475_v4 = vadd.f32 %v6289_v54, %v6165_v61  ;;  %v5748_v19 = vadd.f32 %v5716_v25, %v5631_v38  ;;  %v5718_v42 = vmul.f32 %v14109_v55, %v14036_v27  ;;  %v6170_v43 = vadd.f32 %v14110_v46, %v5958_v34  ;;  %v14115_v37 = vld [vmem:[#allocation499_spill] sm:$0xff]  ;;  %v14116_v25 = vld [vmem:[#allocation549_spill] sm:$0xff]  ;;  %v6293_v52 = vpop.permute.xlu1 %6292  ;;  %v14117_v8 = vld [vmem:[#allocation436_spill] sm:$0xff]  ;;  %s7280_s6 = scalar_lea.vmem %s12925_s13, 128  ;;  %p7287_p2 = scmp.lt.s32.totalorder %s12925_s13, %s7285_s14 }
 0xe46   : > { %v5418_v51 = vadd.f32 %v14111_v5, %v5206_v23  ;;  %v5745_v3 = vadd.f32 %v5713_v24, %v5628_v56  ;;  %v5715_v45 = vmul.f32 %v14112_v20, %v14045_v53  ;;  %v6167_v58 = vadd.f32 %v14113_v59, %v5955_v12  ;;  %v14118_v24 = vld [vmem:[#allocation498_spill] sm:$0xff]  ;;  %v14119_v38 = vld [vmem:[#allocation548_spill] sm:$0xff]  ;;  %v14120_v54 = vld [vmem:[#allocation469_spill] sm:$0xff]  ;;  %p7281_p13 = scmp.ne.s32.totalorder %s12925_s13, %s7280_s6  ;;  %p7288_p4 = scmp.lt.s32.totalorder %s7286_s17, %s7280_s6 }
 0xe47   : > { %v5211_v31 = vadd.f32 %v14114_v13, %v12405_v57  ;;  %v5633_v28 = vadd.f32 %v14115_v37, %v5421_v36  ;;  %v5960_v1 = vadd.f32 %v14116_v25, %v5748_v19  ;;  %v12489_v61 = vadd.f32 %v6299_v21, %v6170_v43  ;;  %v14121_v57 = vld [vmem:[#allocation27_spill] sm:$0xff]  ;;  %v14122_v56 = vld [vmem:[#allocation581_spill] sm:$0xff]  ;;  %v14123_v12 = vld [vmem:[#allocation468_spill] sm:$0xff]  ;;  %v6303_v46 = vpop.permute.xlu0 %6302 }
 0xe48   : > { %v5208_v11 = vadd.f32 %v14117_v8, %v12399_v40  ;;  %v5630_v18 = vadd.f32 %v14118_v24, %v5418_v51  ;;  %v5957_v15 = vadd.f32 %v14119_v38, %v5745_v3  ;;  %v12495_v34 = vadd.f32 %v6293_v52, %v6167_v58  ;;  %v14124_v19 = vld [vmem:[#allocation580_spill] sm:$0xff]  ;;  %v14126_v51 = vld [vmem:[#allocation501_spill] sm:$0xff]  ;;  %v14128_v21 = vld [vmem:[#allocation438_spill] sm:$0xff]  ;;  %p7282_p0 = pnand %p7281_p13, %p7478_p3  ;;  %p7289_p5 = por %p7288_p4, %p7287_p2 }
 0xe49   : > { %v5423_v0 = vadd.f32 %v14120_v54, %v5211_v31  ;;  %v5750_v23 = vadd.f32 %v5718_v42, %v5633_v28  ;;  %v5720_v60 = vmul.f32 %v14121_v57, %v14043_v7  ;;  %v6172_v32 = vadd.f32 %v14122_v56, %v5960_v1  ;;  %v14125_v43 = vld [vmem:[#allocation440_spill] sm:$0xff]  ;;  %v14127_v42 = vld [vmem:[#allocation551_spill] sm:$0xff]  ;;  %v6297_v58 = vpop.permute.xlu1 %6296  ;;  %v14130_v37 = vld [vmem:[#allocation550_spill] sm:$0xff] }
 0xe4a   : > { %v5420_v16 = vadd.f32 %v14123_v12, %v5208_v11  ;;  %v5747_v36 = vadd.f32 %v5715_v45, %v5630_v18  ;;  %v5717_v40 = vmul.f32 %v12252_v47, %v14057_v26  ;;  %v6169_v55 = vadd.f32 %v14124_v19, %v5957_v15  ;;  %v14129_v45 = vld [vmem:[#allocation500_spill] sm:$0xff]  ;;  %v14133_v11 = vld [vmem:[#allocation583_spill] sm:$0xff]  ;;  %v14134_v18 = vld [vmem:[#allocation470_spill] sm:$0xff]  ;;  %p7283_p1 = pneg %p7282_p0 }
 0xe4b   : > { %v5213_v5 = vadd.f32 %v14125_v43, %v12427_v48  ;;  %v5635_v3 = vadd.f32 %v14126_v51, %v5423_v0  ;;  %v5962_v20 = vadd.f32 %v14127_v42, %v5750_v23  ;;  %v12509_v59 = vadd.f32 %v6303_v46, %v6172_v32  ;;  %v14131_v25 = vld [vmem:[#allocation472_spill] sm:$0xff]  ;;  %v14135_v54 = vld [vmem:[#allocation23_spill] sm:$0xff]  ;;  %v14136_v0 = vld [vmem:[#allocation582_spill] sm:$0xff]  ;;  %v6307_v57 = vpop.permute.xlu0 %6306 }
 0xe4c   : > { %v5210_v13 = vadd.f32 %v14128_v21, %v12412_v29  ;;  %v5632_v31 = vadd.f32 %v14129_v45, %v5420_v16  ;;  %v5959_v47 = vadd.f32 %v14130_v37, %v5747_v36  ;;  %v12515_v28 = vadd.f32 %v6297_v58, %v6169_v55  ;;  %v14132_v48 = vld [vmem:[#allocation56_spill] sm:$0xff]  ;;  %v14137_v56 = vld [vmem:[#allocation391_spill] sm:$0xff]  ;;  %v14145_v45 = vld [vmem:[#allocation585_spill] sm:$0xff]  ;;  %p7290_p6 = pnand %p7289_p5, %p7283_p1 }
 0xe4d   : > { %v5425_v1 = vadd.f32 %v14131_v25, %v5213_v5  ;;  %v5752_v52 = vadd.f32 %v5720_v60, %v5635_v3  ;;  %v5722_v8 = vmul.f32 %v14132_v48, %v14036_v27  ;;  %v6174_v24 = vadd.f32 %v14133_v11, %v5962_v20  ;;  %v14138_v12 = vld [vmem:[#allocation504_spill] sm:$0xff]  ;;  %v14139_v60 = vld [vmem:[#allocation553_spill] sm:$0xff]  ;;  %v6301_v55 = vpop.permute.xlu1 %6300  ;;  %v14140_v46 = vld [vmem:[#allocation439_spill] sm:$0xff] }
 0xe4e   : > { %v5422_v38 = vadd.f32 %v14134_v18, %v5210_v13  ;;  %v5749_v15 = vadd.f32 %v5717_v40, %v5632_v31  ;;  %v5719_v29 = vmul.f32 %v14135_v54, %v14045_v53  ;;  %v6171_v23 = vadd.f32 %v14136_v0, %v5959_v47  ;;  %v14141_v40 = vld [vmem:[#allocation502_spill] sm:$0xff]  ;;  %v14142_v51 = vld [vmem:[#allocation552_spill] sm:$0xff]  ;;  %v14143_v20 = vld [vmem:[#allocation409_spill] sm:$0xff] }
 0xe4f   : > { %v4985_v32 = vadd.f32 %v14137_v56, %v12243_v44  ;;  %v5637_v16 = vadd.f32 %v14138_v12, %v5425_v1  ;;  %v5964_v36 = vadd.f32 %v14139_v60, %v5752_v52  ;;  %v12529_v19 = vadd.f32 %v6307_v57, %v6174_v24  ;;  %v14144_v44 = vld [vmem:[#allocation423_spill] sm:$0xff]  ;;  %v14147_v1 = vld [vmem:[#allocation584_spill] sm:$0xff]  ;;  %v6311_v48 = vpop.permute.xlu0 %6310  ;;  %v14149_v18 = vld [vmem:[#allocation53_spill] sm:$0xff] }
 0xe50   : > { %v5212_v43 = vadd.f32 %v14140_v46, %v12452_v14  ;;  %v5634_v5 = vadd.f32 %v14141_v40, %v5422_v38  ;;  %v5961_v3 = vadd.f32 %v14142_v51, %v5749_v15  ;;  %v12535_v42 = vadd.f32 %v6301_v55, %v6171_v23  ;;  %v14146_v37 = vld [vmem:[#allocation471_spill] sm:$0xff]  ;;  %v14151_v0 = vld [vmem:[#allocation441_spill] sm:$0xff]  ;;  %v14153_v56 = vld [vmem:[#allocation554_spill] sm:$0xff] }
 0xe51   : > { %v5002_v58 = vadd.f32 %v14143_v20, %v12355_v50  ;;  %v5197_v21 = vadd.f32 %v14144_v44, %v4985_v32  ;;  %v5754_v13 = vadd.f32 %v5722_v8, %v5637_v16  ;;  %v6176_v31 = vadd.f32 %v14145_v45, %v5964_v36  ;;  %v14148_v11 = vld [vmem:[#allocation455_spill] sm:$0xff]  ;;  %v14150_v50 = vld [vmem:[#allocation556_spill] sm:$0xff]  ;;  %v6305_v8 = vpop.permute.xlu1 %6304  ;;  %v14154_v12 = vld [vmem:[#allocation61_spill] sm:$0xff] }
 0xe52   : > { %v5424_v47 = vadd.f32 %v14146_v37, %v5212_v43  ;;  %v5751_v25 = vadd.f32 %v5719_v29, %v5634_v5  ;;  %v5721_v14 = vmul.f32 %v12360_v62, %v14057_v26  ;;  %v6173_v52 = vadd.f32 %v14147_v1, %v5961_v3  ;;  %v14152_v57 = vld [vmem:[#allocation503_spill] sm:$0xff]  ;;  %v14155_v16 = vld [vmem:[#allocation261_spill] sm:$0xff]  ;;  %v14158_v40 = vld [vmem:[#allocation588_spill] sm:$0xff] }
 0xe53   : > { %v5409_v24 = vadd.f32 %v14148_v11, %v5197_v21  ;;  %v5706_v38 = vmul.f32 %v14149_v18, %v14036_v27  ;;  %v5966_v15 = vadd.f32 %v14150_v50, %v5754_v13  ;;  %v12549_v54 = vadd.f32 %v6311_v48, %v6176_v31  ;;  %v14156_v36 = vld [vmem:[#allocation15_spill] sm:$0xff]  ;;  %v14159_v51 = vld [vmem:[#allocation473_spill] sm:$0xff]  ;;  %v14161_v21 = vld [vmem:[#allocation586_spill] sm:$0xff]  ;;  %v6315_v45 = vpop.permute.xlu0 %6314 }
 0xe54   : > { %v5214_v23 = vadd.f32 %v14151_v0, %v5002_v58  ;;  %v5636_v29 = vadd.f32 %v14152_v57, %v5424_v47  ;;  %v5963_v32 = vadd.f32 %v14153_v56, %v5751_v25  ;;  %v12554_v62 = vadd.f32 %v6305_v8, %v6173_v52  ;;  %v14157_v46 = vld [vmem:[#allocation487_spill] sm:$0xff]  ;;  %v14160_v58 = vld [vmem:[#allocation62_spill] sm:$0xff]  ;;  %v14162_v31 = vld [vmem:[#allocation21_spill] sm:$0xff] }
 0xe55   : > { %v4022_v60 = vadd.f32 %v14155_v16, %v14154_v12  ;;  %v4774_v55 = vadd.f32 %v12274_v10, %v14156_v36  ;;  %v5621_v43 = vadd.f32 %v14157_v46, %v5409_v24  ;;  %v6178_v5 = vadd.f32 %v14158_v40, %v5966_v15  ;;  %v14163_v37 = vld [vmem:[#allocation196_spill] sm:$0xff]  ;;  %v14164_v25 = vld [vmem:[#allocation293_spill] sm:$0xff]  ;;  %v6309_v48 = vpop.permute.xlu1 %6308  ;;  %v14165_v11 = vld [vmem:[#allocation394_spill] sm:$0xff] }
 0xe56   : > { %v5426_v3 = vadd.f32 %v14159_v51, %v5214_v23  ;;  %v5753_v20 = vadd.f32 %v5721_v14, %v5636_v29  ;;  %v5723_v44 = vmul.f32 %v14160_v58, %v14045_v53  ;;  %v6175_v13 = vadd.f32 %v14161_v21, %v5963_v32  ;;  %v14166_v18 = vld [vmem:[#allocation505_spill] sm:$0xff]  ;;  %v14167_v14 = vld [vmem:[#allocation555_spill] sm:$0xff]  ;;  %v14169_v23 = vld [vmem:[#allocation182_spill] sm:$0xff] }
 0xe57   : > { %v2749_v47 = vadd.f32 %v14163_v37, %v14162_v31  ;;  %v4234_v1 = vadd.f32 %v14164_v25, %v4022_v60  ;;  %v5738_v52 = vadd.f32 %v5706_v38, %v5621_v43  ;;  %v12569_v10 = vadd.f32 %v6315_v45, %v6178_v5  ;;  %v14168_v0 = vld [vmem:[#allocation59_spill] sm:$0xff]  ;;  %v14170_v29 = vld [vmem:[#allocation16_spill] sm:$0xff]  ;;  %v14171_v56 = vld [vmem:[#allocation617_spill] sm:$0xff] }
 0xe58   : > { %v4986_v24 = vadd.f32 %v14165_v11, %v4774_v55  ;;  %v5638_v50 = vadd.f32 %v14166_v18, %v5426_v3  ;;  %v5965_v15 = vadd.f32 %v14167_v14, %v5753_v20  ;;  %v12574_v8 = vadd.f32 %v6309_v48, %v6175_v13  ;;  %v14172_v12 = vld [vmem:[#allocation325_spill] sm:$0xff]  ;;  %v14173_v38 = vld [vmem:[#allocation539_spill] sm:$0xff]  ;;  %v14175_v55 = vld [vmem:[#allocation426_spill] sm:$0xff]  ;;  %v6487_v20 = vpop.permute.xlu0 %6486 }
 0xe59   : > { %v2541_v57 = vadd.f32 %v14169_v23, %v14168_v0  ;;  %v2865_v32 = vadd.f32 %v14171_v56, %v14170_v29  ;;  %v4446_v16 = vadd.f32 %v14172_v12, %v4234_v1  ;;  %v5950_v60 = vadd.f32 %v14173_v38, %v5738_v52  ;;  %v7250_v36 = vld [vmem:[#allocation2 + $0x90] sm:$0xff]  ;;  %v14174_v46 = vld [vmem:[#allocation385_spill] sm:$0xff]  ;;  %v6313_v1 = vpop.permute.xlu1 %6312  ;;  %v14180_v48 = vld [vmem:[#allocation458_spill] sm:$0xff] }
 0xe5a   : > { %v4743_v43 = vmul.f32 %v7250_v36, %v14174_v46  ;;  %v5198_v40 = vadd.f32 %v14175_v55, %v4986_v24  ;;  %v5755_v5 = vadd.f32 %v5723_v44, %v5638_v50  ;;  %v14176_v51 = vld [vmem:[#allocation587_spill] sm:$0xff]  ;;  %v14178_v13 = vld [vmem:[#allocation357_spill] sm:$0xff]  ;;  %v6582_v25 = vadd.f32 %v6487_v20, %v12331_v39  ;;  %v14181_v11 = vld [vmem:[#allocation58_spill] sm:$0xff] }
 0xe5b   : > { %v6177_v3 = vadd.f32 %v14176_v51, %v5965_v15  ;;  %v14177_v58 = vld [vmem:[#allocation47_spill] sm:$0xff]  ;;  %v4658_v45 = vadd.f32 %v14178_v13, %v4446_v16  ;;  %v5707_v18 = vmul.f32 %v14181_v11, %v14045_v53  ;;  %v14182_v14 = vld [vmem:[#allocation557_spill] sm:$0xff]  ;;  %v14189_v36 = vld [vmem:[#allocation490_spill] sm:$0xff] }
 0xe5c   : > { %v2866_v21 = vadd.f32 %v14177_v58, %v2749_v47  ;;  %v14179_v31 = vld [vmem:[#allocation571_spill] sm:$0xff]  ;;  %v5410_v52 = vadd.f32 %v14180_v48, %v5198_v40  ;;  %v5967_v24 = vadd.f32 %v14182_v14, %v5755_v5  ;;  %v14183_v50 = vld [vmem:[#allocation57_spill] sm:$0xff]  ;;  %v14185_v47 = vld [vmem:[#allocation184_spill] sm:$0xff]  ;;  %v6495_v5 = vpop.permute.xlu0 %6494 }
 0xe5d   : > { %v6162_v37 = vadd.f32 %v14179_v31, %v5950_v60  ;;  %v12593_v44 = vadd.f32 %v6313_v1, %v6177_v3  ;;  %v14184_v15 = vld [vmem:[#allocation181_spill] sm:$0xff]  ;;  %v2753_v23 = vadd.f32 %v14185_v47, %v2541_v57  ;;  %v14186_v29 = vld [vmem:[#allocation183_spill] sm:$0xff]  ;;  %v4775_v60 = vadd.f32 %v4743_v43, %v4658_v45  ;;  %v14191_v3 = vld [vmem:[#allocation54_spill] sm:$0xff]  ;;  %v6317_v11 = vpop.permute.xlu1 %6316 }
 0xe5e   : > { %v2752_v0 = vadd.f32 %v14184_v15, %v14183_v50  ;;  %v3077_v56 = vadd.f32 %v14186_v29, %v2865_v32  ;;  %v14187_v39 = vld [vmem:[#allocation55_spill] sm:$0xff]  ;;  %v14188_v16 = vld [vmem:[#allocation49_spill] sm:$0xff]  ;;  %v5622_v55 = vadd.f32 %v14189_v36, %v5410_v52  ;;  %v14195_v57 = vld [vmem:[#allocation186_spill] sm:$0xff] }
 0xe5f   : > { %v6374_v12 = vadd.f32 %v12382_v63, %v6162_v37  ;;  %v2862_v38 = vadd.f32 %v14188_v16, %v14187_v39  ;;  %v14190_v40 = vld [vmem:[#allocation589_spill] sm:$0xff]  ;;  %v14192_v20 = vld [vmem:[#allocation51_spill] sm:$0xff]  ;;  %v3078_v48 = vadd.f32 %v14195_v57, %v2866_v21  ;;  %v14196_v63 = vld [vmem:[#allocation20_spill] sm:$0xff] }
 0xe60   : > { %v6179_v51 = vadd.f32 %v14190_v40, %v5967_v24  ;;  %v2868_v58 = vadd.f32 %v14192_v20, %v14191_v3  ;;  %v14193_v13 = vld [vmem:[#allocation13_spill] sm:$0xff]  ;;  %v14197_v37 = vld [vmem:[#allocation148_spill] sm:$0xff]  ;;  %v5739_v45 = vadd.f32 %v5707_v18, %v5622_v55  ;;  %v14199_v24 = vld [vmem:[#allocation11_spill] sm:$0xff]  ;;  %v6503_v55 = vpop.permute.xlu0 %6502 }
 0xe61   : > { %v14194_v31 = vld [vmem:[#allocation145_spill] sm:$0xff]  ;;  %v6586_v32 = vadd.f32 %v6495_v5, %v6374_v12  ;;  %v3288_v14 = vadd.f32 %v14197_v37, %v14196_v63  ;;  %v14200_v15 = vld [vmem:[#allocation195_spill] sm:$0xff]  ;;  %v14201_v29 = vld [vmem:[#allocation12_spill] sm:$0xff] }
 0xe62   : > { %v3287_v1 = vadd.f32 %v14194_v31, %v14193_v13  ;;  %v14198_v50 = vld [vmem:[#allocation393_spill] sm:$0xff]  ;;  %v12612_v52 = vadd.f32 %v6317_v11, %v6179_v51  ;;  %v3073_v47 = vadd.f32 %v14200_v15, %v14199_v24  ;;  %v2869_v39 = vadd.f32 %v14201_v29, %v2752_v0  ;;  %v14202_v16 = vld [vmem:[#allocation50_spill] sm:$0xff]  ;;  %v14209_v51 = vld [vmem:[#allocation199_spill] sm:$0xff] }
 0xe63   : > { %v4987_v43 = vadd.f32 %v14198_v50, %v4775_v60  ;;  %v2870_v36 = vadd.f32 %v14202_v16, %v2753_v23  ;;  %v14203_v40 = vld [vmem:[#allocation185_spill] sm:$0xff]  ;;  %v14204_v21 = vld [vmem:[#allocation14_spill] sm:$0xff]  ;;  %v14210_v63 = vld [vmem:[#allocation188_spill] sm:$0xff]  ;;  %v6590_v0 = vadd.f32 %v6503_v55, %v12444_v6  ;;  %v6489_v23 = vpop.permute.xlu1 %6488 }
 0xe64   : > { %v3289_v3 = vadd.f32 %v14203_v40, %v3077_v56  ;;  %v14205_v12 = vld [vmem:[#allocation197_spill] sm:$0xff]  ;;  %v14206_v20 = vld [vmem:[#allocation198_spill] sm:$0xff]  ;;  %v3285_v11 = vadd.f32 %v14209_v51, %v3073_v47  ;;  %v3290_v37 = vadd.f32 %v14210_v63, %v3078_v48  ;;  %v14214_v16 = vld [vmem:[#allocation200_spill] sm:$0xff]  ;;  %v6491_v51 = vpop.permute.xlu0 %6490 }
 0xe65   : > { %v3079_v5 = vadd.f32 %v14205_v12, %v14204_v21  ;;  %v3074_v13 = vadd.f32 %v14206_v20, %v2862_v38  ;;  %v14207_v31 = vld [vmem:[#allocation425_spill] sm:$0xff]  ;;  %v14208_v60 = vld [vmem:[#allocation542_spill] sm:$0xff]  ;;  %v14217_v48 = vld [vmem:[#allocation203_spill] sm:$0xff] }
 0xe66   : > { %v5199_v57 = vadd.f32 %v14207_v31, %v4987_v43  ;;  %v5951_v18 = vadd.f32 %v14208_v60, %v5739_v45  ;;  %v14211_v50 = vld [vmem:[#allocation457_spill] sm:$0xff]  ;;  %v14212_v24 = vld [vmem:[#allocation22_spill] sm:$0xff]  ;;  %v6583_v43 = vadd.f32 %v6489_v23, %v12368_v49  ;;  %v3080_v45 = vadd.f32 %v14214_v16, %v2868_v58  ;;  %v14220_v49 = vld [vmem:[#allocation207_spill] sm:$0xff] }
 0xe67   : > { %v5708_v15 = vmul.f32 %v14212_v24, %v14043_v7  ;;  %v14213_v29 = vld [vmem:[#allocation574_spill] sm:$0xff]  ;;  %v14215_v40 = vld [vmem:[#allocation201_spill] sm:$0xff]  ;;  %v3081_v20 = vadd.f32 %v14217_v48, %v2869_v39  ;;  %v3082_v23 = vadd.f32 %v14220_v49, %v2870_v36 }
 0xe68   : > { %v5411_v56 = vadd.f32 %v14211_v50, %v5199_v57  ;;  %v6163_v38 = vadd.f32 %v14213_v29, %v5951_v18  ;;  %v3291_v21 = vadd.f32 %v14215_v40, %v3079_v5  ;;  %v14216_v47 = vld [vmem:[#allocation202_spill] sm:$0xff]  ;;  %v14218_v31 = vld [vmem:[#allocation489_spill] sm:$0xff]  ;;  %v6615_v57 = vsel %vm6614_vm10, %v6582_v25, 0.0  ;;  %v14219_v18 = vld [vmem:[#allocation204_spill] sm:$0xff]  ;;  %v6497_v50 = vpop.permute.xlu1 %6496 }
 0xe69   : > { %v3286_v12 = vadd.f32 %v14216_v47, %v3074_v13  ;;  %v6616_v55 = vsel %vm6614_vm10, %v6583_v43, 0.0  ;;  %v3292_v63 = vadd.f32 %v14219_v18, %v3080_v45  ;;  %v6584_v5 = vadd.f32 %v6491_v51, %v12358_v33  ;;  %v14221_v13 = vld [vmem:[#allocation205_spill] sm:$0xff]  ;;  %v14222_v39 = vld [vmem:[#allocation210_spill] sm:$0xff]  ;;  %v14224_v25 = vld [vmem:[#allocation212_spill] sm:$0xff] }
 0xe6a   : > { %v5623_v6 = vadd.f32 %v14218_v31, %v5411_v56  ;;  %v6375_v60 = vadd.f32 %v12446_v22, %v6163_v38  ;;  %v6617_v58 = vadd.f32 %v6616_v55, %v6615_v57  ;;  %v3293_v24 = vadd.f32 %v14221_v13, %v3081_v20  ;;  %v14223_v22 = vld [vmem:[#allocation209_spill] sm:$0xff]  ;;  %v14225_v43 = vld [vmem:[#allocation211_spill] sm:$0xff]  ;;  %v6511_v57 = vpop.permute.xlu0 %6510  ;;  %v14229_v55 = vld [vmem:[#allocation216_spill] sm:$0xff] }
 0xe6b   : > { %v3497_v29 = vadd.f32 %v14222_v39, %v3285_v11  ;;  %v3294_v38 = vadd.f32 %v14223_v22, %v3082_v23  ;;  %v3499_v40 = vadd.f32 %v14224_v25, %v3287_v1  ;;  %v3498_v47 = vadd.f32 %v14225_v43, %v3286_v12  ;;  %v14226_v48 = vld [vmem:[#allocation541_spill] sm:$0xff]  ;;  %v14227_v11 = vld [vmem:[#allocation214_spill] sm:$0xff]  ;;  %v14230_v12 = vld [vmem:[#allocation215_spill] sm:$0xff] }
 0xe6c   : > { %v5740_v56 = vadd.f32 %v5708_v15, %v5623_v6  ;;  %v6587_v16 = vadd.f32 %v6497_v50, %v6375_v60  ;;  %v6618_v45 = vsel %vm6614_vm10, %v6584_v5, 0.0  ;;  %v6628_v31 = vsel %vm6614_vm10, %v6586_v32, 0.0  ;;  %v14228_v6 = vld [vmem:[#allocation213_spill] sm:$0xff]  ;;  %v6505_v18 = vpop.permute.xlu1 %6504  ;;  %v14231_v23 = vld [vmem:[#allocation218_spill] sm:$0xff]  ;;  %v14236_v25 = vld [vmem:[#allocation244_spill] sm:$0xff] }
 0xe6d   : > { %v12651_v33 = vadd.f32 %v6618_v45, %v6617_v58  ;;  %v3501_v15 = vadd.f32 %v14227_v11, %v3289_v3  ;;  %v3500_v60 = vadd.f32 %v14228_v6, %v3288_v14  ;;  %v3503_v51 = vadd.f32 %v14229_v55, %v3291_v21  ;;  %v14232_v50 = vld [vmem:[#allocation573_spill] sm:$0xff]  ;;  %v14235_v22 = vld [vmem:[#allocation242_spill] sm:$0xff]  ;;  %v14237_v43 = vld [vmem:[#allocation243_spill] sm:$0xff] }
 0xe6e   : > { %v5952_v36 = vadd.f32 %v14226_v48, %v5740_v56  ;;  %v6629_v20 = vsel %vm6614_vm10, %v6587_v16, 0.0  ;;  %v3502_v49 = vadd.f32 %v14230_v12, %v3290_v37  ;;  %v3505_v5 = vadd.f32 %v14231_v23, %v3293_v24  ;;  %v14233_v58 = vld [vmem:[#allocation217_spill] sm:$0xff]  ;;  %v14234_v56 = vld [vmem:[#allocation219_spill] sm:$0xff]  ;;  %v12669_v48 = vpop.permute.xlu0 %6322  ;;  %v14242_v55 = vld [vmem:[#allocation250_spill] sm:$0xff] }
 0xe6f   : > { %v6630_v1 = vadd.f32 %v6629_v20, %v6628_v31  ;;  %v6591_v32 = vadd.f32 %v6505_v18, %v12495_v34  ;;  %v3504_v39 = vadd.f32 %v14233_v58, %v3292_v63  ;;  %v3506_v16 = vadd.f32 %v14234_v56, %v3294_v38  ;;  %v14239_v31 = vld [vmem:[#allocation245_spill] sm:$0xff]  ;;  %v14240_v20 = vld [vmem:[#allocation248_spill] sm:$0xff]  ;;  %v14241_v6 = vld [vmem:[#allocation247_spill] sm:$0xff] }
 0xe70   : > { %v6164_v13 = vadd.f32 %v14232_v50, %v5952_v36  ;;  %v3709_v3 = vadd.f32 %v14235_v22, %v3497_v29  ;;  %v3711_v14 = vadd.f32 %v14236_v25, %v3499_v40  ;;  %v3710_v21 = vadd.f32 %v14237_v43, %v3498_v47  ;;  %v14238_v36 = vld [vmem:[#allocation246_spill] sm:$0xff]  ;;  %v6499_v29 = vpop.permute.xlu1 %6498  ;;  %v14243_v18 = vld [vmem:[#allocation249_spill] sm:$0xff]  ;;  %v7251_v50 = vld [vmem:[#allocation2 + $0xf0] sm:$0xff] }
 0xe71   : > { %v6641_v37 = vsel %vm6614_vm10, %v6590_v0, 0.0  ;;  %v6642_v24 = vsel %vm6614_vm10, %v6591_v32, 0.0  ;;  %v3713_v34 = vadd.f32 %v14238_v36, %v3501_v15  ;;  %v3712_v63 = vadd.f32 %v14239_v31, %v3500_v60  ;;  %v14244_v0 = vld [vmem:[#allocation252_spill] sm:$0xff]  ;;  %v7252_v58 = vld [vmem:[#allocation2 + $0x100] sm:$0xff]  ;;  %v14246_v15 = vld [vmem:[#allocation251_spill] sm:$0xff] }
 0xe72   : > { %v6376_v45 = vadd.f32 %v12418_v2, %v6164_v13  ;;  %v3715_v38 = vadd.f32 %v14240_v20, %v3503_v51  ;;  %v6643_v11 = vadd.f32 %v6642_v24, %v6641_v37  ;;  %v3714_v40 = vadd.f32 %v14241_v6, %v3502_v49  ;;  %v14245_v13 = vld [vmem:[#allocation253_spill] sm:$0xff]  ;;  %v14247_v25 = vld [vmem:[#allocation255_spill] sm:$0xff]  ;;  %v14248_v24 = vld [vmem:[#allocation254_spill] sm:$0xff] }
 0xe73   : > { %v3717_v47 = vadd.f32 %v14242_v55, %v3505_v5  ;;  %v3716_v2 = vadd.f32 %v14243_v18, %v3504_v39  ;;  %v3718_v23 = vadd.f32 %v14244_v0, %v3506_v16  ;;  %v3794_v32 = vmul.f32 %v7251_v50, %v14245_v13  ;;  %v7253_v60 = vld [vmem:[#allocation2 + $0x120] sm:$0xff]  ;;  %v7254_v22 = vld [vmem:[#allocation2 + $0xf8] sm:$0xff]  ;;  %v7255_v49 = vld [vmem:[#allocation2 + $0x110] sm:$0xff]  ;;  %v6507_v16 = vpop.permute.xlu0 %6506 }
 0xe74   : > { %v6588_v12 = vadd.f32 %v6499_v29, %v6376_v45  ;;  %v3796_v56 = vmul.f32 %v7252_v58, %v14246_v15  ;;  %v3800_v51 = vmul.f32 %v7253_v60, %v14246_v15  ;;  %v3795_v43 = vmul.f32 %v7254_v22, %v14247_v25  ;;  %v7256_v37 = vld [vmem:[#allocation2 + $0x108] sm:$0xff]  ;;  %v7257_v31 = vld [vmem:[#allocation2 + $0x118] sm:$0xff]  ;;  %v6513_v55 = vpop.permute.xlu1 %6512  ;;  %v7258_v18 = vld [vmem:[#allocation2 + $0x130] sm:$0xff] }
 0xe75   : > { %v3798_v5 = vmul.f32 %v7255_v49, %v14245_v13  ;;  %v6594_v39 = vadd.f32 %v6511_v57, %v12489_v61  ;;  %v3797_v36 = vmul.f32 %v7256_v37, %v14248_v24  ;;  %v3799_v20 = vmul.f32 %v7257_v31, %v14247_v25  ;;  %v7259_v50 = vld [vmem:[#allocation2 + $0x128] sm:$0xff]  ;;  %v7260_v57 = vld [vmem:[#allocation2 + $0x138] sm:$0xff] }
 0xe76   : > { %v6631_v45 = vsel %vm6614_vm10, %v6588_v12, 0.0  ;;  %v6592_v6 = vadd.f32 %v6507_v16, %v12469_v35  ;;  %v3802_v0 = vmul.f32 %v7258_v18, %v14245_v13  ;;  %v3801_v61 = vmul.f32 %v7259_v50, %v14248_v24 }
 0xe77   : > { %v12687_v29 = vadd.f32 %v6631_v45, %v6630_v1  ;;  %v3803_v12 = vmul.f32 %v7260_v57, %v14247_v25  ;;  %v6595_v58 = vadd.f32 %v6513_v55, %v12535_v42  ;;  %v3826_v15 = vadd.f32 %v3794_v32, %v3709_v3  ;;  %v6521_v16 = vpop.permute.xlu0 %6520  ;;  %v14249_v42 = vld [vmem:[#allocation278_spill] sm:$0xff] }
 0xe78   : > { %v3828_v60 = vadd.f32 %v3796_v56, %v3711_v14  ;;  %v3832_v22 = vadd.f32 %v3800_v51, %v3715_v38  ;;  %v6644_v1 = vsel %vm6614_vm10, %v6592_v6, 0.0  ;;  %v3827_v49 = vadd.f32 %v3795_v43, %v3710_v21  ;;  %v12701_v25 = vpop.permute.xlu1 %6324  ;;  %v14250_v21 = vld [vmem:[#allocation280_spill] sm:$0xff]  ;;  %v14251_v51 = vld [vmem:[#allocation279_spill] sm:$0xff]  ;;  %v14252_v43 = vld [vmem:[#allocation282_spill] sm:$0xff] }
 0xe79   : > { %v6654_v35 = vsel %vm6614_vm10, %v6594_v39, 0.0  ;;  %v12696_v45 = vadd.f32 %v6644_v1, %v6643_v11  ;;  %v6655_v13 = vsel %vm6614_vm10, %v6595_v58, 0.0  ;;  %v3830_v37 = vadd.f32 %v3798_v5, %v3713_v34  ;;  %v14253_v6 = vld [vmem:[#allocation281_spill] sm:$0xff]  ;;  %v14254_v34 = vld [vmem:[#allocation284_spill] sm:$0xff]  ;;  %v14261_v1 = vld [vmem:[#allocation311_spill] sm:$0xff] }
 0xe7a   : > { %v3829_v24 = vadd.f32 %v3797_v36, %v3712_v63  ;;  %v3831_v31 = vadd.f32 %v3799_v20, %v3714_v40  ;;  %v12699_v18 = vadd.f32 %v6655_v13, %v6654_v35  ;;  %v4038_v3 = vadd.f32 %v14249_v42, %v3826_v15  ;;  %v14255_v40 = vld [vmem:[#allocation283_spill] sm:$0xff]  ;;  %v14256_v36 = vld [vmem:[#allocation286_spill] sm:$0xff]  ;;  %v14260_v58 = vld [vmem:[#allocation312_spill] sm:$0xff] }
 0xe7b   : > { %v3834_v14 = vadd.f32 %v3802_v0, %v3717_v47  ;;  %v3833_v38 = vadd.f32 %v3801_v61, %v3716_v2  ;;  %v3835_v32 = vadd.f32 %v3803_v12, %v3718_v23  ;;  %v4040_v56 = vadd.f32 %v14250_v21, %v3828_v60  ;;  %v12712_v57 = vpop.permute.xlu0 %6330  ;;  %v14257_v47 = vld [vmem:[#allocation285_spill] sm:$0xff]  ;;  %v14258_v23 = vld [vmem:[#allocation287_spill] sm:$0xff]  ;;  %v14259_v61 = vld [vmem:[#allocation310_spill] sm:$0xff] }
 0xe7c   : > { %v4039_v11 = vadd.f32 %v14251_v51, %v3827_v49  ;;  %v4042_v39 = vadd.f32 %v14252_v43, %v3830_v37  ;;  %v4041_v55 = vadd.f32 %v14253_v6, %v3829_v24  ;;  %v4044_v63 = vadd.f32 %v14254_v34, %v3832_v22  ;;  %v6519_v60 = vpop.permute.xlu1 %6518  ;;  %v14262_v22 = vld [vmem:[#allocation314_spill] sm:$0xff]  ;;  %v14263_v13 = vld [vmem:[#allocation313_spill] sm:$0xff] }
 0xe7d   : > { %v4043_v5 = vadd.f32 %v14255_v40, %v3831_v31  ;;  %v4046_v20 = vadd.f32 %v14256_v36, %v3834_v14  ;;  %v6599_v50 = vadd.f32 %v6521_v16, %v12574_v8  ;;  %v4045_v2 = vadd.f32 %v14257_v47, %v3833_v38  ;;  %v14264_v8 = vld [vmem:[#allocation316_spill] sm:$0xff]  ;;  %v14265_v31 = vld [vmem:[#allocation315_spill] sm:$0xff]  ;;  %v14266_v14 = vld [vmem:[#allocation318_spill] sm:$0xff] }
 0xe7e   : > { %v4047_v0 = vadd.f32 %v14258_v23, %v3835_v32  ;;  %v4250_v12 = vadd.f32 %v14259_v61, %v4038_v3  ;;  %v4252_v15 = vadd.f32 %v14260_v58, %v4040_v56  ;;  %v4251_v49 = vadd.f32 %v14261_v1, %v4039_v11  ;;  %v14267_v32 = vld [vmem:[#allocation317_spill] sm:$0xff]  ;;  %v14268_v3 = vld [vmem:[#allocation319_spill] sm:$0xff]  ;;  %v14269_v56 = vld [vmem:[#allocation342_spill] sm:$0xff] }
 0xe7f   : > { %v4254_v35 = vadd.f32 %v14262_v22, %v4042_v39  ;;  %v4253_v37 = vadd.f32 %v14263_v13, %v4041_v55  ;;  %v6598_v24 = vadd.f32 %v6519_v60, %v12529_v19  ;;  %v4256_v16 = vadd.f32 %v14264_v8, %v4044_v63  ;;  %v6493_v6 = vpop.permute.xlu0 %6492  ;;  %v14270_v55 = vld [vmem:[#allocation344_spill] sm:$0xff]  ;;  %v14271_v19 = vld [vmem:[#allocation343_spill] sm:$0xff] }
 0xe80   : > { %v4255_v42 = vadd.f32 %v14265_v31, %v4043_v5  ;;  %v4258_v38 = vadd.f32 %v14266_v14, %v4046_v20  ;;  %v4257_v21 = vadd.f32 %v14267_v32, %v4045_v2  ;;  %v4259_v51 = vadd.f32 %v14268_v3, %v4047_v0  ;;  %v12735_v36 = vpop.permute.xlu1 %6318  ;;  %v14272_v20 = vld [vmem:[#allocation346_spill] sm:$0xff]  ;;  %v14273_v2 = vld [vmem:[#allocation345_spill] sm:$0xff]  ;;  %v14274_v0 = vld [vmem:[#allocation348_spill] sm:$0xff] }
 0xe81   : > { %v4462_v43 = vadd.f32 %v14269_v56, %v4250_v12  ;;  %v6668_v11 = vsel %vm6614_vm10, %v6599_v50, 0.0  ;;  %v6667_v39 = vsel %vm6614_vm10, %v6598_v24, 0.0  ;;  %v4464_v34 = vadd.f32 %v14270_v55, %v4252_v15  ;;  %v7261_v50 = vld [vmem:[#allocation2 + $0x120] sm:$0xff]  ;;  %v14275_v12 = vld [vmem:[#allocation383_spill] sm:$0xff]  ;;  %v14280_v14 = vld [vmem:[#allocation376_spill] sm:$0xff] }
 0xe82   : > { %v4463_v40 = vadd.f32 %v14271_v19, %v4251_v49  ;;  %v12732_v63 = vadd.f32 %v6668_v11, %v6667_v39  ;;  %v6585_v5 = vadd.f32 %v6493_v6, %v12431_v17  ;;  %v4466_v47 = vadd.f32 %v14272_v20, %v4254_v35  ;;  %v14276_v60 = vld [vmem:[#allocation347_spill] sm:$0xff]  ;;  %v14277_v15 = vld [vmem:[#allocation350_spill] sm:$0xff]  ;;  %v14278_v24 = vld [vmem:[#allocation349_spill] sm:$0xff] }
 0xe83   : > { %v4465_v23 = vadd.f32 %v14273_v2, %v4253_v37  ;;  %v4468_v61 = vadd.f32 %v14274_v0, %v4256_v16  ;;  %v4761_v58 = vmul.f32 %v7261_v50, %v14275_v12  ;;  %v4467_v1 = vadd.f32 %v14276_v60, %v4255_v42  ;;  %v7262_v49 = vld [vmem:[#allocation2 + $0x128] sm:$0xff]  ;;  %v6515_v32 = vpop.permute.xlu0 %6514  ;;  %v14281_v3 = vld [vmem:[#allocation377_spill] sm:$0xff]  ;;  %v7263_v42 = vld [vmem:[#allocation2 + $0x110] sm:$0xff] }
 0xe84   : > { %v4470_v22 = vadd.f32 %v14277_v15, %v4258_v38  ;;  %v4762_v13 = vmul.f32 %v7262_v49, %v14030_v41  ;;  %v6620_v17 = vsel %vm6614_vm10, %v6585_v5, 0.0  ;;  %v4469_v8 = vadd.f32 %v14278_v24, %v4257_v21  ;;  %v14279_v31 = vld [vmem:[#allocation351_spill] sm:$0xff]  ;;  %v7264_v11 = vld [vmem:[#allocation2 + $0x140] sm:$0xff]  ;;  %v12755_v55 = vpop.permute.xlu1 %6332  ;;  %v14285_v2 = vld [vmem:[#allocation380_spill] sm:$0xff] }
 0xe85   : > { %v4471_v35 = vadd.f32 %v14279_v31, %v4259_v51  ;;  %v4676_v37 = vadd.f32 %v14280_v14, %v4464_v34  ;;  %v12749_v16 = vadd.f32 %v6620_v17, %v12651_v33  ;;  %v4677_v56 = vadd.f32 %v14281_v3, %v4465_v23  ;;  %v14282_v21 = vld [vmem:[#allocation374_spill] sm:$0xff]  ;;  %v14283_v19 = vld [vmem:[#allocation375_spill] sm:$0xff]  ;;  %v14288_v17 = vld [vmem:[#allocation381_spill] sm:$0xff] }
 0xe86   : > { %v4759_v38 = vmul.f32 %v7263_v42, %v14174_v46  ;;  %v4765_v39 = vmul.f32 %v7264_v11, %v14275_v12  ;;  %v6596_v6 = vadd.f32 %v6515_v32, %v12509_v59  ;;  %v4674_v51 = vadd.f32 %v14282_v21, %v4462_v43  ;;  %v14284_v5 = vld [vmem:[#allocation378_spill] sm:$0xff]  ;;  %v14286_v23 = vld [vmem:[#allocation379_spill] sm:$0xff]  ;;  %v14289_v24 = vld [vmem:[#allocation412_spill] sm:$0xff] }
 0xe87   : > { %v4675_v34 = vadd.f32 %v14283_v19, %v4463_v40  ;;  %v4678_v33 = vadd.f32 %v14284_v5, %v4466_v47  ;;  %v4793_v20 = vadd.f32 %v4761_v58, %v4676_v37  ;;  %v4680_v0 = vadd.f32 %v14285_v2, %v4468_v61  ;;  %v14287_v49 = vld [vmem:[#allocation382_spill] sm:$0xff]  ;;  %v6529_v40 = vpop.permute.xlu0 %6528  ;;  %v14290_v14 = vld [vmem:[#allocation384_spill] sm:$0xff]  ;;  %v14291_v37 = vld [vmem:[#allocation413_spill] sm:$0xff] }
 0xe88   : > { %v4679_v50 = vadd.f32 %v14286_v23, %v4467_v1  ;;  %v4794_v60 = vadd.f32 %v4762_v13, %v4677_v56  ;;  %v6657_v15 = vsel %vm6614_vm10, %v6596_v6, 0.0  ;;  %v4682_v12 = vadd.f32 %v14287_v49, %v4470_v22  ;;  %v6501_v1 = vpop.permute.xlu1 %6500  ;;  %v7265_v13 = vld [vmem:[#allocation2 + $0x118] sm:$0xff]  ;;  %v7266_v56 = vld [vmem:[#allocation2 + $0x130] sm:$0xff]  ;;  %v7270_v2 = vld [vmem:[#allocation2 + $0x140] sm:$0xff] }
 0xe89   : > { %v4681_v59 = vadd.f32 %v14288_v17, %v4469_v8  ;;  %v5005_v31 = vadd.f32 %v14289_v24, %v4793_v20  ;;  %v12767_v43 = vadd.f32 %v6657_v15, %v12699_v18  ;;  %v4683_v47 = vadd.f32 %v14290_v14, %v4471_v35  ;;  %v14292_v8 = vld [vmem:[#allocation444_spill] sm:$0xff]  ;;  %v14295_v17 = vld [vmem:[#allocation477_spill] sm:$0xff] }
 0xe8a   : > { %v4791_v58 = vadd.f32 %v4759_v38, %v4674_v51  ;;  %v5006_v61 = vadd.f32 %v14291_v37, %v4794_v60  ;;  %v4797_v32 = vadd.f32 %v4765_v39, %v4680_v0  ;;  %v4760_v3 = vmul.f32 %v7265_v13, %v14040_v30  ;;  %v7267_v18 = vld [vmem:[#allocation2 + $0x138] sm:$0xff]  ;;  %v7268_v21 = vld [vmem:[#allocation2 + $0x150] sm:$0xff]  ;;  %v7269_v38 = vld [vmem:[#allocation2 + $0x148] sm:$0xff] }
 0xe8b   : > { %v4763_v22 = vmul.f32 %v7266_v56, %v14174_v46  ;;  %v5217_v42 = vadd.f32 %v14292_v8, %v5005_v31  ;;  %v6589_v11 = vadd.f32 %v6501_v1, %v12475_v4  ;;  %v4764_v6 = vmul.f32 %v7267_v18, %v14040_v30  ;;  %v14293_v51 = vld [vmem:[#allocation445_spill] sm:$0xff]  ;;  %v14294_v5 = vld [vmem:[#allocation476_spill] sm:$0xff]  ;;  %v6509_v60 = vpop.permute.xlu0 %6508  ;;  %v7272_v1 = vld [vmem:[#allocation2 + $0x148] sm:$0xff] }
 0xe8c   : > { %v4767_v35 = vmul.f32 %v7268_v21, %v14174_v46  ;;  %v4766_v39 = vmul.f32 %v7269_v38, %v14030_v41  ;;  %v5218_v19 = vadd.f32 %v14293_v51, %v5006_v61  ;;  %v5726_v0 = vmul.f32 %v7270_v2, %v14036_v27  ;;  %v7271_v15 = vld [vmem:[#allocation2 + $0x158] sm:$0xff]  ;;  %v6527_v31 = vpop.permute.xlu1 %6526  ;;  %v14298_v18 = vld [vmem:[#allocation410_spill] sm:$0xff] }
 0xe8d   : > { %v5429_v20 = vadd.f32 %v14294_v5, %v5217_v42  ;;  %v6603_v23 = vadd.f32 %v6529_v40, %v12612_v52  ;;  %v6633_v4 = vsel %vm6614_vm10, %v6589_v11, 0.0  ;;  %v4768_v49 = vmul.f32 %v7271_v15, %v14040_v30  ;;  %v14296_v37 = vld [vmem:[#allocation508_spill] sm:$0xff]  ;;  %v14297_v8 = vld [vmem:[#allocation509_spill] sm:$0xff] }
 0xe8e   : > { %v5430_v46 = vadd.f32 %v14295_v17, %v5218_v19  ;;  %v12786_v24 = vadd.f32 %v6633_v4, %v12687_v29  ;;  %v6593_v41 = vadd.f32 %v6509_v60, %v12515_v28  ;;  %v4792_v14 = vadd.f32 %v4760_v3, %v4675_v34  ;;  %v14300_v19 = vld [vmem:[#allocation560_spill] sm:$0xff]  ;;  %v14303_v4 = vld [vmem:[#allocation417_spill] sm:$0xff] }
 0xe8f   : > { %v5641_v61 = vadd.f32 %v14296_v37, %v5429_v20  ;;  %v5727_v52 = vmul.f32 %v7272_v1, %v14045_v53  ;;  %v6602_v40 = vadd.f32 %v6527_v31, %v12569_v10  ;;  %v4795_v13 = vadd.f32 %v4763_v22, %v4678_v33  ;;  %v6535_v3 = vpop.permute.xlu0 %6534  ;;  %v14299_v22 = vld [vmem:[#allocation411_spill] sm:$0xff]  ;;  %v14307_v17 = vld [vmem:[#allocation561_spill] sm:$0xff]  ;;  %v14310_v37 = vld [vmem:[#allocation448_spill] sm:$0xff] }
 0xe90   : > { %v4796_v56 = vadd.f32 %v4764_v6, %v4679_v50  ;;  %v5642_v30 = vadd.f32 %v14297_v8, %v5430_v46  ;;  %v6646_v42 = vsel %vm6614_vm10, %v6593_v41, 0.0  ;;  %v6681_v29 = vsel %vm6614_vm10, %v6603_v23, 0.0  ;;  %v12804_v50 = vpop.permute.xlu1 %6326  ;;  %v14308_v41 = vld [vmem:[#allocation592_spill] sm:$0xff]  ;;  %v14311_v1 = vld [vmem:[#allocation449_spill] sm:$0xff] }
 0xe91   : > { %v5758_v11 = vadd.f32 %v5726_v0, %v5641_v61  ;;  %v12796_v28 = vadd.f32 %v6646_v42, %v12696_v45  ;;  %v6680_v34 = vsel %vm6614_vm10, %v6602_v40, 0.0  ;;  %v5003_v21 = vadd.f32 %v14298_v18, %v4791_v58  ;;  %v14301_v45 = vld [vmem:[#allocation414_spill] sm:$0xff]  ;;  %v14302_v0 = vld [vmem:[#allocation416_spill] sm:$0xff] }
 0xe92   : > { %v12800_v38 = vadd.f32 %v4767_v35, %v4682_v12  ;;  %v4798_v10 = vadd.f32 %v4766_v39, %v4681_v59  ;;  %v12802_v33 = vadd.f32 %v6681_v29, %v6680_v34  ;;  %v5004_v6 = vadd.f32 %v14299_v22, %v4792_v14  ;;  %v14304_v58 = vld [vmem:[#allocation442_spill] sm:$0xff]  ;;  %v14305_v35 = vld [vmem:[#allocation415_spill] sm:$0xff]  ;;  %v14316_v22 = vld [vmem:[#allocation481_spill] sm:$0xff] }
 0xe93   : > { %v4800_v51 = vadd.f32 %v4768_v49, %v4683_v47  ;;  %v5970_v5 = vadd.f32 %v14300_v19, %v5758_v11  ;;  %v5759_v20 = vadd.f32 %v5727_v52, %v5642_v30  ;;  %v5007_v2 = vadd.f32 %v14301_v45, %v4795_v13  ;;  %v14306_v39 = vld [vmem:[#allocation443_spill] sm:$0xff]  ;;  %v12816_v47 = vpop.permute.xlu0 %6320  ;;  %v14309_v49 = vld [vmem:[#allocation446_spill] sm:$0xff]  ;;  %v14313_v30 = vld [vmem:[#allocation593_spill] sm:$0xff] }
 0xe94   : > { %v5009_v23 = vadd.f32 %v14302_v0, %v4797_v32  ;;  %v5010_v60 = vadd.f32 %v14303_v4, %v4798_v10  ;;  %v5215_v12 = vadd.f32 %v14304_v58, %v5003_v21  ;;  %v5008_v59 = vadd.f32 %v14305_v35, %v4796_v56  ;;  %v14312_v52 = vld [vmem:[#allocation474_spill] sm:$0xff]  ;;  %v6523_v13 = vpop.permute.xlu1 %6522  ;;  %v7273_v8 = vld [vmem:[#allocation2 + $0x130] sm:$0xff] }
 0xe95   : > { %v5216_v15 = vadd.f32 %v14306_v39, %v5004_v6  ;;  %v5971_v46 = vadd.f32 %v14307_v17, %v5759_v20  ;;  %v6182_v31 = vadd.f32 %v14308_v41, %v5970_v5  ;;  %v5219_v14 = vadd.f32 %v14309_v49, %v5007_v2  ;;  %v14314_v34 = vld [vmem:[#allocation478_spill] sm:$0xff]  ;;  %v14315_v21 = vld [vmem:[#allocation480_spill] sm:$0xff] }
 0xe96   : > { %v5221_v61 = vadd.f32 %v14310_v37, %v5009_v23  ;;  %v5222_v32 = vadd.f32 %v14311_v1, %v5010_v60  ;;  %v5427_v40 = vadd.f32 %v14312_v52, %v5215_v12  ;;  %v5724_v56 = vmul.f32 %v7273_v8, %v14043_v7  ;;  %v7274_v19 = vld [vmem:[#allocation2 + $0x160] sm:$0xff]  ;;  %v7276_v41 = vld [vmem:[#allocation2 + $0x168] sm:$0xff]  ;;  %v7277_v8 = vld [vmem:[#allocation2 + $0x138] sm:$0xff] }
 0xe97   : > { %v6183_v42 = vadd.f32 %v14313_v30, %v5971_v46  ;;  %v6394_v11 = vadd.f32 %v12669_v48, %v6182_v31  ;;  %v6600_v29 = vadd.f32 %v6523_v13, %v12549_v54  ;;  %v5431_v18 = vadd.f32 %v14314_v34, %v5219_v14  ;;  %v14317_v20 = vld [vmem:[#allocation506_spill] sm:$0xff]  ;;  %v6517_v4 = vpop.permute.xlu0 %6516  ;;  %v14318_v48 = vld [vmem:[#allocation512_spill] sm:$0xff]  ;;  %v14321_v14 = vld [vmem:[#allocation513_spill] sm:$0xff] }
 0xe98   : > { %v5433_v10 = vadd.f32 %v14315_v21, %v5221_v61  ;;  %v5434_v6 = vadd.f32 %v14316_v22, %v5222_v32  ;;  %v5730_v5 = vmul.f32 %v7274_v19, %v14036_v27  ;;  %v5639_v45 = vadd.f32 %v14317_v20, %v5427_v40  ;;  %v7275_v54 = vld [vmem:[#allocation2 + $0x150] sm:$0xff]  ;;  %v6537_v39 = vpop.permute.xlu1 %6536  ;;  %v14320_v31 = vld [vmem:[#allocation510_spill] sm:$0xff] }
 0xe99   : > { %v6395_v2 = vadd.f32 %v12701_v25, %v6183_v42  ;;  %v6606_v0 = vadd.f32 %v6535_v3, %v6394_v11  ;;  %v6670_v23 = vsel %vm6614_vm10, %v6600_v29, 0.0  ;;  %v5728_v58 = vmul.f32 %v7275_v54, %v14043_v7  ;;  %v14319_v27 = vld [vmem:[#allocation447_spill] sm:$0xff]  ;;  %v14322_v32 = vld [vmem:[#allocation558_spill] sm:$0xff] }
 0xe9a   : > { %v5645_v60 = vadd.f32 %v14318_v48, %v5433_v10  ;;  %v12836_v12 = vadd.f32 %v6670_v23, %v12732_v63  ;;  %v6597_v35 = vadd.f32 %v6517_v4, %v12554_v62  ;;  %v5220_v17 = vadd.f32 %v14319_v27, %v5008_v59  ;;  %v14323_v13 = vld [vmem:[#allocation475_spill] sm:$0xff]  ;;  %v14324_v29 = vld [vmem:[#allocation418_spill] sm:$0xff]  ;;  %v7278_v23 = vld [vmem:[#allocation2 + $0x158] sm:$0xff] }
 0xe9b   : > { %v5756_v46 = vadd.f32 %v5724_v56, %v5639_v45  ;;  %v5731_v25 = vmul.f32 %v7276_v41, %v14045_v53  ;;  %v6607_v3 = vadd.f32 %v6537_v39, %v6395_v2  ;;  %v5643_v49 = vadd.f32 %v14320_v31, %v5431_v18  ;;  %v6543_v40 = vpop.permute.xlu0 %6542  ;;  %v14325_v18 = vld [vmem:[#allocation564_spill] sm:$0xff]  ;;  %v14330_v2 = vld [vmem:[#allocation562_spill] sm:$0xff]  ;;  %v14331_v48 = vld [vmem:[#allocation565_spill] sm:$0xff] }
 0xe9c   : > { %v5646_v37 = vadd.f32 %v14321_v14, %v5434_v6  ;;  %v5762_v61 = vadd.f32 %v5730_v5, %v5645_v60  ;;  %v6659_v1 = vsel %vm6614_vm10, %v6597_v35, 0.0  ;;  %v6693_v52 = vsel %vm6614_vm10, %v6606_v0, 0.0  ;;  %v12852_v11 = vpop.permute.xlu1 %6334  ;;  %v14327_v6 = vld [vmem:[#allocation419_spill] sm:$0xff]  ;;  %v14332_v54 = vld [vmem:[#allocation606_spill] sm:$0xff]  ;;  %v14337_v14 = vld [vmem:[#allocation613_spill] sm:$0xff] }
 0xe9d   : > { %v5968_v63 = vadd.f32 %v14322_v32, %v5756_v46  ;;  %v12847_v62 = vadd.f32 %v6659_v1, %v12767_v43  ;;  %v6694_v59 = vsel %vm6614_vm10, %v6607_v3, 0.0  ;;  %v5428_v53 = vadd.f32 %v14323_v13, %v5216_v15  ;;  %v14326_v43 = vld [vmem:[#allocation590_spill] sm:$0xff]  ;;  %v14328_v5 = vld [vmem:[#allocation479_spill] sm:$0xff] }
 0xe9e   : > { %v5725_v56 = vmul.f32 %v7277_v8, %v14057_v26  ;;  %v5760_v30 = vadd.f32 %v5728_v58, %v5643_v49  ;;  %v6695_v42 = vadd.f32 %v6694_v59, %v6693_v52  ;;  %v5011_v34 = vadd.f32 %v14324_v29, %v12800_v38  ;;  %v14329_v15 = vld [vmem:[#allocation507_spill] sm:$0xff]  ;;  %v14333_v39 = vld [vmem:[#allocation450_spill] sm:$0xff] }
 0xe9f   : > { %v5974_v21 = vadd.f32 %v14325_v18, %v5762_v61  ;;  %v5763_v10 = vadd.f32 %v5731_v25, %v5646_v37  ;;  %v6180_v22 = vadd.f32 %v14326_v43, %v5968_v63  ;;  %v5012_v19 = vadd.f32 %v14327_v6, %v4800_v51  ;;  %v6329_v35 = vpop.permute.xlu0 %6328  ;;  %v14334_v46 = vld [vmem:[#allocation451_spill] sm:$0xff]  ;;  %v14338_v32 = vld [vmem:[#allocation482_spill] sm:$0xff] }
 0xea0   : > { %v5432_v20 = vadd.f32 %v14328_v5, %v5220_v17  ;;  %v5640_v45 = vadd.f32 %v14329_v15, %v5428_v53  ;;  %v5972_v0 = vadd.f32 %v14330_v2, %v5760_v30  ;;  %v5729_v4 = vmul.f32 %v7278_v23, %v14057_v26  ;;  %v14335_v17 = vld [vmem:[#allocation594_spill] sm:$0xff]  ;;  %v6531_v3 = vpop.permute.xlu1 %6530  ;;  %v14336_v31 = vld [vmem:[#allocation511_spill] sm:$0xff]  ;;  %v14344_v23 = vld [vmem:[#allocation516_spill] sm:$0xff] }
 0xea1   : > { %v5975_v60 = vadd.f32 %v14331_v48, %v5763_v10  ;;  %v6186_v38 = vadd.f32 %v14332_v54, %v5974_v21  ;;  %v6392_v58 = vadd.f32 %v12735_v36, %v6180_v22  ;;  %v5223_v27 = vadd.f32 %v14333_v39, %v5011_v34  ;;  %v14339_v52 = vld [vmem:[#allocation483_spill] sm:$0xff]  ;;  %v14341_v18 = vld [vmem:[#allocation514_spill] sm:$0xff] }
 0xea2   : > { %v5224_v51 = vadd.f32 %v14334_v46, %v5012_v19  ;;  %v5757_v41 = vadd.f32 %v5725_v56, %v5640_v45  ;;  %v6184_v25 = vadd.f32 %v14335_v17, %v5972_v0  ;;  %v5644_v49 = vadd.f32 %v14336_v31, %v5432_v20  ;;  %v14340_v59 = vld [vmem:[#allocation559_spill] sm:$0xff] }
 0xea3   : > { %v6187_v37 = vadd.f32 %v14337_v14, %v5975_v60  ;;  %v6398_v61 = vadd.f32 %v12712_v57, %v6186_v38  ;;  %v6604_v1 = vadd.f32 %v6531_v3, %v6392_v58  ;;  %v5435_v63 = vadd.f32 %v14338_v32, %v5223_v27  ;;  %v6539_v34 = vpop.permute.xlu0 %6538  ;;  %v14342_v10 = vld [vmem:[#allocation591_spill] sm:$0xff]  ;;  %v14345_v38 = vld [vmem:[#allocation604_spill] sm:$0xff] }
 0xea4   : > { %v5436_v36 = vadd.f32 %v14339_v52, %v5224_v51  ;;  %v5969_v13 = vadd.f32 %v14340_v59, %v5757_v41  ;;  %v6396_v53 = vadd.f32 %v12804_v50, %v6184_v25  ;;  %v5761_v8 = vadd.f32 %v5729_v4, %v5644_v49  ;;  %v6545_v6 = vpop.permute.xlu1 %6544  ;;  %v14343_v19 = vld [vmem:[#allocation563_spill] sm:$0xff] }
 0xea5   : > { %v6399_v56 = vadd.f32 %v12755_v55, %v6187_v37  ;;  %v6610_v30 = vadd.f32 %v6543_v40, %v6398_v61  ;;  %v6683_v29 = vsel %vm6614_vm10, %v6604_v1, 0.0  ;;  %v5647_v21 = vadd.f32 %v14341_v18, %v5435_v63  ;;  %v7279_v20 = vld [vmem:[#allocation2 + $0x170] sm:$0xff]  ;;  %v14349_v18 = vld [vmem:[#allocation9_spill] sm:$0xff] }
 0xea6   : > { %v6181_v57 = vadd.f32 %v14342_v10, %v5969_v13  ;;  %v6684_v43 = vadd.f32 %v6683_v29, %v12802_v33  ;;  %v6608_v22 = vadd.f32 %v6539_v34, %v6396_v53  ;;  %v5973_v5 = vadd.f32 %v14343_v19, %v5761_v8  ;;  %v14347_v63 = vld [vmem:[#allocation615_spill] sm:$0xff] }
 0xea7   : > { %v5732_v50 = vmul.f32 %v7279_v20, %v14043_v7  ;;  %v6622_v15 = vrot.slane %v12749_v16, 4  ;;  %v6611_v55 = vadd.f32 %v6545_v6, %v6399_v56  ;;  %v6635_v40 = vrot.slane %v12786_v24, 4  ;;  %v6533_v54 = vpop.permute.xlu0 %6532  ;;  %v14348_v53 = vld [vmem:[#allocation567_spill] sm:$0xff] }
 0xea8   : > { %v6648_v45 = vrot.slane %v12796_v28, 4  ;;  %v6393_v2 = vadd.f32 %v12816_v47, %v6181_v57  ;;  %v6696_v0 = vsel %vm6614_vm10, %v6608_v22, 0.0  ;;  %v5648_v33 = vadd.f32 %v14344_v23, %v5436_v36  ;;  %v6525_v46 = vpop.permute.xlu1 %6524 }
 0xea9   : > { %v6706_v4 = vsel %vm6614_vm10, %v6610_v30, 0.0  ;;  %v6697_v48 = vadd.f32 %v6696_v0, %v6695_v42  ;;  %v6707_v60 = vsel %vm6614_vm10, %v6611_v55, 0.0  ;;  %v5733_v7 = vmul.f32 %v12392_v9, %v14057_v26  ;;  %v14346_v26 = vld [vmem:[#allocation566_spill] sm:$0xff] }
 0xeaa   : > { %v6185_v58 = vadd.f32 %v14345_v38, %v5973_v5  ;;  %v6708_v39 = vadd.f32 %v6707_v60, %v6706_v4  ;;  %v6605_v27 = vadd.f32 %v6533_v54, %v6393_v2  ;;  %v5764_v51 = vadd.f32 %v5732_v50, %v5647_v21 }
 0xeab   : > { %v6623_v47 = vadd.f32 %v6622_v15, %v12749_v16  ;;  %v6661_v41 = vrot.slane %v12847_v62, 4  ;;  %v6601_v17 = vadd.f32 %v6525_v46, %v12593_v44  ;;  %v6636_v42 = vadd.f32 %v6635_v40, %v12786_v24  ;;  %v6541_v37 = vpop.permute.xlu0 %6540 }
 0xeac   : > { %v6649_v25 = vadd.f32 %v6648_v45, %v12796_v28  ;;  %v6397_v3 = vadd.f32 %v6329_v35, %v6185_v58  ;;  %v6685_v31 = vsel %vm6614_vm10, %v6605_v27, 0.0  ;;  %v5976_v9 = vadd.f32 %v14346_v26, %v5764_v51  ;;  %v6337_v32 = vpop.permute.xlu1 %6336 }
 0xead   : > { %v6686_v49 = vadd.f32 %v6685_v31, %v6684_v43  ;;  %v6672_v14 = vsel %vm6614_vm10, %v6601_v17, 0.0  ;;  %v5765_v61 = vadd.f32 %v5733_v7, %v5648_v33  ;;  %v6624_v52 = vrot.slane %v6623_v47, 2 }
 0xeae   : > { %v6673_v16 = vadd.f32 %v6672_v14, %v12836_v12  ;;  %v6609_v1 = vadd.f32 %v6541_v37, %v6397_v3  ;;  %v6188_v44 = vadd.f32 %v14347_v63, %v5976_v9  ;;  %v6662_v24 = vadd.f32 %v6661_v41, %v12847_v62 }
 0xeaf   : > { %v6687_v28 = vrot.slane %v6686_v49, 4  ;;  %v6637_v35 = vrot.slane %v6636_v42, 2  ;;  %v6650_v36 = vrot.slane %v6649_v25, 2  ;;  %v5977_v8 = vadd.f32 %v14348_v53, %v5765_v61 }
 0xeb0   : > { %v6674_v59 = vrot.slane %v6673_v16, 4  ;;  %v6698_v13 = vsel %vm6614_vm10, %v6609_v1, 0.0  ;;  %v6400_v56 = vadd.f32 %v12852_v11, %v6188_v44  ;;  %v6547_v34 = vpop.permute.xlu1 %6546  ;;  %v6663_v10 = vrot.slane %v6662_v24, 2 }
 0xeb1   : > { %v6688_v30 = vadd.f32 %v6687_v28, %v6686_v49  ;;  %v6699_v29 = vadd.f32 %v6698_v13, %v6697_v48  ;;  %v6189_v21 = vadd.f32 %v14349_v18, %v5977_v8  ;;  %v6625_v62 = vadd.f32 %v6624_v52, %v6623_v47 }
 0xeb2   : > { %v6675_v12 = vadd.f32 %v6674_v59, %v6673_v16  ;;  %v6612_v43 = vadd.f32 %v6547_v34, %v6400_v56  ;;  %v6638_v22 = vadd.f32 %v6637_v35, %v6636_v42  ;;  %v6651_v6 = vadd.f32 %v6650_v36, %v6649_v25 }
 0xeb3   : > { %v6700_v57 = vrot.slane %v6699_v29, 4  ;;  %v6689_v5 = vrot.slane %v6688_v30, 2  ;;  %v6401_v50 = vadd.f32 %v6337_v32, %v6189_v21  ;;  %v6664_v40 = vadd.f32 %v6663_v10, %v6662_v24 }
 0xeb4   : > { %v6676_v19 = vrot.slane %v6675_v12, 2  ;;  %v6709_v15 = vsel %vm6614_vm10, %v6612_v43, 0.0  ;;  %v6549_v11 = vpop.permute.xlu1 %6548  ;;  %v6626_v0 = vrot.slane %v6625_v62, 1  ;;  %v6639_v23 = vrot.slane %v6638_v22, 1 }
 0xeb5   : > { %v6701_v20 = vadd.f32 %v6700_v57, %v6699_v29  ;;  %v6710_v55 = vadd.f32 %v6709_v15, %v6708_v39  ;;  %v6613_v2 = vadd.f32 %v6549_v11, %v6401_v50  ;;  %v6652_v4 = vrot.slane %v6651_v6, 1 }
 0xeb6   : > { %v6677_v33 = vadd.f32 %v6676_v19, %v6675_v12  ;;  %v6690_v48 = vadd.f32 %v6689_v5, %v6688_v30  ;;  %v6665_v38 = vrot.slane %v6664_v40, 1  ;;  %v6627_v51 = vadd.f32 %v6626_v0, %v6625_v62 }
 0xeb7   : > { %v6702_v45 = vrot.slane %v6701_v20, 2  ;;  %v6711_v54 = vsel %vm6614_vm10, %v6613_v2, 0.0  ;;  %v6640_v39 = vadd.f32 %v6639_v23, %v6638_v22  ;;  %v6653_v47 = vadd.f32 %v6652_v4, %v6651_v6 }
 0xeb8   : > { %v6712_v7 = vadd.f32 %v6711_v54, %v6710_v55  ;;  %v6678_v58 = vrot.slane %v6677_v33, 1  ;;  %v6691_v41 = vrot.slane %v6690_v48, 1  ;;  %v6666_v25 = vadd.f32 %v6665_v38, %v6664_v40 }
 0xeb9   : > { %v6703_v60 = vadd.f32 %v6702_v45, %v6701_v20 }
 0xeba   : > { %v6713_v46 = vrot.slane %v6712_v7, 4  ;;  %v6679_v9 = vadd.f32 %v6678_v58, %v6677_v33  ;;  %v6692_v37 = vadd.f32 %v6691_v41, %v6690_v48 }
 0xebb   : > { %v6704_v27 = vrot.slane %v6703_v60, 1 }
 0xebc   : > { %v6714_v17 = vadd.f32 %v6713_v46, %v6712_v7  ;;  %v6727_v42 = vpop.permute.xlu0 %6726 }
 0xebd   : > { %v6729_v3 = vadd.f32 %v6727_v42, %v6627_v51  ;;  %v6730_v31 = vadd.f32 %v6727_v42, %v6640_v39  ;;  %v6731_v26 = vadd.f32 %v6727_v42, %v6653_v47  ;;  %v6705_v49 = vadd.f32 %v6704_v27, %v6703_v60 }
 0xebe   : > { %v6715_v14 = vrot.slane %v6714_v17, 2  ;;  %v6732_v61 = vadd.f32 %v6727_v42, %v6666_v25  ;;  %v6733_v32 = vadd.f32 %v6727_v42, %v6679_v9  ;;  %v6734_v44 = vadd.f32 %v6727_v42, %v6692_v37 }
 0xebf   : > { %v6746_v16 = vsel %vm6745_vm11, %v6730_v31, %v6729_v3  ;;  %v6735_v28 = vadd.f32 %v6727_v42, %v6705_v49 }
 0xec0   : > { %v6716_v1 = vadd.f32 %v6715_v14, %v6714_v17  ;;  %v6748_v63 = vsel %vm6747_vm12, %v6731_v26, %v6746_v16 }
 0xec1   : > { %v6750_v52 = vsel %vm6749_vm13, %v6732_v61, %v6748_v63 }
 0xec2   : > { %v6717_v24 = vrot.slane %v6716_v1, 1  ;;  %v6752_v35 = vsel %vm6751_vm14, %v6733_v32, %v6750_v52 }
 0xec3   : > { %v6754_v36 = vsel %vm6753_vm15, %v6734_v44, %v6752_v35 }
 0xec4   : > { %v6718_v59 = vadd.f32 %v6717_v24, %v6716_v1  ;;  %v6756_v13 = vsel %vm6755_vm0, %v6735_v28, %v6754_v36 }
 0xec6   : > { %v6736_v53 = vadd.f32 %v6727_v42, %v6718_v59 }
 0xec8   : > { %v6758_v8 = vsel %vm6757_vm1, %v6736_v53, %v6756_v13 }
 0xec9   : > { %6760 = vst.msk [vmem:[%s287_s22] sm:$0xff] %vm6614_vm10, %v6758_v8 }
 0xeca   : > { %7293 = shalt.err (!%p7290_p6)
}
 0xecb   : > { %s7294_s0 = scalar_lea.hbm %s12923_s19, 128  ;;  %s7298_s1 = scalar_lea.hbm %s12986_s7, 512 }
 0xecc   : > { %p7295_p7 = scmp.ne.s32.totalorder %s12923_s19, %s7294_s0  ;;  %p7299_p11 = scmp.lt.u32.totalorder %s12923_s19, %s12986_s7 }
 0xecd   : > { %p7300_p12 = scmp.lt.u32.totalorder %s7298_s1, %s7294_s0  ;;  %p7302_p0 = scmp.lt.u32.totalorder %s7294_s0, %s12923_s19 }
 0xece   : > { %p7296_p9 = pnand %p7295_p7, %p7478_p3 }
 0xecf   : > { %p7301_p13 = por %p7300_p12, %p7299_p11 }
 0xed0   : > { %p7297_p10 = pneg %p7296_p9 }
 0xed1   : > { %p7303_p1 = por %p7302_p0, %p7301_p13 }
 0xed3   : > { %p7304_p2 = pnand %p7303_p1, %p7297_p10 }
 0xed5   : > { %7307 = shalt.err (!%p7304_p2)
}
 0xed6   : > { %7021 = dma.vmem_to_hbm [thread:$0]  (%p7478_p3), %s12925_s13, 128, %s12923_s19, %s6762_s29  }
 0xed7 PF: > { %p7027_p4 = scmp.ge.s32.totalorder %s7374_s10, 2  ;;  %s6789_s22 = sand.u32 1, %s7346_s26  }
 0xed8   : > { %s6790_s11 = scalar_lea.sflag [#allocation5], %s6789_s22 }
 0xed9   : > { %p7024_p5 = pnand %p7027_p4, %p7487_p8 }
 0xedb   : > { %7341 = dma.done.wait (!%p7024_p5), %s6790_s11, 128  }
 0xedc   : > { %7343 = vsyncadd (!%p7024_p5), %s6790_s11, 4294967168  ;;  %s22_s10 = sadd.s32 1, %s7374_s10   ;;  %s14350_s15 = sld [smem:[#allocation7_spill]] }
 0xedd   : > { %p19_p6 = scmp.ge.s32.totalorder %s22_s10, 6   ;;  %s14351_s26 = smov %s7350_s27 }
 0xede   : > { %s14352_s27 = smov %s7354_s28  ;;  %s14353_s28 = smov %s7496_s20 }
 0xedf   : > { %s14354_s29 = smov %s7366_s8  ;;  %s14355_s30 = smov %s7370_s9 }
 0xee0   : > { %s14356_s8 = smov %s14359_s12  ;;  %21 = sbr.rel (!%p19_p6) target bundleno = 8 (0x8), region = 88 }
 0xee2   : > { %s14357_s9 = smov %s14350_s15 }
 0xee7   :  { %6795 = vsyncpa [#allocation5], 1 }
 0xee8   :  { %6797 = vsyncpa [#allocation5 + $0x1], 1 }

</bundles_post_ra>
